<compile_context>
chip_gen: v7x
topology: tpu7x:2x2x1
jax: 0.10.0
libtpu: 0.0.40
codegen_flags: <defaults>
</compile_context>

<pallas_src>
import numpy as np
import jax
import jax.numpy as jnp
from jax.experimental import pallas as pl
from jax.experimental.pallas import tpu as pltpu

LATENT_DIM = 32      # latent_dim is a ctor arg of the module; 32 keeps lanes aligned
HIDDEN = 1024        # fixed by the module
IMG = 784            # fixed by the module
EPS = 1e-6
LOG_EPS = float(np.log(EPS))        # torch.clamp lower bound, in log space
LOG_1M_EPS = float(np.log1p(-EPS))  # torch.clamp upper bound, in log space

COMPUTE_DTYPE = jnp.bfloat16        # MXU input dtype; accumulation stays f32


# ------------------------- shared math (kernel + reference) ---------------- #

def _mxu_dot(a, w):
    # bf16 x bf16 -> f32 accumulate on the MXU (single pass; replaces HIGHEST).
    return jnp.dot(a.astype(COMPUTE_DTYPE), w, preferred_element_type=jnp.float32)


def _encode(y, w1, b1, w2, b2, wms, bms):
    h1 = jnp.maximum(_mxu_dot(y, w1) + b1, 0.0)          # (N, 1024)
    h2 = jnp.maximum(_mxu_dot(h1, w2) + b2, 0.0)         # (N, 1024)
    ms = _mxu_dot(h2, wms) + bms                         # fused mean|std head, (N, 2L)
    half = ms.shape[1] // 2
    mean = ms[:, :half]
    std = jnp.abs(ms[:, half:]) + EPS
    return mean, std


def _generate_logits(x1, gw1, gb1, gw2, gb2, gw3, gb3):
    h1 = jnp.maximum(_mxu_dot(x1, gw1) + gb1, 0.0)       # (R, 1024)
    h2 = jnp.maximum(_mxu_dot(h1, gw2) + gb2, 0.0)       # (R, 1024)
    return _mxu_dot(h2, gw3) + gb3                       # (R, 784)


def _bernoulli_ll(logits, y):
    # log(clamp(sigmoid(z),eps,1-eps))*y + log(clamp(1-sigmoid(z),eps,1-eps))*(1-y)
    # one exp + one log per element (EUP) instead of sigmoid + divide + 2 logs.
    sp_neg = jnp.maximum(-logits, 0.0) + jnp.log(1.0 + jnp.exp(-jnp.abs(logits)))
    log_p = jnp.clip(-sp_neg, LOG_EPS, LOG_1M_EPS)             # log sigmoid(z), clamped
    log_1mp = jnp.clip(-sp_neg - logits, LOG_EPS, LOG_1M_EPS)  # log(1-sigmoid(z)), clamped
    return y * log_p + (1.0 - y) * log_1mp


# ----------------------------------- kernels ------------------------------- #

def encoder_kernel(y_ref, w1_ref, b1_ref, w2_ref, b2_ref, wms_ref, bms_ref,
                   mean_ref, std_ref):
    mean, std = _encode(y_ref[...], w1_ref[...], b1_ref[...],
                        w2_ref[...], b2_ref[...], wms_ref[...], bms_ref[...])
    mean_ref[...] = mean
    std_ref[...] = std


def decoder_kernel(x_ref, mean_ref, std_ref, y_ref,
                   gw1_ref, gb1_ref, gw2_ref, gb2_ref, gw3_ref, gb3_ref,
                   x1_ref, dw_ref):
    # One grid step == one row tile of the folded (M*N, .) problem.
    x = x_ref[...]                                   # (TR, L)
    mean = mean_ref[...]                             # (TR, L)
    std = std_ref[...]                               # (TR, L)
    x1 = x * std + mean
    x1_ref[...] = x1

    logits = _generate_logits(x1, gw1_ref[...], gb1_ref[...], gw2_ref[...],
                              gb2_ref[...], gw3_ref[...], gb3_ref[...])
    ll = _bernoulli_ll(logits, y_ref[...])           # (TR, 784)

    dw = (0.5 * jnp.sum(x * x, axis=1, keepdims=True)
          - 0.5 * jnp.sum(x1 * x1, axis=1, keepdims=True)
          + jnp.sum(ll, axis=1, keepdims=True)
          + jnp.sum(jnp.log(std), axis=1, keepdims=True))   # sum(log std) recomputed here
    dw_ref[...] = dw                                 # (TR, 1); tiny output, masked store ok


# ----------------------------------- wrapper ------------------------------- #

def prepare_params(params):
    """Store weight matrices in bf16 (halves weight HBM traffic); biases stay f32."""
    (w1, b1, w2, b2, wms, bms, gw1, gb1, gw2, gb2, gw3, gb3) = params
    c = lambda w: w.astype(COMPUTE_DTYPE)
    return (c(w1), b1, c(w2), b2, c(wms), bms, c(gw1), gb1, c(gw2), gb2, c(gw3), gb3)


def simple_vae_forward(x, y, params):
    (w1, b1, w2, b2, wms, bms, gw1, gb1, gw2, gb2, gw3, gb3) = params
    M, N, L = x.shape

    def full(shape):
        return pl.BlockSpec(shape, lambda *_: tuple(0 for _ in shape))

    enc_cparams = pltpu.CompilerParams(
        dimension_semantics=("arbitrary",),
        vmem_limit_bytes=32 * 1024 * 1024)

    # Encoder: tiny call, outputs stay in f32 (N*L*8 bytes round-trip is negligible);
    # kept separate so the decoder grid axis can stay "parallel" on v7x.
    mean, std = pl.pallas_call(
        encoder_kernel,
        out_shape=(jax.ShapeDtypeStruct((N, L), jnp.float32),
                   jax.ShapeDtypeStruct((N, L), jnp.float32)),
        grid=(1,),
        in_specs=[full(y.shape), full(w1.shape), full(b1.shape),
                  full(w2.shape), full(b2.shape), full(wms.shape), full(bms.shape)],
        out_specs=(full((N, L)), full((N, L))),
        compiler_params=enc_cparams,
    )(y, w1, b1, w2, b2, wms, bms)

    # Fold the sample dimension M into the batch rows.
    R = M * N
    TR = 256 if R >= 256 else -(-R // 8) * 8    # 256-row tiles at scale (v6e/v7x MXU)
    R_pad = -(-R // TR) * TR
    G = R_pad // TR
    pad = R_pad - R

    x_rows = x.reshape(R, L)
    mean_rows = jnp.tile(mean, (M, 1))          # broadcast per-y stats across M once
    std_rows = jnp.tile(std, (M, 1))
    y_rows = jnp.tile(y, (M, 1))
    if pad:
        x_rows = jnp.pad(x_rows, ((0, pad), (0, 0)))
        mean_rows = jnp.pad(mean_rows, ((0, pad), (0, 0)))
        std_rows = jnp.pad(std_rows, ((0, pad), (0, 0)), constant_values=1.0)
        y_rows = jnp.pad(y_rows, ((0, pad), (0, 0)))

    dec_cparams = pltpu.CompilerParams(
        dimension_semantics=("parallel",),      # v7x: row tiles split across 2 TCs
        vmem_limit_bytes=32 * 1024 * 1024)

    def row(cols):
        return pl.BlockSpec((TR, cols), lambda t: (t, 0))

    x1_rows, dw_rows = pl.pallas_call(
        decoder_kernel,
        out_shape=(jax.ShapeDtypeStruct((R_pad, L), jnp.float32),
                   jax.ShapeDtypeStruct((R_pad, 1), jnp.float32)),
        grid=(G,),
        in_specs=[row(L), row(L), row(L), row(IMG),
                  full(gw1.shape), full(gb1.shape),
                  full(gw2.shape), full(gb2.shape),
                  full(gw3.shape), full(gb3.shape)],
        out_specs=(row(L), pl.BlockSpec((TR, 1), lambda t: (t, 0))),
        compiler_params=dec_cparams,
    )(x_rows, mean_rows, std_rows, y_rows, gw1, gb1, gw2, gb2, gw3, gb3)

    x1 = x1_rows[:R].reshape(M, N, L)
    dW = dw_rows[:R].reshape(M, N, 1)
    return x1, dW


# ------------------------------ pure-JAX reference -------------------------- #

def reference_forward(x, y, params):
    (w1, b1, w2, b2, wms, bms, gw1, gb1, gw2, gb2, gw3, gb3) = params
    M, N, L = x.shape
    mean, std = _encode(y, w1, b1, w2, b2, wms, bms)
    x_rows = x.reshape(M * N, L)
    mean_rows = jnp.tile(mean, (M, 1))
    std_rows = jnp.tile(std, (M, 1))
    y_rows = jnp.tile(y, (M, 1))
    x1_rows = x_rows * std_rows + mean_rows
    logits = _generate_logits(x1_rows, gw1, gb1, gw2, gb2, gw3, gb3)
    ll = _bernoulli_ll(logits, y_rows)
    dw_rows = (0.5 * jnp.sum(x_rows * x_rows, axis=1, keepdims=True)
               - 0.5 * jnp.sum(x1_rows * x1_rows, axis=1, keepdims=True)
               + jnp.sum(ll, axis=1, keepdims=True)
               + jnp.sum(jnp.log(std_rows), axis=1, keepdims=True))
    return x1_rows.reshape(M, N, L), dw_rows.reshape(M, N, 1)


# --------------------------------------- main ------------------------------- #

def init_linear(key, fan_in, fan_out):
    # PyTorch nn.Linear default init: U(-1/sqrt(fan_in), 1/sqrt(fan_in)).
    kw, kb = jax.random.split(key)
    bound = 1.0 / np.sqrt(fan_in)
    w = jax.random.uniform(kw, (fan_in, fan_out), jnp.float32, -bound, bound)
    b = jax.random.uniform(kb, (1, fan_out), jnp.float32, -bound, bound)
    return w, b


if __name__ == "__main__":
    key = jax.random.PRNGKey(0)
    keys = jax.random.split(key, 8)
    M, N, L = 2, 4, LATENT_DIM

    # encoder: Linear(784,1024) -> Linear(1024,1024) -> Linear(1024, 2L) (mean|std)
    w1, b1 = init_linear(keys[0], IMG, HIDDEN)
    w2, b2 = init_linear(keys[1], HIDDEN, HIDDEN)
    wms, bms = init_linear(keys[2], HIDDEN, 2 * L)
    # generator G: Linear(L,1024) -> Linear(1024,1024) -> Linear(1024,784) (+ sigmoid)
    gw1, gb1 = init_linear(keys[3], L, HIDDEN)
    gw2, gb2 = init_linear(keys[4], HIDDEN, HIDDEN)
    gw3, gb3 = init_linear(keys[5], HIDDEN, IMG)

    params = prepare_params((w1, b1, w2, b2, wms, bms,
                             gw1, gb1, gw2, gb2, gw3, gb3))

    x = jax.random.normal(keys[6], (M, N, L), jnp.float32)     # latent noise
    y = jax.random.uniform(keys[7], (N, IMG), jnp.float32)     # MNIST-like data in [0,1]

    x1, dW = jax.jit(simple_vae_forward)(x, y, params)
    jax.block_until_ready((x1, dW))

    x1_ref, dW_ref = reference_forward(x, y, params)
    np.testing.assert_allclose(np.asarray(x1), np.asarray(x1_ref), rtol=1e-3, atol=1e-3)
    np.testing.assert_allclose(np.asarray(dW), np.asarray(dW_ref), rtol=1e-3, atol=1e-2)

    print("KERNEL_OK")
</pallas_src>

<mosaic_0001>
module attributes {stable_mosaic.version = 11 : i64} {
  func.func @encoder_kernel(%arg0: i32, %arg1: memref<4x784xf32, #tpu.memory_space<vmem>>, %arg2: memref<784x1024xbf16, #tpu.memory_space<vmem>>, %arg3: memref<1x1024xf32, #tpu.memory_space<vmem>>, %arg4: memref<1024x1024xbf16, #tpu.memory_space<vmem>>, %arg5: memref<1x1024xf32, #tpu.memory_space<vmem>>, %arg6: memref<1024x64xbf16, #tpu.memory_space<vmem>>, %arg7: memref<1x64xf32, #tpu.memory_space<vmem>>, %arg8: memref<4x32xf32, #tpu.memory_space<vmem>>, %arg9: memref<4x32xf32, #tpu.memory_space<vmem>>) attributes {dimension_semantics = [#tpu.dimension_semantics<arbitrary>], iteration_bounds = array<i64: 1>, scalar_prefetch = 0 : i64, scratch_operands = 0 : i64, tpu.core_type = #tpu.core_type<tc>, window_params = [{pipeline_mode = #tpu.pipeline_mode<synchronous>, transform_indices = @transform_0, window_bounds = array<i64: 4, 784>}, {pipeline_mode = #tpu.pipeline_mode<synchronous>, transform_indices = @transform_1, window_bounds = array<i64: 784, 1024>}, {pipeline_mode = #tpu.pipeline_mode<synchronous>, transform_indices = @transform_2, window_bounds = array<i64: 1, 1024>}, {pipeline_mode = #tpu.pipeline_mode<synchronous>, transform_indices = @transform_3, window_bounds = array<i64: 1024, 1024>}, {pipeline_mode = #tpu.pipeline_mode<synchronous>, transform_indices = @transform_4, window_bounds = array<i64: 1, 1024>}, {pipeline_mode = #tpu.pipeline_mode<synchronous>, transform_indices = @transform_5, window_bounds = array<i64: 1024, 64>}, {pipeline_mode = #tpu.pipeline_mode<synchronous>, transform_indices = @transform_6, window_bounds = array<i64: 1, 64>}, {pipeline_mode = #tpu.pipeline_mode<synchronous>, transform_indices = @transform_7, window_bounds = array<i64: 4, 32>}, {pipeline_mode = #tpu.pipeline_mode<synchronous>, transform_indices = @transform_8, window_bounds = array<i64: 4, 32>}]} {
    %c0 = arith.constant 0 : index
    %c0_0 = arith.constant 0 : index
    %0 = vector.load %arg1[%c0, %c0_0] : memref<4x784xf32, #tpu.memory_space<vmem>>, vector<4x784xf32>
    %c0_1 = arith.constant 0 : index
    %c0_2 = arith.constant 0 : index
    %1 = vector.load %arg2[%c0_1, %c0_2] : memref<784x1024xbf16, #tpu.memory_space<vmem>>, vector<784x1024xbf16>
    %c0_3 = arith.constant 0 : index
    %c0_4 = arith.constant 0 : index
    %2 = vector.load %arg3[%c0_3, %c0_4] : memref<1x1024xf32, #tpu.memory_space<vmem>>, vector<1x1024xf32>
    %c0_5 = arith.constant 0 : index
    %c0_6 = arith.constant 0 : index
    %3 = vector.load %arg4[%c0_5, %c0_6] : memref<1024x1024xbf16, #tpu.memory_space<vmem>>, vector<1024x1024xbf16>
    %c0_7 = arith.constant 0 : index
    %c0_8 = arith.constant 0 : index
    %4 = vector.load %arg5[%c0_7, %c0_8] : memref<1x1024xf32, #tpu.memory_space<vmem>>, vector<1x1024xf32>
    %c0_9 = arith.constant 0 : index
    %c0_10 = arith.constant 0 : index
    %5 = vector.load %arg6[%c0_9, %c0_10] : memref<1024x64xbf16, #tpu.memory_space<vmem>>, vector<1024x64xbf16>
    %c0_11 = arith.constant 0 : index
    %c0_12 = arith.constant 0 : index
    %6 = vector.load %arg7[%c0_11, %c0_12] : memref<1x64xf32, #tpu.memory_space<vmem>>, vector<1x64xf32>
    %7 = arith.truncf %0 : vector<4x784xf32> to vector<4x784xbf16>
    %cst = arith.constant dense<0.000000e+00> : vector<4x1024xf32>
    %8 = tpu.matmul %7, %1, %cst {dimension_numbers = #tpu.dot_dimension_numbers<[1], [0], [0], [1], [0, 0, 1, 1], [], []>} : vector<4x784xbf16>, vector<784x1024xbf16>, vector<4x1024xf32> -> vector<4x1024xf32>
    %9 = vector.broadcast %2 : vector<1x1024xf32> to vector<4x1024xf32>
    %10 = arith.addf %8, %9 : vector<4x1024xf32>
    %cst_13 = arith.constant 0.000000e+00 : f32
    %11 = vector.broadcast %cst_13 : f32 to vector<4x1024xf32>
    %12 = arith.maximumf %10, %11 : vector<4x1024xf32>
    %13 = arith.truncf %12 : vector<4x1024xf32> to vector<4x1024xbf16>
    %cst_14 = arith.constant dense<0.000000e+00> : vector<4x1024xf32>
    %14 = tpu.matmul %13, %3, %cst_14 {dimension_numbers = #tpu.dot_dimension_numbers<[1], [0], [0], [1], [0, 0, 1, 1], [], []>} : vector<4x1024xbf16>, vector<1024x1024xbf16>, vector<4x1024xf32> -> vector<4x1024xf32>
    %15 = vector.broadcast %4 : vector<1x1024xf32> to vector<4x1024xf32>
    %16 = arith.addf %14, %15 : vector<4x1024xf32>
    %cst_15 = arith.constant 0.000000e+00 : f32
    %17 = vector.broadcast %cst_15 : f32 to vector<4x1024xf32>
    %18 = arith.maximumf %16, %17 : vector<4x1024xf32>
    %19 = arith.truncf %18 : vector<4x1024xf32> to vector<4x1024xbf16>
    %cst_16 = arith.constant dense<0.000000e+00> : vector<4x64xf32>
    %20 = tpu.matmul %19, %5, %cst_16 {dimension_numbers = #tpu.dot_dimension_numbers<[1], [0], [0], [1], [0, 0, 1, 1], [], []>} : vector<4x1024xbf16>, vector<1024x64xbf16>, vector<4x64xf32> -> vector<4x64xf32>
    %21 = vector.broadcast %6 : vector<1x64xf32> to vector<4x64xf32>
    %22 = arith.addf %20, %21 : vector<4x64xf32>
    %23 = vector.extract_strided_slice %22 {offsets = [0, 0], sizes = [4, 32], strides = [1, 1]} : vector<4x64xf32> to vector<4x32xf32>
    %24 = vector.extract_strided_slice %22 {offsets = [0, 32], sizes = [4, 32], strides = [1, 1]} : vector<4x64xf32> to vector<4x32xf32>
    %25 = math.absf %24 : vector<4x32xf32>
    %cst_17 = arith.constant 9.99999997E-7 : f32
    %26 = vector.broadcast %cst_17 : f32 to vector<4x32xf32>
    %27 = arith.addf %25, %26 : vector<4x32xf32>
    %c0_18 = arith.constant 0 : index
    %c0_19 = arith.constant 0 : index
    %28 = vector.load %arg8[%c0_18, %c0_19] : memref<4x32xf32, #tpu.memory_space<vmem>>, vector<4x32xf32>
    tpu.vector_store %arg8[%c0_18, %c0_19], %23 {strides = array<i32>} : memref<4x32xf32, #tpu.memory_space<vmem>>, vector<4x32xf32>,
    %c0_20 = arith.constant 0 : index
    %c0_21 = arith.constant 0 : index
    %29 = vector.load %arg9[%c0_20, %c0_21] : memref<4x32xf32, #tpu.memory_space<vmem>>, vector<4x32xf32>
    tpu.vector_store %arg9[%c0_20, %c0_21], %27 {strides = array<i32>} : memref<4x32xf32, #tpu.memory_space<vmem>>, vector<4x32xf32>,
    return
  }
  func.func @transform_0(%arg0: i32) -> (i32, i32) {
    %c0_i32 = arith.constant 0 : i32
    %c0_i32_0 = arith.constant 0 : i32
    %c0_i32_1 = arith.constant 0 : i32
    return %c0_i32, %c0_i32_0 : i32, i32
  }
  func.func @transform_1(%arg0: i32) -> (i32, i32) {
    %c0_i32 = arith.constant 0 : i32
    %c0_i32_0 = arith.constant 0 : i32
    %c0_i32_1 = arith.constant 0 : i32
    return %c0_i32, %c0_i32_0 : i32, i32
  }
  func.func @transform_2(%arg0: i32) -> (i32, i32) {
    %c0_i32 = arith.constant 0 : i32
    %c0_i32_0 = arith.constant 0 : i32
    %c0_i32_1 = arith.constant 0 : i32
    return %c0_i32, %c0_i32_0 : i32, i32
  }
  func.func @transform_3(%arg0: i32) -> (i32, i32) {
    %c0_i32 = arith.constant 0 : i32
    %c0_i32_0 = arith.constant 0 : i32
    %c0_i32_1 = arith.constant 0 : i32
    return %c0_i32, %c0_i32_0 : i32, i32
  }
  func.func @transform_4(%arg0: i32) -> (i32, i32) {
    %c0_i32 = arith.constant 0 : i32
    %c0_i32_0 = arith.constant 0 : i32
    %c0_i32_1 = arith.constant 0 : i32
    return %c0_i32, %c0_i32_0 : i32, i32
  }
  func.func @transform_5(%arg0: i32) -> (i32, i32) {
    %c0_i32 = arith.constant 0 : i32
    %c0_i32_0 = arith.constant 0 : i32
    %c0_i32_1 = arith.constant 0 : i32
    return %c0_i32, %c0_i32_0 : i32, i32
  }
  func.func @transform_6(%arg0: i32) -> (i32, i32) {
    %c0_i32 = arith.constant 0 : i32
    %c0_i32_0 = arith.constant 0 : i32
    %c0_i32_1 = arith.constant 0 : i32
    return %c0_i32, %c0_i32_0 : i32, i32
  }
  func.func @transform_7(%arg0: i32) -> (i32, i32) {
    %c0_i32 = arith.constant 0 : i32
    %c0_i32_0 = arith.constant 0 : i32
    %c0_i32_1 = arith.constant 0 : i32
    return %c0_i32, %c0_i32_0 : i32, i32
  }
  func.func @transform_8(%arg0: i32) -> (i32, i32) {
    %c0_i32 = arith.constant 0 : i32
    %c0_i32_0 = arith.constant 0 : i32
    %c0_i32_1 = arith.constant 0 : i32
    return %c0_i32, %c0_i32_0 : i32, i32
  }
}

module attributes {stable_mosaic.version = 11 : i64} {
  func.func @decoder_kernel(%arg0: i32, %arg1: memref<8x32xf32, #tpu.memory_space<vmem>>, %arg2: memref<8x32xf32, #tpu.memory_space<vmem>>, %arg3: memref<8x32xf32, #tpu.memory_space<vmem>>, %arg4: memref<8x784xf32, #tpu.memory_space<vmem>>, %arg5: memref<32x1024xbf16, #tpu.memory_space<vmem>>, %arg6: memref<1x1024xf32, #tpu.memory_space<vmem>>, %arg7: memref<1024x1024xbf16, #tpu.memory_space<vmem>>, %arg8: memref<1x1024xf32, #tpu.memory_space<vmem>>, %arg9: memref<1024x784xbf16, #tpu.memory_space<vmem>>, %arg10: memref<1x784xf32, #tpu.memory_space<vmem>>, %arg11: memref<8x32xf32, #tpu.memory_space<vmem>>, %arg12: memref<8x1xf32, #tpu.memory_space<vmem>>) attributes {dimension_semantics = [#tpu.dimension_semantics<parallel>], iteration_bounds = array<i64: 1>, scalar_prefetch = 0 : i64, scratch_operands = 0 : i64, tpu.core_type = #tpu.core_type<tc>, window_params = [{transform_indices = @transform_0, window_bounds = array<i64: 8, 32>}, {transform_indices = @transform_1, window_bounds = array<i64: 8, 32>}, {transform_indices = @transform_2, window_bounds = array<i64: 8, 32>}, {transform_indices = @transform_3, window_bounds = array<i64: 8, 784>}, {pipeline_mode = #tpu.pipeline_mode<synchronous>, transform_indices = @transform_4, window_bounds = array<i64: 32, 1024>}, {pipeline_mode = #tpu.pipeline_mode<synchronous>, transform_indices = @transform_5, window_bounds = array<i64: 1, 1024>}, {pipeline_mode = #tpu.pipeline_mode<synchronous>, transform_indices = @transform_6, window_bounds = array<i64: 1024, 1024>}, {pipeline_mode = #tpu.pipeline_mode<synchronous>, transform_indices = @transform_7, window_bounds = array<i64: 1, 1024>}, {pipeline_mode = #tpu.pipeline_mode<synchronous>, transform_indices = @transform_8, window_bounds = array<i64: 1024, 784>}, {pipeline_mode = #tpu.pipeline_mode<synchronous>, transform_indices = @transform_9, window_bounds = array<i64: 1, 784>}, {transform_indices = @transform_10, window_bounds = array<i64: 8, 32>}, {transform_indices = @transform_11, window_bounds = array<i64: 8, 1>}]} {
    %c0 = arith.constant 0 : index
    %c0_0 = arith.constant 0 : index
    %0 = vector.load %arg1[%c0, %c0_0] : memref<8x32xf32, #tpu.memory_space<vmem>>, vector<8x32xf32>
    %c0_1 = arith.constant 0 : index
    %c0_2 = arith.constant 0 : index
    %1 = vector.load %arg2[%c0_1, %c0_2] : memref<8x32xf32, #tpu.memory_space<vmem>>, vector<8x32xf32>
    %c0_3 = arith.constant 0 : index
    %c0_4 = arith.constant 0 : index
    %2 = vector.load %arg3[%c0_3, %c0_4] : memref<8x32xf32, #tpu.memory_space<vmem>>, vector<8x32xf32>
    %3 = arith.mulf %0, %2 : vector<8x32xf32>
    %4 = arith.addf %3, %1 : vector<8x32xf32>
    %c0_5 = arith.constant 0 : index
    %c0_6 = arith.constant 0 : index
    %5 = vector.load %arg11[%c0_5, %c0_6] : memref<8x32xf32, #tpu.memory_space<vmem>>, vector<8x32xf32>
    tpu.vector_store %arg11[%c0_5, %c0_6], %4 {strides = array<i32>} : memref<8x32xf32, #tpu.memory_space<vmem>>, vector<8x32xf32>,
    %c0_7 = arith.constant 0 : index
    %c0_8 = arith.constant 0 : index
    %6 = vector.load %arg5[%c0_7, %c0_8] : memref<32x1024xbf16, #tpu.memory_space<vmem>>, vector<32x1024xbf16>
    %c0_9 = arith.constant 0 : index
    %c0_10 = arith.constant 0 : index
    %7 = vector.load %arg6[%c0_9, %c0_10] : memref<1x1024xf32, #tpu.memory_space<vmem>>, vector<1x1024xf32>
    %c0_11 = arith.constant 0 : index
    %c0_12 = arith.constant 0 : index
    %8 = vector.load %arg7[%c0_11, %c0_12] : memref<1024x1024xbf16, #tpu.memory_space<vmem>>, vector<1024x1024xbf16>
    %c0_13 = arith.constant 0 : index
    %c0_14 = arith.constant 0 : index
    %9 = vector.load %arg8[%c0_13, %c0_14] : memref<1x1024xf32, #tpu.memory_space<vmem>>, vector<1x1024xf32>
    %c0_15 = arith.constant 0 : index
    %c0_16 = arith.constant 0 : index
    %10 = vector.load %arg9[%c0_15, %c0_16] : memref<1024x784xbf16, #tpu.memory_space<vmem>>, vector<1024x784xbf16>
    %c0_17 = arith.constant 0 : index
    %c0_18 = arith.constant 0 : index
    %11 = vector.load %arg10[%c0_17, %c0_18] : memref<1x784xf32, #tpu.memory_space<vmem>>, vector<1x784xf32>
    %12 = arith.truncf %4 : vector<8x32xf32> to vector<8x32xbf16>
    %cst = arith.constant dense<0.000000e+00> : vector<8x1024xf32>
    %13 = tpu.matmul %12, %6, %cst {dimension_numbers = #tpu.dot_dimension_numbers<[1], [0], [0], [1], [0, 0, 1, 1], [], []>} : vector<8x32xbf16>, vector<32x1024xbf16>, vector<8x1024xf32> -> vector<8x1024xf32>
    %14 = vector.broadcast %7 : vector<1x1024xf32> to vector<8x1024xf32>
    %15 = arith.addf %13, %14 : vector<8x1024xf32>
    %cst_19 = arith.constant 0.000000e+00 : f32
    %16 = vector.broadcast %cst_19 : f32 to vector<8x1024xf32>
    %17 = arith.maximumf %15, %16 : vector<8x1024xf32>
    %18 = arith.truncf %17 : vector<8x1024xf32> to vector<8x1024xbf16>
    %cst_20 = arith.constant dense<0.000000e+00> : vector<8x1024xf32>
    %19 = tpu.matmul %18, %8, %cst_20 {dimension_numbers = #tpu.dot_dimension_numbers<[1], [0], [0], [1], [0, 0, 1, 1], [], []>} : vector<8x1024xbf16>, vector<1024x1024xbf16>, vector<8x1024xf32> -> vector<8x1024xf32>
    %20 = vector.broadcast %9 : vector<1x1024xf32> to vector<8x1024xf32>
    %21 = arith.addf %19, %20 : vector<8x1024xf32>
    %cst_21 = arith.constant 0.000000e+00 : f32
    %22 = vector.broadcast %cst_21 : f32 to vector<8x1024xf32>
    %23 = arith.maximumf %21, %22 : vector<8x1024xf32>
    %24 = arith.truncf %23 : vector<8x1024xf32> to vector<8x1024xbf16>
    %cst_22 = arith.constant dense<0.000000e+00> : vector<8x784xf32>
    %25 = tpu.matmul %24, %10, %cst_22 {dimension_numbers = #tpu.dot_dimension_numbers<[1], [0], [0], [1], [0, 0, 1, 1], [], []>} : vector<8x1024xbf16>, vector<1024x784xbf16>, vector<8x784xf32> -> vector<8x784xf32>
    %26 = vector.broadcast %11 : vector<1x784xf32> to vector<8x784xf32>
    %27 = arith.addf %25, %26 : vector<8x784xf32>
    %c0_23 = arith.constant 0 : index
    %c0_24 = arith.constant 0 : index
    %28 = vector.load %arg4[%c0_23, %c0_24] : memref<8x784xf32, #tpu.memory_space<vmem>>, vector<8x784xf32>
    %cst_25 = arith.constant 0.000000e+00 : f32
    %29 = vector.broadcast %cst_25 : f32 to vector<8x784xf32>
    %30 = arith.subf %29, %27 : vector<8x784xf32>
    %cst_26 = arith.constant 0.000000e+00 : f32
    %31 = vector.broadcast %cst_26 : f32 to vector<8x784xf32>
    %32 = arith.maximumf %30, %31 : vector<8x784xf32>
    %33 = math.absf %27 : vector<8x784xf32>
    %cst_27 = arith.constant 0.000000e+00 : f32
    %34 = vector.broadcast %cst_27 : f32 to vector<8x784xf32>
    %35 = arith.subf %34, %33 : vector<8x784xf32>
    %36 = math.exp %35 : vector<8x784xf32>
    %cst_28 = arith.constant 1.000000e+00 : f32
    %37 = vector.broadcast %cst_28 : f32 to vector<8x784xf32>
    %38 = arith.addf %37, %36 : vector<8x784xf32>
    %39 = math.log %38 : vector<8x784xf32>
    %40 = arith.addf %32, %39 : vector<8x784xf32>
    %cst_29 = arith.constant 0.000000e+00 : f32
    %41 = vector.broadcast %cst_29 : f32 to vector<8x784xf32>
    %42 = arith.subf %41, %40 : vector<8x784xf32>
    %cst_30 = arith.constant -13.8155107 : f32
    %cst_31 = arith.constant -1.00000045E-6 : f32
    %43 = vector.broadcast %cst_30 : f32 to vector<8x784xf32>
    %44 = arith.maximumf %43, %42 : vector<8x784xf32>
    %45 = vector.broadcast %cst_31 : f32 to vector<8x784xf32>
    %46 = arith.minimumf %45, %44 : vector<8x784xf32>
    %cst_32 = arith.constant 0.000000e+00 : f32
    %47 = vector.broadcast %cst_32 : f32 to vector<8x784xf32>
    %48 = arith.subf %47, %40 : vector<8x784xf32>
    %49 = arith.subf %48, %27 : vector<8x784xf32>
    %cst_33 = arith.constant -13.8155107 : f32
    %cst_34 = arith.constant -1.00000045E-6 : f32
    %50 = vector.broadcast %cst_33 : f32 to vector<8x784xf32>
    %51 = arith.maximumf %50, %49 : vector<8x784xf32>
    %52 = vector.broadcast %cst_34 : f32 to vector<8x784xf32>
    %53 = arith.minimumf %52, %51 : vector<8x784xf32>
    %54 = arith.mulf %28, %46 : vector<8x784xf32>
    %cst_35 = arith.constant 1.000000e+00 : f32
    %55 = vector.broadcast %cst_35 : f32 to vector<8x784xf32>
    %56 = arith.subf %55, %28 : vector<8x784xf32>
    %57 = arith.mulf %56, %53 : vector<8x784xf32>
    %58 = arith.addf %54, %57 : vector<8x784xf32>
    %59 = arith.mulf %0, %0 : vector<8x32xf32>
    %cst_36 = arith.constant dense<0.000000e+00> : vector<8xf32>
    %60 = vector.multi_reduction <add>, %59, %cst_36 [1] : vector<8x32xf32> to vector<8xf32>
    %61 = vector.shape_cast %60 : vector<8xf32> to vector<8x1xf32>
    %cst_37 = arith.constant 5.000000e-01 : f32
    %62 = vector.broadcast %cst_37 : f32 to vector<8x1xf32>
    %63 = arith.mulf %62, %61 : vector<8x1xf32>
    %64 = arith.mulf %4, %4 : vector<8x32xf32>
    %cst_38 = arith.constant dense<0.000000e+00> : vector<8xf32>
    %65 = vector.multi_reduction <add>, %64, %cst_38 [1] : vector<8x32xf32> to vector<8xf32>
    %66 = vector.shape_cast %65 : vector<8xf32> to vector<8x1xf32>
    %cst_39 = arith.constant 5.000000e-01 : f32
    %67 = vector.broadcast %cst_39 : f32 to vector<8x1xf32>
    %68 = arith.mulf %67, %66 : vector<8x1xf32>
    %69 = arith.subf %63, %68 : vector<8x1xf32>
    %cst_40 = arith.constant dense<0.000000e+00> : vector<8xf32>
    %70 = vector.multi_reduction <add>, %58, %cst_40 [1] : vector<8x784xf32> to vector<8xf32>
    %71 = vector.shape_cast %70 : vector<8xf32> to vector<8x1xf32>
    %72 = arith.addf %69, %71 : vector<8x1xf32>
    %73 = math.log %2 : vector<8x32xf32>
    %cst_41 = arith.constant dense<0.000000e+00> : vector<8xf32>
    %74 = vector.multi_reduction <add>, %73, %cst_41 [1] : vector<8x32xf32> to vector<8xf32>
    %75 = vector.shape_cast %74 : vector<8xf32> to vector<8x1xf32>
    %76 = arith.addf %72, %75 : vector<8x1xf32>
    %c0_42 = arith.constant 0 : index
    %c0_43 = arith.constant 0 : index
    %77 = vector.load %arg12[%c0_42, %c0_43] : memref<8x1xf32, #tpu.memory_space<vmem>>, vector<8x1xf32>
    tpu.vector_store %arg12[%c0_42, %c0_43], %76 {strides = array<i32>} : memref<8x1xf32, #tpu.memory_space<vmem>>, vector<8x1xf32>,
    return
  }
  func.func @transform_0(%arg0: i32) -> (i32, i32) {
    %c0_i32 = arith.constant 0 : i32
    %c0_i32_0 = arith.constant 0 : i32
    return %arg0, %c0_i32 : i32, i32
  }
  func.func @transform_1(%arg0: i32) -> (i32, i32) {
    %c0_i32 = arith.constant 0 : i32
    %c0_i32_0 = arith.constant 0 : i32
    return %arg0, %c0_i32 : i32, i32
  }
  func.func @transform_2(%arg0: i32) -> (i32, i32) {
    %c0_i32 = arith.constant 0 : i32
    %c0_i32_0 = arith.constant 0 : i32
    return %arg0, %c0_i32 : i32, i32
  }
  func.func @transform_3(%arg0: i32) -> (i32, i32) {
    %c0_i32 = arith.constant 0 : i32
    %c0_i32_0 = arith.constant 0 : i32
    return %arg0, %c0_i32 : i32, i32
  }
  func.func @transform_4(%arg0: i32) -> (i32, i32) {
    %c0_i32 = arith.constant 0 : i32
    %c0_i32_0 = arith.constant 0 : i32
    %c0_i32_1 = arith.constant 0 : i32
    return %c0_i32, %c0_i32_0 : i32, i32
  }
  func.func @transform_5(%arg0: i32) -> (i32, i32) {
    %c0_i32 = arith.constant 0 : i32
    %c0_i32_0 = arith.constant 0 : i32
    %c0_i32_1 = arith.constant 0 : i32
    return %c0_i32, %c0_i32_0 : i32, i32
  }
  func.func @transform_6(%arg0: i32) -> (i32, i32) {
    %c0_i32 = arith.constant 0 : i32
    %c0_i32_0 = arith.constant 0 : i32
    %c0_i32_1 = arith.constant 0 : i32
    return %c0_i32, %c0_i32_0 : i32, i32
  }
  func.func @transform_7(%arg0: i32) -> (i32, i32) {
    %c0_i32 = arith.constant 0 : i32
    %c0_i32_0 = arith.constant 0 : i32
    %c0_i32_1 = arith.constant 0 : i32
    return %c0_i32, %c0_i32_0 : i32, i32
  }
  func.func @transform_8(%arg0: i32) -> (i32, i32) {
    %c0_i32 = arith.constant 0 : i32
    %c0_i32_0 = arith.constant 0 : i32
    %c0_i32_1 = arith.constant 0 : i32
    return %c0_i32, %c0_i32_0 : i32, i32
  }
  func.func @transform_9(%arg0: i32) -> (i32, i32) {
    %c0_i32 = arith.constant 0 : i32
    %c0_i32_0 = arith.constant 0 : i32
    %c0_i32_1 = arith.constant 0 : i32
    return %c0_i32, %c0_i32_0 : i32, i32
  }
  func.func @transform_10(%arg0: i32) -> (i32, i32) {
    %c0_i32 = arith.constant 0 : i32
    %c0_i32_0 = arith.constant 0 : i32
    return %arg0, %c0_i32 : i32, i32
  }
  func.func @transform_11(%arg0: i32) -> (i32, i32) {
    %c0_i32 = arith.constant 0 : i32
    %c0_i32_0 = arith.constant 0 : i32
    return %arg0, %c0_i32 : i32, i32
  }
}

</mosaic_0001>

<bundles_post_ra>
// kernel: tile.29
= control target key start
LH: loop header
LB: loop body
LE: loop exit
PB: predicated region body
PF: predicated region fallthrough
CT: control target
= control target key end

     0   :  { %vm72_vm0 = vcmask 130048   ;;  %s260_s0 = inlined_call_operand.vmem [shape: f32[2,4,784], index: 0, kind: input, shape index: {}]   ;;  %s261_s1 = inlined_call_operand.vmem [shape: f32[8,784], index: 1, kind: output, shape index: {}]  }
   0x1   :  { %v138_v0 = vld [vmem:[%s260_s0 + $0x34] sm:$0xf]  ;;  %v139_v1 = vld [vmem:[%s260_s0 + $0x30] sm:$0xf]  ;;  %v140_v2 = vld [vmem:[%s260_s0 + $0x2c] sm:$0xf] }
   0x2   :  { %8 = vst [vmem:[#allocation0 + $0x68] sm:$0xf] %v138_v0  ;;  %13 = vst [vmem:[#allocation0 + $0x60] sm:$0xf] %v139_v1  ;;  %v141_v3 = vld [vmem:[%s260_s0 + $0x28] sm:$0xf] }
   0x3   :  { %18 = vst [vmem:[#allocation0 + $0x58] sm:$0xf] %v140_v2  ;;  %v142_v4 = vld [vmem:[%s260_s0 + $0x24] sm:$0xf]  ;;  %v143_v5 = vld [vmem:[%s260_s0 + $0x20] sm:$0xf] }
   0x4   :  { %23 = vst [vmem:[#allocation0 + $0x50] sm:$0xf] %v141_v3  ;;  %28 = vst [vmem:[#allocation0 + $0x48] sm:$0xf] %v142_v4  ;;  %v144_v6 = vld [vmem:[%s260_s0 + $0x1c] sm:$0xf] }
   0x5   :  { %33 = vst [vmem:[#allocation0 + $0x40] sm:$0xf] %v143_v5  ;;  %v145_v7 = vld [vmem:[%s260_s0 + $0x18] sm:$0xf]  ;;  %v146_v8 = vld [vmem:[%s260_s0 + $0x14] sm:$0xf] }
   0x6   :  { %38 = vst [vmem:[#allocation0 + $0x38] sm:$0xf] %v144_v6  ;;  %43 = vst [vmem:[#allocation0 + $0x30] sm:$0xf] %v145_v7  ;;  %v147_v9 = vld [vmem:[%s260_s0 + $0x10] sm:$0xf] }
   0x7   :  { %48 = vst [vmem:[#allocation0 + $0x28] sm:$0xf] %v146_v8  ;;  %v148_v10 = vld [vmem:[%s260_s0 + $0xc] sm:$0xf]  ;;  %v149_v11 = vld [vmem:[%s260_s0 + $0x8] sm:$0xf] }
   0x8   :  { %53 = vst [vmem:[#allocation0 + $0x20] sm:$0xf] %v147_v9  ;;  %58 = vst [vmem:[#allocation0 + $0x18] sm:$0xf] %v148_v10  ;;  %v150_v12 = vld [vmem:[%s260_s0 + $0x4] sm:$0xf] }
   0x9   :  { %63 = vst [vmem:[#allocation0 + $0x10] sm:$0xf] %v149_v11  ;;  %v68_v13 = vld [vmem:[%s260_s0] sm:$0xf]  ;;  %67 = vst [vmem:[#allocation0 + $0x8] sm:$0xf] %v150_v12 }
   0xa   :  { %69 = vst [vmem:[#allocation0] sm:$0xf] %v68_v13  ;;  %v76_v14 = vld [vmem:[#allocation0 + $0x68] sm:$0xf]   ;;  %v119_v15 = vld [vmem:[#allocation0 + $0x58] sm:$0xf]  }
   0xb   :  { %v123_v16 = vld [vmem:[#allocation0 + $0x60] sm:$0xf]   ;;  %152 = vst.msk [vmem:[%s261_s1 + $0x34] sm:$0xf] %vm72_vm0, %v76_v14   ;;  %v111_v18 = vld [vmem:[#allocation0 + $0x48] sm:$0xf]  }
   0xc   :  { %v107_v17 = vld [vmem:[#allocation0 + $0x40] sm:$0xf]   ;;  %v115_v19 = vld [vmem:[#allocation0 + $0x50] sm:$0xf]   ;;  %162 = vst [vmem:[%s261_s1 + $0x24] sm:$0xf] %v119_v15  }
   0xd   :  { %163 = vst [vmem:[%s261_s1 + $0x2c] sm:$0xf] %v123_v16   ;;  %v71_v20 = vld [vmem:[#allocation0 + $0x30] sm:$0xf]   ;;  %v103_v22 = vld [vmem:[#allocation0 + $0x38] sm:$0xf]  }
   0xe   :  { %v99_v21 = vld [vmem:[#allocation0 + $0x28] sm:$0xf]   ;;  %159 = vst [vmem:[%s261_s1 + $0xc] sm:$0xf] %v107_v17   ;;  %160 = vst [vmem:[%s261_s1 + $0x14] sm:$0xf] %v111_v18  }
   0xf   :  { %161 = vst [vmem:[%s261_s1 + $0x1c] sm:$0xf] %v115_v19   ;;  %151 = vst.msk [vmem:[%s261_s1 + $0x30] sm:$0xf] %vm72_vm0, %v71_v20   ;;  %v91_v24 = vld [vmem:[#allocation0 + $0x18] sm:$0xf]  }
  0x10   :  { %v87_v23 = vld [vmem:[#allocation0 + $0x10] sm:$0xf]   ;;  %v95_v25 = vld [vmem:[#allocation0 + $0x20] sm:$0xf]   ;;  %157 = vst [vmem:[%s261_s1 + $0x28] sm:$0xf] %v99_v21  }
  0x11   :  { %158 = vst [vmem:[%s261_s1 + $0x4] sm:$0xf] %v103_v22   ;;  %v80_v26 = vld [vmem:[#allocation0] sm:$0xf]   ;;  %v83_v27 = vld [vmem:[#allocation0 + $0x8] sm:$0xf]  }
  0x12   :  { %154 = vst [vmem:[%s261_s1 + $0x10] sm:$0xf] %v87_v23   ;;  %155 = vst [vmem:[%s261_s1 + $0x18] sm:$0xf] %v91_v24  }
  0x13   :  { %156 = vst [vmem:[%s261_s1 + $0x20] sm:$0xf] %v95_v25   ;;  %81 = vst [vmem:[%s261_s1] sm:$0xf] %v80_v26  }
  0x14   :  { %153 = vst [vmem:[%s261_s1 + $0x8] sm:$0xf] %v83_v27  }

// kernel: simple_vae_forward.2
= control target key start
LH: loop header
LB: loop body
LE: loop exit
PB: predicated region body
PF: predicated region fallthrough
CT: control target
= control target key end

     0   :  { %14 = vsyncpa [#allocation3], 0  ;;  %s9599_s0 = inlined_call_operand.hbm [shape: f32[4,784], index: 0, kind: input, shape index: {}]   ;;  %s9600_s1 = inlined_call_operand.hbm [shape: bf16[784,1024], index: 1, kind: input, shape index: {}]   ;;  %s9601_s2 = inlined_call_operand.hbm [shape: f32[1,1024], index: 2, kind: input, shape index: {}]   ;;  %s9602_s3 = inlined_call_operand.hbm [shape: bf16[1024,1024], index: 3, kind: input, shape index: {}]   ;;  %s9603_s4 = inlined_call_operand.hbm [shape: f32[1,1024], index: 4, kind: input, shape index: {}]   ;;  %s9604_s5 = inlined_call_operand.vmem [shape: bf16[1024,64], index: 5, kind: input, shape index: {}]   ;;  %s9605_s6 = inlined_call_operand.hbm [shape: f32[1,64], index: 6, kind: input, shape index: {}]   ;;  %s9606_s7 = inlined_call_operand.vmem [shape: f32[4,32], index: 7, kind: output, shape index: {0}]   ;;  %s9607_s8 = inlined_call_operand.vmem [shape: f32[4,32], index: 8, kind: output, shape index: {1}]  }
   0x1   :  { %15 = vsyncpa [#allocation5], 0 }
   0x2   :  { %16 = vsyncpa [#allocation8], 0 }
   0x3   :  { %17 = vsyncpa [#allocation11], 0  ;;  %s9070_s27 = smov [#allocation4]   ;;  %s8930_s9 = scalar_lea.hbm %s9600_s1, 50176 }
   0x4   :  { %s33_s28 = sshll.u32 %s9070_s27, 4  ;;  %p8931_p0 = scmp.ne.s32.totalorder %s9600_s1, %s8930_s9  ;;  %s34_s28 = int_to_ptr.vmem [resolvable:$true] %s33_s28 }
   0x5   :  { %p8934_p1 = scmp.lt.u32.totalorder %s8930_s9, %s9600_s1 }
   0x7   :  { %p8936_p2 = pnand %p8934_p1, %p8931_p0 }
   0x9   :  { %8939 = shalt.err (!%p8936_p2)
}
   0xa   :  { %s8940_s14 = scalar_lea.vmem %s34_s28, 50176  ;;  %p8945_p4 = scmp.lt.s32.totalorder %s34_s28, %s34_s28 }
   0xb   :  { %p8941_p3 = scmp.ne.s32.totalorder %s34_s28, %s8940_s14  ;;  %p8946_p5 = scmp.lt.s32.totalorder %s8940_s14, %s8940_s14 }
   0xd   :  { %p8947_p6 = por %p8946_p5, %p8945_p4 }
   0xf   :  { %p8948_p7 = pnand %p8947_p6, %p8941_p3 }
  0x11   :  { %8951 = shalt.err (!%p8948_p7)
}
  0x12   :  { %s9071_s15 = smov 512   ;;  %s9072_s16 = smov 32  }
  0x13   :  { %39 = dma.hbm_to_vmem [thread:$0]  %s9600_s1, 50176, %s34_s28, [#allocation5], %s9071_s15, %s9071_s15, %s9072_s16  }
  0x14   :  { %s9073_s19 = smov [#allocation7]   ;;  %s9074_s21 = smov [#allocation2]  }
  0x15   :  { %s55_s20 = sshll.u32 %s9073_s19, 4  ;;  %s24_s22 = sshll.u32 %s9074_s21, 4  ;;  %s56_s20 = int_to_ptr.vmem [resolvable:$true] %s55_s20  ;;  %s25_s22 = int_to_ptr.vmem [resolvable:$true] %s24_s22 }
  0x16   :  { %s8952_s25 = scalar_lea.hbm %s9602_s3, 65536 }
  0x17   :  { %p8953_p8 = scmp.ne.s32.totalorder %s9602_s3, %s8952_s25  ;;  %p8956_p9 = scmp.lt.u32.totalorder %s8952_s25, %s9602_s3 }
  0x19   :  { %p8958_p10 = pnand %p8956_p9, %p8953_p8 }
  0x1b   :  { %8961 = shalt.err (!%p8958_p10)
}
  0x1c   :  { %s8962_s1 = scalar_lea.vmem %s56_s20, 65536  ;;  %p8967_p12 = scmp.lt.s32.totalorder %s56_s20, %s56_s20 }
  0x1d   :  { %p8963_p11 = scmp.ne.s32.totalorder %s56_s20, %s8962_s1  ;;  %p8968_p13 = scmp.lt.s32.totalorder %s8962_s1, %s8962_s1 }
  0x1f   :  { %p8969_p0 = por %p8968_p13, %p8967_p12 }
  0x21   :  { %p8970_p1 = pnand %p8969_p0, %p8963_p11 }
  0x23   :  { %8973 = shalt.err (!%p8970_p1)
}
  0x24   :  { %61 = dma.hbm_to_vmem [thread:$0]  %s9602_s3, 65536, %s56_s20, [#allocation8], %s9071_s15, %s9071_s15, %s9072_s16  }
  0x25   :  { %s8974_s12 = scalar_lea.hbm %s9599_s0, 448 }
  0x26   :  { %p8975_p2 = scmp.ne.s32.totalorder %s9599_s0, %s8974_s12  ;;  %p8978_p3 = scmp.lt.u32.totalorder %s8974_s12, %s9599_s0 }
  0x28   :  { %p8980_p4 = pnand %p8978_p3, %p8975_p2 }
  0x2a   :  { %8983 = shalt.err (!%p8980_p4)
}
  0x2b   :  { %s8984_s19 = scalar_lea.vmem %s25_s22, 448  ;;  %p8989_p6 = scmp.lt.s32.totalorder %s25_s22, %s25_s22 }
  0x2c   :  { %p8985_p5 = scmp.ne.s32.totalorder %s25_s22, %s8984_s19  ;;  %p8990_p7 = scmp.lt.s32.totalorder %s8984_s19, %s8984_s19 }
  0x2e   :  { %p8991_p8 = por %p8990_p7, %p8989_p6 }
  0x30   :  { %p8992_p9 = pnand %p8991_p8, %p8985_p5 }
  0x32   :  { %8995 = shalt.err (!%p8992_p9)
}
  0x33   :  { %27 = dma.hbm_to_vmem [thread:$0]  %s9599_s0, 448, %s25_s22, [#allocation3]  }
  0x34   :  { %s9075_s16 = smov [#allocation6]   ;;  %s9076_s21 = smov [#allocation9]  }
  0x35   :  { %s46_s20 = sshll.u32 %s9075_s16, 4  ;;  %s68_s23 = sshll.u32 %s9076_s21, 4  ;;  %s47_s20 = int_to_ptr.vmem [resolvable:$true] %s46_s20  ;;  %s69_s23 = int_to_ptr.vmem [resolvable:$true] %s68_s23 }
  0x36   :  { %s8996_s26 = scalar_lea.hbm %s9601_s2, 128 }
  0x37   :  { %p8997_p10 = scmp.ne.s32.totalorder %s9601_s2, %s8996_s26  ;;  %p9000_p11 = scmp.lt.u32.totalorder %s8996_s26, %s9601_s2 }
  0x39   :  { %p9002_p12 = pnand %p9000_p11, %p8997_p10 }
  0x3b   :  { %9005 = shalt.err (!%p9002_p12)
}
  0x3c   :  { %s9006_s0 = scalar_lea.vmem %s47_s20, 128  ;;  %p9011_p0 = scmp.lt.s32.totalorder %s47_s20, %s47_s20 }
  0x3d   :  { %p9007_p13 = scmp.ne.s32.totalorder %s47_s20, %s9006_s0  ;;  %p9012_p1 = scmp.lt.s32.totalorder %s9006_s0, %s9006_s0 }
  0x3f   :  { %p9013_p2 = por %p9012_p1, %p9011_p0 }
  0x41   :  { %p9014_p3 = pnand %p9013_p2, %p9007_p13 }
  0x43   :  { %9017 = shalt.err (!%p9014_p3)
}
  0x44   :  { %49 = dma.hbm_to_vmem [thread:$0]  %s9601_s2, 128, %s47_s20, [#allocation5]  }
  0x45   :  { %s9018_s11 = scalar_lea.hbm %s9603_s4, 128 }
  0x46   :  { %p9019_p4 = scmp.ne.s32.totalorder %s9603_s4, %s9018_s11  ;;  %p9022_p5 = scmp.lt.u32.totalorder %s9018_s11, %s9603_s4 }
  0x48   :  { %p9024_p6 = pnand %p9022_p5, %p9019_p4 }
  0x4a   :  { %9027 = shalt.err (!%p9024_p6)
}
  0x4b   :  { %s9028_s18 = scalar_lea.vmem %s69_s23, 128  ;;  %p9033_p8 = scmp.lt.s32.totalorder %s69_s23, %s69_s23 }
  0x4c   :  { %p9029_p7 = scmp.ne.s32.totalorder %s69_s23, %s9028_s18  ;;  %p9034_p9 = scmp.lt.s32.totalorder %s9028_s18, %s9028_s18 }
  0x4e   :  { %p9035_p10 = por %p9034_p9, %p9033_p8 }
  0x50   :  { %p9036_p11 = pnand %p9035_p10, %p9029_p7 }
  0x52   :  { %9039 = shalt.err (!%p9036_p11)
}
  0x53   :  { %71 = dma.hbm_to_vmem [thread:$0]  %s9603_s4, 128, %s69_s23, [#allocation8]  }
  0x54   :  { %s9077_s3 = smov [#allocation10]   ;;  %s9040_s21 = scalar_lea.hbm %s9605_s6, 16 }
  0x55   :  { %s80_s15 = sshll.u32 %s9077_s3, 4  ;;  %p9041_p12 = scmp.ne.s32.totalorder %s9605_s6, %s9040_s21  ;;  %s81_s15 = int_to_ptr.vmem [resolvable:$true] %s80_s15 }
  0x56   :  { %p9044_p13 = scmp.lt.u32.totalorder %s9040_s21, %s9605_s6 }
  0x58   :  { %p9046_p0 = pnand %p9044_p13, %p9041_p12 }
  0x5a   :  { %9049 = shalt.err (!%p9046_p0)
}
  0x5b   :  { %s9050_s29 = scalar_lea.vmem %s81_s15, 16  ;;  %s9054_s4 = scalar_lea.vmem %s81_s15, 32 }
  0x5c   :  { %p9051_p1 = scmp.ne.s32.totalorder %s81_s15, %s9050_s29  ;;  %p9055_p2 = scmp.lt.s32.totalorder %s81_s15, %s81_s15 }
  0x5d   :  { %p9056_p3 = scmp.lt.s32.totalorder %s9054_s4, %s9050_s29 }
  0x5f   :  { %p9057_p4 = por %p9056_p3, %p9055_p2 }
  0x61   :  { %p9058_p5 = pnand %p9057_p4, %p9051_p1 }
  0x63   :  { %9061 = shalt.err (!%p9058_p5)
}
  0x64   :  { %83 = dma.hbm_to_vmem [thread:$0]  %s9605_s6, 16, %s81_s15, [#allocation11]  }
  0x65   :  { %9062 = dma.done.wait [#allocation3], 448  }
  0x66   :  { %9063 = vsyncadd [#allocation3], 4294966848 }
  0x67   :  { %9064 = dma.done.wait [#allocation5], 50304  }
  0x68   :  { %9065 = vsyncadd [#allocation5], 4294916992 }
  0x69   :  { %9066 = dma.done.wait [#allocation8], 65664  }
  0x6a   :  { %9067 = vsyncadd [#allocation8], 4294901632 }
  0x6b   :  { %9068 = dma.done.wait [#allocation11], 16  }
  0x6c   :  { %9069 = vsyncadd [#allocation11], 4294967280  ;;  %v107_v0 = vld [vmem:[#allocation4] sm:$0xff]  ;;  %v108_v2 = vld [vmem:[#allocation4 + $0x8] sm:$0xff]  ;;  %vm3159_vm0 = vcmask 130048   ;;  %vm7660_vm1 = vcmask 257024  }
  0x6d   :  { %v111_v1 = vld [vmem:[#allocation4 + $0x20] sm:$0xff]  ;;  %v112_v4 = vld [vmem:[#allocation4 + $0x28] sm:$0xff]  ;;  %s9079_s16 = smov 96  }
  0x6e   :  { %v7680_v3 = vcombine.high %v107_v0, %v111_v1  ;;  %v7679_v5 = vcombine.low %v107_v0, %v111_v1  ;;  %v115_v6 = vld [vmem:[#allocation4 + $0x40] sm:$0xff]  ;;  %v7682_v8 = vcombine.high %v108_v2, %v112_v4  ;;  %v7681_v9 = vcombine.low %v108_v2, %v112_v4  ;;  %v116_v11 = vld [vmem:[#allocation4 + $0x48] sm:$0xff] }
  0x6f   :  { %v119_v7 = vld [vmem:[#allocation4 + $0x60] sm:$0xff]  ;;  %v120_v12 = vld [vmem:[#allocation4 + $0x68] sm:$0xff] }
  0x70   :  { %v7688_v10 = vcombine.high %v115_v6, %v119_v7  ;;  %v123_v13 = vld [vmem:[#allocation4 + $0x80] sm:$0xff]  ;;  %3163 = vmatprep.subr.bf16.mxu0 %v7680_v3  ;;  %v7690_v14 = vcombine.high %v116_v11, %v120_v12  ;;  %v124_v16 = vld [vmem:[#allocation4 + $0x88] sm:$0xff]  ;;  %3327 = vmatprep.subr.bf16.mxu1 %v7682_v8  ;;  %v7687_v18 = vcombine.low %v115_v6, %v119_v7 }
  0x71   :  { %v127_v15 = vld [vmem:[#allocation4 + $0xa0] sm:$0xff]  ;;  %v128_v17 = vld [vmem:[#allocation4 + $0xa8] sm:$0xff]  ;;  %3164 = vmatpush1.bf16.msra.mxu0 %v7679_v5  ;;  %3328 = vmatpush1.bf16.msra.mxu1 %v7681_v9  ;;  %v7689_v19 = vcombine.low %v116_v11, %v120_v12 }
  0x72   :  { %3165 = vmatprep.subr.bf16.mxu0 %v7688_v10  ;;  %v7696_v20 = vcombine.high %v123_v13, %v127_v15  ;;  %3329 = vmatprep.subr.bf16.mxu1 %v7690_v14  ;;  %v7698_v21 = vcombine.high %v124_v16, %v128_v17  ;;  %v131_v22 = vld [vmem:[#allocation4 + $0xc0] sm:$0xff]  ;;  %v132_v24 = vld [vmem:[#allocation4 + $0xc8] sm:$0xff]  ;;  %v7695_v26 = vcombine.low %v123_v13, %v127_v15 }
  0x73   :  { %v135_v23 = vld [vmem:[#allocation4 + $0xe0] sm:$0xff]  ;;  %v136_v25 = vld [vmem:[#allocation4 + $0xe8] sm:$0xff]  ;;  %v7697_v27 = vcombine.low %v124_v16, %v128_v17 }
  0x74   :  { %v7704_v28 = vcombine.high %v131_v22, %v135_v23  ;;  %v7706_v29 = vcombine.high %v132_v24, %v136_v25  ;;  %v139_v30 = vld [vmem:[#allocation4 + $0x100] sm:$0xff]  ;;  %v140_v32 = vld [vmem:[#allocation4 + $0x108] sm:$0xff]  ;;  %v7703_v34 = vcombine.low %v131_v22, %v135_v23  ;;  %v7705_v35 = vcombine.low %v132_v24, %v136_v25 }
  0x75   :  { %3166 = vmatpush1.bf16.msra.mxu0 %v7687_v18  ;;  %3330 = vmatpush1.bf16.msra.mxu1 %v7689_v19  ;;  %v143_v31 = vld [vmem:[#allocation4 + $0x120] sm:$0xff]  ;;  %v144_v33 = vld [vmem:[#allocation4 + $0x128] sm:$0xff] }
  0x76   :  { %3167 = vmatprep.subr.bf16.mxu0 %v7696_v20  ;;  %3331 = vmatprep.subr.bf16.mxu1 %v7698_v21  ;;  %v7712_v36 = vcombine.high %v139_v30, %v143_v31  ;;  %v7714_v37 = vcombine.high %v140_v32, %v144_v33  ;;  %v147_v38 = vld [vmem:[#allocation4 + $0x140] sm:$0xff]  ;;  %v148_v40 = vld [vmem:[#allocation4 + $0x148] sm:$0xff]  ;;  %v7711_v42 = vcombine.low %v139_v30, %v143_v31 }
  0x77   :  { %v151_v39 = vld [vmem:[#allocation4 + $0x160] sm:$0xff]  ;;  %v152_v41 = vld [vmem:[#allocation4 + $0x168] sm:$0xff]  ;;  %v7713_v43 = vcombine.low %v140_v32, %v144_v33 }
  0x78   :  { %v7720_v44 = vcombine.high %v147_v38, %v151_v39  ;;  %v7722_v45 = vcombine.high %v148_v40, %v152_v41  ;;  %v155_v46 = vld [vmem:[#allocation4 + $0x180] sm:$0xff]  ;;  %v156_v48 = vld [vmem:[#allocation4 + $0x188] sm:$0xff]  ;;  %v7719_v50 = vcombine.low %v147_v38, %v151_v39  ;;  %v7721_v51 = vcombine.low %v148_v40, %v152_v41 }
  0x79   :  { %3168 = vmatpush1.bf16.msra.mxu0 %v7695_v26  ;;  %3332 = vmatpush1.bf16.msra.mxu1 %v7697_v27  ;;  %v159_v47 = vld [vmem:[#allocation4 + $0x1a0] sm:$0xff]  ;;  %v160_v49 = vld [vmem:[#allocation4 + $0x1a8] sm:$0xff] }
  0x7a   :  { %3169 = vmatprep.subr.bf16.mxu0 %v7704_v28  ;;  %3333 = vmatprep.subr.bf16.mxu1 %v7706_v29  ;;  %v7728_v52 = vcombine.high %v155_v46, %v159_v47  ;;  %v9197_v53 = vld [vmem:[#allocation2] sm:$0xff]  ;;  %v7730_v54 = vcombine.high %v156_v48, %v160_v49  ;;  %v7727_v60 = vcombine.low %v155_v46, %v159_v47 }
  0x7b   :  { %v163_v55 = vld [vmem:[#allocation4 + $0x1c0] sm:$0xff]  ;;  %v1145_v57 = vcombine.high %v9197_v53, %v9197_v53  ;;  %v164_v58 = vld [vmem:[#allocation4 + $0x1c8] sm:$0xff]  ;;  %v7729_v62 = vcombine.low %v156_v48, %v160_v49 }
  0x7c   :  { %v167_v56 = vld [vmem:[#allocation4 + $0x1e0] sm:$0xff]  ;;  %v168_v59 = vld [vmem:[#allocation4 + $0x1e8] sm:$0xff] }
  0x7d   :  { %3170 = vmatpush1.bf16.msra.mxu0 %v7703_v34  ;;  %3334 = vmatpush1.bf16.msra.mxu1 %v7705_v35  ;;  %v9201_v61 = vpack.c.bf16 %v1145_v57, %v1145_v57  ;;  %v7736_v63 = vcombine.high %v163_v55, %v167_v56  ;;  %v7738_v0 = vcombine.high %v164_v58, %v168_v59  ;;  %v171_v1 = vld [vmem:[#allocation4 + $0x200] sm:$0xff]  ;;  %v172_v3 = vld [vmem:[#allocation4 + $0x208] sm:$0xff] }
  0x7e   :  { %3171 = vmatprep.subr.bf16.mxu0 %v7712_v36  ;;  %3335 = vmatprep.subr.bf16.mxu1 %v7714_v37  ;;  %v175_v2 = vld [vmem:[#allocation4 + $0x220] sm:$0xff]  ;;  %v176_v4 = vld [vmem:[#allocation4 + $0x228] sm:$0xff]  ;;  %v7735_v5 = vcombine.low %v163_v55, %v167_v56  ;;  %v7737_v6 = vcombine.low %v164_v58, %v168_v59 }
  0x7f   :  { %3195 = vmatprep.mubr.bf16.mxu0 %v9201_v61  ;;  %3359 = vmatprep.mubr.bf16.mxu1 %v9201_v61  ;;  %v7744_v7 = vcombine.high %v171_v1, %v175_v2  ;;  %v7746_v8 = vcombine.high %v172_v3, %v176_v4  ;;  %v179_v9 = vld [vmem:[#allocation4 + $0x240] sm:$0xff]  ;;  %v180_v11 = vld [vmem:[#allocation4 + $0x248] sm:$0xff]  ;;  %v7743_v13 = vcombine.low %v171_v1, %v175_v2 }
  0x80   :  { %v183_v10 = vld [vmem:[#allocation4 + $0x260] sm:$0xff]  ;;  %v184_v12 = vld [vmem:[#allocation4 + $0x268] sm:$0xff]  ;;  %v7745_v14 = vcombine.low %v172_v3, %v176_v4 }
  0x81   :  { %3172 = vmatpush1.bf16.msra.mxu0 %v7711_v42  ;;  %3336 = vmatpush1.bf16.msra.mxu1 %v7713_v43  ;;  %v7752_v15 = vcombine.high %v179_v9, %v183_v10  ;;  %v7754_v16 = vcombine.high %v180_v11, %v184_v12  ;;  %v187_v17 = vld [vmem:[#allocation4 + $0x280] sm:$0xff]  ;;  %v188_v19 = vld [vmem:[#allocation4 + $0x288] sm:$0xff]  ;;  %v7751_v21 = vcombine.low %v179_v9, %v183_v10 }
  0x82   :  { %3173 = vmatprep.subr.bf16.mxu0 %v7720_v44  ;;  %3337 = vmatprep.subr.bf16.mxu1 %v7722_v45  ;;  %v191_v18 = vld [vmem:[#allocation4 + $0x2a0] sm:$0xff]  ;;  %v192_v20 = vld [vmem:[#allocation4 + $0x2a8] sm:$0xff]  ;;  %v7753_v22 = vcombine.low %v180_v11, %v184_v12 }
  0x83   :  { %v7760_v23 = vcombine.high %v187_v17, %v191_v18  ;;  %v7762_v24 = vcombine.high %v188_v19, %v192_v20  ;;  %v195_v25 = vld [vmem:[#allocation4 + $0x2c0] sm:$0xff]  ;;  %v196_v27 = vld [vmem:[#allocation4 + $0x2c8] sm:$0xff]  ;;  %v7759_v29 = vcombine.low %v187_v17, %v191_v18  ;;  %v7761_v30 = vcombine.low %v188_v19, %v192_v20 }
  0x84   :  { %v199_v26 = vld [vmem:[#allocation4 + $0x2e0] sm:$0xff]  ;;  %v200_v28 = vld [vmem:[#allocation4 + $0x2e8] sm:$0xff] }
  0x85   :  { %3174 = vmatpush1.bf16.msra.mxu0 %v7719_v50  ;;  %3338 = vmatpush1.bf16.msra.mxu1 %v7721_v51  ;;  %v7768_v31 = vcombine.high %v195_v25, %v199_v26  ;;  %v7770_v32 = vcombine.high %v196_v27, %v200_v28  ;;  %v203_v33 = vld [vmem:[#allocation4 + $0x300] sm:$0xff]  ;;  %v204_v35 = vld [vmem:[#allocation4 + $0x308] sm:$0xff]  ;;  %v7767_v37 = vcombine.low %v195_v25, %v199_v26 }
  0x86   :  { %3175 = vmatprep.subr.bf16.mxu0 %v7728_v52  ;;  %3339 = vmatprep.subr.bf16.mxu1 %v7730_v54  ;;  %v207_v34 = vld [vmem:[#allocation4 + $0x320] sm:$0xff]  ;;  %v208_v36 = vld [vmem:[#allocation4 + $0x328] sm:$0xff]  ;;  %v7769_v38 = vcombine.low %v196_v27, %v200_v28 }
  0x87   :  { %v7776_v39 = vcombine.high %v203_v33, %v207_v34  ;;  %v7778_v40 = vcombine.high %v204_v35, %v208_v36  ;;  %v211_v41 = vld [vmem:[#allocation4 + $0x340] sm:$0xff]  ;;  %v212_v43 = vld [vmem:[#allocation4 + $0x348] sm:$0xff]  ;;  %v7775_v45 = vcombine.low %v203_v33, %v207_v34  ;;  %v7777_v46 = vcombine.low %v204_v35, %v208_v36 }
  0x88   :  { %v215_v42 = vld [vmem:[#allocation4 + $0x360] sm:$0xff]  ;;  %v216_v44 = vld [vmem:[#allocation4 + $0x368] sm:$0xff] }
  0x89   :  { %3176 = vmatpush1.bf16.msra.mxu0 %v7727_v60  ;;  %3340 = vmatpush1.bf16.msra.mxu1 %v7729_v62  ;;  %v7784_v47 = vcombine.high %v211_v41, %v215_v42  ;;  %v7786_v48 = vcombine.high %v212_v43, %v216_v44  ;;  %v219_v49 = vld [vmem:[#allocation4 + $0x380] sm:$0xff]  ;;  %v220_v51 = vld [vmem:[#allocation4 + $0x388] sm:$0xff]  ;;  %v7783_v54 = vcombine.low %v211_v41, %v215_v42 }
  0x8a   :  { %3177 = vmatprep.subr.bf16.mxu0 %v7736_v63  ;;  %3341 = vmatprep.subr.bf16.mxu1 %v7738_v0  ;;  %v223_v50 = vld [vmem:[#allocation4 + $0x3a0] sm:$0xff]  ;;  %v224_v52 = vld [vmem:[#allocation4 + $0x3a8] sm:$0xff]  ;;  %v7785_v55 = vcombine.low %v212_v43, %v216_v44 }
  0x8b   :  { %v7792_v56 = vcombine.high %v219_v49, %v223_v50  ;;  %v7794_v57 = vcombine.high %v220_v51, %v224_v52  ;;  %v227_v58 = vld [vmem:[#allocation4 + $0x3c0] sm:$0xff]  ;;  %v228_v60 = vld [vmem:[#allocation4 + $0x3c8] sm:$0xff]  ;;  %v7791_v63 = vcombine.low %v219_v49, %v223_v50  ;;  %v7793_v0 = vcombine.low %v220_v51, %v224_v52 }
  0x8c   :  { %v231_v59 = vld [vmem:[#allocation4 + $0x3e0] sm:$0xff]  ;;  %v232_v62 = vld [vmem:[#allocation4 + $0x3e8] sm:$0xff] }
  0x8d   :  { %3178 = vmatpush1.bf16.msra.mxu0 %v7735_v5  ;;  %3342 = vmatpush1.bf16.msra.mxu1 %v7737_v6  ;;  %v7800_v1 = vcombine.high %v227_v58, %v231_v59  ;;  %v7802_v2 = vcombine.high %v228_v60, %v232_v62  ;;  %v235_v3 = vld [vmem:[#allocation4 + $0x400] sm:$0xff]  ;;  %v236_v5 = vld [vmem:[#allocation4 + $0x408] sm:$0xff]  ;;  %v7801_v9 = vcombine.low %v228_v60, %v232_v62 }
  0x8e   :  { %3179 = vmatprep.subr.bf16.mxu0 %v7744_v7  ;;  %3343 = vmatprep.subr.bf16.mxu1 %v7746_v8  ;;  %v239_v4 = vld [vmem:[#allocation4 + $0x420] sm:$0xff]  ;;  %v240_v6 = vld [vmem:[#allocation4 + $0x428] sm:$0xff]  ;;  %v7799_v8 = vcombine.low %v227_v58, %v231_v59 }
  0x8f   :  { %v9205_v7 = vld [vmem:[#allocation2 + $0x8] sm:$0xff]  ;;  %v7808_v10 = vcombine.high %v235_v3, %v239_v4  ;;  %v7810_v11 = vcombine.high %v236_v5, %v240_v6  ;;  %v243_v12 = vld [vmem:[#allocation4 + $0x440] sm:$0xff]  ;;  %v7807_v18 = vcombine.low %v235_v3, %v239_v4 }
  0x90   :  { %v248_v17 = vld [vmem:[#allocation4 + $0x468] sm:$0xff]  ;;  %v251_v19 = vld [vmem:[#allocation4 + $0x480] sm:$0xff] }
  0x91   :  { %3180 = vmatpush1.bf16.msra.mxu0 %v7743_v13  ;;  %3344 = vmatpush1.bf16.msra.mxu1 %v7745_v14  ;;  %v247_v13 = vld [vmem:[#allocation4 + $0x460] sm:$0xff]  ;;  %v1146_v14 = vcombine.high %v9205_v7, %v9205_v7  ;;  %v252_v25 = vld [vmem:[#allocation4 + $0x488] sm:$0xff] }
  0x92   :  { %3181 = vmatprep.subr.bf16.mxu0 %v7752_v15  ;;  %3345 = vmatprep.subr.bf16.mxu1 %v7754_v16  ;;  %v9211_v15 = vpack.c.bf16 %v9197_v53, %v9197_v53  ;;  %v244_v16 = vld [vmem:[#allocation4 + $0x448] sm:$0xff]  ;;  %v255_v20 = vld [vmem:[#allocation4 + $0x4a0] sm:$0xff]  ;;  %v7815_v53 = vcombine.low %v243_v12, %v247_v13 }
  0x93   :  { %v256_v26 = vld [vmem:[#allocation4 + $0x4a8] sm:$0xff]  ;;  %v7817_v27 = vcombine.low %v244_v16, %v248_v17  ;;  %v7824_v28 = vcombine.high %v251_v19, %v255_v20  ;;  %v7823_v34 = vcombine.low %v251_v19, %v255_v20  ;;  %v267_v35 = vld [vmem:[#allocation4 + $0x500] sm:$0xff] }
  0x94   :  { %v264_v33 = vld [vmem:[#allocation4 + $0x4e8] sm:$0xff]  ;;  %v271_v36 = vld [vmem:[#allocation4 + $0x520] sm:$0xff] }
  0x95   :  { %3182 = vmatpush1.bf16.msra.mxu0 %v7751_v21  ;;  %3346 = vmatpush1.bf16.msra.mxu1 %v7753_v22  ;;  %v7809_v21 = vcombine.low %v236_v5, %v240_v6  ;;  %v7816_v22 = vcombine.high %v243_v12, %v247_v13  ;;  %v275_v43 = vld [vmem:[#allocation4 + $0x540] sm:$0xff]  ;;  %v7839_v50 = vcombine.low %v267_v35, %v271_v36  ;;  %v288_v58 = vld [vmem:[#allocation4 + $0x5a8] sm:$0xff] }
  0x96   :  { %3183 = vmatprep.subr.bf16.mxu0 %v7760_v23  ;;  %3347 = vmatprep.subr.bf16.mxu1 %v7762_v24  ;;  %v7818_v23 = vcombine.high %v244_v16, %v248_v17  ;;  %v9213_v24 = vpack.c.bf16 %v1146_v14, %v1146_v14  ;;  %v279_v44 = vld [vmem:[#allocation4 + $0x560] sm:$0xff]  ;;  %v296_v3 = vld [vmem:[#allocation4 + $0x5e8] sm:$0xff] }
  0x97   :  { %v7848_v52 = vcombine.high %v275_v43, %v279_v44  ;;  %v7847_v59 = vcombine.low %v275_v43, %v279_v44  ;;  %v304_v12 = vld [vmem:[#allocation4 + $0x628] sm:$0xff]  ;;  %v307_v17 = vld [vmem:[#allocation4 + $0x640] sm:$0xff] }
  0x98   :  { %v308_v19 = vld [vmem:[#allocation4 + $0x648] sm:$0xff] }
  0x99   :  { %3184 = vmatpush1.bf16.msra.mxu0 %v7759_v29  ;;  %3348 = vmatpush1.bf16.msra.mxu1 %v7761_v30  ;;  %v7826_v29 = vcombine.high %v252_v25, %v256_v26  ;;  %v259_v30 = vld [vmem:[#allocation4 + $0x4c0] sm:$0xff]  ;;  %v332_v43 = vld [vmem:[#allocation4 + $0x708] sm:$0xff] }
  0x9a   :  { %3185 = vmatprep.subr.bf16.mxu0 %v7768_v31  ;;  %3349 = vmatprep.subr.bf16.mxu1 %v7770_v32  ;;  %v263_v31 = vld [vmem:[#allocation4 + $0x4e0] sm:$0xff]  ;;  %v260_v32 = vld [vmem:[#allocation4 + $0x4c8] sm:$0xff] }
  0x9b   :  { %v7834_v41 = vcombine.high %v260_v32, %v264_v33  ;;  %v7831_v42 = vcombine.low %v259_v30, %v263_v31 }
  0x9d   :  { %3186 = vmatpush1.bf16.msra.mxu0 %v7767_v37  ;;  %3350 = vmatpush1.bf16.msra.mxu1 %v7769_v38  ;;  %v7825_v37 = vcombine.low %v252_v25, %v256_v26  ;;  %v7832_v38 = vcombine.high %v259_v30, %v263_v31  ;;  %v315_v26 = vld [vmem:[#allocation4 + $0x680] sm:$0xff] }
  0x9e   :  { %3187 = vmatprep.subr.bf16.mxu0 %v7776_v39  ;;  %3351 = vmatprep.subr.bf16.mxu1 %v7778_v40  ;;  %v268_v39 = vld [vmem:[#allocation4 + $0x508] sm:$0xff] }
  0x9f   :  { %v272_v40 = vld [vmem:[#allocation4 + $0x528] sm:$0xff] }
  0xa0   :  { %v7842_v49 = vcombine.high %v268_v39, %v272_v40  ;;  %v7841_v51 = vcombine.low %v268_v39, %v272_v40 }
  0xa1   :  { %3188 = vmatpush1.bf16.msra.mxu0 %v7775_v45  ;;  %3352 = vmatpush1.bf16.msra.mxu1 %v7777_v46  ;;  %v7833_v45 = vcombine.low %v260_v32, %v264_v33  ;;  %v7840_v46 = vcombine.high %v267_v35, %v271_v36  ;;  %v323_v33 = vld [vmem:[#allocation4 + $0x6c0] sm:$0xff]  ;;  %v324_v35 = vld [vmem:[#allocation4 + $0x6c8] sm:$0xff] }
  0xa2   :  { %3189 = vmatprep.subr.bf16.mxu0 %v7784_v47  ;;  %3353 = vmatprep.subr.bf16.mxu1 %v7786_v48  ;;  %v276_v47 = vld [vmem:[#allocation4 + $0x548] sm:$0xff] }
  0xa3   :  { %v280_v48 = vld [vmem:[#allocation4 + $0x568] sm:$0xff] }
  0xa4   :  { %v7849_v60 = vcombine.low %v276_v47, %v280_v48 }
  0xa5   :  { %3190 = vmatpush1.bf16.msra.mxu0 %v7783_v54  ;;  %3354 = vmatpush1.bf16.msra.mxu1 %v7785_v55  ;;  %v283_v54 = vld [vmem:[#allocation4 + $0x580] sm:$0xff] }
  0xa6   :  { %3191 = vmatprep.subr.bf16.mxu0 %v7792_v56  ;;  %3355 = vmatprep.subr.bf16.mxu1 %v7794_v57  ;;  %v287_v55 = vld [vmem:[#allocation4 + $0x5a0] sm:$0xff]  ;;  %v284_v56 = vld [vmem:[#allocation4 + $0x588] sm:$0xff]  ;;  %v7850_v57 = vcombine.high %v276_v47, %v280_v48 }
  0xa7   :  { %v7856_v62 = vcombine.high %v283_v54, %v287_v55  ;;  %v7855_v4 = vcombine.low %v283_v54, %v287_v55  ;;  %v7857_v5 = vcombine.low %v284_v56, %v288_v58  ;;  %v344_v54 = vld [vmem:[#allocation4 + $0x768] sm:$0xff] }
  0xa9   :  { %3192 = vmatpush1.bf16.msra.mxu0 %v7791_v63  ;;  %3356 = vmatpush1.bf16.msra.mxu1 %v7793_v0  ;;  %v291_v63 = vld [vmem:[#allocation4 + $0x5c0] sm:$0xff] }
  0xaa   :  { %3193 = vmatprep.subr.bf16.mxu0 %v7800_v1  ;;  %3357 = vmatprep.subr.bf16.mxu1 %v7802_v2  ;;  %v295_v0 = vld [vmem:[#allocation4 + $0x5e0] sm:$0xff]  ;;  %v292_v1 = vld [vmem:[#allocation4 + $0x5c8] sm:$0xff]  ;;  %v7858_v2 = vcombine.high %v284_v56, %v288_v58 }
  0xab   :  { %v7864_v6 = vcombine.high %v291_v63, %v295_v0  ;;  %v7863_v13 = vcombine.low %v291_v63, %v295_v0  ;;  %v7865_v14 = vcombine.low %v292_v1, %v296_v3  ;;  %v347_v58 = vld [vmem:[#allocation4 + $0x780] sm:$0xff]  ;;  %v352_v63 = vld [vmem:[#allocation4 + $0x7a8] sm:$0xff] }
  0xad   :  { %3194 = vmatpush1.bf16.msra.mxu0 %v7799_v8  ;;  %3358 = vmatpush1.bf16.msra.mxu1 %v7801_v9  ;;  %v299_v8 = vld [vmem:[#allocation4 + $0x600] sm:$0xff] }
  0xae   :  { %3204 = vmatprep.subr.bf16.mxu0 %v7808_v10  ;;  %3368 = vmatprep.subr.bf16.mxu1 %v7810_v11  ;;  %v303_v9 = vld [vmem:[#allocation4 + $0x620] sm:$0xff]  ;;  %v300_v10 = vld [vmem:[#allocation4 + $0x608] sm:$0xff]  ;;  %v7866_v11 = vcombine.high %v292_v1, %v296_v3 }
  0xaf   :  { %v7872_v16 = vcombine.high %v299_v8, %v303_v9  ;;  %v7874_v20 = vcombine.high %v300_v10, %v304_v12  ;;  %v355_v3 = vld [vmem:[#allocation4 + $0x7c0] sm:$0xff] }
  0xb0   :  { %3196 = vmatmul.mubr.bf16.vlgmr.msra.gmra.mrb[0].mxu0 %v9211_v15  ;;  %3360 = vmatmul.mubr.bf16.vlgmr.msra.gmra.mrb[0].mxu1 %v9211_v15 }
  0xb1   :  { %3205 = vmatpush1.bf16.msra.mxu0 %v7807_v18  ;;  %3369 = vmatpush1.bf16.msra.mxu1 %v7809_v21  ;;  %v311_v18 = vld [vmem:[#allocation4 + $0x660] sm:$0xff]  ;;  %v312_v21 = vld [vmem:[#allocation4 + $0x668] sm:$0xff] }
  0xb2   :  { %3206 = vmatprep.subr.bf16.mxu0 %v7816_v22  ;;  %3370 = vmatprep.subr.bf16.mxu1 %v7818_v23  ;;  %v7871_v22 = vcombine.low %v299_v8, %v303_v9  ;;  %v7873_v23 = vcombine.low %v300_v10, %v304_v12  ;;  %v7880_v25 = vcombine.high %v307_v17, %v311_v18  ;;  %v360_v8 = vld [vmem:[#allocation4 + $0x7e8] sm:$0xff]  ;;  %v363_v10 = vld [vmem:[#allocation4 + $0x800] sm:$0xff] }
  0xb3   :  { %3236 = vmatprep.mubr.bf16.mxu0 %v9213_v24  ;;  %3400 = vmatprep.mubr.bf16.mxu1 %v9213_v24  ;;  %v7879_v30 = vcombine.low %v307_v17, %v311_v18  ;;  %v7881_v31 = vcombine.low %v308_v19, %v312_v21  ;;  %v9219_v18 = vld [vmem:[#allocation2 + $0x10] sm:$0xff] }
  0xb5   :  { %3207 = vmatpush1.bf16.msra.mxu0 %v7815_v53  ;;  %3371 = vmatpush1.bf16.msra.mxu1 %v7817_v27  ;;  %v319_v53 = vld [vmem:[#allocation4 + $0x6a0] sm:$0xff]  ;;  %v316_v27 = vld [vmem:[#allocation4 + $0x688] sm:$0xff] }
  0xb6   :  { %3208 = vmatprep.subr.bf16.mxu0 %v7824_v28  ;;  %3372 = vmatprep.subr.bf16.mxu1 %v7826_v29  ;;  %v7882_v28 = vcombine.high %v308_v19, %v312_v21  ;;  %v320_v29 = vld [vmem:[#allocation4 + $0x6a8] sm:$0xff]  ;;  %v7888_v32 = vcombine.high %v315_v26, %v319_v53 }
  0xb7   :  { %v7890_v36 = vcombine.high %v316_v27, %v320_v29  ;;  %v7889_v39 = vcombine.low %v316_v27, %v320_v29  ;;  %v372_v27 = vld [vmem:[#allocation4 + $0x848] sm:$0xff] }
  0xb9   :  { %3209 = vmatpush1.bf16.msra.mxu0 %v7823_v34  ;;  %3373 = vmatpush1.bf16.msra.mxu1 %v7825_v37  ;;  %v327_v34 = vld [vmem:[#allocation4 + $0x6e0] sm:$0xff]  ;;  %v328_v37 = vld [vmem:[#allocation4 + $0x6e8] sm:$0xff] }
  0xba   :  { %3210 = vmatprep.subr.bf16.mxu0 %v7832_v38  ;;  %3374 = vmatprep.subr.bf16.mxu1 %v7834_v41  ;;  %v7887_v38 = vcombine.low %v315_v26, %v319_v53  ;;  %v7896_v40 = vcombine.high %v323_v33, %v327_v34  ;;  %v331_v41 = vld [vmem:[#allocation4 + $0x700] sm:$0xff]  ;;  %v7898_v44 = vcombine.high %v324_v35, %v328_v37 }
  0xbb   :  { %v7897_v47 = vcombine.low %v324_v35, %v328_v37  ;;  %v1147_v26 = vcombine.high %v9219_v18, %v9219_v18  ;;  %v9225_v53 = vpack.c.bf16 %v9205_v7, %v9205_v7  ;;  %v384_v37 = vld [vmem:[#allocation4 + $0x8a8] sm:$0xff] }
  0xbd   :  { %3211 = vmatpush1.bf16.msra.mxu0 %v7831_v42  ;;  %3375 = vmatpush1.bf16.msra.mxu1 %v7833_v45  ;;  %v335_v42 = vld [vmem:[#allocation4 + $0x720] sm:$0xff]  ;;  %v336_v45 = vld [vmem:[#allocation4 + $0x728] sm:$0xff]  ;;  %v9227_v35 = vpack.c.bf16 %v1147_v26, %v1147_v26 }
  0xbe   :  { %3212 = vmatprep.subr.bf16.mxu0 %v7840_v46  ;;  %3376 = vmatprep.subr.bf16.mxu1 %v7842_v49  ;;  %v7895_v46 = vcombine.low %v323_v33, %v327_v34  ;;  %v7904_v48 = vcombine.high %v331_v41, %v335_v42  ;;  %v339_v49 = vld [vmem:[#allocation4 + $0x740] sm:$0xff]  ;;  %v7903_v55 = vcombine.low %v331_v41, %v335_v42  ;;  %v432_v26 = vld [vmem:[#allocation4 + $0xa28] sm:$0xff] }
  0xbf   :  { %v7905_v56 = vcombine.low %v332_v43, %v336_v45  ;;  %v379_v33 = vld [vmem:[#allocation4 + $0x880] sm:$0xff] }
  0xc0   :  { %v383_v34 = vld [vmem:[#allocation4 + $0x8a0] sm:$0xff] }
  0xc1   :  { %3213 = vmatpush1.bf16.msra.mxu0 %v7839_v50  ;;  %3377 = vmatpush1.bf16.msra.mxu1 %v7841_v51  ;;  %v343_v50 = vld [vmem:[#allocation4 + $0x760] sm:$0xff]  ;;  %v340_v51 = vld [vmem:[#allocation4 + $0x748] sm:$0xff] }
  0xc2   :  { %3214 = vmatprep.subr.bf16.mxu0 %v7848_v52  ;;  %3378 = vmatprep.subr.bf16.mxu1 %v7850_v57  ;;  %v7906_v52 = vcombine.high %v332_v43, %v336_v45  ;;  %v7912_v57 = vcombine.high %v339_v49, %v343_v50  ;;  %v7911_v0 = vcombine.low %v339_v49, %v343_v50  ;;  %v387_v41 = vld [vmem:[#allocation4 + $0x8c0] sm:$0xff]  ;;  %v388_v43 = vld [vmem:[#allocation4 + $0x8c8] sm:$0xff] }
  0xc3   :  { %v7913_v1 = vcombine.low %v340_v51, %v344_v54  ;;  %v391_v42 = vld [vmem:[#allocation4 + $0x8e0] sm:$0xff]  ;;  %v7951_v45 = vcombine.low %v379_v33, %v383_v34 }
  0xc4   :  { %v395_v49 = vld [vmem:[#allocation4 + $0x900] sm:$0xff] }
  0xc5   :  { %3215 = vmatpush1.bf16.msra.mxu0 %v7847_v59  ;;  %3379 = vmatpush1.bf16.msra.mxu1 %v7849_v60  ;;  %v351_v59 = vld [vmem:[#allocation4 + $0x7a0] sm:$0xff]  ;;  %v348_v60 = vld [vmem:[#allocation4 + $0x788] sm:$0xff] }
  0xc6   :  { %3216 = vmatprep.subr.bf16.mxu0 %v7856_v62  ;;  %3380 = vmatprep.subr.bf16.mxu1 %v7858_v2  ;;  %v7914_v62 = vcombine.high %v340_v51, %v344_v54  ;;  %v7920_v2 = vcombine.high %v347_v58, %v351_v59  ;;  %v7919_v9 = vcombine.low %v347_v58, %v351_v59  ;;  %v399_v50 = vld [vmem:[#allocation4 + $0x920] sm:$0xff]  ;;  %v396_v51 = vld [vmem:[#allocation4 + $0x908] sm:$0xff] }
  0xc7   :  { %v7959_v54 = vcombine.low %v387_v41, %v391_v42  ;;  %v403_v58 = vld [vmem:[#allocation4 + $0x940] sm:$0xff] }
  0xc8   :  { %v407_v59 = vld [vmem:[#allocation4 + $0x960] sm:$0xff] }
  0xc9   :  { %3217 = vmatpush1.bf16.msra.mxu0 %v7855_v4  ;;  %3381 = vmatpush1.bf16.msra.mxu1 %v7857_v5  ;;  %v359_v4 = vld [vmem:[#allocation4 + $0x7e0] sm:$0xff]  ;;  %v356_v5 = vld [vmem:[#allocation4 + $0x7c8] sm:$0xff] }
  0xca   :  { %3218 = vmatprep.subr.bf16.mxu0 %v7864_v6  ;;  %3382 = vmatprep.subr.bf16.mxu1 %v7866_v11  ;;  %v7922_v6 = vcombine.high %v348_v60, %v352_v63  ;;  %v7921_v11 = vcombine.low %v348_v60, %v352_v63  ;;  %v7928_v12 = vcombine.high %v355_v3, %v359_v4  ;;  %v404_v60 = vld [vmem:[#allocation4 + $0x948] sm:$0xff] }
  0xcb   :  { %v7930_v17 = vcombine.high %v356_v5, %v360_v8  ;;  %v7927_v19 = vcombine.low %v355_v3, %v359_v4  ;;  %v7967_v63 = vcombine.low %v395_v49, %v399_v50  ;;  %v411_v3 = vld [vmem:[#allocation4 + $0x980] sm:$0xff] }
  0xcc   :  { %v415_v4 = vld [vmem:[#allocation4 + $0x9a0] sm:$0xff] }
  0xcd   :  { %3219 = vmatpush1.bf16.msra.mxu0 %v7863_v13  ;;  %3383 = vmatpush1.bf16.msra.mxu1 %v7865_v14  ;;  %v367_v13 = vld [vmem:[#allocation4 + $0x820] sm:$0xff]  ;;  %v364_v14 = vld [vmem:[#allocation4 + $0x808] sm:$0xff] }
  0xce   :  { %3220 = vmatprep.subr.bf16.mxu0 %v7872_v16  ;;  %3384 = vmatprep.subr.bf16.mxu1 %v7874_v20  ;;  %v368_v16 = vld [vmem:[#allocation4 + $0x828] sm:$0xff]  ;;  %v7929_v20 = vcombine.low %v356_v5, %v360_v8  ;;  %v7936_v21 = vcombine.high %v363_v10, %v367_v13  ;;  %v7935_v29 = vcombine.low %v363_v10, %v367_v13  ;;  %v423_v13 = vld [vmem:[#allocation4 + $0x9e0] sm:$0xff] }
  0xcf   :  { %v412_v5 = vld [vmem:[#allocation4 + $0x988] sm:$0xff]  ;;  %v7975_v8 = vcombine.low %v403_v58, %v407_v59  ;;  %v7984_v10 = vcombine.high %v411_v3, %v415_v4 }
  0xd1   :  { %3221 = vmatpush1.bf16.msra.mxu0 %v7871_v22  ;;  %3385 = vmatpush1.bf16.msra.mxu1 %v7873_v23  ;;  %v371_v22 = vld [vmem:[#allocation4 + $0x840] sm:$0xff]  ;;  %v7938_v23 = vcombine.high %v364_v14, %v368_v16 }
  0xd2   :  { %3222 = vmatprep.subr.bf16.mxu0 %v7880_v25  ;;  %3386 = vmatprep.subr.bf16.mxu1 %v7882_v28  ;;  %v375_v25 = vld [vmem:[#allocation4 + $0x860] sm:$0xff]  ;;  %v376_v28 = vld [vmem:[#allocation4 + $0x868] sm:$0xff] }
  0xd3   :  { %v7943_v7 = vcombine.low %v371_v22, %v375_v25 }
  0xd5   :  { %3223 = vmatpush1.bf16.msra.mxu0 %v7879_v30  ;;  %3387 = vmatpush1.bf16.msra.mxu1 %v7881_v31  ;;  %v7937_v30 = vcombine.low %v364_v14, %v368_v16  ;;  %v7944_v31 = vcombine.high %v371_v22, %v375_v25  ;;  %v420_v14 = vld [vmem:[#allocation4 + $0x9c8] sm:$0xff]  ;;  %v427_v22 = vld [vmem:[#allocation4 + $0xa00] sm:$0xff] }
  0xd6   :  { %3224 = vmatprep.subr.bf16.mxu0 %v7888_v32  ;;  %3388 = vmatprep.subr.bf16.mxu1 %v7890_v36  ;;  %v7946_v32 = vcombine.high %v372_v27, %v376_v28  ;;  %v380_v36 = vld [vmem:[#allocation4 + $0x888] sm:$0xff] }
  0xd7   :  { %v424_v16 = vld [vmem:[#allocation4 + $0x9e8] sm:$0xff] }
  0xd8   :  { %v428_v25 = vld [vmem:[#allocation4 + $0xa08] sm:$0xff] }
  0xd9   :  { %3225 = vmatpush1.bf16.msra.mxu0 %v7887_v38  ;;  %3389 = vmatpush1.bf16.msra.mxu1 %v7889_v39  ;;  %v7945_v38 = vcombine.low %v372_v27, %v376_v28  ;;  %v7952_v39 = vcombine.high %v379_v33, %v383_v34  ;;  %v7993_v28 = vcombine.low %v420_v14, %v424_v16  ;;  %v436_v33 = vld [vmem:[#allocation4 + $0xa48] sm:$0xff] }
  0xda   :  { %3226 = vmatprep.subr.bf16.mxu0 %v7896_v40  ;;  %3390 = vmatprep.subr.bf16.mxu1 %v7898_v44  ;;  %v7954_v40 = vcombine.high %v380_v36, %v384_v37  ;;  %v392_v44 = vld [vmem:[#allocation4 + $0x8e8] sm:$0xff] }
  0xdb   :  { %v440_v34 = vld [vmem:[#allocation4 + $0xa68] sm:$0xff] }
  0xdd   :  { %3227 = vmatpush1.bf16.msra.mxu0 %v7895_v46  ;;  %3391 = vmatpush1.bf16.msra.mxu1 %v7897_v47  ;;  %v7953_v46 = vcombine.low %v380_v36, %v384_v37  ;;  %v7960_v47 = vcombine.high %v387_v41, %v391_v42  ;;  %v8001_v37 = vcombine.low %v428_v25, %v432_v26  ;;  %v444_v41 = vld [vmem:[#allocation4 + $0xa88] sm:$0xff] }
  0xde   :  { %3228 = vmatprep.subr.bf16.mxu0 %v7904_v48  ;;  %3392 = vmatprep.subr.bf16.mxu1 %v7906_v52  ;;  %v7962_v48 = vcombine.high %v388_v43, %v392_v44  ;;  %v400_v52 = vld [vmem:[#allocation4 + $0x928] sm:$0xff] }
  0xdf   :  { %v448_v42 = vld [vmem:[#allocation4 + $0xaa8] sm:$0xff] }
  0xe1   :  { %3229 = vmatpush1.bf16.msra.mxu0 %v7903_v55  ;;  %3393 = vmatpush1.bf16.msra.mxu1 %v7905_v56  ;;  %v7961_v55 = vcombine.low %v388_v43, %v392_v44  ;;  %v7968_v56 = vcombine.high %v395_v49, %v399_v50  ;;  %v8009_v44 = vcombine.low %v436_v33, %v440_v34  ;;  %v452_v49 = vld [vmem:[#allocation4 + $0xac8] sm:$0xff] }
  0xe2   :  { %3230 = vmatprep.subr.bf16.mxu0 %v7912_v57  ;;  %3394 = vmatprep.subr.bf16.mxu1 %v7914_v62  ;;  %v7970_v57 = vcombine.high %v396_v51, %v400_v52  ;;  %v408_v62 = vld [vmem:[#allocation4 + $0x968] sm:$0xff] }
  0xe3   :  { %v456_v50 = vld [vmem:[#allocation4 + $0xae8] sm:$0xff] }
  0xe5   :  { %3231 = vmatpush1.bf16.msra.mxu0 %v7911_v0  ;;  %3395 = vmatpush1.bf16.msra.mxu1 %v7913_v1  ;;  %v7969_v0 = vcombine.low %v396_v51, %v400_v52  ;;  %v7976_v1 = vcombine.high %v403_v58, %v407_v59  ;;  %v8017_v52 = vcombine.low %v444_v41, %v448_v42  ;;  %v460_v58 = vld [vmem:[#allocation4 + $0xb08] sm:$0xff] }
  0xe6   :  { %3232 = vmatprep.subr.bf16.mxu0 %v7920_v2  ;;  %3396 = vmatprep.subr.bf16.mxu1 %v7922_v6  ;;  %v7978_v2 = vcombine.high %v404_v60, %v408_v62  ;;  %v416_v6 = vld [vmem:[#allocation4 + $0x9a8] sm:$0xff] }
  0xe7   :  { %v464_v59 = vld [vmem:[#allocation4 + $0xb28] sm:$0xff] }
  0xe9   :  { %3233 = vmatpush1.bf16.msra.mxu0 %v7919_v9  ;;  %3397 = vmatpush1.bf16.msra.mxu1 %v7921_v11  ;;  %v7977_v9 = vcombine.low %v404_v60, %v408_v62  ;;  %v7986_v11 = vcombine.high %v412_v5, %v416_v6  ;;  %v8025_v62 = vcombine.low %v452_v49, %v456_v50 }
  0xea   :  { %3234 = vmatprep.subr.bf16.mxu0 %v7928_v12  ;;  %3398 = vmatprep.subr.bf16.mxu1 %v7930_v17  ;;  %v419_v12 = vld [vmem:[#allocation4 + $0x9c0] sm:$0xff]  ;;  %v7983_v17 = vcombine.low %v411_v3, %v415_v4  ;;  %v468_v3 = vld [vmem:[#allocation4 + $0xb48] sm:$0xff] }
  0xeb   :  { %v7991_v27 = vcombine.low %v419_v12, %v423_v13  ;;  %v472_v4 = vld [vmem:[#allocation4 + $0xb68] sm:$0xff] }
  0xed   :  { %3235 = vmatpush1.bf16.msra.mxu0 %v7927_v19  ;;  %3399 = vmatpush1.bf16.msra.mxu1 %v7929_v20  ;;  %v7985_v19 = vcombine.low %v412_v5, %v416_v6  ;;  %v7992_v20 = vcombine.high %v419_v12, %v423_v13  ;;  %v8033_v6 = vcombine.low %v460_v58, %v464_v59  ;;  %v476_v12 = vld [vmem:[#allocation4 + $0xb88] sm:$0xff] }
  0xee   :  { %3245 = vmatprep.subr.bf16.mxu0 %v7936_v21  ;;  %3409 = vmatprep.subr.bf16.mxu1 %v7938_v23  ;;  %v7994_v21 = vcombine.high %v420_v14, %v424_v16  ;;  %v431_v23 = vld [vmem:[#allocation4 + $0xa20] sm:$0xff]  ;;  %v480_v13 = vld [vmem:[#allocation4 + $0xba8] sm:$0xff]  ;;  %v8041_v16 = vcombine.low %v468_v3, %v472_v4 }
  0xef   :  { %v7999_v36 = vcombine.low %v427_v22, %v431_v23 }
  0xf0   :  { %3237 = vmatmul.mubr.bf16.vlgmr.msra.gmra.mrb[0].mxu0 %v9225_v53  ;;  %3401 = vmatmul.mubr.bf16.vlgmr.msra.gmra.mrb[0].mxu1 %v9225_v53 }
  0xf1   :  { %3246 = vmatpush1.bf16.msra.mxu0 %v7935_v29  ;;  %3410 = vmatpush1.bf16.msra.mxu1 %v7937_v30  ;;  %v8000_v29 = vcombine.high %v427_v22, %v431_v23  ;;  %v8002_v30 = vcombine.high %v428_v25, %v432_v26  ;;  %v484_v22 = vld [vmem:[#allocation4 + $0xbc8] sm:$0xff]  ;;  %v8049_v26 = vcombine.low %v476_v12, %v480_v13 }
  0xf2   :  { %3247 = vmatprep.subr.bf16.mxu0 %v7944_v31  ;;  %3411 = vmatprep.subr.bf16.mxu1 %v7946_v32  ;;  %v435_v31 = vld [vmem:[#allocation4 + $0xa40] sm:$0xff]  ;;  %v488_v23 = vld [vmem:[#allocation4 + $0xbe8] sm:$0xff] }
  0xf3   :  { %3277 = vmatprep.mubr.bf16.mxu0 %v9227_v35  ;;  %3441 = vmatprep.mubr.bf16.mxu1 %v9227_v35  ;;  %v439_v32 = vld [vmem:[#allocation4 + $0xa60] sm:$0xff] }
  0xf4   :  { %v8007_v43 = vcombine.low %v435_v31, %v439_v32 }
  0xf5   :  { %3248 = vmatpush1.bf16.msra.mxu0 %v7943_v7  ;;  %3412 = vmatpush1.bf16.msra.mxu1 %v7945_v38  ;;  %v8008_v7 = vcombine.high %v435_v31, %v439_v32  ;;  %v8010_v38 = vcombine.high %v436_v33, %v440_v34  ;;  %v492_v31 = vld [vmem:[#allocation4 + $0xc08] sm:$0xff]  ;;  %v8057_v34 = vcombine.low %v484_v22, %v488_v23 }
  0xf6   :  { %3249 = vmatprep.subr.bf16.mxu0 %v7952_v39  ;;  %3413 = vmatprep.subr.bf16.mxu1 %v7954_v40  ;;  %v443_v39 = vld [vmem:[#allocation4 + $0xa80] sm:$0xff]  ;;  %v496_v32 = vld [vmem:[#allocation4 + $0xc28] sm:$0xff] }
  0xf7   :  { %v447_v40 = vld [vmem:[#allocation4 + $0xaa0] sm:$0xff] }
  0xf8   :  { %v8015_v51 = vcombine.low %v443_v39, %v447_v40 }
  0xf9   :  { %3250 = vmatpush1.bf16.msra.mxu0 %v7951_v45  ;;  %3414 = vmatpush1.bf16.msra.mxu1 %v7953_v46  ;;  %v8016_v45 = vcombine.high %v443_v39, %v447_v40  ;;  %v8018_v46 = vcombine.high %v444_v41, %v448_v42  ;;  %v113_v39 = vld [vmem:[#allocation4 + $0x30] sm:$0xff]  ;;  %v110_v41 = vld [vmem:[#allocation4 + $0x18] sm:$0xff] }
  0xfa   :  { %3251 = vmatprep.subr.bf16.mxu0 %v7960_v47  ;;  %3415 = vmatprep.subr.bf16.mxu1 %v7962_v48  ;;  %v451_v47 = vld [vmem:[#allocation4 + $0xac0] sm:$0xff]  ;;  %v114_v42 = vld [vmem:[#allocation4 + $0x38] sm:$0xff] }
  0xfb   :  { %v455_v48 = vld [vmem:[#allocation4 + $0xae0] sm:$0xff] }
  0xfc   :  { %v8023_v60 = vcombine.low %v451_v47, %v455_v48 }
  0xfd   :  { %3252 = vmatpush1.bf16.msra.mxu0 %v7959_v54  ;;  %3416 = vmatpush1.bf16.msra.mxu1 %v7961_v55  ;;  %v8024_v54 = vcombine.high %v451_v47, %v455_v48  ;;  %v8026_v55 = vcombine.high %v452_v49, %v456_v50  ;;  %v117_v47 = vld [vmem:[#allocation4 + $0x50] sm:$0xff]  ;;  %v118_v50 = vld [vmem:[#allocation4 + $0x58] sm:$0xff] }
  0xfe   :  { %3253 = vmatprep.subr.bf16.mxu0 %v7968_v56  ;;  %3417 = vmatprep.subr.bf16.mxu1 %v7970_v57  ;;  %v459_v56 = vld [vmem:[#allocation4 + $0xb00] sm:$0xff]  ;;  %v121_v48 = vld [vmem:[#allocation4 + $0x70] sm:$0xff] }
  0xff   :  { %v463_v57 = vld [vmem:[#allocation4 + $0xb20] sm:$0xff] }
 0x100   :  { %v8031_v5 = vcombine.low %v459_v56, %v463_v57 }
 0x101   :  { %3254 = vmatpush1.bf16.msra.mxu0 %v7967_v63  ;;  %3418 = vmatpush1.bf16.msra.mxu1 %v7969_v0  ;;  %v8032_v63 = vcombine.high %v459_v56, %v463_v57  ;;  %v8034_v0 = vcombine.high %v460_v58, %v464_v59  ;;  %v125_v57 = vld [vmem:[#allocation4 + $0x90] sm:$0xff]  ;;  %v126_v59 = vld [vmem:[#allocation4 + $0x98] sm:$0xff] }
 0x102   :  { %3255 = vmatprep.subr.bf16.mxu0 %v7976_v1  ;;  %3419 = vmatprep.subr.bf16.mxu1 %v7978_v2  ;;  %v467_v1 = vld [vmem:[#allocation4 + $0xb40] sm:$0xff]  ;;  %v129_v58 = vld [vmem:[#allocation4 + $0xb0] sm:$0xff] }
 0x103   :  { %v471_v2 = vld [vmem:[#allocation4 + $0xb60] sm:$0xff] }
 0x104   :  { %v8039_v14 = vcombine.low %v467_v1, %v471_v2 }
 0x105   :  { %3256 = vmatpush1.bf16.msra.mxu0 %v7975_v8  ;;  %3420 = vmatpush1.bf16.msra.mxu1 %v7977_v9  ;;  %v8040_v8 = vcombine.high %v467_v1, %v471_v2  ;;  %v8042_v9 = vcombine.high %v468_v3, %v472_v4  ;;  %v133_v2 = vld [vmem:[#allocation4 + $0xd0] sm:$0xff]  ;;  %v134_v4 = vld [vmem:[#allocation4 + $0xd8] sm:$0xff] }
 0x106   :  { %3257 = vmatprep.subr.bf16.mxu0 %v7984_v10  ;;  %3421 = vmatprep.subr.bf16.mxu1 %v7986_v11  ;;  %v475_v10 = vld [vmem:[#allocation4 + $0xb80] sm:$0xff]  ;;  %v137_v3 = vld [vmem:[#allocation4 + $0xf0] sm:$0xff] }
 0x107   :  { %v479_v11 = vld [vmem:[#allocation4 + $0xba0] sm:$0xff] }
 0x108   :  { %v8047_v25 = vcombine.low %v475_v10, %v479_v11 }
 0x109   :  { %3258 = vmatpush1.bf16.msra.mxu0 %v7983_v17  ;;  %3422 = vmatpush1.bf16.msra.mxu1 %v7985_v19  ;;  %v8048_v17 = vcombine.high %v475_v10, %v479_v11  ;;  %v8050_v19 = vcombine.high %v476_v12, %v480_v13  ;;  %v141_v11 = vld [vmem:[#allocation4 + $0x110] sm:$0xff]  ;;  %v142_v13 = vld [vmem:[#allocation4 + $0x118] sm:$0xff] }
 0x10a   :  { %3259 = vmatprep.subr.bf16.mxu0 %v7992_v20  ;;  %3423 = vmatprep.subr.bf16.mxu1 %v7994_v21  ;;  %v483_v20 = vld [vmem:[#allocation4 + $0xbc0] sm:$0xff]  ;;  %v145_v12 = vld [vmem:[#allocation4 + $0x130] sm:$0xff] }
 0x10b   :  { %v487_v21 = vld [vmem:[#allocation4 + $0xbe0] sm:$0xff] }
 0x10c   :  { %v8055_v33 = vcombine.low %v483_v20, %v487_v21 }
 0x10d   :  { %3260 = vmatpush1.bf16.msra.mxu0 %v7991_v27  ;;  %3424 = vmatpush1.bf16.msra.mxu1 %v7993_v28  ;;  %v8056_v27 = vcombine.high %v483_v20, %v487_v21  ;;  %v8058_v28 = vcombine.high %v484_v22, %v488_v23  ;;  %v149_v20 = vld [vmem:[#allocation4 + $0x150] sm:$0xff]  ;;  %v150_v22 = vld [vmem:[#allocation4 + $0x158] sm:$0xff] }
 0x10e   :  { %3261 = vmatprep.subr.bf16.mxu0 %v8000_v29  ;;  %3425 = vmatprep.subr.bf16.mxu1 %v8002_v30  ;;  %v491_v29 = vld [vmem:[#allocation4 + $0xc00] sm:$0xff]  ;;  %v153_v21 = vld [vmem:[#allocation4 + $0x170] sm:$0xff]  ;;  %v154_v23 = vld [vmem:[#allocation4 + $0x178] sm:$0xff] }
 0x10f   :  { %v495_v30 = vld [vmem:[#allocation4 + $0xc20] sm:$0xff] }
 0x110   :  { %v8063_v40 = vcombine.low %v491_v29, %v495_v30 }
 0x111   :  { %3262 = vmatpush1.bf16.msra.mxu0 %v7999_v36  ;;  %3426 = vmatpush1.bf16.msra.mxu1 %v8001_v37  ;;  %v8064_v36 = vcombine.high %v491_v29, %v495_v30  ;;  %v8066_v37 = vcombine.high %v492_v31, %v496_v32  ;;  %v157_v29 = vld [vmem:[#allocation4 + $0x190] sm:$0xff] }
 0x112   :  { %3263 = vmatprep.subr.bf16.mxu0 %v8008_v7  ;;  %3427 = vmatprep.subr.bf16.mxu1 %v8010_v38  ;;  %v9235_v7 = vpack.c.bf16 %v9219_v18, %v9219_v18  ;;  %v109_v38 = vld [vmem:[#allocation4 + $0x10] sm:$0xff]  ;;  %v9078_v18 = vmov 0  }
 0x113   :  { %v161_v30 = vld [vmem:[#allocation4 + $0x1b0] sm:$0xff] }
 0x115   :  { %3264 = vmatpush1.bf16.msra.mxu0 %v8007_v43  ;;  %3428 = vmatpush1.bf16.msra.mxu1 %v8009_v44  ;;  %v8065_v43 = vcombine.low %v492_v31, %v496_v32  ;;  %v7684_v44 = vcombine.high %v109_v38, %v113_v39  ;;  %v158_v31 = vld [vmem:[#allocation4 + $0x198] sm:$0xff] }
 0x116   :  { %3265 = vmatprep.subr.bf16.mxu0 %v8016_v45  ;;  %3429 = vmatprep.subr.bf16.mxu1 %v8018_v46  ;;  %v7686_v45 = vcombine.high %v110_v41, %v114_v42  ;;  %v106_v46 = vld [vmem:[#allocation2 + $0x18] sm:$0xf] }
 0x117   :  { %v9241_v49 = vpack.c.bf16 %v106_v46, %v106_v46  ;;  %v162_v32 = vld [vmem:[#allocation4 + $0x1b8] sm:$0xff]  ;;  %v173_v46 = vld [vmem:[#allocation4 + $0x210] sm:$0xff] }
 0x119   :  { %3266 = vmatpush1.bf16.msra.mxu0 %v8015_v51  ;;  %3430 = vmatpush1.bf16.msra.mxu1 %v8017_v52  ;;  %v122_v51 = vld [vmem:[#allocation4 + $0x78] sm:$0xff]  ;;  %v7683_v52 = vcombine.low %v109_v38, %v113_v39  ;;  %v165_v38 = vld [vmem:[#allocation4 + $0x1d0] sm:$0xff] }
 0x11a   :  { %3267 = vmatprep.subr.bf16.mxu0 %v8024_v54  ;;  %3431 = vmatprep.subr.bf16.mxu1 %v8026_v55  ;;  %v7685_v54 = vcombine.low %v110_v41, %v114_v42  ;;  %v7692_v55 = vcombine.high %v117_v47, %v121_v48  ;;  %v7694_v56 = vcombine.high %v118_v50, %v122_v51  ;;  %v169_v39 = vld [vmem:[#allocation4 + $0x1f0] sm:$0xff]  ;;  %v170_v41 = vld [vmem:[#allocation4 + $0x1f8] sm:$0xff] }
 0x11b   :  { %v7731_v42 = vcombine.low %v157_v29, %v161_v30 }
 0x11d   :  { %3268 = vmatpush1.bf16.msra.mxu0 %v8023_v60  ;;  %3432 = vmatpush1.bf16.msra.mxu1 %v8025_v62  ;;  %v130_v60 = vld [vmem:[#allocation4 + $0xb8] sm:$0xff]  ;;  %v7691_v62 = vcombine.low %v117_v47, %v121_v48  ;;  %v177_v47 = vld [vmem:[#allocation4 + $0x230] sm:$0xff] }
 0x11e   :  { %3269 = vmatprep.subr.bf16.mxu0 %v8032_v63  ;;  %3433 = vmatprep.subr.bf16.mxu1 %v8034_v0  ;;  %v7693_v63 = vcombine.low %v118_v50, %v122_v51  ;;  %v7700_v0 = vcombine.high %v125_v57, %v129_v58  ;;  %v7702_v1 = vcombine.high %v126_v59, %v130_v60  ;;  %v174_v48 = vld [vmem:[#allocation4 + $0x218] sm:$0xff] }
 0x11f   :  { %v178_v50 = vld [vmem:[#allocation4 + $0x238] sm:$0xff]  ;;  %v7739_v51 = vcombine.low %v165_v38, %v169_v39 }
 0x121   :  { %3270 = vmatpush1.bf16.msra.mxu0 %v8031_v5  ;;  %3434 = vmatpush1.bf16.msra.mxu1 %v8033_v6  ;;  %v138_v5 = vld [vmem:[#allocation4 + $0xf8] sm:$0xff]  ;;  %v7699_v6 = vcombine.low %v125_v57, %v129_v58  ;;  %v185_v57 = vld [vmem:[#allocation4 + $0x270] sm:$0xff] }
 0x122   :  { %3271 = vmatprep.subr.bf16.mxu0 %v8040_v8  ;;  %3435 = vmatprep.subr.bf16.mxu1 %v8042_v9  ;;  %v7701_v8 = vcombine.low %v126_v59, %v130_v60  ;;  %v7708_v9 = vcombine.high %v133_v2, %v137_v3  ;;  %v7710_v10 = vcombine.high %v134_v4, %v138_v5  ;;  %v182_v58 = vld [vmem:[#allocation4 + $0x258] sm:$0xff] }
 0x123   :  { %v186_v59 = vld [vmem:[#allocation4 + $0x278] sm:$0xff]  ;;  %v7747_v60 = vcombine.low %v173_v46, %v177_v47 }
 0x125   :  { %3272 = vmatpush1.bf16.msra.mxu0 %v8039_v14  ;;  %3436 = vmatpush1.bf16.msra.mxu1 %v8041_v16  ;;  %v146_v14 = vld [vmem:[#allocation4 + $0x138] sm:$0xff]  ;;  %v7707_v16 = vcombine.low %v133_v2, %v137_v3  ;;  %v193_v2 = vld [vmem:[#allocation4 + $0x2b0] sm:$0xff] }
 0x126   :  { %3273 = vmatprep.subr.bf16.mxu0 %v8048_v17  ;;  %3437 = vmatprep.subr.bf16.mxu1 %v8050_v19  ;;  %v7709_v17 = vcombine.low %v134_v4, %v138_v5  ;;  %v7716_v19 = vcombine.high %v141_v11, %v145_v12  ;;  %v190_v3 = vld [vmem:[#allocation4 + $0x298] sm:$0xff] }
 0x127   :  { %v194_v4 = vld [vmem:[#allocation4 + $0x2b8] sm:$0xff] }
 0x129   :  { %3274 = vmatpush1.bf16.msra.mxu0 %v8047_v25  ;;  %3438 = vmatpush1.bf16.msra.mxu1 %v8049_v26  ;;  %v7715_v25 = vcombine.low %v141_v11, %v145_v12  ;;  %v7717_v26 = vcombine.low %v142_v13, %v146_v14  ;;  %v201_v11 = vld [vmem:[#allocation4 + $0x2f0] sm:$0xff]  ;;  %v198_v12 = vld [vmem:[#allocation4 + $0x2d8] sm:$0xff] }
 0x12a   :  { %3275 = vmatprep.subr.bf16.mxu0 %v8056_v27  ;;  %3439 = vmatprep.subr.bf16.mxu1 %v8058_v28  ;;  %v7724_v27 = vcombine.high %v149_v20, %v153_v21  ;;  %v7726_v28 = vcombine.high %v150_v22, %v154_v23 }
 0x12d   :  { %3276 = vmatpush1.bf16.msra.mxu0 %v8055_v33  ;;  %3440 = vmatpush1.bf16.msra.mxu1 %v8057_v34  ;;  %v7723_v33 = vcombine.low %v149_v20, %v153_v21  ;;  %v7725_v34 = vcombine.low %v150_v22, %v154_v23  ;;  %v209_v20 = vld [vmem:[#allocation4 + $0x330] sm:$0xff]  ;;  %v206_v21 = vld [vmem:[#allocation4 + $0x318] sm:$0xff] }
 0x12e   :  { %3286 = vmatprep.subr.bf16.mxu0 %v8064_v36  ;;  %3450 = vmatprep.subr.bf16.mxu1 %v8066_v37  ;;  %v7732_v36 = vcombine.high %v157_v29, %v161_v30  ;;  %v7734_v37 = vcombine.high %v158_v31, %v162_v32  ;;  %v210_v22 = vld [vmem:[#allocation4 + $0x338] sm:$0xff]  ;;  %v217_v29 = vld [vmem:[#allocation4 + $0x370] sm:$0xff] }
 0x12f   :  { %v214_v30 = vld [vmem:[#allocation4 + $0x358] sm:$0xff] }
 0x130   :  { %3278 = vmatmul.mubr.bf16.vlgmr.msra.gmra.mrb[0].mxu0 %v9235_v7  ;;  %3442 = vmatmul.mubr.bf16.vlgmr.msra.gmra.mrb[0].mxu1 %v9235_v7 }
 0x131   :  { %3287 = vmatpush1.bf16.msra.mxu0 %v8063_v40  ;;  %3451 = vmatpush1.bf16.msra.mxu1 %v8065_v43  ;;  %v166_v40 = vld [vmem:[#allocation4 + $0x1d8] sm:$0xff]  ;;  %v7733_v43 = vcombine.low %v158_v31, %v162_v32 }
 0x132   :  { %3318 = vmatprep.mubr.bf16.mxu0 %v9078_v18  ;;  %3482 = vmatprep.mubr.bf16.mxu1 %v9078_v18  ;;  %v218_v31 = vld [vmem:[#allocation4 + $0x378] sm:$0xff] }
 0x133   :  { %3491 = vmatprep.subr.bf16.mxu0 %v7684_v44  ;;  %3655 = vmatprep.subr.bf16.mxu1 %v7686_v45  ;;  %v7740_v44 = vcombine.high %v165_v38, %v169_v39  ;;  %v7742_v45 = vcombine.high %v166_v40, %v170_v41  ;;  %v225_v38 = vld [vmem:[#allocation4 + $0x3b0] sm:$0xff]  ;;  %v222_v39 = vld [vmem:[#allocation4 + $0x398] sm:$0xff] }
 0x13c   :  { %8071 = vmatmul.mubr.msk.bf16.vlgmr.msra.gmra.mrb[0].mxu0 %vm3159_vm0, %v9241_v49  ;;  %8072 = vmatmul.mubr.msk.bf16.vlgmr.msra.gmra.mrb[0].mxu1 %vm3159_vm0, %v9241_v49 }
 0x13d   :  { %3492 = vmatpush1.bf16.msra.mxu0 %v7683_v52  ;;  %3656 = vmatpush1.bf16.msra.mxu1 %v7685_v54  ;;  %v7741_v52 = vcombine.low %v166_v40, %v170_v41  ;;  %v7748_v54 = vcombine.high %v173_v46, %v177_v47  ;;  %v226_v40 = vld [vmem:[#allocation4 + $0x3b8] sm:$0xff]  ;;  %v233_v46 = vld [vmem:[#allocation4 + $0x3f0] sm:$0xff] }
 0x13e   :  { %3493 = vmatprep.subr.bf16.mxu0 %v7692_v55  ;;  %3657 = vmatprep.subr.bf16.mxu1 %v7694_v56  ;;  %v7750_v55 = vcombine.high %v174_v48, %v178_v50  ;;  %v181_v56 = vld [vmem:[#allocation4 + $0x250] sm:$0xff]  ;;  %v230_v47 = vld [vmem:[#allocation4 + $0x3d8] sm:$0xff] }
 0x13f   :  { %3523 = vmatprep.mubr.bf16.mxu0 %v9201_v61  ;;  %3687 = vmatprep.mubr.bf16.mxu1 %v9201_v61  ;;  %v7718_v61 = vcombine.high %v142_v13, %v146_v14  ;;  %v7755_v5 = vcombine.low %v181_v56, %v185_v57  ;;  %v202_v13 = vld [vmem:[#allocation4 + $0x2f8] sm:$0xff] }
 0x141   :  { %3494 = vmatpush1.bf16.msra.mxu0 %v7691_v62  ;;  %3658 = vmatpush1.bf16.msra.mxu1 %v7693_v63  ;;  %v7749_v62 = vcombine.low %v174_v48, %v178_v50  ;;  %v7756_v63 = vcombine.high %v181_v56, %v185_v57  ;;  %v234_v48 = vld [vmem:[#allocation4 + $0x3f8] sm:$0xff]  ;;  %v241_v56 = vld [vmem:[#allocation4 + $0x430] sm:$0xff] }
 0x142   :  { %3495 = vmatprep.subr.bf16.mxu0 %v7700_v0  ;;  %3659 = vmatprep.subr.bf16.mxu1 %v7702_v1  ;;  %v7758_v0 = vcombine.high %v182_v58, %v186_v59  ;;  %v189_v1 = vld [vmem:[#allocation4 + $0x290] sm:$0xff]  ;;  %v238_v57 = vld [vmem:[#allocation4 + $0x418] sm:$0xff] }
 0x143   :  { %v7763_v14 = vcombine.low %v189_v1, %v193_v2 }
 0x145   :  { %3496 = vmatpush1.bf16.msra.mxu0 %v7699_v6  ;;  %3660 = vmatpush1.bf16.msra.mxu1 %v7701_v8  ;;  %v7757_v6 = vcombine.low %v182_v58, %v186_v59  ;;  %v7764_v8 = vcombine.high %v189_v1, %v193_v2  ;;  %v242_v58 = vld [vmem:[#allocation4 + $0x438] sm:$0xff]  ;;  %v249_v1 = vld [vmem:[#allocation4 + $0x470] sm:$0xff] }
 0x146   :  { %3497 = vmatprep.subr.bf16.mxu0 %v7708_v9  ;;  %3661 = vmatprep.subr.bf16.mxu1 %v7710_v10  ;;  %v7766_v9 = vcombine.high %v190_v3, %v194_v4  ;;  %v197_v10 = vld [vmem:[#allocation4 + $0x2d0] sm:$0xff]  ;;  %v246_v2 = vld [vmem:[#allocation4 + $0x458] sm:$0xff] }
 0x147   :  { %v7771_v23 = vcombine.low %v197_v10, %v201_v11 }
 0x149   :  { %3498 = vmatpush1.bf16.msra.mxu0 %v7707_v16  ;;  %3662 = vmatpush1.bf16.msra.mxu1 %v7709_v17  ;;  %v7765_v16 = vcombine.low %v190_v3, %v194_v4  ;;  %v7772_v17 = vcombine.high %v197_v10, %v201_v11  ;;  %v250_v3 = vld [vmem:[#allocation4 + $0x478] sm:$0xff]  ;;  %v257_v10 = vld [vmem:[#allocation4 + $0x4b0] sm:$0xff] }
 0x14a   :  { %3499 = vmatprep.subr.bf16.mxu0 %v7716_v19  ;;  %3663 = vmatprep.subr.bf16.mxu1 %v7718_v61  ;;  %v7774_v19 = vcombine.high %v198_v12, %v202_v13  ;;  %v205_v61 = vld [vmem:[#allocation4 + $0x310] sm:$0xff]  ;;  %v254_v11 = vld [vmem:[#allocation4 + $0x498] sm:$0xff] }
 0x14b   :  { %v7779_v32 = vcombine.low %v205_v61, %v209_v20 }
 0x14d   :  { %3500 = vmatpush1.bf16.msra.mxu0 %v7715_v25  ;;  %3664 = vmatpush1.bf16.msra.mxu1 %v7717_v26  ;;  %v7773_v25 = vcombine.low %v198_v12, %v202_v13  ;;  %v7780_v26 = vcombine.high %v205_v61, %v209_v20  ;;  %v258_v12 = vld [vmem:[#allocation4 + $0x4b8] sm:$0xff]  ;;  %v265_v61 = vld [vmem:[#allocation4 + $0x4f0] sm:$0xff] }
 0x14e   :  { %3501 = vmatprep.subr.bf16.mxu0 %v7724_v27  ;;  %3665 = vmatprep.subr.bf16.mxu1 %v7726_v28  ;;  %v7782_v27 = vcombine.high %v206_v21, %v210_v22  ;;  %v213_v28 = vld [vmem:[#allocation4 + $0x350] sm:$0xff]  ;;  %v262_v20 = vld [vmem:[#allocation4 + $0x4d8] sm:$0xff] }
 0x14f   :  { %v7787_v41 = vcombine.low %v213_v28, %v217_v29 }
 0x151   :  { %3502 = vmatpush1.bf16.msra.mxu0 %v7723_v33  ;;  %3666 = vmatpush1.bf16.msra.mxu1 %v7725_v34  ;;  %v7781_v33 = vcombine.low %v206_v21, %v210_v22  ;;  %v7788_v34 = vcombine.high %v213_v28, %v217_v29  ;;  %v266_v21 = vld [vmem:[#allocation4 + $0x4f8] sm:$0xff] }
 0x152   :  { %3503 = vmatprep.subr.bf16.mxu0 %v7732_v36  ;;  %3667 = vmatprep.subr.bf16.mxu1 %v7734_v37  ;;  %v7790_v36 = vcombine.high %v214_v30, %v218_v31  ;;  %v221_v37 = vld [vmem:[#allocation4 + $0x390] sm:$0xff]  ;;  %v270_v28 = vld [vmem:[#allocation4 + $0x518] sm:$0xff] }
 0x153   :  { %v7795_v50 = vcombine.low %v221_v37, %v225_v38  ;;  %v274_v29 = vld [vmem:[#allocation4 + $0x538] sm:$0xff] }
 0x155   :  { %3504 = vmatpush1.bf16.msra.mxu0 %v7731_v42  ;;  %3668 = vmatpush1.bf16.msra.mxu1 %v7733_v43  ;;  %v7789_v42 = vcombine.low %v214_v30, %v218_v31  ;;  %v7796_v43 = vcombine.high %v221_v37, %v225_v38  ;;  %v7837_v31 = vcombine.low %v262_v20, %v266_v21  ;;  %v282_v37 = vld [vmem:[#allocation4 + $0x578] sm:$0xff] }
 0x156   :  { %3505 = vmatprep.subr.bf16.mxu0 %v7740_v44  ;;  %3669 = vmatprep.subr.bf16.mxu1 %v7742_v45  ;;  %v7798_v44 = vcombine.high %v222_v39, %v226_v40  ;;  %v229_v45 = vld [vmem:[#allocation4 + $0x3d0] sm:$0xff] }
 0x157   :  { %v7803_v59 = vcombine.low %v229_v45, %v233_v46 }
 0x159   :  { %3506 = vmatpush1.bf16.msra.mxu0 %v7739_v51  ;;  %3670 = vmatpush1.bf16.msra.mxu1 %v7741_v52  ;;  %v7797_v51 = vcombine.low %v222_v39, %v226_v40  ;;  %v7804_v52 = vcombine.high %v229_v45, %v233_v46  ;;  %v7845_v39 = vcombine.low %v270_v28, %v274_v29  ;;  %v290_v45 = vld [vmem:[#allocation4 + $0x5b8] sm:$0xff] }
 0x15a   :  { %3507 = vmatprep.subr.bf16.mxu0 %v7748_v54  ;;  %3671 = vmatprep.subr.bf16.mxu1 %v7750_v55  ;;  %v7806_v54 = vcombine.high %v230_v47, %v234_v48  ;;  %v237_v55 = vld [vmem:[#allocation4 + $0x410] sm:$0xff] }
 0x15b   :  { %v7811_v4 = vcombine.low %v237_v55, %v241_v56 }
 0x15d   :  { %3508 = vmatpush1.bf16.msra.mxu0 %v7747_v60  ;;  %3672 = vmatpush1.bf16.msra.mxu1 %v7749_v62  ;;  %v7805_v60 = vcombine.low %v230_v47, %v234_v48  ;;  %v7812_v62 = vcombine.high %v237_v55, %v241_v56  ;;  %v298_v55 = vld [vmem:[#allocation4 + $0x5f8] sm:$0xff] }
 0x15e   :  { %3509 = vmatprep.subr.bf16.mxu0 %v7756_v63  ;;  %3673 = vmatprep.subr.bf16.mxu1 %v7758_v0  ;;  %v7814_v63 = vcombine.high %v238_v57, %v242_v58  ;;  %v245_v0 = vld [vmem:[#allocation4 + $0x450] sm:$0xff] }
 0x15f   :  { %v7819_v13 = vcombine.low %v245_v0, %v249_v1 }
 0x161   :  { %3510 = vmatpush1.bf16.msra.mxu0 %v7755_v5  ;;  %3674 = vmatpush1.bf16.msra.mxu1 %v7757_v6  ;;  %v7813_v5 = vcombine.low %v238_v57, %v242_v58  ;;  %v7820_v6 = vcombine.high %v245_v0, %v249_v1  ;;  %v306_v0 = vld [vmem:[#allocation4 + $0x638] sm:$0xff] }
 0x162   :  { %3511 = vmatprep.subr.bf16.mxu0 %v7764_v8  ;;  %3675 = vmatprep.subr.bf16.mxu1 %v7766_v9  ;;  %v7822_v8 = vcombine.high %v246_v2, %v250_v3  ;;  %v253_v9 = vld [vmem:[#allocation4 + $0x490] sm:$0xff] }
 0x163   :  { %v7827_v22 = vcombine.low %v253_v9, %v257_v10 }
 0x165   :  { %3512 = vmatpush1.bf16.msra.mxu0 %v7763_v14  ;;  %3676 = vmatpush1.bf16.msra.mxu1 %v7765_v16  ;;  %v7821_v14 = vcombine.low %v246_v2, %v250_v3  ;;  %v7828_v16 = vcombine.high %v253_v9, %v257_v10  ;;  %v314_v9 = vld [vmem:[#allocation4 + $0x678] sm:$0xff] }
 0x166   :  { %3513 = vmatprep.subr.bf16.mxu0 %v7772_v17  ;;  %3677 = vmatprep.subr.bf16.mxu1 %v7774_v19  ;;  %v7830_v17 = vcombine.high %v254_v11, %v258_v12  ;;  %v261_v19 = vld [vmem:[#allocation4 + $0x4d0] sm:$0xff] }
 0x167   :  { %v7835_v30 = vcombine.low %v261_v19, %v265_v61 }
 0x169   :  { %3514 = vmatpush1.bf16.msra.mxu0 %v7771_v23  ;;  %3678 = vmatpush1.bf16.msra.mxu1 %v7773_v25  ;;  %v7836_v23 = vcombine.high %v261_v19, %v265_v61  ;;  %v7838_v25 = vcombine.high %v262_v20, %v266_v21  ;;  %v322_v19 = vld [vmem:[#allocation4 + $0x6b8] sm:$0xff] }
 0x16a   :  { %3515 = vmatprep.subr.bf16.mxu0 %v7780_v26  ;;  %3679 = vmatprep.subr.bf16.mxu1 %v7782_v27  ;;  %v269_v26 = vld [vmem:[#allocation4 + $0x510] sm:$0xff] }
 0x16b   :  { %v273_v27 = vld [vmem:[#allocation4 + $0x530] sm:$0xff] }
 0x16c   :  { %v7843_v38 = vcombine.low %v269_v26, %v273_v27 }
 0x16d   :  { %3516 = vmatpush1.bf16.msra.mxu0 %v7779_v32  ;;  %3680 = vmatpush1.bf16.msra.mxu1 %v7781_v33  ;;  %v7844_v32 = vcombine.high %v269_v26, %v273_v27  ;;  %v277_v33 = vld [vmem:[#allocation4 + $0x550] sm:$0xff]  ;;  %v330_v26 = vld [vmem:[#allocation4 + $0x6f8] sm:$0xff] }
 0x16e   :  { %3517 = vmatprep.subr.bf16.mxu0 %v7788_v34  ;;  %3681 = vmatprep.subr.bf16.mxu1 %v7790_v36  ;;  %v281_v34 = vld [vmem:[#allocation4 + $0x570] sm:$0xff]  ;;  %v278_v36 = vld [vmem:[#allocation4 + $0x558] sm:$0xff] }
 0x16f   :  { %v7852_v40 = vcombine.high %v277_v33, %v281_v34  ;;  %v7851_v46 = vcombine.low %v277_v33, %v281_v34  ;;  %v7853_v47 = vcombine.low %v278_v36, %v282_v37  ;;  %v338_v33 = vld [vmem:[#allocation4 + $0x738] sm:$0xff] }
 0x171   :  { %3518 = vmatpush1.bf16.msra.mxu0 %v7787_v41  ;;  %3682 = vmatpush1.bf16.msra.mxu1 %v7789_v42  ;;  %v7854_v41 = vcombine.high %v278_v36, %v282_v37  ;;  %v285_v42 = vld [vmem:[#allocation4 + $0x590] sm:$0xff] }
 0x172   :  { %3519 = vmatprep.subr.bf16.mxu0 %v7796_v43  ;;  %3683 = vmatprep.subr.bf16.mxu1 %v7798_v44  ;;  %v289_v43 = vld [vmem:[#allocation4 + $0x5b0] sm:$0xff]  ;;  %v286_v44 = vld [vmem:[#allocation4 + $0x598] sm:$0xff] }
 0x173   :  { %v7860_v48 = vcombine.high %v285_v42, %v289_v43  ;;  %v7859_v56 = vcombine.low %v285_v42, %v289_v43  ;;  %v7861_v57 = vcombine.low %v286_v44, %v290_v45  ;;  %v346_v42 = vld [vmem:[#allocation4 + $0x778] sm:$0xff] }
 0x175   :  { %3520 = vmatpush1.bf16.msra.mxu0 %v7795_v50  ;;  %3684 = vmatpush1.bf16.msra.mxu1 %v7797_v51  ;;  %v7862_v50 = vcombine.high %v286_v44, %v290_v45  ;;  %v293_v51 = vld [vmem:[#allocation4 + $0x5d0] sm:$0xff] }
 0x176   :  { %3521 = vmatprep.subr.bf16.mxu0 %v7804_v52  ;;  %3685 = vmatprep.subr.bf16.mxu1 %v7806_v54  ;;  %v297_v52 = vld [vmem:[#allocation4 + $0x5f0] sm:$0xff]  ;;  %v294_v54 = vld [vmem:[#allocation4 + $0x5d8] sm:$0xff] }
 0x177   :  { %v7868_v58 = vcombine.high %v293_v51, %v297_v52  ;;  %v7867_v1 = vcombine.low %v293_v51, %v297_v52  ;;  %v7869_v2 = vcombine.low %v294_v54, %v298_v55  ;;  %v354_v51 = vld [vmem:[#allocation4 + $0x7b8] sm:$0xff] }
 0x179   :  { %3522 = vmatpush1.bf16.msra.mxu0 %v7803_v59  ;;  %3686 = vmatpush1.bf16.msra.mxu1 %v7805_v60  ;;  %v7870_v59 = vcombine.high %v294_v54, %v298_v55  ;;  %v301_v60 = vld [vmem:[#allocation4 + $0x610] sm:$0xff] }
 0x17a   :  { %3532 = vmatprep.subr.bf16.mxu0 %v7812_v62  ;;  %3696 = vmatprep.subr.bf16.mxu1 %v7814_v63  ;;  %v305_v62 = vld [vmem:[#allocation4 + $0x630] sm:$0xff]  ;;  %v302_v63 = vld [vmem:[#allocation4 + $0x618] sm:$0xff] }
 0x17b   :  { %v7876_v3 = vcombine.high %v301_v60, %v305_v62  ;;  %v7875_v10 = vcombine.low %v301_v60, %v305_v62  ;;  %v362_v60 = vld [vmem:[#allocation4 + $0x7f8] sm:$0xff] }
 0x17c   :  { %3524 = vmatmul.mubr.bf16.vlgmr.msra.gmra.mrb[4].mxu0 %v9211_v15  ;;  %3688 = vmatmul.mubr.bf16.vlgmr.msra.gmra.mrb[4].mxu1 %v9211_v15  ;;  %v7829_v15 = vcombine.low %v254_v11, %v258_v12  ;;  %v7877_v11 = vcombine.low %v302_v63, %v306_v0 }
 0x17d   :  { %3533 = vmatpush1.bf16.msra.mxu0 %v7811_v4  ;;  %3697 = vmatpush1.bf16.msra.mxu1 %v7813_v5  ;;  %v7878_v4 = vcombine.high %v302_v63, %v306_v0  ;;  %v309_v5 = vld [vmem:[#allocation4 + $0x650] sm:$0xff] }
 0x17e   :  { %3534 = vmatprep.subr.bf16.mxu0 %v7820_v6  ;;  %3698 = vmatprep.subr.bf16.mxu1 %v7822_v8  ;;  %v313_v6 = vld [vmem:[#allocation4 + $0x670] sm:$0xff]  ;;  %v310_v8 = vld [vmem:[#allocation4 + $0x658] sm:$0xff] }
 0x17f   :  { %3564 = vmatprep.mubr.bf16.mxu0 %v9213_v24  ;;  %3728 = vmatprep.mubr.bf16.mxu1 %v9213_v24  ;;  %v7846_v24 = vcombine.high %v270_v28, %v274_v29  ;;  %v7884_v12 = vcombine.high %v309_v5, %v313_v6  ;;  %v7883_v61 = vcombine.low %v309_v5, %v313_v6  ;;  %v370_v5 = vld [vmem:[#allocation4 + $0x838] sm:$0xff] }
 0x180   :  { %v7885_v20 = vcombine.low %v310_v8, %v314_v9 }
 0x181   :  { %3535 = vmatpush1.bf16.msra.mxu0 %v7819_v13  ;;  %3699 = vmatpush1.bf16.msra.mxu1 %v7821_v14  ;;  %v7886_v13 = vcombine.high %v310_v8, %v314_v9  ;;  %v317_v14 = vld [vmem:[#allocation4 + $0x690] sm:$0xff] }
 0x182   :  { %3536 = vmatprep.subr.bf16.mxu0 %v7828_v16  ;;  %3700 = vmatprep.subr.bf16.mxu1 %v7830_v17  ;;  %v321_v16 = vld [vmem:[#allocation4 + $0x6b0] sm:$0xff]  ;;  %v318_v17 = vld [vmem:[#allocation4 + $0x698] sm:$0xff] }
 0x183   :  { %v7892_v21 = vcombine.high %v317_v14, %v321_v16  ;;  %v7891_v27 = vcombine.low %v317_v14, %v321_v16  ;;  %v7893_v28 = vcombine.low %v318_v17, %v322_v19  ;;  %v378_v14 = vld [vmem:[#allocation4 + $0x878] sm:$0xff] }
 0x185   :  { %3537 = vmatpush1.bf16.msra.mxu0 %v7827_v22  ;;  %3701 = vmatpush1.bf16.msra.mxu1 %v7829_v15  ;;  %v7894_v22 = vcombine.high %v318_v17, %v322_v19  ;;  %v325_v15 = vld [vmem:[#allocation4 + $0x6d0] sm:$0xff] }
 0x186   :  { %3538 = vmatprep.subr.bf16.mxu0 %v7836_v23  ;;  %3702 = vmatprep.subr.bf16.mxu1 %v7838_v25  ;;  %v329_v23 = vld [vmem:[#allocation4 + $0x6f0] sm:$0xff]  ;;  %v326_v25 = vld [vmem:[#allocation4 + $0x6d8] sm:$0xff] }
 0x187   :  { %v7900_v29 = vcombine.high %v325_v15, %v329_v23  ;;  %v7899_v34 = vcombine.low %v325_v15, %v329_v23  ;;  %v7901_v36 = vcombine.low %v326_v25, %v330_v26  ;;  %v386_v15 = vld [vmem:[#allocation4 + $0x8b8] sm:$0xff] }
 0x189   :  { %3539 = vmatpush1.bf16.msra.mxu0 %v7835_v30  ;;  %3703 = vmatpush1.bf16.msra.mxu1 %v7837_v31  ;;  %v7902_v30 = vcombine.high %v326_v25, %v330_v26  ;;  %v333_v31 = vld [vmem:[#allocation4 + $0x710] sm:$0xff] }
 0x18a   :  { %3540 = vmatprep.subr.bf16.mxu0 %v7844_v32  ;;  %3704 = vmatprep.subr.bf16.mxu1 %v7846_v24  ;;  %v337_v32 = vld [vmem:[#allocation4 + $0x730] sm:$0xff]  ;;  %v334_v24 = vld [vmem:[#allocation4 + $0x718] sm:$0xff] }
 0x18b   :  { %v7908_v37 = vcombine.high %v333_v31, %v337_v32  ;;  %v7907_v43 = vcombine.low %v333_v31, %v337_v32  ;;  %v7909_v44 = vcombine.low %v334_v24, %v338_v33  ;;  %v394_v31 = vld [vmem:[#allocation4 + $0x8f8] sm:$0xff] }
 0x18d   :  { %3541 = vmatpush1.bf16.msra.mxu0 %v7843_v38  ;;  %3705 = vmatpush1.bf16.msra.mxu1 %v7845_v39  ;;  %v7910_v38 = vcombine.high %v334_v24, %v338_v33  ;;  %v341_v39 = vld [vmem:[#allocation4 + $0x750] sm:$0xff] }
 0x18e   :  { %3542 = vmatprep.subr.bf16.mxu0 %v7852_v40  ;;  %3706 = vmatprep.subr.bf16.mxu1 %v7854_v41  ;;  %v345_v40 = vld [vmem:[#allocation4 + $0x770] sm:$0xff]  ;;  %v342_v41 = vld [vmem:[#allocation4 + $0x758] sm:$0xff] }
 0x18f   :  { %v7916_v45 = vcombine.high %v341_v39, %v345_v40  ;;  %v7915_v52 = vcombine.low %v341_v39, %v345_v40  ;;  %v7917_v54 = vcombine.low %v342_v41, %v346_v42 }
 0x191   :  { %3543 = vmatpush1.bf16.msra.mxu0 %v7851_v46  ;;  %3707 = vmatpush1.bf16.msra.mxu1 %v7853_v47  ;;  %v7918_v46 = vcombine.high %v342_v41, %v346_v42  ;;  %v349_v47 = vld [vmem:[#allocation4 + $0x790] sm:$0xff] }
 0x192   :  { %3544 = vmatprep.subr.bf16.mxu0 %v7860_v48  ;;  %3708 = vmatprep.subr.bf16.mxu1 %v7862_v50  ;;  %v353_v48 = vld [vmem:[#allocation4 + $0x7b0] sm:$0xff]  ;;  %v350_v50 = vld [vmem:[#allocation4 + $0x798] sm:$0xff] }
 0x193   :  { %v7924_v55 = vcombine.high %v349_v47, %v353_v48  ;;  %v7923_v62 = vcombine.low %v349_v47, %v353_v48  ;;  %v7925_v63 = vcombine.low %v350_v50, %v354_v51  ;;  %v405_v42 = vld [vmem:[#allocation4 + $0x950] sm:$0xff] }
 0x195   :  { %3545 = vmatpush1.bf16.msra.mxu0 %v7859_v56  ;;  %3709 = vmatpush1.bf16.msra.mxu1 %v7861_v57  ;;  %v7926_v56 = vcombine.high %v350_v50, %v354_v51  ;;  %v357_v57 = vld [vmem:[#allocation4 + $0x7d0] sm:$0xff] }
 0x196   :  { %3546 = vmatprep.subr.bf16.mxu0 %v7868_v58  ;;  %3710 = vmatprep.subr.bf16.mxu1 %v7870_v59  ;;  %v361_v58 = vld [vmem:[#allocation4 + $0x7f0] sm:$0xff]  ;;  %v358_v59 = vld [vmem:[#allocation4 + $0x7d8] sm:$0xff] }
 0x197   :  { %v7932_v0 = vcombine.high %v357_v57, %v361_v58  ;;  %v7931_v6 = vcombine.low %v357_v57, %v361_v58  ;;  %v7933_v8 = vcombine.low %v358_v59, %v362_v60  ;;  %v413_v51 = vld [vmem:[#allocation4 + $0x990] sm:$0xff] }
 0x199   :  { %3547 = vmatpush1.bf16.msra.mxu0 %v7867_v1  ;;  %3711 = vmatpush1.bf16.msra.mxu1 %v7869_v2  ;;  %v7934_v1 = vcombine.high %v358_v59, %v362_v60  ;;  %v365_v2 = vld [vmem:[#allocation4 + $0x810] sm:$0xff] }
 0x19a   :  { %3548 = vmatprep.subr.bf16.mxu0 %v7876_v3  ;;  %3712 = vmatprep.subr.bf16.mxu1 %v7878_v4  ;;  %v369_v3 = vld [vmem:[#allocation4 + $0x830] sm:$0xff]  ;;  %v366_v4 = vld [vmem:[#allocation4 + $0x818] sm:$0xff] }
 0x19b   :  { %v7940_v9 = vcombine.high %v365_v2, %v369_v3  ;;  %v7939_v16 = vcombine.low %v365_v2, %v369_v3  ;;  %v7941_v17 = vcombine.low %v366_v4, %v370_v5  ;;  %v421_v60 = vld [vmem:[#allocation4 + $0x9d0] sm:$0xff] }
 0x19d   :  { %3549 = vmatpush1.bf16.msra.mxu0 %v7875_v10  ;;  %3713 = vmatpush1.bf16.msra.mxu1 %v7877_v11  ;;  %v7942_v10 = vcombine.high %v366_v4, %v370_v5  ;;  %v373_v11 = vld [vmem:[#allocation4 + $0x850] sm:$0xff] }
 0x19e   :  { %3550 = vmatprep.subr.bf16.mxu0 %v7884_v12  ;;  %3714 = vmatprep.subr.bf16.mxu1 %v7886_v13  ;;  %v377_v12 = vld [vmem:[#allocation4 + $0x870] sm:$0xff]  ;;  %v374_v13 = vld [vmem:[#allocation4 + $0x858] sm:$0xff] }
 0x19f   :  { %v7948_v19 = vcombine.high %v373_v11, %v377_v12  ;;  %v7947_v23 = vcombine.low %v373_v11, %v377_v12  ;;  %v7949_v25 = vcombine.low %v374_v13, %v378_v14  ;;  %v429_v5 = vld [vmem:[#allocation4 + $0xa10] sm:$0xff] }
 0x1a1   :  { %3551 = vmatpush1.bf16.msra.mxu0 %v7883_v61  ;;  %3715 = vmatpush1.bf16.msra.mxu1 %v7885_v20  ;;  %v7950_v61 = vcombine.high %v374_v13, %v378_v14  ;;  %v381_v20 = vld [vmem:[#allocation4 + $0x890] sm:$0xff] }
 0x1a2   :  { %3552 = vmatprep.subr.bf16.mxu0 %v7892_v21  ;;  %3716 = vmatprep.subr.bf16.mxu1 %v7894_v22  ;;  %v385_v21 = vld [vmem:[#allocation4 + $0x8b0] sm:$0xff]  ;;  %v382_v22 = vld [vmem:[#allocation4 + $0x898] sm:$0xff] }
 0x1a3   :  { %v7956_v26 = vcombine.high %v381_v20, %v385_v21  ;;  %v7955_v32 = vcombine.low %v381_v20, %v385_v21  ;;  %v437_v14 = vld [vmem:[#allocation4 + $0xa50] sm:$0xff] }
 0x1a5   :  { %3553 = vmatpush1.bf16.msra.mxu0 %v7891_v27  ;;  %3717 = vmatpush1.bf16.msra.mxu1 %v7893_v28  ;;  %v7958_v27 = vcombine.high %v382_v22, %v386_v15  ;;  %v389_v28 = vld [vmem:[#allocation4 + $0x8d0] sm:$0xff] }
 0x1a6   :  { %3554 = vmatprep.subr.bf16.mxu0 %v7900_v29  ;;  %3718 = vmatprep.subr.bf16.mxu1 %v7902_v30  ;;  %v393_v29 = vld [vmem:[#allocation4 + $0x8f0] sm:$0xff]  ;;  %v390_v30 = vld [vmem:[#allocation4 + $0x8d8] sm:$0xff] }
 0x1a7   :  { %v7964_v24 = vcombine.high %v389_v28, %v393_v29  ;;  %v7966_v33 = vcombine.high %v390_v30, %v394_v31  ;;  %v7963_v39 = vcombine.low %v389_v28, %v393_v29  ;;  %v7965_v40 = vcombine.low %v390_v30, %v394_v31  ;;  %v453_v31 = vld [vmem:[#allocation4 + $0xad0] sm:$0xff] }
 0x1a9   :  { %3555 = vmatpush1.bf16.msra.mxu0 %v7899_v34  ;;  %3719 = vmatpush1.bf16.msra.mxu1 %v7901_v36  ;;  %v397_v34 = vld [vmem:[#allocation4 + $0x910] sm:$0xff] }
 0x1aa   :  { %3556 = vmatprep.subr.bf16.mxu0 %v7908_v37  ;;  %3720 = vmatprep.subr.bf16.mxu1 %v7910_v38  ;;  %v401_v36 = vld [vmem:[#allocation4 + $0x930] sm:$0xff]  ;;  %v398_v37 = vld [vmem:[#allocation4 + $0x918] sm:$0xff] }
 0x1ab   :  { %v402_v38 = vld [vmem:[#allocation4 + $0x938] sm:$0xff]  ;;  %v7972_v41 = vcombine.high %v397_v34, %v401_v36 }
 0x1ac   :  { %v7973_v47 = vcombine.low %v398_v37, %v402_v38 }
 0x1ad   :  { %3557 = vmatpush1.bf16.msra.mxu0 %v7907_v43  ;;  %3721 = vmatpush1.bf16.msra.mxu1 %v7909_v44  ;;  %v409_v43 = vld [vmem:[#allocation4 + $0x970] sm:$0xff]  ;;  %v406_v44 = vld [vmem:[#allocation4 + $0x958] sm:$0xff] }
 0x1ae   :  { %3558 = vmatprep.subr.bf16.mxu0 %v7916_v45  ;;  %3722 = vmatprep.subr.bf16.mxu1 %v7918_v46  ;;  %v410_v45 = vld [vmem:[#allocation4 + $0x978] sm:$0xff]  ;;  %v7971_v46 = vcombine.low %v397_v34, %v401_v36  ;;  %v7980_v48 = vcombine.high %v405_v42, %v409_v43 }
 0x1af   :  { %v7982_v50 = vcombine.high %v406_v44, %v410_v45  ;;  %v7981_v57 = vcombine.low %v406_v44, %v410_v45  ;;  %v469_v45 = vld [vmem:[#allocation4 + $0xb50] sm:$0xff] }
 0x1b1   :  { %3559 = vmatpush1.bf16.msra.mxu0 %v7915_v52  ;;  %3723 = vmatpush1.bf16.msra.mxu1 %v7917_v54  ;;  %v417_v52 = vld [vmem:[#allocation4 + $0x9b0] sm:$0xff]  ;;  %v414_v54 = vld [vmem:[#allocation4 + $0x998] sm:$0xff] }
 0x1b2   :  { %3560 = vmatprep.subr.bf16.mxu0 %v7924_v55  ;;  %3724 = vmatprep.subr.bf16.mxu1 %v7926_v56  ;;  %v418_v55 = vld [vmem:[#allocation4 + $0x9b8] sm:$0xff]  ;;  %v7979_v56 = vcombine.low %v405_v42, %v409_v43  ;;  %v7988_v58 = vcombine.high %v413_v51, %v417_v52 }
 0x1b3   :  { %v7990_v59 = vcombine.high %v414_v54, %v418_v55  ;;  %v7989_v2 = vcombine.low %v414_v54, %v418_v55  ;;  %v477_v55 = vld [vmem:[#allocation4 + $0xb90] sm:$0xff] }
 0x1b5   :  { %3561 = vmatpush1.bf16.msra.mxu0 %v7923_v62  ;;  %3725 = vmatpush1.bf16.msra.mxu1 %v7925_v63  ;;  %v425_v62 = vld [vmem:[#allocation4 + $0x9f0] sm:$0xff]  ;;  %v422_v63 = vld [vmem:[#allocation4 + $0x9d8] sm:$0xff] }
 0x1b6   :  { %3562 = vmatprep.subr.bf16.mxu0 %v7932_v0  ;;  %3726 = vmatprep.subr.bf16.mxu1 %v7934_v1  ;;  %v426_v0 = vld [vmem:[#allocation4 + $0x9f8] sm:$0xff]  ;;  %v7987_v1 = vcombine.low %v413_v51, %v417_v52  ;;  %v7996_v3 = vcombine.high %v421_v60, %v425_v62 }
 0x1b7   :  { %v7998_v4 = vcombine.high %v422_v63, %v426_v0  ;;  %v7997_v11 = vcombine.low %v422_v63, %v426_v0  ;;  %v485_v0 = vld [vmem:[#allocation4 + $0xbd0] sm:$0xff] }
 0x1b9   :  { %3563 = vmatpush1.bf16.msra.mxu0 %v7931_v6  ;;  %3727 = vmatpush1.bf16.msra.mxu1 %v7933_v8  ;;  %v433_v6 = vld [vmem:[#allocation4 + $0xa30] sm:$0xff]  ;;  %v430_v8 = vld [vmem:[#allocation4 + $0xa18] sm:$0xff] }
 0x1ba   :  { %3573 = vmatprep.subr.bf16.mxu0 %v7940_v9  ;;  %3737 = vmatprep.subr.bf16.mxu1 %v7942_v10  ;;  %v434_v9 = vld [vmem:[#allocation4 + $0xa38] sm:$0xff]  ;;  %v7995_v10 = vcombine.low %v421_v60, %v425_v62  ;;  %v8004_v12 = vcombine.high %v429_v5, %v433_v6 }
 0x1bb   :  { %v8006_v13 = vcombine.high %v430_v8, %v434_v9  ;;  %v8005_v20 = vcombine.low %v430_v8, %v434_v9  ;;  %v493_v9 = vld [vmem:[#allocation4 + $0xc10] sm:$0xff] }
 0x1bc   :  { %3565 = vmatmul.mubr.bf16.vlgmr.msra.gmra.mrb[4].mxu0 %v9225_v53  ;;  %3729 = vmatmul.mubr.bf16.vlgmr.msra.gmra.mrb[4].mxu1 %v9225_v53  ;;  %v7957_v53 = vcombine.low %v382_v22, %v386_v15  ;;  %v445_v15 = vld [vmem:[#allocation4 + $0xa90] sm:$0xff] }
 0x1bd   :  { %3574 = vmatpush1.bf16.msra.mxu0 %v7939_v16  ;;  %3738 = vmatpush1.bf16.msra.mxu1 %v7941_v17  ;;  %v441_v16 = vld [vmem:[#allocation4 + $0xa70] sm:$0xff]  ;;  %v438_v17 = vld [vmem:[#allocation4 + $0xa58] sm:$0xff] }
 0x1be   :  { %3575 = vmatprep.subr.bf16.mxu0 %v7948_v19  ;;  %3739 = vmatprep.subr.bf16.mxu1 %v7950_v61  ;;  %v442_v19 = vld [vmem:[#allocation4 + $0xa78] sm:$0xff]  ;;  %v8003_v61 = vcombine.low %v429_v5, %v433_v6  ;;  %v8012_v21 = vcombine.high %v437_v14, %v441_v16 }
 0x1bf   :  { %3605 = vmatprep.mubr.bf16.mxu0 %v9227_v35  ;;  %3769 = vmatprep.mubr.bf16.mxu1 %v9227_v35  ;;  %v7974_v35 = vcombine.high %v398_v37, %v402_v38  ;;  %v8014_v22 = vcombine.high %v438_v17, %v442_v19  ;;  %v8013_v28 = vcombine.low %v438_v17, %v442_v19  ;;  %v461_v38 = vld [vmem:[#allocation4 + $0xb10] sm:$0xff]  ;;  %v500_v19 = vld [vmem:[#allocation7] sm:$0xff] }
 0x1c1   :  { %3576 = vmatpush1.bf16.msra.mxu0 %v7947_v23  ;;  %3740 = vmatpush1.bf16.msra.mxu1 %v7949_v25  ;;  %v449_v23 = vld [vmem:[#allocation4 + $0xab0] sm:$0xff]  ;;  %v446_v25 = vld [vmem:[#allocation4 + $0xa98] sm:$0xff] }
 0x1c2   :  { %3577 = vmatprep.subr.bf16.mxu0 %v7956_v26  ;;  %3741 = vmatprep.subr.bf16.mxu1 %v7958_v27  ;;  %v450_v26 = vld [vmem:[#allocation4 + $0xab8] sm:$0xff]  ;;  %v8011_v27 = vcombine.low %v437_v14, %v441_v16  ;;  %v8020_v29 = vcombine.high %v445_v15, %v449_v23 }
 0x1c3   :  { %v8022_v30 = vcombine.high %v446_v25, %v450_v26  ;;  %v8021_v34 = vcombine.low %v446_v25, %v450_v26  ;;  %v1159_v26 = vlaneseq }
 0x1c5   :  { %3578 = vmatpush1.bf16.msra.mxu0 %v7955_v32  ;;  %3742 = vmatpush1.bf16.msra.mxu1 %v7957_v53  ;;  %v457_v32 = vld [vmem:[#allocation4 + $0xaf0] sm:$0xff]  ;;  %v454_v53 = vld [vmem:[#allocation4 + $0xad8] sm:$0xff] }
 0x1c6   :  { %3579 = vmatprep.subr.bf16.mxu0 %v7964_v24  ;;  %3743 = vmatprep.subr.bf16.mxu1 %v7966_v33  ;;  %v458_v24 = vld [vmem:[#allocation4 + $0xaf8] sm:$0xff]  ;;  %v8019_v33 = vcombine.low %v445_v15, %v449_v23  ;;  %v8028_v36 = vcombine.high %v453_v31, %v457_v32 }
 0x1c7   :  { %v8030_v37 = vcombine.high %v454_v53, %v458_v24  ;;  %v8029_v42 = vcombine.low %v454_v53, %v458_v24 }
 0x1c9   :  { %3580 = vmatpush1.bf16.msra.mxu0 %v7963_v39  ;;  %3744 = vmatpush1.bf16.msra.mxu1 %v7965_v40  ;;  %v465_v39 = vld [vmem:[#allocation4 + $0xb30] sm:$0xff]  ;;  %v462_v40 = vld [vmem:[#allocation4 + $0xb18] sm:$0xff] }
 0x1ca   :  { %3581 = vmatprep.subr.bf16.mxu0 %v7972_v41  ;;  %3745 = vmatprep.subr.bf16.mxu1 %v7974_v35  ;;  %v466_v41 = vld [vmem:[#allocation4 + $0xb38] sm:$0xff]  ;;  %v8027_v35 = vcombine.low %v453_v31, %v457_v32  ;;  %v8036_v43 = vcombine.high %v461_v38, %v465_v39  ;;  %v9261_v32 = vshrl.u32 %v1159_v26, 7  ;;  %v556_v26 = vld [vmem:[#allocation7 + $0x1c0] sm:$0xff] }
 0x1cb   :  { %v8038_v44 = vcombine.high %v462_v40, %v466_v41  ;;  %v8037_v51 = vcombine.low %v462_v40, %v466_v41  ;;  %v9268_v41 = vld [vmem:[#allocation6] sm:$0xff] }
 0x1cd   :  { %3582 = vmatpush1.bf16.msra.mxu0 %v7971_v46  ;;  %3746 = vmatpush1.bf16.msra.mxu1 %v7973_v47  ;;  %v473_v46 = vld [vmem:[#allocation4 + $0xb70] sm:$0xff]  ;;  %v470_v47 = vld [vmem:[#allocation4 + $0xb58] sm:$0xff] }
 0x1ce   :  { %3583 = vmatprep.subr.bf16.mxu0 %v7980_v48  ;;  %3747 = vmatprep.subr.bf16.mxu1 %v7982_v50  ;;  %v474_v48 = vld [vmem:[#allocation4 + $0xb78] sm:$0xff]  ;;  %v8035_v50 = vcombine.low %v461_v38, %v465_v39  ;;  %v8044_v52 = vcombine.high %v469_v45, %v473_v46  ;;  %v1165_v38 = vsub.s32 1, %v9261_v32 }
 0x1cf   :  { %v8046_v54 = vcombine.high %v470_v47, %v474_v48  ;;  %v8045_v60 = vcombine.low %v470_v47, %v474_v48 }
 0x1d1   :  { %3584 = vmatpush1.bf16.msra.mxu0 %v7979_v56  ;;  %3748 = vmatpush1.bf16.msra.mxu1 %v7981_v57  ;;  %v481_v56 = vld [vmem:[#allocation4 + $0xbb0] sm:$0xff]  ;;  %v478_v57 = vld [vmem:[#allocation4 + $0xb98] sm:$0xff] }
 0x1d2   :  { %3585 = vmatprep.subr.bf16.mxu0 %v7988_v58  ;;  %3749 = vmatprep.subr.bf16.mxu1 %v7990_v59  ;;  %v482_v58 = vld [vmem:[#allocation4 + $0xbb8] sm:$0xff]  ;;  %v8043_v59 = vcombine.low %v469_v45, %v473_v46  ;;  %v8052_v62 = vcombine.high %v477_v55, %v481_v56  ;;  %v529_v45 = vld [vmem:[#allocation7 + $0xe8] sm:$0xff] }
 0x1d3   :  { %v8054_v63 = vcombine.high %v478_v57, %v482_v58  ;;  %v8053_v5 = vcombine.low %v478_v57, %v482_v58  ;;  %v533_v57 = vld [vmem:[#allocation7 + $0x108] sm:$0xff] }
 0x1d4   :  { %v537_v58 = vld [vmem:[#allocation7 + $0x128] sm:$0xff] }
 0x1d5   :  { %3586 = vmatpush1.bf16.msra.mxu0 %v7987_v1  ;;  %3750 = vmatpush1.bf16.msra.mxu1 %v7989_v2  ;;  %v489_v1 = vld [vmem:[#allocation4 + $0xbf0] sm:$0xff]  ;;  %v486_v2 = vld [vmem:[#allocation4 + $0xbd8] sm:$0xff] }
 0x1d6   :  { %3587 = vmatprep.subr.bf16.mxu0 %v7996_v3  ;;  %3751 = vmatprep.subr.bf16.mxu1 %v7998_v4  ;;  %v490_v3 = vld [vmem:[#allocation4 + $0xbf8] sm:$0xff]  ;;  %v8051_v4 = vcombine.low %v477_v55, %v481_v56  ;;  %v8060_v6 = vcombine.high %v485_v0, %v489_v1 }
 0x1d7   :  { %v8062_v8 = vcombine.high %v486_v2, %v490_v3  ;;  %v8061_v14 = vcombine.low %v486_v2, %v490_v3 }
 0x1d9   :  { %3588 = vmatpush1.bf16.msra.mxu0 %v7995_v10  ;;  %3752 = vmatpush1.bf16.msra.mxu1 %v7997_v11  ;;  %v497_v10 = vld [vmem:[#allocation4 + $0xc30] sm:$0xff]  ;;  %v494_v11 = vld [vmem:[#allocation4 + $0xc18] sm:$0xff] }
 0x1da   :  { %3589 = vmatprep.subr.bf16.mxu0 %v8004_v12  ;;  %3753 = vmatprep.subr.bf16.mxu1 %v8006_v13  ;;  %v498_v12 = vld [vmem:[#allocation4 + $0xc38] sm:$0xff]  ;;  %v8059_v13 = vcombine.low %v485_v0, %v489_v1  ;;  %v8068_v16 = vcombine.high %v493_v9, %v497_v10 }
 0x1db   :  { %v8070_v17 = vcombine.high %v494_v11, %v498_v12  ;;  %v8069_v15 = vcombine.low %v494_v11, %v498_v12  ;;  %v545_v11 = vld [vmem:[#allocation7 + $0x168] sm:$0xff] }
 0x1dd   :  { %3590 = vmatpush1.bf16.msra.mxu0 %v8003_v61  ;;  %3754 = vmatpush1.bf16.msra.mxu1 %v8005_v20  ;;  %v504_v61 = vld [vmem:[#allocation7 + $0x20] sm:$0xff]  ;;  %v8067_v20 = vcombine.low %v493_v9, %v497_v10  ;;  %v541_v10 = vld [vmem:[#allocation7 + $0x148] sm:$0xff] }
 0x1de   :  { %3591 = vmatprep.subr.bf16.mxu0 %v8012_v21  ;;  %3755 = vmatprep.subr.bf16.mxu1 %v8014_v22  ;;  %v501_v21 = vld [vmem:[#allocation7 + $0x8] sm:$0xff]  ;;  %v8076_v23 = vcombine.high %v500_v19, %v504_v61  ;;  %v8075_v31 = vcombine.low %v500_v19, %v504_v61  ;;  %v544_v9 = vld [vmem:[#allocation7 + $0x160] sm:$0xff] }
 0x1df   :  { %v505_v22 = vld [vmem:[#allocation7 + $0x28] sm:$0xff]  ;;  %v548_v19 = vld [vmem:[#allocation7 + $0x180] sm:$0xff] }
 0x1e0   :  { %v8078_v25 = vcombine.high %v501_v21, %v505_v22  ;;  %v8077_v53 = vcombine.low %v501_v21, %v505_v22  ;;  %v552_v61 = vld [vmem:[#allocation7 + $0x1a0] sm:$0xff]  ;;  %v553_v21 = vld [vmem:[#allocation7 + $0x1a8] sm:$0xff] }
 0x1e1   :  { %3592 = vmatpush1.bf16.msra.mxu0 %v8011_v27  ;;  %3756 = vmatpush1.bf16.msra.mxu1 %v8013_v28  ;;  %v508_v27 = vld [vmem:[#allocation7 + $0x40] sm:$0xff] }
 0x1e2   :  { %3593 = vmatprep.subr.bf16.mxu0 %v8020_v29  ;;  %3757 = vmatprep.subr.bf16.mxu1 %v8022_v30  ;;  %v512_v28 = vld [vmem:[#allocation7 + $0x60] sm:$0xff]  ;;  %v509_v29 = vld [vmem:[#allocation7 + $0x48] sm:$0xff] }
 0x1e3   :  { %v513_v30 = vld [vmem:[#allocation7 + $0x68] sm:$0xff]  ;;  %v8084_v24 = vcombine.high %v508_v27, %v512_v28 }
 0x1e4   :  { %v8085_v39 = vcombine.low %v509_v29, %v513_v30 }
 0x1e5   :  { %3594 = vmatpush1.bf16.msra.mxu0 %v8019_v33  ;;  %3758 = vmatpush1.bf16.msra.mxu1 %v8021_v34  ;;  %v8086_v33 = vcombine.high %v509_v29, %v513_v30  ;;  %v520_v34 = vld [vmem:[#allocation7 + $0xa0] sm:$0xff]  ;;  %v561_v29 = vld [vmem:[#allocation7 + $0x1e8] sm:$0xff]  ;;  %v8123_v30 = vcombine.low %v548_v19, %v552_v61 }
 0x1e6   :  { %3595 = vmatprep.subr.bf16.mxu0 %v8028_v36  ;;  %3759 = vmatprep.subr.bf16.mxu1 %v8030_v37  ;;  %v517_v36 = vld [vmem:[#allocation7 + $0x88] sm:$0xff]  ;;  %v8083_v37 = vcombine.low %v508_v27, %v512_v28  ;;  %v560_v27 = vld [vmem:[#allocation7 + $0x1e0] sm:$0xff] }
 0x1e7   :  { %v557_v28 = vld [vmem:[#allocation7 + $0x1c8] sm:$0xff] }
 0x1e9   :  { %3596 = vmatpush1.bf16.msra.mxu0 %v8027_v35  ;;  %3760 = vmatpush1.bf16.msra.mxu1 %v8029_v42  ;;  %v524_v42 = vld [vmem:[#allocation7 + $0xc0] sm:$0xff] }
 0x1ea   :  { %3597 = vmatprep.subr.bf16.mxu0 %v8036_v43  ;;  %3761 = vmatprep.subr.bf16.mxu1 %v8038_v44  ;;  %v528_v43 = vld [vmem:[#allocation7 + $0xe0] sm:$0xff]  ;;  %v525_v44 = vld [vmem:[#allocation7 + $0xc8] sm:$0xff] }
 0x1eb   :  { %v8100_v48 = vcombine.high %v524_v42, %v528_v43  ;;  %v8101_v2 = vcombine.low %v525_v44, %v529_v45 }
 0x1ed   :  { %3598 = vmatpush1.bf16.msra.mxu0 %v8035_v50  ;;  %3762 = vmatpush1.bf16.msra.mxu1 %v8037_v51  ;;  %v8102_v51 = vcombine.high %v525_v44, %v529_v45  ;;  %v577_v44 = vld [vmem:[#allocation7 + $0x268] sm:$0xff] }
 0x1ee   :  { %3599 = vmatprep.subr.bf16.mxu0 %v8044_v52  ;;  %3763 = vmatprep.subr.bf16.mxu1 %v8046_v54  ;;  %v532_v52 = vld [vmem:[#allocation7 + $0x100] sm:$0xff] }
 0x1ef   :  { %v536_v54 = vld [vmem:[#allocation7 + $0x120] sm:$0xff] }
 0x1f0   :  { %v8108_v3 = vcombine.high %v532_v52, %v536_v54 }
 0x1f1   :  { %3600 = vmatpush1.bf16.msra.mxu0 %v8043_v59  ;;  %3764 = vmatpush1.bf16.msra.mxu1 %v8045_v60 }
 0x1f2   :  { %3601 = vmatprep.subr.bf16.mxu0 %v8052_v62  ;;  %3765 = vmatprep.subr.bf16.mxu1 %v8054_v63  ;;  %v8099_v63 = vcombine.low %v524_v42, %v528_v43  ;;  %v576_v42 = vld [vmem:[#allocation7 + $0x260] sm:$0xff]  ;;  %v573_v43 = vld [vmem:[#allocation7 + $0x248] sm:$0xff] }
 0x1f5   :  { %3602 = vmatpush1.bf16.msra.mxu0 %v8051_v4  ;;  %3766 = vmatpush1.bf16.msra.mxu1 %v8053_v5 }
 0x1f6   :  { %3603 = vmatprep.subr.bf16.mxu0 %v8060_v6  ;;  %3767 = vmatprep.subr.bf16.mxu1 %v8062_v8  ;;  %v8110_v6 = vcombine.high %v533_v57, %v537_v58  ;;  %v540_v8 = vld [vmem:[#allocation7 + $0x140] sm:$0xff] }
 0x1f7   :  { %v8115_v22 = vcombine.low %v540_v8, %v544_v9 }
 0x1f9   :  { %3604 = vmatpush1.bf16.msra.mxu0 %v8059_v13  ;;  %3768 = vmatpush1.bf16.msra.mxu1 %v8061_v14  ;;  %v8107_v13 = vcombine.low %v532_v52, %v536_v54  ;;  %v8109_v14 = vcombine.low %v533_v57, %v537_v58  ;;  %v581_v52 = vld [vmem:[#allocation7 + $0x288] sm:$0xff]  ;;  %v8149_v57 = vcombine.low %v573_v43, %v577_v44 }
 0x1fa   :  { %3614 = vmatprep.subr.bf16.mxu0 %v8068_v16  ;;  %3778 = vmatprep.subr.bf16.mxu1 %v8070_v17  ;;  %v8116_v16 = vcombine.high %v540_v8, %v544_v9  ;;  %v8118_v17 = vcombine.high %v541_v10, %v545_v11  ;;  %v585_v54 = vld [vmem:[#allocation7 + $0x2a8] sm:$0xff]  ;;  %v600_v8 = vld [vmem:[#allocation7 + $0x320] sm:$0xff] }
 0x1fb   :  { %v597_v9 = vld [vmem:[#allocation7 + $0x308] sm:$0xff] }
 0x1fc   :  { %3606 = vmatmul.mubr.bf16.vlgmr.msra.gmra.mrb[4].mxu0 %v9235_v7  ;;  %3770 = vmatmul.mubr.bf16.vlgmr.msra.gmra.mrb[4].mxu1 %v9235_v7  ;;  %v516_v7 = vld [vmem:[#allocation7 + $0x80] sm:$0xff] }
 0x1fd   :  { %3615 = vmatpush1.bf16.msra.mxu0 %v8067_v20  ;;  %3779 = vmatpush1.bf16.msra.mxu1 %v8069_v15  ;;  %v8092_v40 = vcombine.high %v516_v7, %v520_v34  ;;  %v8091_v46 = vcombine.low %v516_v7, %v520_v34  ;;  %v549_v20 = vld [vmem:[#allocation7 + $0x188] sm:$0xff]  ;;  %v8117_v15 = vcombine.low %v541_v10, %v545_v11  ;;  %v568_v7 = vld [vmem:[#allocation7 + $0x220] sm:$0xff] }
 0x1fe   :  { %3646 = vmatprep.mubr.bf16.mxu0 %v9078_v18  ;;  %3810 = vmatprep.mubr.bf16.mxu1 %v9078_v18  ;;  %v521_v18 = vld [vmem:[#allocation7 + $0xa8] sm:$0xff] }
 0x1ff   :  { %6436 = vmatprep.subr.bf16.mxu0 %v8076_v23  ;;  %6600 = vmatprep.subr.bf16.mxu1 %v8078_v25  ;;  %v8094_v35 = vcombine.high %v517_v36, %v521_v18  ;;  %v8093_v47 = vcombine.low %v517_v36, %v521_v18  ;;  %v8124_v23 = vcombine.high %v548_v19, %v552_v61  ;;  %v565_v34 = vld [vmem:[#allocation7 + $0x208] sm:$0xff]  ;;  %v608_v19 = vld [vmem:[#allocation7 + $0x360] sm:$0xff] }
 0x200   :  { %v8126_v25 = vcombine.high %v549_v20, %v553_v21  ;;  %v569_v36 = vld [vmem:[#allocation7 + $0x228] sm:$0xff]  ;;  %v8131_v18 = vcombine.low %v556_v26, %v560_v27 }
 0x201   :  { %v601_v10 = vld [vmem:[#allocation7 + $0x328] sm:$0xff] }
 0x202   :  { %v605_v61 = vld [vmem:[#allocation7 + $0x348] sm:$0xff] }
 0x208   :  { %8073 = vmatmul.mubr.msk.bf16.vlgmr.msra.gmra.mrb[4].mxu0 %vm3159_vm0, %v9241_v49  ;;  %8074 = vmatmul.mubr.msk.bf16.vlgmr.msra.gmra.mrb[4].mxu1 %vm3159_vm0, %v9241_v49  ;;  %v1166_v49 = vrot.slane %v9268_v41, %v1165_v38 }
 0x209   :  { %6437 = vmatpush1.bf16.msra.mxu0 %v8075_v31  ;;  %6601 = vmatpush1.bf16.msra.mxu1 %v8077_v53  ;;  %v8125_v31 = vcombine.low %v549_v20, %v553_v21  ;;  %v8132_v53 = vcombine.high %v556_v26, %v560_v27  ;;  %v609_v20 = vld [vmem:[#allocation7 + $0x368] sm:$0xff]  ;;  %v612_v26 = vld [vmem:[#allocation7 + $0x380] sm:$0xff] }
 0x20a   :  { %6438 = vmatprep.subr.bf16.mxu0 %v8084_v24  ;;  %6602 = vmatprep.subr.bf16.mxu1 %v8086_v33  ;;  %v8134_v24 = vcombine.high %v557_v28, %v561_v29  ;;  %v564_v33 = vld [vmem:[#allocation7 + $0x200] sm:$0xff] }
 0x20b   :  { %v8139_v45 = vcombine.low %v564_v33, %v568_v7  ;;  %v616_v27 = vld [vmem:[#allocation7 + $0x3a0] sm:$0xff] }
 0x20d   :  { %6439 = vmatpush1.bf16.msra.mxu0 %v8083_v37  ;;  %6603 = vmatpush1.bf16.msra.mxu1 %v8085_v39  ;;  %v8133_v37 = vcombine.low %v557_v28, %v561_v29  ;;  %v8140_v39 = vcombine.high %v564_v33, %v568_v7  ;;  %v1173_v28 = vsub.s32 3, %v9261_v32  ;;  %v613_v29 = vld [vmem:[#allocation7 + $0x388] sm:$0xff]  ;;  %v8188_v33 = vcombine.high %v612_v26, %v616_v27 }
 0x20e   :  { %6440 = vmatprep.subr.bf16.mxu0 %v8092_v40  ;;  %6604 = vmatprep.subr.bf16.mxu1 %v8094_v35  ;;  %v8142_v40 = vcombine.high %v565_v34, %v569_v36  ;;  %v572_v35 = vld [vmem:[#allocation7 + $0x240] sm:$0xff] }
 0x20f   :  { %v9273_v50 = vpop.f32.mrb[0].mxu0  ;;  %v9275_v55 = vpop.f32.mrb[0].mxu1 }
 0x210   :  { %v3322_v56 = vpop.f32.mrb[1].mxu0  ;;  %v9277_v60 = vpop.f32.mrb[1].mxu1 }
 0x211   :  { %6441 = vmatpush1.bf16.msra.mxu0 %v8091_v46  ;;  %v8741_v59 = vadd.f32 %v3322_v56, %v1166_v49  ;;  %v3324_v62 = vpop.f32.mrb[2].mxu0  ;;  %6605 = vmatpush1.bf16.msra.mxu1 %v8093_v47  ;;  %v3488_v0 = vpop.f32.mrb[2].mxu1  ;;  %v8141_v46 = vcombine.low %v565_v34, %v569_v36  ;;  %v8148_v49 = vcombine.high %v572_v35, %v576_v42  ;;  %v620_v34 = vld [vmem:[#allocation7 + $0x3c0] sm:$0xff] }
 0x212   :  { %v3325_v1 = vpop.f32.mrb[3].mxu0  ;;  %6442 = vmatprep.subr.bf16.mxu0 %v8100_v48  ;;  %v3489_v5 = vpop.f32.mrb[3].mxu1  ;;  %6606 = vmatprep.subr.bf16.mxu1 %v8102_v51  ;;  %v8150_v47 = vcombine.high %v573_v43, %v577_v44  ;;  %v580_v48 = vld [vmem:[#allocation7 + $0x280] sm:$0xff]  ;;  %v8147_v56 = vcombine.low %v572_v35, %v576_v42  ;;  %v589_v0 = vld [vmem:[#allocation7 + $0x2c8] sm:$0xff] }
 0x213   :  { %v3820_v4 = vmax.f32 %v8741_v59, 0.0  ;;  %v584_v51 = vld [vmem:[#allocation7 + $0x2a0] sm:$0xff]  ;;  %v8158_v59 = vcombine.high %v581_v52, %v585_v54  ;;  %v593_v1 = vld [vmem:[#allocation7 + $0x2e8] sm:$0xff] }
 0x214   :  { %v8156_v58 = vcombine.high %v580_v48, %v584_v51  ;;  %v588_v62 = vld [vmem:[#allocation7 + $0x2c0] sm:$0xff]  ;;  %v8166_v5 = vcombine.high %v589_v0, %v593_v1 }
 0x215   :  { %v9279_v12 = vpack.c.bf16 %v3820_v4, %v3820_v4  ;;  %6443 = vmatpush1.bf16.msra.mxu0 %v8099_v63  ;;  %6607 = vmatpush1.bf16.msra.mxu1 %v8101_v2  ;;  %v592_v63 = vld [vmem:[#allocation7 + $0x2e0] sm:$0xff]  ;;  %v8155_v2 = vcombine.low %v580_v48, %v584_v51  ;;  %v633_v48 = vld [vmem:[#allocation7 + $0x428] sm:$0xff] }
 0x216   :  { %6444 = vmatprep.subr.bf16.mxu0 %v8108_v3  ;;  %6608 = vmatprep.subr.bf16.mxu1 %v8110_v6  ;;  %v8157_v3 = vcombine.low %v581_v52, %v585_v54  ;;  %v8164_v4 = vcombine.high %v588_v62, %v592_v63  ;;  %v596_v6 = vld [vmem:[#allocation7 + $0x300] sm:$0xff]  ;;  %v8163_v11 = vcombine.low %v588_v62, %v592_v63  ;;  %v637_v63 = vld [vmem:[#allocation7 + $0x448] sm:$0xff] }
 0x217   :  { %6468 = vmatprep.mubr.bf16.mxu0 %v9279_v12  ;;  %6632 = vmatprep.mubr.bf16.mxu1 %v9279_v12  ;;  %v8171_v21 = vcombine.low %v596_v6, %v600_v8  ;;  %v624_v36 = vld [vmem:[#allocation7 + $0x3e0] sm:$0xff] }
 0x218   :  { %v8196_v43 = vcombine.high %v620_v34, %v624_v36  ;;  %v8195_v51 = vcombine.low %v620_v34, %v624_v36  ;;  %v669_v34 = vld [vmem:[#allocation7 + $0x548] sm:$0xff] }
 0x219   :  { %6445 = vmatpush1.bf16.msra.mxu0 %v8107_v13  ;;  %6609 = vmatpush1.bf16.msra.mxu1 %v8109_v14  ;;  %v8165_v13 = vcombine.low %v589_v0, %v593_v1  ;;  %v8172_v14 = vcombine.high %v596_v6, %v600_v8  ;;  %v641_v0 = vld [vmem:[#allocation7 + $0x468] sm:$0xff] }
 0x21a   :  { %6446 = vmatprep.subr.bf16.mxu0 %v8116_v16  ;;  %6610 = vmatprep.subr.bf16.mxu1 %v8118_v17  ;;  %v8174_v16 = vcombine.high %v597_v9, %v601_v10  ;;  %v604_v17 = vld [vmem:[#allocation7 + $0x340] sm:$0xff]  ;;  %v8214_v6 = vcombine.high %v637_v63, %v641_v0  ;;  %v645_v8 = vld [vmem:[#allocation7 + $0x488] sm:$0xff] }
 0x21b   :  { %v673_v36 = vld [vmem:[#allocation7 + $0x568] sm:$0xff] }
 0x21d   :  { %6447 = vmatpush1.bf16.msra.mxu0 %v8115_v22  ;;  %6611 = vmatpush1.bf16.msra.mxu1 %v8117_v15  ;;  %v1161_v22 = vsub.s32 0, %v9261_v32  ;;  %v8173_v15 = vcombine.low %v597_v9, %v601_v10  ;;  %v649_v9 = vld [vmem:[#allocation7 + $0x4a8] sm:$0xff] }
 0x21e   :  { %6448 = vmatprep.subr.bf16.mxu0 %v8124_v23  ;;  %6612 = vmatprep.subr.bf16.mxu1 %v8126_v25  ;;  %v8180_v23 = vcombine.high %v604_v17, %v608_v19  ;;  %v8182_v25 = vcombine.high %v605_v61, %v609_v20 }
 0x221   :  { %6449 = vmatpush1.bf16.msra.mxu0 %v8123_v30  ;;  %6613 = vmatpush1.bf16.msra.mxu1 %v8125_v31  ;;  %v617_v30 = vld [vmem:[#allocation7 + $0x3a8] sm:$0xff]  ;;  %v8179_v31 = vcombine.low %v604_v17, %v608_v19  ;;  %v656_v17 = vld [vmem:[#allocation7 + $0x4e0] sm:$0xff] }
 0x222   :  { %6450 = vmatprep.subr.bf16.mxu0 %v8132_v53  ;;  %6614 = vmatprep.subr.bf16.mxu1 %v8134_v24  ;;  %v1162_v53 = vrot.slane %v9268_v41, %v1161_v22  ;;  %v8181_v24 = vcombine.low %v605_v61, %v609_v20  ;;  %v8190_v7 = vcombine.high %v613_v29, %v617_v30  ;;  %v653_v19 = vld [vmem:[#allocation7 + $0x4c8] sm:$0xff] }
 0x223   :  { %v8189_v42 = vcombine.low %v613_v29, %v617_v30  ;;  %v657_v61 = vld [vmem:[#allocation7 + $0x4e8] sm:$0xff] }
 0x224   :  { %v8740_v35 = vadd.f32 %v9273_v50, %v1162_v53  ;;  %v665_v29 = vld [vmem:[#allocation7 + $0x528] sm:$0xff] }
 0x225   :  { %6451 = vmatpush1.bf16.msra.mxu0 %v8131_v18  ;;  %6615 = vmatpush1.bf16.msra.mxu1 %v8133_v37  ;;  %v1174_v18 = vrot.slane %v9268_v41, %v1173_v28  ;;  %v621_v37 = vld [vmem:[#allocation7 + $0x3c8] sm:$0xff] }
 0x226   :  { %6452 = vmatprep.subr.bf16.mxu0 %v8140_v39  ;;  %6616 = vmatprep.subr.bf16.mxu1 %v8142_v40  ;;  %v625_v39 = vld [vmem:[#allocation7 + $0x3e8] sm:$0xff]  ;;  %v8187_v40 = vcombine.low %v612_v26, %v616_v27  ;;  %v3819_v52 = vmax.f32 %v8740_v35, 0.0  ;;  %v664_v26 = vld [vmem:[#allocation7 + $0x520] sm:$0xff] }
 0x227   :  { %v8198_v44 = vcombine.high %v621_v37, %v625_v39  ;;  %v8197_v54 = vcombine.low %v621_v37, %v625_v39  ;;  %v661_v27 = vld [vmem:[#allocation7 + $0x508] sm:$0xff]  ;;  %v676_v35 = vld [vmem:[#allocation7 + $0x580] sm:$0xff] }
 0x228   :  { %v9293_v1 = vpack.c.bf16 %v3819_v52, %v3819_v52  ;;  %v8237_v37 = vcombine.low %v661_v27, %v665_v29  ;;  %v685_v52 = vld [vmem:[#allocation7 + $0x5c8] sm:$0xff] }
 0x229   :  { %6453 = vmatpush1.bf16.msra.mxu0 %v8139_v45  ;;  %6617 = vmatpush1.bf16.msra.mxu1 %v8141_v46  ;;  %v628_v45 = vld [vmem:[#allocation7 + $0x400] sm:$0xff] }
 0x22a   :  { %6454 = vmatprep.subr.bf16.mxu0 %v8148_v49  ;;  %6618 = vmatprep.subr.bf16.mxu1 %v8150_v47  ;;  %v632_v46 = vld [vmem:[#allocation7 + $0x420] sm:$0xff]  ;;  %v8743_v49 = vadd.f32 %v9277_v60, %v1174_v18  ;;  %v629_v47 = vld [vmem:[#allocation7 + $0x408] sm:$0xff] }
 0x22b   :  { %v8206_v50 = vcombine.high %v629_v47, %v633_v48  ;;  %v8203_v62 = vcombine.low %v628_v45, %v632_v46  ;;  %v8205_v60 = vcombine.low %v629_v47, %v633_v48  ;;  %v684_v48 = vld [vmem:[#allocation7 + $0x5c0] sm:$0xff] }
 0x22d   :  { %6455 = vmatpush1.bf16.msra.mxu0 %v8147_v56  ;;  %6619 = vmatpush1.bf16.msra.mxu1 %v8149_v57  ;;  %v8204_v56 = vcombine.high %v628_v45, %v632_v46  ;;  %v3822_v57 = vmax.f32 %v8743_v49, 0.0  ;;  %v8245_v46 = vcombine.low %v669_v34, %v673_v36 }
 0x22e   :  { %6456 = vmatprep.subr.bf16.mxu0 %v8156_v58  ;;  %6620 = vmatprep.subr.bf16.mxu1 %v8158_v59  ;;  %v636_v58 = vld [vmem:[#allocation7 + $0x440] sm:$0xff] }
 0x22f   :  { %v640_v59 = vld [vmem:[#allocation7 + $0x460] sm:$0xff] }
 0x230   :  { %v8211_v10 = vcombine.low %v636_v58, %v640_v59 }
 0x231   :  { %6457 = vmatpush1.bf16.msra.mxu0 %v8155_v2  ;;  %6621 = vmatpush1.bf16.msra.mxu1 %v8157_v3  ;;  %v8212_v2 = vcombine.high %v636_v58, %v640_v59  ;;  %v644_v3 = vld [vmem:[#allocation7 + $0x480] sm:$0xff] }
 0x232   :  { %6458 = vmatprep.subr.bf16.mxu0 %v8164_v4  ;;  %6622 = vmatprep.subr.bf16.mxu1 %v8166_v5  ;;  %v648_v4 = vld [vmem:[#allocation7 + $0x4a0] sm:$0xff]  ;;  %v9295_v5 = vpack.c.bf16 %v3822_v57, %v3822_v57 }
 0x233   :  { %v8219_v20 = vcombine.low %v644_v3, %v648_v4  ;;  %v692_v59 = vld [vmem:[#allocation7 + $0x600] sm:$0xff] }
 0x235   :  { %6459 = vmatpush1.bf16.msra.mxu0 %v8163_v11  ;;  %6623 = vmatpush1.bf16.msra.mxu1 %v8165_v13  ;;  %v8213_v11 = vcombine.low %v637_v63, %v641_v0  ;;  %v8220_v13 = vcombine.high %v644_v3, %v648_v4  ;;  %v693_v63 = vld [vmem:[#allocation7 + $0x608] sm:$0xff] }
 0x236   :  { %6460 = vmatprep.subr.bf16.mxu0 %v8172_v14  ;;  %6624 = vmatprep.subr.bf16.mxu1 %v8174_v16  ;;  %v8222_v14 = vcombine.high %v645_v8, %v649_v9  ;;  %v652_v16 = vld [vmem:[#allocation7 + $0x4c0] sm:$0xff]  ;;  %v697_v0 = vld [vmem:[#allocation7 + $0x628] sm:$0xff] }
 0x237   :  { %v8227_v30 = vcombine.low %v652_v16, %v656_v17  ;;  %v8270_v4 = vcombine.high %v693_v63, %v697_v0 }
 0x239   :  { %6461 = vmatpush1.bf16.msra.mxu0 %v8171_v21  ;;  %6625 = vmatpush1.bf16.msra.mxu1 %v8173_v15  ;;  %v8221_v21 = vcombine.low %v645_v8, %v649_v9  ;;  %v8228_v15 = vcombine.high %v652_v16, %v656_v17  ;;  %v704_v8 = vld [vmem:[#allocation7 + $0x660] sm:$0xff]  ;;  %v701_v9 = vld [vmem:[#allocation7 + $0x648] sm:$0xff] }
 0x23a   :  { %6462 = vmatprep.subr.bf16.mxu0 %v8180_v23  ;;  %6626 = vmatprep.subr.bf16.mxu1 %v8182_v25  ;;  %v8230_v23 = vcombine.high %v653_v19, %v657_v61  ;;  %v660_v25 = vld [vmem:[#allocation7 + $0x500] sm:$0xff] }
 0x23b   :  { %v8236_v53 = vcombine.high %v660_v25, %v664_v26  ;;  %v8235_v18 = vcombine.low %v660_v25, %v664_v26  ;;  %v708_v17 = vld [vmem:[#allocation7 + $0x680] sm:$0xff] }
 0x23c   :  { %v716_v26 = vld [vmem:[#allocation7 + $0x6c0] sm:$0xff] }
 0x23d   :  { %6463 = vmatpush1.bf16.msra.mxu0 %v8179_v31  ;;  %6627 = vmatpush1.bf16.msra.mxu1 %v8181_v24  ;;  %v8229_v31 = vcombine.low %v653_v19, %v657_v61  ;;  %v8238_v24 = vcombine.high %v661_v27, %v665_v29  ;;  %v712_v19 = vld [vmem:[#allocation7 + $0x6a0] sm:$0xff]  ;;  %v709_v61 = vld [vmem:[#allocation7 + $0x688] sm:$0xff] }
 0x23e   :  { %6464 = vmatprep.subr.bf16.mxu0 %v8188_v33  ;;  %6628 = vmatprep.subr.bf16.mxu1 %v8190_v7  ;;  %v668_v33 = vld [vmem:[#allocation7 + $0x540] sm:$0xff]  ;;  %v717_v29 = vld [vmem:[#allocation7 + $0x6c8] sm:$0xff] }
 0x23f   :  { %v672_v7 = vld [vmem:[#allocation7 + $0x560] sm:$0xff] }
 0x240   :  { %v8244_v39 = vcombine.high %v668_v33, %v672_v7  ;;  %v8243_v45 = vcombine.low %v668_v33, %v672_v7  ;;  %v720_v27 = vld [vmem:[#allocation7 + $0x6e0] sm:$0xff] }
 0x241   :  { %6465 = vmatpush1.bf16.msra.mxu0 %v8187_v40  ;;  %6629 = vmatpush1.bf16.msra.mxu1 %v8189_v42  ;;  %v8246_v40 = vcombine.high %v669_v34, %v673_v36  ;;  %v680_v42 = vld [vmem:[#allocation7 + $0x5a0] sm:$0xff]  ;;  %v725_v36 = vld [vmem:[#allocation7 + $0x708] sm:$0xff] }
 0x242   :  { %6466 = vmatprep.subr.bf16.mxu0 %v8196_v43  ;;  %6630 = vmatprep.subr.bf16.mxu1 %v8198_v44  ;;  %v677_v43 = vld [vmem:[#allocation7 + $0x588] sm:$0xff]  ;;  %v8252_v49 = vcombine.high %v676_v35, %v680_v42  ;;  %v724_v7 = vld [vmem:[#allocation7 + $0x700] sm:$0xff] }
 0x243   :  { %v681_v44 = vld [vmem:[#allocation7 + $0x5a8] sm:$0xff]  ;;  %v728_v34 = vld [vmem:[#allocation7 + $0x720] sm:$0xff] }
 0x244   :  { %v8254_v47 = vcombine.high %v677_v43, %v681_v44 }
 0x245   :  { %6467 = vmatpush1.bf16.msra.mxu0 %v8195_v51  ;;  %6631 = vmatpush1.bf16.msra.mxu1 %v8197_v54  ;;  %v688_v51 = vld [vmem:[#allocation7 + $0x5e0] sm:$0xff]  ;;  %v689_v54 = vld [vmem:[#allocation7 + $0x5e8] sm:$0xff] }
 0x246   :  { %6477 = vmatprep.subr.bf16.mxu0 %v8204_v56  ;;  %6641 = vmatprep.subr.bf16.mxu1 %v8206_v50  ;;  %v8251_v56 = vcombine.low %v676_v35, %v680_v42  ;;  %v8253_v50 = vcombine.low %v677_v43, %v681_v44  ;;  %v8260_v57 = vcombine.high %v684_v48, %v688_v51  ;;  %v732_v42 = vld [vmem:[#allocation7 + $0x740] sm:$0xff]  ;;  %v733_v44 = vld [vmem:[#allocation7 + $0x748] sm:$0xff] }
 0x247   :  { %v8262_v58 = vcombine.high %v685_v52, %v689_v54  ;;  %v736_v43 = vld [vmem:[#allocation7 + $0x760] sm:$0xff] }
 0x248   :  { %6469 = vmatmul.mubr.bf16.vlgmr.msra.gmra.mrb[8].mxu0 %v9293_v1  ;;  %6633 = vmatmul.mubr.bf16.vlgmr.msra.gmra.mrb[8].mxu1 %v9293_v1 }
 0x249   :  { %6478 = vmatpush1.bf16.msra.mxu0 %v8203_v62  ;;  %6509 = vmatprep.mubr.bf16.mxu0 %v9295_v5  ;;  %v696_v62 = vld [vmem:[#allocation7 + $0x620] sm:$0xff] }
 0x24a   :  { %6642 = vmatpush1.bf16.msra.mxu1 %v8205_v60  ;;  %6673 = vmatprep.mubr.bf16.mxu1 %v9295_v5  ;;  %v8259_v60 = vcombine.low %v684_v48, %v688_v51  ;;  %v8268_v3 = vcombine.high %v692_v59, %v696_v62  ;;  %v8308_v48 = vcombine.high %v732_v42, %v736_v43 }
 0x24b   :  { %6479 = vmatprep.subr.bf16.mxu0 %v8212_v2  ;;  %6643 = vmatprep.subr.bf16.mxu1 %v8214_v6  ;;  %v8261_v2 = vcombine.low %v685_v52, %v689_v54  ;;  %v700_v6 = vld [vmem:[#allocation7 + $0x640] sm:$0xff] }
 0x24c   :  { %v740_v52 = vld [vmem:[#allocation7 + $0x780] sm:$0xff] }
 0x24d   :  { %6480 = vmatpush1.bf16.msra.mxu0 %v8211_v10  ;;  %v705_v10 = vld [vmem:[#allocation7 + $0x668] sm:$0xff]  ;;  %v744_v54 = vld [vmem:[#allocation7 + $0x7a0] sm:$0xff] }
 0x24e   :  { %6644 = vmatpush1.bf16.msra.mxu1 %v8213_v11  ;;  %6481 = vmatprep.subr.bf16.mxu0 %v8220_v13  ;;  %v8267_v11 = vcombine.low %v692_v59, %v696_v62  ;;  %v8269_v13 = vcombine.low %v693_v63, %v697_v0  ;;  %v8278_v16 = vcombine.high %v701_v9, %v705_v10  ;;  %v748_v0 = vld [vmem:[#allocation7 + $0x7c0] sm:$0xff] }
 0x24f   :  { %6645 = vmatprep.subr.bf16.mxu1 %v8222_v14  ;;  %v8276_v14 = vcombine.high %v700_v6, %v704_v8  ;;  %v8316_v62 = vcombine.high %v740_v52, %v744_v54 }
 0x251   :  { %6482 = vmatpush1.bf16.msra.mxu0 %v8219_v20  ;;  %v713_v20 = vld [vmem:[#allocation7 + $0x6a8] sm:$0xff] }
 0x252   :  { %6646 = vmatpush1.bf16.msra.mxu1 %v8221_v21  ;;  %6483 = vmatprep.subr.bf16.mxu0 %v8228_v15  ;;  %v8275_v21 = vcombine.low %v700_v6, %v704_v8  ;;  %v8277_v15 = vcombine.low %v701_v9, %v705_v10  ;;  %v8286_v25 = vcombine.high %v709_v61, %v713_v20  ;;  %v756_v10 = vld [vmem:[#allocation7 + $0x800] sm:$0xff] }
 0x253   :  { %6647 = vmatprep.subr.bf16.mxu1 %v8230_v23  ;;  %v8284_v23 = vcombine.high %v708_v17, %v712_v19 }
 0x255   :  { %6484 = vmatpush1.bf16.msra.mxu0 %v8227_v30  ;;  %v721_v30 = vld [vmem:[#allocation7 + $0x6e8] sm:$0xff] }
 0x256   :  { %6648 = vmatpush1.bf16.msra.mxu1 %v8229_v31  ;;  %6485 = vmatprep.subr.bf16.mxu0 %v8236_v53  ;;  %v8283_v31 = vcombine.low %v708_v17, %v712_v19  ;;  %v8285_v53 = vcombine.low %v709_v61, %v713_v20  ;;  %v8294_v33 = vcombine.high %v717_v29, %v721_v30 }
 0x257   :  { %6649 = vmatprep.subr.bf16.mxu1 %v8238_v24  ;;  %v8292_v24 = vcombine.high %v716_v26, %v720_v27 }
 0x259   :  { %6486 = vmatpush1.bf16.msra.mxu0 %v8235_v18  ;;  %v729_v18 = vld [vmem:[#allocation7 + $0x728] sm:$0xff] }
 0x25a   :  { %6650 = vmatpush1.bf16.msra.mxu1 %v8237_v37  ;;  %6487 = vmatprep.subr.bf16.mxu0 %v8244_v39  ;;  %v8291_v37 = vcombine.low %v716_v26, %v720_v27  ;;  %v8293_v39 = vcombine.low %v717_v29, %v721_v30  ;;  %v8302_v35 = vcombine.high %v725_v36, %v729_v18 }
 0x25b   :  { %6651 = vmatprep.subr.bf16.mxu1 %v8246_v40  ;;  %v8300_v40 = vcombine.high %v724_v7, %v728_v34 }
 0x25d   :  { %6488 = vmatpush1.bf16.msra.mxu0 %v8243_v45  ;;  %v737_v45 = vld [vmem:[#allocation7 + $0x768] sm:$0xff] }
 0x25e   :  { %6652 = vmatpush1.bf16.msra.mxu1 %v8245_v46  ;;  %6489 = vmatprep.subr.bf16.mxu0 %v8252_v49  ;;  %v8299_v46 = vcombine.low %v724_v7, %v728_v34  ;;  %v1169_v49 = vsub.s32 2, %v9261_v32  ;;  %v8310_v51 = vcombine.high %v733_v44, %v737_v45  ;;  %v8309_v59 = vcombine.low %v733_v44, %v737_v45 }
 0x25f   :  { %6653 = vmatprep.subr.bf16.mxu1 %v8254_v47  ;;  %v8301_v47 = vcombine.low %v725_v36, %v729_v18 }
 0x261   :  { %6490 = vmatpush1.bf16.msra.mxu0 %v8251_v56  ;;  %v741_v56 = vld [vmem:[#allocation7 + $0x788] sm:$0xff] }
 0x262   :  { %6654 = vmatpush1.bf16.msra.mxu1 %v8253_v50  ;;  %6491 = vmatprep.subr.bf16.mxu0 %v8260_v57  ;;  %v745_v50 = vld [vmem:[#allocation7 + $0x7a8] sm:$0xff]  ;;  %v8307_v57 = vcombine.low %v732_v42, %v736_v43 }
 0x263   :  { %6655 = vmatprep.subr.bf16.mxu1 %v8262_v58  ;;  %v1170_v58 = vrot.slane %v9268_v41, %v1169_v49  ;;  %v8318_v63 = vcombine.high %v741_v56, %v745_v50  ;;  %v8317_v8 = vcombine.low %v741_v56, %v745_v50 }
 0x265   :  { %6492 = vmatpush1.bf16.msra.mxu0 %v8259_v60  ;;  %v752_v60 = vld [vmem:[#allocation7 + $0x7e0] sm:$0xff]  ;;  %v8742_v6 = vadd.f32 %v9275_v55, %v1170_v58 }
 0x266   :  { %6656 = vmatpush1.bf16.msra.mxu1 %v8261_v2  ;;  %6493 = vmatprep.subr.bf16.mxu0 %v8268_v3  ;;  %v749_v2 = vld [vmem:[#allocation7 + $0x7c8] sm:$0xff]  ;;  %v8324_v9 = vcombine.high %v748_v0, %v752_v60  ;;  %v764_v55 = vld [vmem:[#allocation7 + $0x840] sm:$0xff] }
 0x267   :  { %6657 = vmatprep.subr.bf16.mxu1 %v8270_v4  ;;  %v753_v3 = vld [vmem:[#allocation7 + $0x7e8] sm:$0xff]  ;;  %v8315_v4 = vcombine.low %v740_v52, %v744_v54  ;;  %v3821_v17 = vmax.f32 %v8742_v6, 0.0  ;;  %v800_v58 = vld [vmem:[#allocation7 + $0x960] sm:$0xff] }
 0x268   :  { %v8326_v41 = vcombine.high %v749_v2, %v753_v3  ;;  %v8325_v19 = vcombine.low %v749_v2, %v753_v3  ;;  %v804_v3 = vld [vmem:[#allocation7 + $0x980] sm:$0xff]  ;;  %v805_v6 = vld [vmem:[#allocation7 + $0x988] sm:$0xff] }
 0x269   :  { %6494 = vmatpush1.bf16.msra.mxu0 %v8267_v11  ;;  %v760_v11 = vld [vmem:[#allocation7 + $0x820] sm:$0xff]  ;;  %v9306_v26 = vpack.c.bf16 %v3821_v17, %v3821_v17  ;;  %v817_v17 = vld [vmem:[#allocation7 + $0x9e8] sm:$0xff] }
 0x26a   :  { %6658 = vmatpush1.bf16.msra.mxu1 %v8269_v13  ;;  %6495 = vmatprep.subr.bf16.mxu0 %v8276_v14  ;;  %v757_v13 = vld [vmem:[#allocation7 + $0x808] sm:$0xff]  ;;  %v8332_v61 = vcombine.high %v756_v10, %v760_v11 }
 0x26b   :  { %6659 = vmatprep.subr.bf16.mxu1 %v8278_v16  ;;  %v761_v14 = vld [vmem:[#allocation7 + $0x828] sm:$0xff]  ;;  %v8323_v16 = vcombine.low %v748_v0, %v752_v60 }
 0x26c   :  { %v8334_v20 = vcombine.high %v757_v13, %v761_v14  ;;  %v8333_v27 = vcombine.low %v757_v13, %v761_v14  ;;  %v812_v13 = vld [vmem:[#allocation7 + $0x9c0] sm:$0xff] }
 0x26d   :  { %6496 = vmatpush1.bf16.msra.mxu0 %v8275_v21  ;;  %v768_v21 = vld [vmem:[#allocation7 + $0x860] sm:$0xff] }
 0x26e   :  { %6660 = vmatpush1.bf16.msra.mxu1 %v8277_v15  ;;  %6497 = vmatprep.subr.bf16.mxu0 %v8284_v23  ;;  %v765_v15 = vld [vmem:[#allocation7 + $0x848] sm:$0xff]  ;;  %v8340_v29 = vcombine.high %v764_v55, %v768_v21  ;;  %v8339_v7 = vcombine.low %v764_v55, %v768_v21  ;;  %v816_v14 = vld [vmem:[#allocation7 + $0x9e0] sm:$0xff] }
 0x26f   :  { %6661 = vmatprep.subr.bf16.mxu1 %v8286_v25  ;;  %v769_v23 = vld [vmem:[#allocation7 + $0x868] sm:$0xff]  ;;  %v8331_v25 = vcombine.low %v756_v10, %v760_v11  ;;  %v820_v21 = vld [vmem:[#allocation7 + $0xa00] sm:$0xff] }
 0x270   :  { %v8342_v30 = vcombine.high %v765_v15, %v769_v23  ;;  %v8341_v34 = vcombine.low %v765_v15, %v769_v23  ;;  %v824_v15 = vld [vmem:[#allocation7 + $0xa20] sm:$0xff]  ;;  %v821_v23 = vld [vmem:[#allocation7 + $0xa08] sm:$0xff] }
 0x271   :  { %6498 = vmatpush1.bf16.msra.mxu0 %v8283_v31  ;;  %v772_v31 = vld [vmem:[#allocation7 + $0x880] sm:$0xff] }
 0x272   :  { %6662 = vmatpush1.bf16.msra.mxu1 %v8285_v53  ;;  %6499 = vmatprep.subr.bf16.mxu0 %v8292_v24  ;;  %v776_v53 = vld [vmem:[#allocation7 + $0x8a0] sm:$0xff]  ;;  %v773_v24 = vld [vmem:[#allocation7 + $0x888] sm:$0xff] }
 0x273   :  { %6663 = vmatprep.subr.bf16.mxu1 %v8294_v33  ;;  %v777_v33 = vld [vmem:[#allocation7 + $0x8a8] sm:$0xff]  ;;  %v8348_v36 = vcombine.high %v772_v31, %v776_v53  ;;  %v8347_v42 = vcombine.low %v772_v31, %v776_v53  ;;  %v828_v53 = vld [vmem:[#allocation7 + $0xa40] sm:$0xff] }
 0x274   :  { %v8350_v18 = vcombine.high %v773_v24, %v777_v33  ;;  %v8349_v43 = vcombine.low %v773_v24, %v777_v33  ;;  %v832_v24 = vld [vmem:[#allocation7 + $0xa60] sm:$0xff]  ;;  %v829_v33 = vld [vmem:[#allocation7 + $0xa48] sm:$0xff] }
 0x275   :  { %6500 = vmatpush1.bf16.msra.mxu0 %v8291_v37  ;;  %v780_v37 = vld [vmem:[#allocation7 + $0x8c0] sm:$0xff] }
 0x276   :  { %6664 = vmatpush1.bf16.msra.mxu1 %v8293_v39  ;;  %6501 = vmatprep.subr.bf16.mxu0 %v8300_v40  ;;  %v784_v39 = vld [vmem:[#allocation7 + $0x8e0] sm:$0xff]  ;;  %v781_v40 = vld [vmem:[#allocation7 + $0x8c8] sm:$0xff] }
 0x277   :  { %6665 = vmatprep.subr.bf16.mxu1 %v8302_v35  ;;  %v785_v35 = vld [vmem:[#allocation7 + $0x8e8] sm:$0xff]  ;;  %v8356_v44 = vcombine.high %v780_v37, %v784_v39  ;;  %v8355_v52 = vcombine.low %v780_v37, %v784_v39  ;;  %v836_v39 = vld [vmem:[#allocation7 + $0xa80] sm:$0xff] }
 0x278   :  { %v8358_v45 = vcombine.high %v781_v40, %v785_v35  ;;  %v8357_v54 = vcombine.low %v781_v40, %v785_v35  ;;  %v840_v40 = vld [vmem:[#allocation7 + $0xaa0] sm:$0xff]  ;;  %v837_v35 = vld [vmem:[#allocation7 + $0xa88] sm:$0xff] }
 0x279   :  { %6502 = vmatpush1.bf16.msra.mxu0 %v8299_v46  ;;  %v788_v46 = vld [vmem:[#allocation7 + $0x900] sm:$0xff] }
 0x27a   :  { %6666 = vmatpush1.bf16.msra.mxu1 %v8301_v47  ;;  %6503 = vmatprep.subr.bf16.mxu0 %v8308_v48  ;;  %v792_v47 = vld [vmem:[#allocation7 + $0x920] sm:$0xff]  ;;  %v789_v48 = vld [vmem:[#allocation7 + $0x908] sm:$0xff] }
 0x27b   :  { %6667 = vmatprep.subr.bf16.mxu1 %v8310_v51  ;;  %v793_v51 = vld [vmem:[#allocation7 + $0x928] sm:$0xff]  ;;  %v8364_v56 = vcombine.high %v788_v46, %v792_v47 }
 0x27c   :  { %v8366_v50 = vcombine.high %v789_v48, %v793_v51  ;;  %v8365_v0 = vcombine.low %v789_v48, %v793_v51  ;;  %v848_v48 = vld [vmem:[#allocation7 + $0xae0] sm:$0xff]  ;;  %v845_v51 = vld [vmem:[#allocation7 + $0xac8] sm:$0xff] }
 0x27d   :  { %6504 = vmatpush1.bf16.msra.mxu0 %v8307_v57  ;;  %v796_v57 = vld [vmem:[#allocation7 + $0x940] sm:$0xff] }
 0x27e   :  { %6668 = vmatpush1.bf16.msra.mxu1 %v8309_v59  ;;  %6505 = vmatprep.subr.bf16.mxu0 %v8316_v62  ;;  %v797_v59 = vld [vmem:[#allocation7 + $0x948] sm:$0xff]  ;;  %v8372_v60 = vcombine.high %v796_v57, %v800_v58 }
 0x27f   :  { %6669 = vmatprep.subr.bf16.mxu1 %v8318_v63  ;;  %v801_v62 = vld [vmem:[#allocation7 + $0x968] sm:$0xff]  ;;  %v8363_v63 = vcombine.low %v788_v46, %v792_v47  ;;  %v844_v47 = vld [vmem:[#allocation7 + $0xac0] sm:$0xff] }
 0x280   :  { %v8374_v2 = vcombine.high %v797_v59, %v801_v62 }
 0x281   :  { %6506 = vmatpush1.bf16.msra.mxu0 %v8315_v4  ;;  %v808_v4 = vld [vmem:[#allocation7 + $0x9a0] sm:$0xff] }
 0x282   :  { %6670 = vmatpush1.bf16.msra.mxu1 %v8317_v8  ;;  %6507 = vmatprep.subr.bf16.mxu0 %v8324_v9  ;;  %v809_v8 = vld [vmem:[#allocation7 + $0x9a8] sm:$0xff]  ;;  %v8371_v9 = vcombine.low %v796_v57, %v800_v58  ;;  %v8380_v10 = vcombine.high %v804_v3, %v808_v4  ;;  %v852_v58 = vld [vmem:[#allocation7 + $0xb00] sm:$0xff] }
 0x283   :  { %6671 = vmatprep.subr.bf16.mxu1 %v8326_v41  ;;  %v8373_v41 = vcombine.low %v797_v59, %v801_v62  ;;  %v8382_v11 = vcombine.high %v805_v6, %v809_v8  ;;  %v856_v59 = vld [vmem:[#allocation7 + $0xb20] sm:$0xff]  ;;  %v853_v62 = vld [vmem:[#allocation7 + $0xb08] sm:$0xff] }
 0x285   :  { %6508 = vmatpush1.bf16.msra.mxu0 %v8323_v16  ;;  %v813_v16 = vld [vmem:[#allocation7 + $0x9c8] sm:$0xff] }
 0x286   :  { %6672 = vmatpush1.bf16.msra.mxu1 %v8325_v19  ;;  %6518 = vmatprep.subr.bf16.mxu0 %v8332_v61  ;;  %v8379_v19 = vcombine.low %v804_v3, %v808_v4  ;;  %v8381_v61 = vcombine.low %v805_v6, %v809_v8  ;;  %v8390_v55 = vcombine.high %v813_v16, %v817_v17  ;;  %v860_v4 = vld [vmem:[#allocation7 + $0xb40] sm:$0xff]  ;;  %v861_v8 = vld [vmem:[#allocation7 + $0xb48] sm:$0xff] }
 0x287   :  { %6682 = vmatprep.subr.bf16.mxu1 %v8334_v20  ;;  %v8388_v20 = vcombine.high %v812_v13, %v816_v14  ;;  %v864_v6 = vld [vmem:[#allocation7 + $0xb60] sm:$0xff] }
 0x288   :  { %6510 = vmatmul.mubr.bf16.vlgmr.msra.gmra.mrb[8].mxu0 %v9306_v26 }
 0x289   :  { %6674 = vmatmul.mubr.bf16.vlgmr.msra.gmra.mrb[8].mxu1 %v9306_v26  ;;  %6519 = vmatpush1.bf16.msra.mxu0 %v8331_v25  ;;  %v825_v25 = vld [vmem:[#allocation7 + $0xa28] sm:$0xff] }
 0x28a   :  { %6683 = vmatpush1.bf16.msra.mxu1 %v8333_v27  ;;  %6520 = vmatprep.subr.bf16.mxu0 %v8340_v29  ;;  %v8387_v27 = vcombine.low %v812_v13, %v816_v14  ;;  %v8389_v29 = vcombine.low %v813_v16, %v817_v17  ;;  %v8398_v31 = vcombine.high %v821_v23, %v825_v25  ;;  %v868_v14 = vld [vmem:[#allocation7 + $0xb80] sm:$0xff]  ;;  %v869_v17 = vld [vmem:[#allocation7 + $0xb88] sm:$0xff] }
 0x28b   :  { %6684 = vmatprep.subr.bf16.mxu1 %v8342_v30  ;;  %v8396_v30 = vcombine.high %v820_v21, %v824_v15  ;;  %v872_v16 = vld [vmem:[#allocation7 + $0xba0] sm:$0xff] }
 0x28d   :  { %6521 = vmatpush1.bf16.msra.mxu0 %v8339_v7  ;;  %v833_v7 = vld [vmem:[#allocation7 + $0xa68] sm:$0xff] }
 0x28e   :  { %6685 = vmatpush1.bf16.msra.mxu1 %v8341_v34  ;;  %6522 = vmatprep.subr.bf16.mxu0 %v8348_v36  ;;  %v8395_v34 = vcombine.low %v820_v21, %v824_v15  ;;  %v8397_v36 = vcombine.low %v821_v23, %v825_v25  ;;  %v8406_v37 = vcombine.high %v829_v33, %v833_v7  ;;  %v876_v15 = vld [vmem:[#allocation7 + $0xbc0] sm:$0xff]  ;;  %v877_v25 = vld [vmem:[#allocation7 + $0xbc8] sm:$0xff] }
 0x28f   :  { %6686 = vmatprep.subr.bf16.mxu1 %v8350_v18  ;;  %v8404_v18 = vcombine.high %v828_v53, %v832_v24  ;;  %v880_v23 = vld [vmem:[#allocation7 + $0xbe0] sm:$0xff] }
 0x291   :  { %6523 = vmatpush1.bf16.msra.mxu0 %v8347_v42  ;;  %v841_v42 = vld [vmem:[#allocation7 + $0xaa8] sm:$0xff] }
 0x292   :  { %6687 = vmatpush1.bf16.msra.mxu1 %v8349_v43  ;;  %6524 = vmatprep.subr.bf16.mxu0 %v8356_v44  ;;  %v8403_v43 = vcombine.low %v828_v53, %v832_v24  ;;  %v8405_v44 = vcombine.low %v829_v33, %v833_v7  ;;  %v8414_v46 = vcombine.high %v837_v35, %v841_v42  ;;  %v884_v24 = vld [vmem:[#allocation7 + $0xc00] sm:$0xff]  ;;  %v885_v7 = vld [vmem:[#allocation7 + $0xc08] sm:$0xff] }
 0x293   :  { %6688 = vmatprep.subr.bf16.mxu1 %v8358_v45  ;;  %v8412_v45 = vcombine.high %v836_v39, %v840_v40  ;;  %v888_v33 = vld [vmem:[#allocation7 + $0xc20] sm:$0xff] }
 0x295   :  { %6525 = vmatpush1.bf16.msra.mxu0 %v8355_v52  ;;  %v849_v52 = vld [vmem:[#allocation7 + $0xae8] sm:$0xff] }
 0x296   :  { %6689 = vmatpush1.bf16.msra.mxu1 %v8357_v54  ;;  %6526 = vmatprep.subr.bf16.mxu0 %v8364_v56  ;;  %v8411_v54 = vcombine.low %v836_v39, %v840_v40  ;;  %v8413_v56 = vcombine.low %v837_v35, %v841_v42  ;;  %v8422_v57 = vcombine.high %v845_v51, %v849_v52  ;;  %v1177_v40 = vsub.s32 4, %v9261_v32 }
 0x297   :  { %6690 = vmatprep.subr.bf16.mxu1 %v8366_v50  ;;  %v8420_v50 = vcombine.high %v844_v47, %v848_v48  ;;  %v1181_v35 = vsub.s32 5, %v9261_v32  ;;  %v1189_v42 = vsub.s32 7, %v9261_v32 }
 0x299   :  { %6527 = vmatpush1.bf16.msra.mxu0 %v8363_v63  ;;  %v857_v63 = vld [vmem:[#allocation7 + $0xb28] sm:$0xff] }
 0x29a   :  { %6691 = vmatpush1.bf16.msra.mxu1 %v8365_v0  ;;  %6528 = vmatprep.subr.bf16.mxu0 %v8372_v60  ;;  %v8419_v0 = vcombine.low %v844_v47, %v848_v48  ;;  %v8421_v60 = vcombine.low %v845_v51, %v849_v52  ;;  %v8430_v3 = vcombine.high %v853_v62, %v857_v63 }
 0x29b   :  { %6692 = vmatprep.subr.bf16.mxu1 %v8374_v2  ;;  %v8428_v2 = vcombine.high %v852_v58, %v856_v59 }
 0x29d   :  { %6529 = vmatpush1.bf16.msra.mxu0 %v8371_v9  ;;  %v865_v9 = vld [vmem:[#allocation7 + $0xb68] sm:$0xff] }
 0x29e   :  { %6693 = vmatpush1.bf16.msra.mxu1 %v8373_v41  ;;  %6530 = vmatprep.subr.bf16.mxu0 %v8380_v10  ;;  %v8427_v41 = vcombine.low %v852_v58, %v856_v59  ;;  %v8429_v10 = vcombine.low %v853_v62, %v857_v63  ;;  %v8438_v13 = vcombine.high %v861_v8, %v865_v9 }
 0x29f   :  { %6694 = vmatprep.subr.bf16.mxu1 %v8382_v11  ;;  %v8436_v11 = vcombine.high %v860_v4, %v864_v6 }
 0x2a1   :  { %6531 = vmatpush1.bf16.msra.mxu0 %v8379_v19  ;;  %v873_v19 = vld [vmem:[#allocation7 + $0xba8] sm:$0xff] }
 0x2a2   :  { %6695 = vmatpush1.bf16.msra.mxu1 %v8381_v61  ;;  %6532 = vmatprep.subr.bf16.mxu0 %v8388_v20  ;;  %v8435_v61 = vcombine.low %v860_v4, %v864_v6  ;;  %v8437_v20 = vcombine.low %v861_v8, %v865_v9  ;;  %v8446_v21 = vcombine.high %v869_v17, %v873_v19  ;;  %v893_v4 = vld [vmem:[#allocation7 + $0xc48] sm:$0xff] }
 0x2a3   :  { %6696 = vmatprep.subr.bf16.mxu1 %v8390_v55  ;;  %v8444_v55 = vcombine.high %v868_v14, %v872_v16  ;;  %v897_v6 = vld [vmem:[#allocation7 + $0xc68] sm:$0xff]  ;;  %v8459_v9 = vcombine.low %v884_v24, %v888_v33 }
 0x2a5   :  { %6533 = vmatpush1.bf16.msra.mxu0 %v8387_v27  ;;  %v881_v27 = vld [vmem:[#allocation7 + $0xbe8] sm:$0xff] }
 0x2a6   :  { %6697 = vmatpush1.bf16.msra.mxu1 %v8389_v29  ;;  %6534 = vmatprep.subr.bf16.mxu0 %v8396_v30  ;;  %v8443_v29 = vcombine.low %v868_v14, %v872_v16  ;;  %v8445_v30 = vcombine.low %v869_v17, %v873_v19  ;;  %v8454_v53 = vcombine.high %v877_v25, %v881_v27  ;;  %v904_v16 = vld [vmem:[#allocation7 + $0xca0] sm:$0xff]  ;;  %v901_v17 = vld [vmem:[#allocation7 + $0xc88] sm:$0xff] }
 0x2a7   :  { %6698 = vmatprep.subr.bf16.mxu1 %v8398_v31  ;;  %v8452_v31 = vcombine.high %v876_v15, %v880_v23  ;;  %v8470_v14 = vcombine.high %v893_v4, %v897_v6  ;;  %v905_v19 = vld [vmem:[#allocation7 + $0xca8] sm:$0xff] }
 0x2a9   :  { %6535 = vmatpush1.bf16.msra.mxu0 %v8395_v34  ;;  %v889_v34 = vld [vmem:[#allocation7 + $0xc28] sm:$0xff] }
 0x2aa   :  { %6699 = vmatpush1.bf16.msra.mxu1 %v8397_v36  ;;  %6536 = vmatprep.subr.bf16.mxu0 %v8404_v18  ;;  %v8451_v36 = vcombine.low %v876_v15, %v880_v23  ;;  %v8453_v18 = vcombine.low %v877_v25, %v881_v27  ;;  %v8462_v39 = vcombine.high %v885_v7, %v889_v34  ;;  %v908_v23 = vld [vmem:[#allocation7 + $0xcc0] sm:$0xff]  ;;  %v909_v27 = vld [vmem:[#allocation7 + $0xcc8] sm:$0xff] }
 0x2ab   :  { %6700 = vmatprep.subr.bf16.mxu1 %v8406_v37  ;;  %v8460_v37 = vcombine.high %v884_v24, %v888_v33  ;;  %v8478_v15 = vcombine.high %v901_v17, %v905_v19  ;;  %v912_v25 = vld [vmem:[#allocation7 + $0xce0] sm:$0xff] }
 0x2ac   :  { %v916_v33 = vld [vmem:[#allocation7 + $0xd00] sm:$0xff] }
 0x2ad   :  { %6537 = vmatpush1.bf16.msra.mxu0 %v8403_v43  ;;  %v9313_v43 = vld [vmem:[#allocation6] sm:$0xff] }
 0x2ae   :  { %6701 = vmatpush1.bf16.msra.mxu1 %v8405_v44  ;;  %6538 = vmatprep.subr.bf16.mxu0 %v8412_v45  ;;  %v1178_v44 = vrot.slane %v9313_v43, %v1177_v40  ;;  %v1182_v45 = vrot.slane %v9313_v43, %v1181_v35 }
 0x2af   :  { %6702 = vmatprep.subr.bf16.mxu1 %v8414_v46  ;;  %v1190_v46 = vrot.slane %v9313_v43, %v1189_v42 }
 0x2b1   :  { %6539 = vmatpush1.bf16.msra.mxu0 %v8411_v54 }
 0x2b2   :  { %6703 = vmatpush1.bf16.msra.mxu1 %v8413_v56  ;;  %6540 = vmatprep.subr.bf16.mxu0 %v8420_v50 }
 0x2b3   :  { %6704 = vmatprep.subr.bf16.mxu1 %v8422_v57 }
 0x2b5   :  { %6541 = vmatpush1.bf16.msra.mxu0 %v8419_v0 }
 0x2b6   :  { %6705 = vmatpush1.bf16.msra.mxu1 %v8421_v60  ;;  %6542 = vmatprep.subr.bf16.mxu0 %v8428_v2  ;;  %v892_v60 = vld [vmem:[#allocation7 + $0xc40] sm:$0xff] }
 0x2b7   :  { %6706 = vmatprep.subr.bf16.mxu1 %v8430_v3  ;;  %v896_v3 = vld [vmem:[#allocation7 + $0xc60] sm:$0xff] }
 0x2b9   :  { %6543 = vmatpush1.bf16.msra.mxu0 %v8427_v41  ;;  %v8461_v41 = vcombine.low %v885_v7, %v889_v34  ;;  %v920_v7 = vld [vmem:[#allocation7 + $0xd20] sm:$0xff]  ;;  %v917_v34 = vld [vmem:[#allocation7 + $0xd08] sm:$0xff] }
 0x2ba   :  { %6707 = vmatpush1.bf16.msra.mxu1 %v8429_v10  ;;  %6544 = vmatprep.subr.bf16.mxu0 %v8436_v11  ;;  %v900_v11 = vld [vmem:[#allocation7 + $0xc80] sm:$0xff] }
 0x2bb   :  { %6708 = vmatprep.subr.bf16.mxu1 %v8438_v13  ;;  %v8468_v13 = vcombine.high %v892_v60, %v896_v3 }
 0x2bd   :  { %6545 = vmatpush1.bf16.msra.mxu0 %v8435_v61 }
 0x2be   :  { %6709 = vmatpush1.bf16.msra.mxu1 %v8437_v20  ;;  %6546 = vmatprep.subr.bf16.mxu0 %v8444_v55  ;;  %v8467_v20 = vcombine.low %v892_v60, %v896_v3  ;;  %v8469_v55 = vcombine.low %v893_v4, %v897_v6  ;;  %v940_v3 = vld [vmem:[#allocation7 + $0xdc0] sm:$0xff]  ;;  %v941_v6 = vld [vmem:[#allocation7 + $0xdc8] sm:$0xff] }
 0x2bf   :  { %6710 = vmatprep.subr.bf16.mxu1 %v8446_v21  ;;  %v8476_v21 = vcombine.high %v900_v11, %v904_v16  ;;  %v944_v4 = vld [vmem:[#allocation7 + $0xde0] sm:$0xff] }
 0x2c1   :  { %6547 = vmatpush1.bf16.msra.mxu0 %v8443_v29  ;;  %v913_v29 = vld [vmem:[#allocation7 + $0xce8] sm:$0xff] }
 0x2c2   :  { %6711 = vmatpush1.bf16.msra.mxu1 %v8445_v30  ;;  %6548 = vmatprep.subr.bf16.mxu0 %v8452_v31  ;;  %v8475_v30 = vcombine.low %v900_v11, %v904_v16  ;;  %v8477_v31 = vcombine.low %v901_v17, %v905_v19  ;;  %v8486_v24 = vcombine.high %v909_v27, %v913_v29  ;;  %v948_v16 = vld [vmem:[#allocation7 + $0xe00] sm:$0xff]  ;;  %v949_v19 = vld [vmem:[#allocation7 + $0xe08] sm:$0xff] }
 0x2c3   :  { %6712 = vmatprep.subr.bf16.mxu1 %v8454_v53  ;;  %v8484_v53 = vcombine.high %v908_v23, %v912_v25  ;;  %v952_v17 = vld [vmem:[#allocation7 + $0xe20] sm:$0xff] }
 0x2c5   :  { %6549 = vmatpush1.bf16.msra.mxu0 %v8451_v36  ;;  %v921_v36 = vld [vmem:[#allocation7 + $0xd28] sm:$0xff] }
 0x2c6   :  { %6713 = vmatpush1.bf16.msra.mxu1 %v8453_v18  ;;  %6559 = vmatprep.subr.bf16.mxu0 %v8460_v37  ;;  %v8483_v18 = vcombine.low %v908_v23, %v912_v25  ;;  %v8485_v37 = vcombine.low %v909_v27, %v913_v29  ;;  %v956_v25 = vld [vmem:[#allocation7 + $0xe40] sm:$0xff]  ;;  %v957_v29 = vld [vmem:[#allocation7 + $0xe48] sm:$0xff] }
 0x2c7   :  { %6723 = vmatprep.subr.bf16.mxu1 %v8462_v39  ;;  %v8492_v39 = vcombine.high %v916_v33, %v920_v7  ;;  %v960_v27 = vld [vmem:[#allocation7 + $0xe60] sm:$0xff] }
 0x2db   :  { %v3648_v47 = vpop.f32.mrb[4].mxu0  ;;  %v9324_v51 = vpop.f32.mrb[4].mxu1 }
 0x2dc   :  { %v8744_v48 = vadd.f32 %v3648_v47, %v1178_v44  ;;  %v3650_v52 = vpop.f32.mrb[5].mxu0  ;;  %v3814_v56 = vpop.f32.mrb[5].mxu1  ;;  %v8494_v44 = vcombine.high %v917_v34, %v921_v36  ;;  %v925_v47 = vld [vmem:[#allocation7 + $0xd48] sm:$0xff] }
 0x2dd   :  { %v8745_v54 = vadd.f32 %v3650_v52, %v1182_v45  ;;  %v3652_v50 = vpop.f32.mrb[6].mxu0  ;;  %v8747_v58 = vadd.f32 %v3814_v56, %v1190_v46  ;;  %v3816_v59 = vpop.f32.mrb[6].mxu1  ;;  %v924_v45 = vld [vmem:[#allocation7 + $0xd40] sm:$0xff]  ;;  %v8491_v52 = vcombine.low %v916_v33, %v920_v7 }
 0x2de   :  { %v3823_v57 = vmax.f32 %v8744_v48, 0.0  ;;  %v3653_v62 = vpop.f32.mrb[7].mxu0  ;;  %v3817_v0 = vpop.f32.mrb[7].mxu1  ;;  %v928_v46 = vld [vmem:[#allocation7 + $0xd60] sm:$0xff]  ;;  %v929_v48 = vld [vmem:[#allocation7 + $0xd68] sm:$0xff] }
 0x2df   :  { %v3824_v63 = vmax.f32 %v8745_v54, 0.0  ;;  %v3826_v2 = vmax.f32 %v8747_v58, 0.0  ;;  %v8493_v54 = vcombine.low %v917_v34, %v921_v36  ;;  %v8500_v56 = vcombine.high %v924_v45, %v928_v46  ;;  %v936_v58 = vld [vmem:[#allocation7 + $0xda0] sm:$0xff]  ;;  %v933_v59 = vld [vmem:[#allocation7 + $0xd88] sm:$0xff] }
 0x2e0   :  { %v9328_v10 = vpack.c.bf16 %v3823_v57, %v3823_v57  ;;  %v8502_v50 = vcombine.high %v925_v47, %v929_v48  ;;  %v932_v57 = vld [vmem:[#allocation7 + $0xd80] sm:$0xff]  ;;  %v937_v62 = vld [vmem:[#allocation7 + $0xda8] sm:$0xff]  ;;  %v8501_v0 = vcombine.low %v925_v47, %v929_v48 }
 0x2e1   :  { %v9326_v8 = vpack.c.bf16 %v3824_v63, %v3824_v63  ;;  %v9332_v61 = vpack.c.bf16 %v3826_v2, %v3826_v2  ;;  %v8499_v63 = vcombine.low %v924_v45, %v928_v46  ;;  %v8508_v60 = vcombine.high %v932_v57, %v936_v58  ;;  %v964_v7 = vld [vmem:[#allocation7 + $0xe80] sm:$0xff]  ;;  %v965_v36 = vld [vmem:[#allocation7 + $0xe88] sm:$0xff] }
 0x2e2   :  { %v8510_v2 = vcombine.high %v933_v59, %v937_v62  ;;  %v8509_v11 = vcombine.low %v933_v59, %v937_v62  ;;  %v968_v34 = vld [vmem:[#allocation7 + $0xea0] sm:$0xff]  ;;  %v973_v48 = vld [vmem:[#allocation7 + $0xec8] sm:$0xff] }
 0x2e3   :  { %6550 = vmatprep.mubr.bf16.mxu0 %v9326_v8  ;;  %6714 = vmatprep.mubr.bf16.mxu1 %v9326_v8  ;;  %v972_v46 = vld [vmem:[#allocation7 + $0xec0] sm:$0xff]  ;;  %v981_v62 = vld [vmem:[#allocation7 + $0xf08] sm:$0xff] }
 0x2e4   :  { %6551 = vmatmul.mubr.bf16.vlgmr.msra.gmra.mrb[8].mxu0 %v9328_v10  ;;  %6715 = vmatmul.mubr.bf16.vlgmr.msra.gmra.mrb[8].mxu1 %v9328_v10  ;;  %v976_v47 = vld [vmem:[#allocation7 + $0xee0] sm:$0xff] }
 0x2e5   :  { %6560 = vmatpush1.bf16.msra.mxu0 %v8459_v9  ;;  %6724 = vmatpush1.bf16.msra.mxu1 %v8461_v41  ;;  %v945_v9 = vld [vmem:[#allocation7 + $0xde8] sm:$0xff]  ;;  %v8507_v41 = vcombine.low %v932_v57, %v936_v58  ;;  %v980_v58 = vld [vmem:[#allocation7 + $0xf00] sm:$0xff] }
 0x2e6   :  { %6591 = vmatprep.mubr.bf16.mxu0 %v9332_v61  ;;  %6755 = vmatprep.mubr.bf16.mxu1 %v9332_v61  ;;  %v984_v59 = vld [vmem:[#allocation7 + $0xf20] sm:$0xff] }
 0x2e7   :  { %6561 = vmatprep.subr.bf16.mxu0 %v8468_v13  ;;  %6725 = vmatprep.subr.bf16.mxu1 %v8470_v14  ;;  %v8516_v13 = vcombine.high %v940_v3, %v944_v4  ;;  %v8518_v14 = vcombine.high %v941_v6, %v945_v9 }
 0x2e9   :  { %6562 = vmatpush1.bf16.msra.mxu0 %v8467_v20  ;;  %6726 = vmatpush1.bf16.msra.mxu1 %v8469_v55  ;;  %v953_v20 = vld [vmem:[#allocation7 + $0xe28] sm:$0xff]  ;;  %v8515_v55 = vcombine.low %v940_v3, %v944_v4  ;;  %v988_v4 = vld [vmem:[#allocation7 + $0xf40] sm:$0xff] }
 0x2ea   :  { %6563 = vmatprep.subr.bf16.mxu0 %v8476_v21  ;;  %6727 = vmatprep.subr.bf16.mxu1 %v8478_v15  ;;  %v8517_v21 = vcombine.low %v941_v6, %v945_v9  ;;  %v8524_v15 = vcombine.high %v948_v16, %v952_v17  ;;  %v8526_v23 = vcombine.high %v949_v19, %v953_v20  ;;  %v992_v6 = vld [vmem:[#allocation7 + $0xf60] sm:$0xff]  ;;  %v989_v9 = vld [vmem:[#allocation7 + $0xf48] sm:$0xff] }
 0x2ed   :  { %6564 = vmatpush1.bf16.msra.mxu0 %v8475_v30  ;;  %6728 = vmatpush1.bf16.msra.mxu1 %v8477_v31  ;;  %v961_v30 = vld [vmem:[#allocation7 + $0xe68] sm:$0xff]  ;;  %v8523_v31 = vcombine.low %v948_v16, %v952_v17  ;;  %v8564_v16 = vcombine.high %v988_v4, %v992_v6 }
 0x2ee   :  { %6565 = vmatprep.subr.bf16.mxu0 %v8484_v53  ;;  %6729 = vmatprep.subr.bf16.mxu1 %v8486_v24  ;;  %v8525_v53 = vcombine.low %v949_v19, %v953_v20  ;;  %v8532_v24 = vcombine.high %v956_v25, %v960_v27  ;;  %v8534_v33 = vcombine.high %v957_v29, %v961_v30  ;;  %v996_v19 = vld [vmem:[#allocation7 + $0xf80] sm:$0xff] }
 0x2ef   :  { %v1000_v20 = vld [vmem:[#allocation7 + $0xfa0] sm:$0xff] }
 0x2f1   :  { %6566 = vmatpush1.bf16.msra.mxu0 %v8483_v18  ;;  %6730 = vmatpush1.bf16.msra.mxu1 %v8485_v37  ;;  %v969_v18 = vld [vmem:[#allocation7 + $0xea8] sm:$0xff]  ;;  %v8531_v37 = vcombine.low %v956_v25, %v960_v27  ;;  %v8572_v27 = vcombine.high %v996_v19, %v1000_v20 }
 0x2f2   :  { %6567 = vmatprep.subr.bf16.mxu0 %v8492_v39  ;;  %6731 = vmatprep.subr.bf16.mxu1 %v8494_v44  ;;  %v8533_v39 = vcombine.low %v957_v29, %v961_v30  ;;  %v8540_v44 = vcombine.high %v964_v7, %v968_v34  ;;  %v8542_v45 = vcombine.high %v965_v36, %v969_v18  ;;  %v1004_v30 = vld [vmem:[#allocation7 + $0xfc0] sm:$0xff] }
 0x2f5   :  { %6568 = vmatpush1.bf16.msra.mxu0 %v8491_v52  ;;  %6732 = vmatpush1.bf16.msra.mxu1 %v8493_v54  ;;  %v977_v52 = vld [vmem:[#allocation7 + $0xee8] sm:$0xff]  ;;  %v8539_v54 = vcombine.low %v964_v7, %v968_v34 }
 0x2f6   :  { %6569 = vmatprep.subr.bf16.mxu0 %v8500_v56  ;;  %6733 = vmatprep.subr.bf16.mxu1 %v8502_v50  ;;  %v8541_v56 = vcombine.low %v965_v36, %v969_v18  ;;  %v8548_v50 = vcombine.high %v972_v46, %v976_v47  ;;  %v8550_v57 = vcombine.high %v973_v48, %v977_v52 }
 0x2f9   :  { %6570 = vmatpush1.bf16.msra.mxu0 %v8499_v63  ;;  %6734 = vmatpush1.bf16.msra.mxu1 %v8501_v0  ;;  %v985_v63 = vld [vmem:[#allocation7 + $0xf28] sm:$0xff]  ;;  %v8547_v0 = vcombine.low %v972_v46, %v976_v47 }
 0x2fa   :  { %6571 = vmatprep.subr.bf16.mxu0 %v8508_v60  ;;  %6735 = vmatprep.subr.bf16.mxu1 %v8510_v2  ;;  %v8549_v60 = vcombine.low %v973_v48, %v977_v52  ;;  %v8556_v2 = vcombine.high %v980_v58, %v984_v59  ;;  %v8558_v3 = vcombine.high %v981_v62, %v985_v63 }
 0x2fd   :  { %6572 = vmatpush1.bf16.msra.mxu0 %v8507_v41  ;;  %6736 = vmatpush1.bf16.msra.mxu1 %v8509_v11  ;;  %v993_v41 = vld [vmem:[#allocation7 + $0xf68] sm:$0xff]  ;;  %v8555_v11 = vcombine.low %v980_v58, %v984_v59 }
 0x2fe   :  { %6573 = vmatprep.subr.bf16.mxu0 %v8516_v13  ;;  %6737 = vmatprep.subr.bf16.mxu1 %v8518_v14  ;;  %v8557_v13 = vcombine.low %v981_v62, %v985_v63  ;;  %v1185_v14 = vsub.s32 6, %v9261_v32  ;;  %v8566_v17 = vcombine.high %v989_v9, %v993_v41 }
 0x300   :  { %v1186_v25 = vrot.slane %v9313_v43, %v1185_v14  ;;  %v506_v43 = vld [vmem:[#allocation7 + $0x30] sm:$0xff] }
 0x301   :  { %6574 = vmatpush1.bf16.msra.mxu0 %v8515_v55  ;;  %6738 = vmatpush1.bf16.msra.mxu1 %v8517_v21  ;;  %v997_v55 = vld [vmem:[#allocation7 + $0xf88] sm:$0xff] }
 0x302   :  { %6575 = vmatprep.subr.bf16.mxu0 %v8524_v15  ;;  %6739 = vmatprep.subr.bf16.mxu1 %v8526_v23  ;;  %v1001_v21 = vld [vmem:[#allocation7 + $0xfa8] sm:$0xff]  ;;  %v8563_v15 = vcombine.low %v988_v4, %v992_v6  ;;  %v8565_v23 = vcombine.low %v989_v9, %v993_v41  ;;  %v8746_v34 = vadd.f32 %v9324_v51, %v1186_v25  ;;  %v511_v51 = vld [vmem:[#allocation7 + $0x58] sm:$0xff] }
 0x303   :  { %v8574_v29 = vcombine.high %v997_v55, %v1001_v21  ;;  %v8573_v7 = vcombine.low %v997_v55, %v1001_v21  ;;  %v539_v25 = vld [vmem:[#allocation7 + $0x138] sm:$0xff] }
 0x304   :  { %v3825_v47 = vmax.f32 %v8746_v34, 0.0 }
 0x305   :  { %6576 = vmatpush1.bf16.msra.mxu0 %v8523_v31  ;;  %6740 = vmatpush1.bf16.msra.mxu1 %v8525_v53  ;;  %v1008_v31 = vld [vmem:[#allocation7 + $0xfe0] sm:$0xff]  ;;  %v1005_v53 = vld [vmem:[#allocation7 + $0xfc8] sm:$0xff] }
 0x306   :  { %6577 = vmatprep.subr.bf16.mxu0 %v8532_v24  ;;  %6741 = vmatprep.subr.bf16.mxu1 %v8534_v33  ;;  %v1009_v24 = vld [vmem:[#allocation7 + $0xfe8] sm:$0xff]  ;;  %v8571_v33 = vcombine.low %v996_v19, %v1000_v20  ;;  %v8580_v36 = vcombine.high %v1004_v30, %v1008_v31  ;;  %v9343_v58 = vpack.c.bf16 %v3825_v47, %v3825_v47 }
 0x307   :  { %v8582_v18 = vcombine.high %v1005_v53, %v1009_v24  ;;  %v8581_v46 = vcombine.low %v1005_v53, %v1009_v24  ;;  %v542_v53 = vld [vmem:[#allocation7 + $0x150] sm:$0xff] }
 0x308   :  { %v546_v24 = vld [vmem:[#allocation7 + $0x170] sm:$0xff] }
 0x309   :  { %6578 = vmatpush1.bf16.msra.mxu0 %v8531_v37  ;;  %6742 = vmatpush1.bf16.msra.mxu1 %v8533_v39  ;;  %v502_v37 = vld [vmem:[#allocation7 + $0x10] sm:$0xff]  ;;  %v503_v39 = vld [vmem:[#allocation7 + $0x18] sm:$0xff] }
 0x30a   :  { %6579 = vmatprep.subr.bf16.mxu0 %v8540_v44  ;;  %6743 = vmatprep.subr.bf16.mxu1 %v8542_v45  ;;  %v507_v44 = vld [vmem:[#allocation7 + $0x38] sm:$0xff]  ;;  %v8579_v45 = vcombine.low %v1004_v30, %v1008_v31  ;;  %v8080_v48 = vcombine.high %v502_v37, %v506_v43 }
 0x30b   :  { %v8082_v52 = vcombine.high %v503_v39, %v507_v44  ;;  %v8081_v59 = vcombine.low %v503_v39, %v507_v44  ;;  %v554_v39 = vld [vmem:[#allocation7 + $0x1b0] sm:$0xff]  ;;  %v551_v44 = vld [vmem:[#allocation7 + $0x198] sm:$0xff] }
 0x30d   :  { %6580 = vmatpush1.bf16.msra.mxu0 %v8539_v54  ;;  %6744 = vmatpush1.bf16.msra.mxu1 %v8541_v56  ;;  %v510_v54 = vld [vmem:[#allocation7 + $0x50] sm:$0xff] }
 0x30e   :  { %6581 = vmatprep.subr.bf16.mxu0 %v8548_v50  ;;  %6745 = vmatprep.subr.bf16.mxu1 %v8550_v57  ;;  %v514_v56 = vld [vmem:[#allocation7 + $0x70] sm:$0xff]  ;;  %v515_v50 = vld [vmem:[#allocation7 + $0x78] sm:$0xff]  ;;  %v8079_v57 = vcombine.low %v502_v37, %v506_v43 }
 0x30f   :  { %v8088_v62 = vcombine.high %v510_v54, %v514_v56  ;;  %v8090_v63 = vcombine.high %v511_v51, %v515_v50  ;;  %v8087_v4 = vcombine.low %v510_v54, %v514_v56  ;;  %v8089_v6 = vcombine.low %v511_v51, %v515_v50  ;;  %v550_v43 = vld [vmem:[#allocation7 + $0x190] sm:$0xff]  ;;  %v559_v51 = vld [vmem:[#allocation7 + $0x1d8] sm:$0xff] }
 0x310   :  { %v558_v54 = vld [vmem:[#allocation7 + $0x1d0] sm:$0xff]  ;;  %v563_v50 = vld [vmem:[#allocation7 + $0x1f8] sm:$0xff] }
 0x311   :  { %6582 = vmatpush1.bf16.msra.mxu0 %v8547_v0  ;;  %6746 = vmatpush1.bf16.msra.mxu1 %v8549_v60  ;;  %v518_v0 = vld [vmem:[#allocation7 + $0x90] sm:$0xff] }
 0x312   :  { %6583 = vmatprep.subr.bf16.mxu0 %v8556_v2  ;;  %6747 = vmatprep.subr.bf16.mxu1 %v8558_v3  ;;  %v522_v60 = vld [vmem:[#allocation7 + $0xb0] sm:$0xff]  ;;  %v519_v2 = vld [vmem:[#allocation7 + $0x98] sm:$0xff] }
 0x313   :  { %v523_v3 = vld [vmem:[#allocation7 + $0xb8] sm:$0xff]  ;;  %v8096_v9 = vcombine.high %v518_v0, %v522_v60  ;;  %v8095_v19 = vcombine.low %v518_v0, %v522_v60  ;;  %v562_v56 = vld [vmem:[#allocation7 + $0x1f0] sm:$0xff] }
 0x314   :  { %v8098_v41 = vcombine.high %v519_v2, %v523_v3  ;;  %v8097_v20 = vcombine.low %v519_v2, %v523_v3  ;;  %v566_v0 = vld [vmem:[#allocation7 + $0x210] sm:$0xff]  ;;  %v567_v2 = vld [vmem:[#allocation7 + $0x218] sm:$0xff] }
 0x315   :  { %6584 = vmatpush1.bf16.msra.mxu0 %v8555_v11  ;;  %6748 = vmatpush1.bf16.msra.mxu1 %v8557_v13  ;;  %v526_v11 = vld [vmem:[#allocation7 + $0xd0] sm:$0xff]  ;;  %v571_v3 = vld [vmem:[#allocation7 + $0x238] sm:$0xff] }
 0x316   :  { %6585 = vmatprep.subr.bf16.mxu0 %v8564_v16  ;;  %6749 = vmatprep.subr.bf16.mxu1 %v8566_v17  ;;  %v530_v13 = vld [vmem:[#allocation7 + $0xf0] sm:$0xff]  ;;  %v527_v16 = vld [vmem:[#allocation7 + $0xd8] sm:$0xff] }
 0x317   :  { %v531_v17 = vld [vmem:[#allocation7 + $0xf8] sm:$0xff]  ;;  %v8104_v55 = vcombine.high %v526_v11, %v530_v13  ;;  %v570_v60 = vld [vmem:[#allocation7 + $0x230] sm:$0xff] }
 0x318   :  { %v8106_v21 = vcombine.high %v527_v16, %v531_v17 }
 0x319   :  { %6586 = vmatpush1.bf16.msra.mxu0 %v8563_v15  ;;  %6750 = vmatpush1.bf16.msra.mxu1 %v8565_v23  ;;  %v534_v15 = vld [vmem:[#allocation7 + $0x110] sm:$0xff] }
 0x31a   :  { %6587 = vmatprep.subr.bf16.mxu0 %v8572_v27  ;;  %6751 = vmatprep.subr.bf16.mxu1 %v8574_v29  ;;  %v538_v23 = vld [vmem:[#allocation7 + $0x130] sm:$0xff]  ;;  %v8103_v27 = vcombine.low %v526_v11, %v530_v13  ;;  %v8105_v29 = vcombine.low %v527_v16, %v531_v17  ;;  %v575_v16 = vld [vmem:[#allocation7 + $0x258] sm:$0xff] }
 0x31b   :  { %v8112_v30 = vcombine.high %v534_v15, %v538_v23  ;;  %v8111_v34 = vcombine.low %v534_v15, %v538_v23  ;;  %v574_v11 = vld [vmem:[#allocation7 + $0x250] sm:$0xff]  ;;  %v579_v17 = vld [vmem:[#allocation7 + $0x278] sm:$0xff] }
 0x31c   :  { %v578_v13 = vld [vmem:[#allocation7 + $0x270] sm:$0xff] }
 0x31d   :  { %6588 = vmatpush1.bf16.msra.mxu0 %v8571_v33  ;;  %6752 = vmatpush1.bf16.msra.mxu1 %v8573_v7  ;;  %v543_v33 = vld [vmem:[#allocation7 + $0x158] sm:$0xff]  ;;  %v582_v15 = vld [vmem:[#allocation7 + $0x290] sm:$0xff] }
 0x31e   :  { %6589 = vmatprep.subr.bf16.mxu0 %v8580_v36  ;;  %6753 = vmatprep.subr.bf16.mxu1 %v8582_v18  ;;  %v547_v7 = vld [vmem:[#allocation7 + $0x178] sm:$0xff]  ;;  %v8120_v18 = vcombine.high %v542_v53, %v546_v24  ;;  %v586_v23 = vld [vmem:[#allocation7 + $0x2b0] sm:$0xff] }
 0x31f   :  { %v8122_v37 = vcombine.high %v543_v33, %v547_v7  ;;  %v8121_v47 = vcombine.low %v543_v33, %v547_v7  ;;  %v591_v33 = vld [vmem:[#allocation7 + $0x2d8] sm:$0xff] }
 0x320   :  { %v595_v7 = vld [vmem:[#allocation7 + $0x2f8] sm:$0xff] }
 0x321   :  { %6590 = vmatpush1.bf16.msra.mxu0 %v8579_v45  ;;  %6754 = vmatpush1.bf16.msra.mxu1 %v8581_v46  ;;  %v555_v45 = vld [vmem:[#allocation7 + $0x1b8] sm:$0xff]  ;;  %v8119_v46 = vcombine.low %v542_v53, %v546_v24  ;;  %v590_v53 = vld [vmem:[#allocation7 + $0x2d0] sm:$0xff] }
 0x322   :  { %6764 = vmatprep.subr.bf16.mxu0 %v8080_v48  ;;  %6928 = vmatprep.subr.bf16.mxu1 %v8082_v52  ;;  %v8128_v48 = vcombine.high %v550_v43, %v554_v39  ;;  %v8130_v52 = vcombine.high %v551_v44, %v555_v45  ;;  %v594_v24 = vld [vmem:[#allocation7 + $0x2f0] sm:$0xff] }
 0x324   :  { %6592 = vmatmul.mubr.bf16.vlgmr.msra.gmra.mrb[8].mxu0 %v9343_v58  ;;  %6756 = vmatmul.mubr.bf16.vlgmr.msra.gmra.mrb[8].mxu1 %v9343_v58 }
 0x325   :  { %6765 = vmatpush1.bf16.msra.mxu0 %v8079_v57  ;;  %6796 = vmatprep.mubr.bf16.mxu0 %v9279_v12  ;;  %v8127_v57 = vcombine.low %v550_v43, %v554_v39  ;;  %v598_v43 = vld [vmem:[#allocation7 + $0x310] sm:$0xff] }
 0x326   :  { %6929 = vmatpush1.bf16.msra.mxu1 %v8081_v59  ;;  %6960 = vmatprep.mubr.bf16.mxu1 %v9279_v12  ;;  %v535_v12 = vld [vmem:[#allocation7 + $0x118] sm:$0xff]  ;;  %v8129_v59 = vcombine.low %v551_v44, %v555_v45  ;;  %v602_v39 = vld [vmem:[#allocation7 + $0x330] sm:$0xff] }
 0x327   :  { %6766 = vmatprep.subr.bf16.mxu0 %v8088_v62  ;;  %6930 = vmatprep.subr.bf16.mxu1 %v8090_v63  ;;  %v8114_v31 = vcombine.high %v535_v12, %v539_v25  ;;  %v8113_v36 = vcombine.low %v535_v12, %v539_v25  ;;  %v8136_v62 = vcombine.high %v558_v54, %v562_v56  ;;  %v583_v12 = vld [vmem:[#allocation7 + $0x298] sm:$0xff] }
 0x328   :  { %v8138_v63 = vcombine.high %v559_v51, %v563_v50  ;;  %v587_v25 = vld [vmem:[#allocation7 + $0x2b8] sm:$0xff] }
 0x329   :  { %6767 = vmatpush1.bf16.msra.mxu0 %v8087_v4  ;;  %v8135_v4 = vcombine.low %v558_v54, %v562_v56  ;;  %v599_v44 = vld [vmem:[#allocation7 + $0x318] sm:$0xff]  ;;  %v606_v54 = vld [vmem:[#allocation7 + $0x350] sm:$0xff] }
 0x32a   :  { %6931 = vmatpush1.bf16.msra.mxu1 %v8089_v6  ;;  %6768 = vmatprep.subr.bf16.mxu0 %v8096_v9  ;;  %v8137_v6 = vcombine.low %v559_v51, %v563_v50  ;;  %v8144_v9 = vcombine.high %v566_v0, %v570_v60  ;;  %v603_v45 = vld [vmem:[#allocation7 + $0x338] sm:$0xff]  ;;  %v610_v56 = vld [vmem:[#allocation7 + $0x370] sm:$0xff] }
 0x32b   :  { %6932 = vmatprep.subr.bf16.mxu1 %v8098_v41  ;;  %v8146_v41 = vcombine.high %v567_v2, %v571_v3  ;;  %v607_v51 = vld [vmem:[#allocation7 + $0x358] sm:$0xff] }
 0x32c   :  { %v611_v50 = vld [vmem:[#allocation7 + $0x378] sm:$0xff] }
 0x32d   :  { %6769 = vmatpush1.bf16.msra.mxu0 %v8095_v19  ;;  %v8143_v19 = vcombine.low %v566_v0, %v570_v60  ;;  %v614_v0 = vld [vmem:[#allocation7 + $0x390] sm:$0xff] }
 0x32e   :  { %6933 = vmatpush1.bf16.msra.mxu1 %v8097_v20  ;;  %6770 = vmatprep.subr.bf16.mxu0 %v8104_v55  ;;  %v8145_v20 = vcombine.low %v567_v2, %v571_v3  ;;  %v8152_v55 = vcombine.high %v574_v11, %v578_v13  ;;  %v618_v60 = vld [vmem:[#allocation7 + $0x3b0] sm:$0xff]  ;;  %v615_v2 = vld [vmem:[#allocation7 + $0x398] sm:$0xff] }
 0x32f   :  { %6934 = vmatprep.subr.bf16.mxu1 %v8106_v21  ;;  %v8154_v21 = vcombine.high %v575_v16, %v579_v17  ;;  %v619_v3 = vld [vmem:[#allocation7 + $0x3b8] sm:$0xff] }
 0x331   :  { %6771 = vmatpush1.bf16.msra.mxu0 %v8103_v27  ;;  %v8151_v27 = vcombine.low %v574_v11, %v578_v13  ;;  %v622_v11 = vld [vmem:[#allocation7 + $0x3d0] sm:$0xff] }
 0x332   :  { %6935 = vmatpush1.bf16.msra.mxu1 %v8105_v29  ;;  %6772 = vmatprep.subr.bf16.mxu0 %v8112_v30  ;;  %v8153_v29 = vcombine.low %v575_v16, %v579_v17  ;;  %v8160_v30 = vcombine.high %v582_v15, %v586_v23  ;;  %v626_v13 = vld [vmem:[#allocation7 + $0x3f0] sm:$0xff]  ;;  %v623_v16 = vld [vmem:[#allocation7 + $0x3d8] sm:$0xff] }
 0x333   :  { %6936 = vmatprep.subr.bf16.mxu1 %v8114_v31  ;;  %v8162_v31 = vcombine.high %v583_v12, %v587_v25  ;;  %v627_v17 = vld [vmem:[#allocation7 + $0x3f8] sm:$0xff] }
 0x335   :  { %6773 = vmatpush1.bf16.msra.mxu0 %v8111_v34  ;;  %v8159_v34 = vcombine.low %v582_v15, %v586_v23  ;;  %v630_v15 = vld [vmem:[#allocation7 + $0x410] sm:$0xff] }
 0x336   :  { %6937 = vmatpush1.bf16.msra.mxu1 %v8113_v36  ;;  %6774 = vmatprep.subr.bf16.mxu0 %v8120_v18  ;;  %v8161_v36 = vcombine.low %v583_v12, %v587_v25  ;;  %v8168_v18 = vcombine.high %v590_v53, %v594_v24  ;;  %v634_v23 = vld [vmem:[#allocation7 + $0x430] sm:$0xff]  ;;  %v631_v12 = vld [vmem:[#allocation7 + $0x418] sm:$0xff] }
 0x337   :  { %6938 = vmatprep.subr.bf16.mxu1 %v8122_v37  ;;  %v8170_v37 = vcombine.high %v591_v33, %v595_v7  ;;  %v635_v25 = vld [vmem:[#allocation7 + $0x438] sm:$0xff] }
 0x339   :  { %6775 = vmatpush1.bf16.msra.mxu0 %v8119_v46  ;;  %v8167_v46 = vcombine.low %v590_v53, %v594_v24  ;;  %v638_v53 = vld [vmem:[#allocation7 + $0x450] sm:$0xff] }
 0x33a   :  { %6939 = vmatpush1.bf16.msra.mxu1 %v8121_v47  ;;  %6776 = vmatprep.subr.bf16.mxu0 %v8128_v48  ;;  %v8169_v47 = vcombine.low %v591_v33, %v595_v7  ;;  %v8176_v48 = vcombine.high %v598_v43, %v602_v39  ;;  %v642_v24 = vld [vmem:[#allocation7 + $0x470] sm:$0xff]  ;;  %v8207_v33 = vcombine.low %v630_v15, %v634_v23  ;;  %v639_v7 = vld [vmem:[#allocation7 + $0x458] sm:$0xff] }
 0x33b   :  { %6940 = vmatprep.subr.bf16.mxu1 %v8130_v52  ;;  %v8178_v52 = vcombine.high %v599_v44, %v603_v45 }
 0x33d   :  { %6777 = vmatpush1.bf16.msra.mxu0 %v8127_v57  ;;  %v8175_v57 = vcombine.low %v598_v43, %v602_v39  ;;  %v650_v43 = vld [vmem:[#allocation7 + $0x4b0] sm:$0xff] }
 0x33e   :  { %6941 = vmatpush1.bf16.msra.mxu1 %v8129_v59  ;;  %6778 = vmatprep.subr.bf16.mxu0 %v8136_v62  ;;  %v8177_v59 = vcombine.low %v599_v44, %v603_v45  ;;  %v8184_v62 = vcombine.high %v606_v54, %v610_v56  ;;  %v647_v44 = vld [vmem:[#allocation7 + $0x498] sm:$0xff] }
 0x33f   :  { %6942 = vmatprep.subr.bf16.mxu1 %v8138_v63  ;;  %v8186_v63 = vcombine.high %v607_v51, %v611_v50  ;;  %v651_v45 = vld [vmem:[#allocation7 + $0x4b8] sm:$0xff] }
 0x341   :  { %6779 = vmatpush1.bf16.msra.mxu0 %v8135_v4  ;;  %v8183_v4 = vcombine.low %v606_v54, %v610_v56  ;;  %v654_v54 = vld [vmem:[#allocation7 + $0x4d0] sm:$0xff] }
 0x342   :  { %6943 = vmatpush1.bf16.msra.mxu1 %v8137_v6  ;;  %6780 = vmatprep.subr.bf16.mxu0 %v8144_v9  ;;  %v8185_v6 = vcombine.low %v607_v51, %v611_v50  ;;  %v8192_v9 = vcombine.high %v614_v0, %v618_v60  ;;  %v658_v56 = vld [vmem:[#allocation7 + $0x4f0] sm:$0xff]  ;;  %v655_v51 = vld [vmem:[#allocation7 + $0x4d8] sm:$0xff] }
 0x343   :  { %6944 = vmatprep.subr.bf16.mxu1 %v8146_v41  ;;  %v8194_v41 = vcombine.high %v615_v2, %v619_v3  ;;  %v659_v50 = vld [vmem:[#allocation7 + $0x4f8] sm:$0xff] }
 0x345   :  { %6781 = vmatpush1.bf16.msra.mxu0 %v8143_v19  ;;  %v8191_v19 = vcombine.low %v614_v0, %v618_v60  ;;  %v666_v0 = vld [vmem:[#allocation7 + $0x530] sm:$0xff]  ;;  %v663_v60 = vld [vmem:[#allocation7 + $0x518] sm:$0xff] }
 0x346   :  { %6945 = vmatpush1.bf16.msra.mxu1 %v8145_v20  ;;  %6782 = vmatprep.subr.bf16.mxu0 %v8152_v55  ;;  %v8193_v20 = vcombine.low %v615_v2, %v619_v3  ;;  %v8200_v55 = vcombine.high %v622_v11, %v626_v13  ;;  %v667_v2 = vld [vmem:[#allocation7 + $0x538] sm:$0xff]  ;;  %v8233_v3 = vcombine.low %v655_v51, %v659_v50 }
 0x347   :  { %6946 = vmatprep.subr.bf16.mxu1 %v8154_v21  ;;  %v8202_v21 = vcombine.high %v623_v16, %v627_v17 }
 0x349   :  { %6783 = vmatpush1.bf16.msra.mxu0 %v8151_v27  ;;  %v8199_v27 = vcombine.low %v622_v11, %v626_v13  ;;  %v671_v11 = vld [vmem:[#allocation7 + $0x558] sm:$0xff] }
 0x34a   :  { %6947 = vmatpush1.bf16.msra.mxu1 %v8153_v29  ;;  %6784 = vmatprep.subr.bf16.mxu0 %v8160_v30  ;;  %v8201_v29 = vcombine.low %v623_v16, %v627_v17  ;;  %v8208_v30 = vcombine.high %v630_v15, %v634_v23  ;;  %v675_v13 = vld [vmem:[#allocation7 + $0x578] sm:$0xff]  ;;  %v8241_v17 = vcombine.low %v663_v60, %v667_v2 }
 0x34b   :  { %6948 = vmatprep.subr.bf16.mxu1 %v8162_v31  ;;  %v8210_v31 = vcombine.high %v631_v12, %v635_v25  ;;  %v679_v15 = vld [vmem:[#allocation7 + $0x598] sm:$0xff] }
 0x34c   :  { %v683_v23 = vld [vmem:[#allocation7 + $0x5b8] sm:$0xff] }
 0x34d   :  { %6785 = vmatpush1.bf16.msra.mxu0 %v8159_v34  ;;  %v643_v34 = vld [vmem:[#allocation7 + $0x478] sm:$0xff] }
 0x34e   :  { %6949 = vmatpush1.bf16.msra.mxu1 %v8161_v36  ;;  %6786 = vmatprep.subr.bf16.mxu0 %v8168_v18  ;;  %v8209_v36 = vcombine.low %v631_v12, %v635_v25  ;;  %v8216_v18 = vcombine.high %v638_v53, %v642_v24  ;;  %v8218_v39 = vcombine.high %v639_v7, %v643_v34 }
 0x34f   :  { %6950 = vmatprep.subr.bf16.mxu1 %v8170_v37  ;;  %v646_v37 = vld [vmem:[#allocation7 + $0x490] sm:$0xff]  ;;  %v8249_v25 = vcombine.low %v671_v11, %v675_v13 }
 0x351   :  { %6787 = vmatpush1.bf16.msra.mxu0 %v8167_v46  ;;  %v8215_v46 = vcombine.low %v638_v53, %v642_v24  ;;  %v687_v53 = vld [vmem:[#allocation7 + $0x5d8] sm:$0xff] }
 0x352   :  { %6951 = vmatpush1.bf16.msra.mxu1 %v8169_v47  ;;  %6788 = vmatprep.subr.bf16.mxu0 %v8176_v48  ;;  %v8217_v47 = vcombine.low %v639_v7, %v643_v34  ;;  %v8224_v48 = vcombine.high %v646_v37, %v650_v43  ;;  %v691_v24 = vld [vmem:[#allocation7 + $0x5f8] sm:$0xff]  ;;  %v8257_v7 = vcombine.low %v679_v15, %v683_v23 }
 0x353   :  { %6952 = vmatprep.subr.bf16.mxu1 %v8178_v52  ;;  %v8226_v52 = vcombine.high %v647_v44, %v651_v45 }
 0x355   :  { %6789 = vmatpush1.bf16.msra.mxu0 %v8175_v57  ;;  %v8223_v57 = vcombine.low %v646_v37, %v650_v43  ;;  %v698_v37 = vld [vmem:[#allocation7 + $0x630] sm:$0xff]  ;;  %v695_v43 = vld [vmem:[#allocation7 + $0x618] sm:$0xff] }
 0x356   :  { %6953 = vmatpush1.bf16.msra.mxu1 %v8177_v59  ;;  %6790 = vmatprep.subr.bf16.mxu0 %v8184_v62  ;;  %v8232_v59 = vcombine.high %v654_v54, %v658_v56  ;;  %v8234_v62 = vcombine.high %v655_v51, %v659_v50 }
 0x357   :  { %6954 = vmatprep.subr.bf16.mxu1 %v8186_v63  ;;  %v662_v63 = vld [vmem:[#allocation7 + $0x510] sm:$0xff] }
 0x358   :  { %v8239_v16 = vcombine.low %v662_v63, %v666_v0 }
 0x359   :  { %6791 = vmatpush1.bf16.msra.mxu0 %v8183_v4  ;;  %v8240_v4 = vcombine.high %v662_v63, %v666_v0  ;;  %v711_v63 = vld [vmem:[#allocation7 + $0x698] sm:$0xff] }
 0x35a   :  { %6955 = vmatpush1.bf16.msra.mxu1 %v8185_v6  ;;  %6792 = vmatprep.subr.bf16.mxu0 %v8192_v9  ;;  %v8242_v6 = vcombine.high %v663_v60, %v667_v2  ;;  %v670_v9 = vld [vmem:[#allocation7 + $0x550] sm:$0xff]  ;;  %v715_v0 = vld [vmem:[#allocation7 + $0x6b8] sm:$0xff] }
 0x35b   :  { %6956 = vmatprep.subr.bf16.mxu1 %v8194_v41  ;;  %v674_v41 = vld [vmem:[#allocation7 + $0x570] sm:$0xff] }
 0x35c   :  { %v8247_v12 = vcombine.low %v670_v9, %v674_v41 }
 0x35d   :  { %6793 = vmatpush1.bf16.msra.mxu0 %v8191_v19  ;;  %v8248_v19 = vcombine.high %v670_v9, %v674_v41  ;;  %v719_v9 = vld [vmem:[#allocation7 + $0x6d8] sm:$0xff] }
 0x35e   :  { %6957 = vmatpush1.bf16.msra.mxu1 %v8193_v20  ;;  %6794 = vmatprep.subr.bf16.mxu0 %v8200_v55  ;;  %v8250_v20 = vcombine.high %v671_v11, %v675_v13  ;;  %v678_v55 = vld [vmem:[#allocation7 + $0x590] sm:$0xff]  ;;  %v723_v41 = vld [vmem:[#allocation7 + $0x6f8] sm:$0xff]  ;;  %v8289_v13 = vcombine.low %v711_v63, %v715_v0 }
 0x35f   :  { %6958 = vmatprep.subr.bf16.mxu1 %v8202_v21  ;;  %v682_v21 = vld [vmem:[#allocation7 + $0x5b0] sm:$0xff] }
 0x361   :  { %6795 = vmatpush1.bf16.msra.mxu0 %v8199_v27  ;;  %v8256_v27 = vcombine.high %v678_v55, %v682_v21 }
 0x362   :  { %6959 = vmatpush1.bf16.msra.mxu1 %v8201_v29  ;;  %6805 = vmatprep.subr.bf16.mxu0 %v8208_v30  ;;  %v8258_v29 = vcombine.high %v679_v15, %v683_v23  ;;  %v686_v30 = vld [vmem:[#allocation7 + $0x5d0] sm:$0xff]  ;;  %v8297_v23 = vcombine.low %v719_v9, %v723_v41 }
 0x363   :  { %6969 = vmatprep.subr.bf16.mxu1 %v8210_v31  ;;  %v690_v31 = vld [vmem:[#allocation7 + $0x5f0] sm:$0xff] }
 0x364   :  { %6797 = vmatmul.mubr.bf16.vlgmr.msra.gmra.mrb[12].mxu0 %v9293_v1  ;;  %v8264_v34 = vcombine.high %v686_v30, %v690_v31 }
 0x365   :  { %6961 = vmatmul.mubr.bf16.vlgmr.msra.gmra.mrb[12].mxu1 %v9293_v1  ;;  %6806 = vmatpush1.bf16.msra.mxu0 %v8207_v33  ;;  %v8225_v1 = vcombine.low %v647_v44, %v651_v45  ;;  %v8255_v33 = vcombine.low %v678_v55, %v682_v21  ;;  %v8263_v44 = vcombine.low %v686_v30, %v690_v31  ;;  %v727_v55 = vld [vmem:[#allocation7 + $0x718] sm:$0xff] }
 0x366   :  { %6837 = vmatprep.mubr.bf16.mxu0 %v9295_v5  ;;  %6970 = vmatpush1.bf16.msra.mxu1 %v8209_v36  ;;  %v8266_v36 = vcombine.high %v687_v53, %v691_v24  ;;  %v8265_v45 = vcombine.low %v687_v53, %v691_v24  ;;  %v731_v21 = vld [vmem:[#allocation7 + $0x738] sm:$0xff] }
 0x367   :  { %7001 = vmatprep.mubr.bf16.mxu1 %v9295_v5  ;;  %6807 = vmatprep.subr.bf16.mxu0 %v8216_v18  ;;  %v8231_v5 = vcombine.low %v654_v54, %v658_v56  ;;  %v694_v18 = vld [vmem:[#allocation7 + $0x610] sm:$0xff]  ;;  %v703_v54 = vld [vmem:[#allocation7 + $0x658] sm:$0xff]  ;;  %v8305_v24 = vcombine.low %v727_v55, %v731_v21 }
 0x368   :  { %6971 = vmatprep.subr.bf16.mxu1 %v8218_v39  ;;  %v699_v39 = vld [vmem:[#allocation7 + $0x638] sm:$0xff]  ;;  %v8271_v51 = vcombine.low %v694_v18, %v698_v37 }
 0x369   :  { %6808 = vmatpush1.bf16.msra.mxu0 %v8215_v46  ;;  %v8272_v46 = vcombine.high %v694_v18, %v698_v37  ;;  %v707_v56 = vld [vmem:[#allocation7 + $0x678] sm:$0xff]  ;;  %v8273_v50 = vcombine.low %v695_v43, %v699_v39 }
 0x36a   :  { %6972 = vmatpush1.bf16.msra.mxu1 %v8217_v47  ;;  %6809 = vmatprep.subr.bf16.mxu0 %v8224_v48  ;;  %v8274_v47 = vcombine.high %v695_v43, %v699_v39  ;;  %v702_v48 = vld [vmem:[#allocation7 + $0x650] sm:$0xff]  ;;  %v8281_v2 = vcombine.low %v703_v54, %v707_v56  ;;  %v735_v30 = vld [vmem:[#allocation7 + $0x758] sm:$0xff] }
 0x36b   :  { %6973 = vmatprep.subr.bf16.mxu1 %v8226_v52  ;;  %v706_v52 = vld [vmem:[#allocation7 + $0x670] sm:$0xff]  ;;  %v739_v31 = vld [vmem:[#allocation7 + $0x778] sm:$0xff] }
 0x36c   :  { %v8279_v60 = vcombine.low %v702_v48, %v706_v52  ;;  %v743_v18 = vld [vmem:[#allocation7 + $0x798] sm:$0xff]  ;;  %v8313_v39 = vcombine.low %v735_v30, %v739_v31 }
 0x36d   :  { %6810 = vmatpush1.bf16.msra.mxu0 %v8223_v57  ;;  %v8280_v57 = vcombine.high %v702_v48, %v706_v52  ;;  %v747_v37 = vld [vmem:[#allocation7 + $0x7b8] sm:$0xff] }
 0x36e   :  { %6974 = vmatpush1.bf16.msra.mxu1 %v8225_v1  ;;  %6811 = vmatprep.subr.bf16.mxu0 %v8232_v59  ;;  %v8282_v1 = vcombine.high %v703_v54, %v707_v56  ;;  %v710_v59 = vld [vmem:[#allocation7 + $0x690] sm:$0xff]  ;;  %v751_v48 = vld [vmem:[#allocation7 + $0x7d8] sm:$0xff]  ;;  %v8321_v56 = vcombine.low %v743_v18, %v747_v37 }
 0x36f   :  { %6975 = vmatprep.subr.bf16.mxu1 %v8234_v62  ;;  %v714_v62 = vld [vmem:[#allocation7 + $0x6b0] sm:$0xff]  ;;  %v755_v52 = vld [vmem:[#allocation7 + $0x7f8] sm:$0xff] }
 0x370   :  { %v8287_v11 = vcombine.low %v710_v59, %v714_v62 }
 0x371   :  { %6812 = vmatpush1.bf16.msra.mxu0 %v8231_v5  ;;  %v8288_v5 = vcombine.high %v710_v59, %v714_v62  ;;  %v759_v59 = vld [vmem:[#allocation7 + $0x818] sm:$0xff] }
 0x372   :  { %6976 = vmatpush1.bf16.msra.mxu1 %v8233_v3  ;;  %6813 = vmatprep.subr.bf16.mxu0 %v8240_v4  ;;  %v8290_v3 = vcombine.high %v711_v63, %v715_v0  ;;  %v718_v4 = vld [vmem:[#allocation7 + $0x6d0] sm:$0xff]  ;;  %v763_v62 = vld [vmem:[#allocation7 + $0x838] sm:$0xff]  ;;  %v8329_v0 = vcombine.low %v751_v48, %v755_v52 }
 0x373   :  { %6977 = vmatprep.subr.bf16.mxu1 %v8242_v6  ;;  %v722_v6 = vld [vmem:[#allocation7 + $0x6f0] sm:$0xff] }
 0x374   :  { %v8295_v15 = vcombine.low %v718_v4, %v722_v6 }
 0x375   :  { %6814 = vmatpush1.bf16.msra.mxu0 %v8239_v16  ;;  %v8296_v16 = vcombine.high %v718_v4, %v722_v6  ;;  %v767_v6 = vld [vmem:[#allocation7 + $0x858] sm:$0xff] }
 0x376   :  { %6978 = vmatpush1.bf16.msra.mxu1 %v8241_v17  ;;  %6815 = vmatprep.subr.bf16.mxu0 %v8248_v19  ;;  %v8298_v17 = vcombine.high %v719_v9, %v723_v41  ;;  %v726_v19 = vld [vmem:[#allocation7 + $0x710] sm:$0xff]  ;;  %v771_v9 = vld [vmem:[#allocation7 + $0x878] sm:$0xff]  ;;  %v8337_v41 = vcombine.low %v759_v59, %v763_v62 }
 0x377   :  { %6979 = vmatprep.subr.bf16.mxu1 %v8250_v20  ;;  %v730_v20 = vld [vmem:[#allocation7 + $0x730] sm:$0xff] }
 0x378   :  { %v8303_v53 = vcombine.low %v726_v19, %v730_v20 }
 0x379   :  { %6816 = vmatpush1.bf16.msra.mxu0 %v8247_v12  ;;  %v8304_v12 = vcombine.high %v726_v19, %v730_v20  ;;  %v775_v19 = vld [vmem:[#allocation7 + $0x898] sm:$0xff] }
 0x37a   :  { %6980 = vmatpush1.bf16.msra.mxu1 %v8249_v25  ;;  %6817 = vmatprep.subr.bf16.mxu0 %v8256_v27  ;;  %v8306_v25 = vcombine.high %v727_v55, %v731_v21  ;;  %v734_v27 = vld [vmem:[#allocation7 + $0x750] sm:$0xff]  ;;  %v779_v20 = vld [vmem:[#allocation7 + $0x8b8] sm:$0xff]  ;;  %v8345_v21 = vcombine.low %v767_v6, %v771_v9 }
 0x37b   :  { %6981 = vmatprep.subr.bf16.mxu1 %v8258_v29  ;;  %v738_v29 = vld [vmem:[#allocation7 + $0x770] sm:$0xff] }
 0x37c   :  { %v8311_v43 = vcombine.low %v734_v27, %v738_v29 }
 0x37d   :  { %6818 = vmatpush1.bf16.msra.mxu0 %v8255_v33  ;;  %v8312_v33 = vcombine.high %v734_v27, %v738_v29  ;;  %v783_v27 = vld [vmem:[#allocation7 + $0x8d8] sm:$0xff] }
 0x37e   :  { %6982 = vmatpush1.bf16.msra.mxu1 %v8257_v7  ;;  %6819 = vmatprep.subr.bf16.mxu0 %v8264_v34  ;;  %v8314_v7 = vcombine.high %v735_v30, %v739_v31  ;;  %v742_v34 = vld [vmem:[#allocation7 + $0x790] sm:$0xff]  ;;  %v787_v29 = vld [vmem:[#allocation7 + $0x8f8] sm:$0xff] }
 0x37f   :  { %6983 = vmatprep.subr.bf16.mxu1 %v8266_v36  ;;  %v746_v36 = vld [vmem:[#allocation7 + $0x7b0] sm:$0xff] }
 0x380   :  { %v8319_v54 = vcombine.low %v742_v34, %v746_v36 }
 0x381   :  { %6820 = vmatpush1.bf16.msra.mxu0 %v8263_v44  ;;  %v8320_v44 = vcombine.high %v742_v34, %v746_v36  ;;  %v795_v34 = vld [vmem:[#allocation7 + $0x938] sm:$0xff]  ;;  %v8361_v36 = vcombine.low %v783_v27, %v787_v29 }
 0x382   :  { %6984 = vmatpush1.bf16.msra.mxu1 %v8265_v45  ;;  %6821 = vmatprep.subr.bf16.mxu0 %v8272_v46  ;;  %v8322_v45 = vcombine.high %v743_v18, %v747_v37  ;;  %v750_v46 = vld [vmem:[#allocation7 + $0x7d0] sm:$0xff] }
 0x383   :  { %6985 = vmatprep.subr.bf16.mxu1 %v8274_v47  ;;  %v754_v47 = vld [vmem:[#allocation7 + $0x7f0] sm:$0xff] }
 0x384   :  { %v8327_v63 = vcombine.low %v750_v46, %v754_v47 }
 0x385   :  { %6822 = vmatpush1.bf16.msra.mxu0 %v8271_v51  ;;  %v8328_v51 = vcombine.high %v750_v46, %v754_v47 }
 0x386   :  { %6986 = vmatpush1.bf16.msra.mxu1 %v8273_v50  ;;  %6823 = vmatprep.subr.bf16.mxu0 %v8280_v57  ;;  %v8330_v50 = vcombine.high %v751_v48, %v755_v52  ;;  %v758_v57 = vld [vmem:[#allocation7 + $0x810] sm:$0xff] }
 0x387   :  { %6987 = vmatprep.subr.bf16.mxu1 %v8282_v1  ;;  %v762_v1 = vld [vmem:[#allocation7 + $0x830] sm:$0xff] }
 0x388   :  { %v8335_v4 = vcombine.low %v758_v57, %v762_v1 }
 0x389   :  { %6824 = vmatpush1.bf16.msra.mxu0 %v8279_v60  ;;  %v8336_v60 = vcombine.high %v758_v57, %v762_v1 }
 0x38a   :  { %6988 = vmatpush1.bf16.msra.mxu1 %v8281_v2  ;;  %6825 = vmatprep.subr.bf16.mxu0 %v8288_v5  ;;  %v8338_v2 = vcombine.high %v759_v59, %v763_v62  ;;  %v766_v5 = vld [vmem:[#allocation7 + $0x850] sm:$0xff] }
 0x38b   :  { %6989 = vmatprep.subr.bf16.mxu1 %v8290_v3  ;;  %v770_v3 = vld [vmem:[#allocation7 + $0x870] sm:$0xff] }
 0x38c   :  { %v8343_v55 = vcombine.low %v766_v5, %v770_v3 }
 0x38d   :  { %6826 = vmatpush1.bf16.msra.mxu0 %v8287_v11  ;;  %v8344_v11 = vcombine.high %v766_v5, %v770_v3 }
 0x38e   :  { %6990 = vmatpush1.bf16.msra.mxu1 %v8289_v13  ;;  %6827 = vmatprep.subr.bf16.mxu0 %v8296_v16  ;;  %v774_v13 = vld [vmem:[#allocation7 + $0x890] sm:$0xff] }
 0x38f   :  { %6991 = vmatprep.subr.bf16.mxu1 %v8298_v17  ;;  %v778_v16 = vld [vmem:[#allocation7 + $0x8b0] sm:$0xff]  ;;  %v8346_v17 = vcombine.high %v767_v6, %v771_v9 }
 0x390   :  { %v8351_v30 = vcombine.low %v774_v13, %v778_v16  ;;  %v822_v9 = vld [vmem:[#allocation7 + $0xa10] sm:$0xff] }
 0x391   :  { %6828 = vmatpush1.bf16.msra.mxu0 %v8295_v15  ;;  %v8352_v15 = vcombine.high %v774_v13, %v778_v16  ;;  %v827_v13 = vld [vmem:[#allocation7 + $0xa38] sm:$0xff] }
 0x392   :  { %6992 = vmatpush1.bf16.msra.mxu1 %v8297_v23  ;;  %6829 = vmatprep.subr.bf16.mxu0 %v8304_v12  ;;  %v8354_v23 = vcombine.high %v775_v19, %v779_v20  ;;  %v782_v12 = vld [vmem:[#allocation7 + $0x8d0] sm:$0xff] }
 0x393   :  { %6993 = vmatprep.subr.bf16.mxu1 %v8306_v25  ;;  %v786_v25 = vld [vmem:[#allocation7 + $0x8f0] sm:$0xff] }
 0x394   :  { %v8360_v31 = vcombine.high %v782_v12, %v786_v25 }
 0x395   :  { %6830 = vmatpush1.bf16.msra.mxu0 %v8303_v53  ;;  %v8362_v53 = vcombine.high %v783_v27, %v787_v29 }
 0x396   :  { %6994 = vmatpush1.bf16.msra.mxu1 %v8305_v24  ;;  %6831 = vmatprep.subr.bf16.mxu0 %v8312_v33  ;;  %v790_v24 = vld [vmem:[#allocation7 + $0x910] sm:$0xff] }
 0x397   :  { %6995 = vmatprep.subr.bf16.mxu1 %v8314_v7  ;;  %v794_v33 = vld [vmem:[#allocation7 + $0x930] sm:$0xff]  ;;  %v791_v7 = vld [vmem:[#allocation7 + $0x918] sm:$0xff] }
 0x398   :  { %v8368_v18 = vcombine.high %v790_v24, %v794_v33  ;;  %v8370_v37 = vcombine.high %v791_v7, %v795_v34  ;;  %v8367_v46 = vcombine.low %v790_v24, %v794_v33  ;;  %v8369_v47 = vcombine.low %v791_v7, %v795_v34 }
 0x399   :  { %6832 = vmatpush1.bf16.msra.mxu0 %v8311_v43  ;;  %v798_v43 = vld [vmem:[#allocation7 + $0x950] sm:$0xff] }
 0x39a   :  { %6996 = vmatpush1.bf16.msra.mxu1 %v8313_v39  ;;  %6833 = vmatprep.subr.bf16.mxu0 %v8320_v44  ;;  %v802_v39 = vld [vmem:[#allocation7 + $0x970] sm:$0xff]  ;;  %v799_v44 = vld [vmem:[#allocation7 + $0x958] sm:$0xff] }
 0x39b   :  { %6997 = vmatprep.subr.bf16.mxu1 %v8322_v45  ;;  %v803_v45 = vld [vmem:[#allocation7 + $0x978] sm:$0xff]  ;;  %v8376_v48 = vcombine.high %v798_v43, %v802_v39  ;;  %v8375_v57 = vcombine.low %v798_v43, %v802_v39 }
 0x39c   :  { %v8378_v52 = vcombine.high %v799_v44, %v803_v45  ;;  %v8377_v1 = vcombine.low %v799_v44, %v803_v45 }
 0x39d   :  { %6834 = vmatpush1.bf16.msra.mxu0 %v8319_v54  ;;  %v806_v54 = vld [vmem:[#allocation7 + $0x990] sm:$0xff] }
 0x39e   :  { %6998 = vmatpush1.bf16.msra.mxu1 %v8321_v56  ;;  %6835 = vmatprep.subr.bf16.mxu0 %v8328_v51  ;;  %v810_v56 = vld [vmem:[#allocation7 + $0x9b0] sm:$0xff]  ;;  %v807_v51 = vld [vmem:[#allocation7 + $0x998] sm:$0xff] }
 0x39f   :  { %6999 = vmatprep.subr.bf16.mxu1 %v8330_v50  ;;  %v811_v50 = vld [vmem:[#allocation7 + $0x9b8] sm:$0xff]  ;;  %v8384_v59 = vcombine.high %v806_v54, %v810_v56  ;;  %v8383_v5 = vcombine.low %v806_v54, %v810_v56 }
 0x3a0   :  { %v8386_v62 = vcombine.high %v807_v51, %v811_v50  ;;  %v8385_v3 = vcombine.low %v807_v51, %v811_v50 }
 0x3a1   :  { %6836 = vmatpush1.bf16.msra.mxu0 %v8327_v63  ;;  %v814_v63 = vld [vmem:[#allocation7 + $0x9d0] sm:$0xff] }
 0x3a2   :  { %7000 = vmatpush1.bf16.msra.mxu1 %v8329_v0  ;;  %6846 = vmatprep.subr.bf16.mxu0 %v8336_v60  ;;  %v818_v0 = vld [vmem:[#allocation7 + $0x9f0] sm:$0xff]  ;;  %v815_v60 = vld [vmem:[#allocation7 + $0x9d8] sm:$0xff] }
 0x3a3   :  { %7010 = vmatprep.subr.bf16.mxu1 %v8338_v2  ;;  %v819_v2 = vld [vmem:[#allocation7 + $0x9f8] sm:$0xff]  ;;  %v8391_v16 = vcombine.low %v814_v63, %v818_v0 }
 0x3a4   :  { %6838 = vmatmul.mubr.bf16.vlgmr.msra.gmra.mrb[12].mxu0 %v9306_v26  ;;  %v8394_v6 = vcombine.high %v815_v60, %v819_v2 }
 0x3a5   :  { %7002 = vmatmul.mubr.bf16.vlgmr.msra.gmra.mrb[12].mxu1 %v9306_v26  ;;  %6847 = vmatpush1.bf16.msra.mxu0 %v8335_v4  ;;  %v8353_v26 = vcombine.low %v775_v19, %v779_v20  ;;  %v8392_v4 = vcombine.high %v814_v63, %v818_v0 }
 0x3a6   :  { %6878 = vmatprep.mubr.bf16.mxu0 %v9326_v8  ;;  %7011 = vmatpush1.bf16.msra.mxu1 %v8337_v41  ;;  %v826_v41 = vld [vmem:[#allocation7 + $0xa30] sm:$0xff] }
 0x3a7   :  { %7042 = vmatprep.mubr.bf16.mxu1 %v9326_v8  ;;  %6848 = vmatprep.subr.bf16.mxu0 %v8344_v11  ;;  %v8359_v8 = vcombine.low %v782_v12, %v786_v25  ;;  %v823_v11 = vld [vmem:[#allocation7 + $0xa18] sm:$0xff]  ;;  %v8400_v19 = vcombine.high %v822_v9, %v826_v41  ;;  %v8399_v12 = vcombine.low %v822_v9, %v826_v41 }
 0x3a8   :  { %7012 = vmatprep.subr.bf16.mxu1 %v8346_v17  ;;  %v8393_v17 = vcombine.low %v815_v60, %v819_v2  ;;  %v8402_v20 = vcombine.high %v823_v11, %v827_v13  ;;  %v8401_v25 = vcombine.low %v823_v11, %v827_v13 }
 0x3a9   :  { %6849 = vmatpush1.bf16.msra.mxu0 %v8343_v55  ;;  %v830_v55 = vld [vmem:[#allocation7 + $0xa50] sm:$0xff] }
 0x3aa   :  { %7013 = vmatpush1.bf16.msra.mxu1 %v8345_v21  ;;  %6850 = vmatprep.subr.bf16.mxu0 %v8352_v15  ;;  %v834_v21 = vld [vmem:[#allocation7 + $0xa70] sm:$0xff]  ;;  %v831_v15 = vld [vmem:[#allocation7 + $0xa58] sm:$0xff] }
 0x3ab   :  { %7014 = vmatprep.subr.bf16.mxu1 %v8354_v23  ;;  %v835_v23 = vld [vmem:[#allocation7 + $0xa78] sm:$0xff]  ;;  %v8408_v27 = vcombine.high %v830_v55, %v834_v21  ;;  %v8407_v24 = vcombine.low %v830_v55, %v834_v21 }
 0x3ac   :  { %v8410_v29 = vcombine.high %v831_v15, %v835_v23  ;;  %v8409_v33 = vcombine.low %v831_v15, %v835_v23 }
 0x3ad   :  { %6851 = vmatpush1.bf16.msra.mxu0 %v8351_v30  ;;  %v838_v30 = vld [vmem:[#allocation7 + $0xa90] sm:$0xff] }
 0x3ae   :  { %7015 = vmatpush1.bf16.msra.mxu1 %v8353_v26  ;;  %6852 = vmatprep.subr.bf16.mxu0 %v8360_v31  ;;  %v842_v26 = vld [vmem:[#allocation7 + $0xab0] sm:$0xff]  ;;  %v839_v31 = vld [vmem:[#allocation7 + $0xa98] sm:$0xff] }
 0x3af   :  { %7016 = vmatprep.subr.bf16.mxu1 %v8362_v53  ;;  %v843_v53 = vld [vmem:[#allocation7 + $0xab8] sm:$0xff]  ;;  %v8416_v7 = vcombine.high %v838_v30, %v842_v26  ;;  %v8415_v43 = vcombine.low %v838_v30, %v842_v26 }
 0x3b0   :  { %v8418_v34 = vcombine.high %v839_v31, %v843_v53  ;;  %v8417_v39 = vcombine.low %v839_v31, %v843_v53 }
 0x3b1   :  { %6853 = vmatpush1.bf16.msra.mxu0 %v8359_v8  ;;  %v846_v8 = vld [vmem:[#allocation7 + $0xad0] sm:$0xff] }
 0x3b2   :  { %7017 = vmatpush1.bf16.msra.mxu1 %v8361_v36  ;;  %6854 = vmatprep.subr.bf16.mxu0 %v8368_v18  ;;  %v850_v36 = vld [vmem:[#allocation7 + $0xaf0] sm:$0xff]  ;;  %v847_v18 = vld [vmem:[#allocation7 + $0xad8] sm:$0xff] }
 0x3b3   :  { %7018 = vmatprep.subr.bf16.mxu1 %v8370_v37  ;;  %v851_v37 = vld [vmem:[#allocation7 + $0xaf8] sm:$0xff]  ;;  %v8424_v44 = vcombine.high %v846_v8, %v850_v36  ;;  %v8423_v54 = vcombine.low %v846_v8, %v850_v36 }
 0x3b4   :  { %v8426_v45 = vcombine.high %v847_v18, %v851_v37  ;;  %v8425_v56 = vcombine.low %v847_v18, %v851_v37  ;;  %v899_v8 = vld [vmem:[#allocation7 + $0xc78] sm:$0xff]  ;;  %v902_v37 = vld [vmem:[#allocation7 + $0xc90] sm:$0xff] }
 0x3b5   :  { %6855 = vmatpush1.bf16.msra.mxu0 %v8367_v46  ;;  %v854_v46 = vld [vmem:[#allocation7 + $0xb10] sm:$0xff] }
 0x3b6   :  { %7019 = vmatpush1.bf16.msra.mxu1 %v8369_v47  ;;  %6856 = vmatprep.subr.bf16.mxu0 %v8376_v48  ;;  %v858_v47 = vld [vmem:[#allocation7 + $0xb30] sm:$0xff]  ;;  %v855_v48 = vld [vmem:[#allocation7 + $0xb18] sm:$0xff] }
 0x3b7   :  { %7020 = vmatprep.subr.bf16.mxu1 %v8378_v52  ;;  %v859_v52 = vld [vmem:[#allocation7 + $0xb38] sm:$0xff]  ;;  %v8432_v51 = vcombine.high %v854_v46, %v858_v47  ;;  %v8431_v63 = vcombine.low %v854_v46, %v858_v47 }
 0x3b8   :  { %v8434_v50 = vcombine.high %v855_v48, %v859_v52  ;;  %v8433_v0 = vcombine.low %v855_v48, %v859_v52 }
 0x3b9   :  { %6857 = vmatpush1.bf16.msra.mxu0 %v8375_v57  ;;  %v862_v57 = vld [vmem:[#allocation7 + $0xb50] sm:$0xff] }
 0x3ba   :  { %7021 = vmatpush1.bf16.msra.mxu1 %v8377_v1  ;;  %6858 = vmatprep.subr.bf16.mxu0 %v8384_v59  ;;  %v866_v1 = vld [vmem:[#allocation7 + $0xb70] sm:$0xff]  ;;  %v863_v59 = vld [vmem:[#allocation7 + $0xb58] sm:$0xff] }
 0x3bb   :  { %7022 = vmatprep.subr.bf16.mxu1 %v8386_v62  ;;  %v867_v62 = vld [vmem:[#allocation7 + $0xb78] sm:$0xff]  ;;  %v8440_v60 = vcombine.high %v862_v57, %v866_v1  ;;  %v8439_v9 = vcombine.low %v862_v57, %v866_v1 }
 0x3bc   :  { %v8442_v2 = vcombine.high %v863_v59, %v867_v62  ;;  %v8441_v41 = vcombine.low %v863_v59, %v867_v62  ;;  %v918_v62 = vld [vmem:[#allocation7 + $0xd10] sm:$0xff] }
 0x3bd   :  { %6859 = vmatpush1.bf16.msra.mxu0 %v8383_v5  ;;  %v870_v5 = vld [vmem:[#allocation7 + $0xb90] sm:$0xff] }
 0x3be   :  { %7023 = vmatpush1.bf16.msra.mxu1 %v8385_v3  ;;  %6860 = vmatprep.subr.bf16.mxu0 %v8392_v4  ;;  %v874_v3 = vld [vmem:[#allocation7 + $0xbb0] sm:$0xff]  ;;  %v871_v4 = vld [vmem:[#allocation7 + $0xb98] sm:$0xff] }
 0x3bf   :  { %7024 = vmatprep.subr.bf16.mxu1 %v8394_v6  ;;  %v875_v6 = vld [vmem:[#allocation7 + $0xbb8] sm:$0xff]  ;;  %v8448_v11 = vcombine.high %v870_v5, %v874_v3  ;;  %v8447_v55 = vcombine.low %v870_v5, %v874_v3 }
 0x3c0   :  { %v8450_v13 = vcombine.high %v871_v4, %v875_v6  ;;  %v8449_v21 = vcombine.low %v871_v4, %v875_v6  ;;  %v926_v4 = vld [vmem:[#allocation7 + $0xd50] sm:$0xff] }
 0x3c1   :  { %6861 = vmatpush1.bf16.msra.mxu0 %v8391_v16  ;;  %v878_v16 = vld [vmem:[#allocation7 + $0xbd0] sm:$0xff] }
 0x3c2   :  { %7025 = vmatpush1.bf16.msra.mxu1 %v8393_v17  ;;  %6862 = vmatprep.subr.bf16.mxu0 %v8400_v19  ;;  %v882_v17 = vld [vmem:[#allocation7 + $0xbf0] sm:$0xff]  ;;  %v879_v19 = vld [vmem:[#allocation7 + $0xbd8] sm:$0xff] }
 0x3c3   :  { %7026 = vmatprep.subr.bf16.mxu1 %v8402_v20  ;;  %v883_v20 = vld [vmem:[#allocation7 + $0xbf8] sm:$0xff]  ;;  %v8456_v15 = vcombine.high %v878_v16, %v882_v17  ;;  %v8455_v30 = vcombine.low %v878_v16, %v882_v17  ;;  %v930_v6 = vld [vmem:[#allocation7 + $0xd70] sm:$0xff] }
 0x3c4   :  { %v8458_v23 = vcombine.high %v879_v19, %v883_v20  ;;  %v8457_v26 = vcombine.low %v879_v19, %v883_v20  ;;  %v8504_v16 = vcombine.high %v926_v4, %v930_v6  ;;  %v934_v19 = vld [vmem:[#allocation7 + $0xd90] sm:$0xff] }
 0x3c5   :  { %6863 = vmatpush1.bf16.msra.mxu0 %v8399_v12  ;;  %v886_v12 = vld [vmem:[#allocation7 + $0xc10] sm:$0xff] }
 0x3c6   :  { %7027 = vmatpush1.bf16.msra.mxu1 %v8401_v25  ;;  %6864 = vmatprep.subr.bf16.mxu0 %v8408_v27  ;;  %v890_v25 = vld [vmem:[#allocation7 + $0xc30] sm:$0xff]  ;;  %v887_v27 = vld [vmem:[#allocation7 + $0xc18] sm:$0xff] }
 0x3c7   :  { %7028 = vmatprep.subr.bf16.mxu1 %v8410_v29  ;;  %v891_v29 = vld [vmem:[#allocation7 + $0xc38] sm:$0xff]  ;;  %v8464_v31 = vcombine.high %v886_v12, %v890_v25  ;;  %v938_v20 = vld [vmem:[#allocation7 + $0xdb0] sm:$0xff] }
 0x3c8   :  { %v8466_v53 = vcombine.high %v887_v27, %v891_v29  ;;  %v8465_v36 = vcombine.low %v887_v27, %v891_v29 }
 0x3c9   :  { %6865 = vmatpush1.bf16.msra.mxu0 %v8407_v24  ;;  %v894_v24 = vld [vmem:[#allocation7 + $0xc50] sm:$0xff] }
 0x3ca   :  { %7029 = vmatpush1.bf16.msra.mxu1 %v8409_v33  ;;  %6866 = vmatprep.subr.bf16.mxu0 %v8416_v7  ;;  %v898_v33 = vld [vmem:[#allocation7 + $0xc70] sm:$0xff]  ;;  %v8463_v7 = vcombine.low %v886_v12, %v890_v25  ;;  %v8512_v12 = vcombine.high %v934_v19, %v938_v20 }
 0x3cb   :  { %7030 = vmatprep.subr.bf16.mxu1 %v8418_v34  ;;  %v895_v34 = vld [vmem:[#allocation7 + $0xc58] sm:$0xff]  ;;  %v8472_v18 = vcombine.high %v894_v24, %v898_v33  ;;  %v8471_v46 = vcombine.low %v894_v24, %v898_v33 }
 0x3cc   :  { %v8473_v47 = vcombine.low %v895_v34, %v899_v8  ;;  %v943_v24 = vld [vmem:[#allocation7 + $0xdd8] sm:$0xff] }
 0x3cd   :  { %6867 = vmatpush1.bf16.msra.mxu0 %v8415_v43  ;;  %v906_v43 = vld [vmem:[#allocation7 + $0xcb0] sm:$0xff]  ;;  %v947_v33 = vld [vmem:[#allocation7 + $0xdf8] sm:$0xff] }
 0x3ce   :  { %7031 = vmatpush1.bf16.msra.mxu1 %v8417_v39  ;;  %6868 = vmatprep.subr.bf16.mxu0 %v8424_v44  ;;  %v8474_v39 = vcombine.high %v895_v34, %v899_v8  ;;  %v903_v44 = vld [vmem:[#allocation7 + $0xc98] sm:$0xff]  ;;  %v8480_v48 = vcombine.high %v902_v37, %v906_v43  ;;  %v8479_v57 = vcombine.low %v902_v37, %v906_v43 }
 0x3cf   :  { %7032 = vmatprep.subr.bf16.mxu1 %v8426_v45  ;;  %v907_v45 = vld [vmem:[#allocation7 + $0xcb8] sm:$0xff]  ;;  %v8511_v8 = vcombine.low %v934_v19, %v938_v20 }
 0x3d0   :  { %v8482_v52 = vcombine.high %v903_v44, %v907_v45 }
 0x3d1   :  { %6869 = vmatpush1.bf16.msra.mxu0 %v8423_v54  ;;  %v910_v54 = vld [vmem:[#allocation7 + $0xcd0] sm:$0xff] }
 0x3d2   :  { %7033 = vmatpush1.bf16.msra.mxu1 %v8425_v56  ;;  %6870 = vmatprep.subr.bf16.mxu0 %v8432_v51  ;;  %v914_v56 = vld [vmem:[#allocation7 + $0xcf0] sm:$0xff]  ;;  %v911_v51 = vld [vmem:[#allocation7 + $0xcd8] sm:$0xff] }
 0x3d3   :  { %7034 = vmatprep.subr.bf16.mxu1 %v8434_v50  ;;  %v915_v50 = vld [vmem:[#allocation7 + $0xcf8] sm:$0xff]  ;;  %v8488_v1 = vcombine.high %v910_v54, %v914_v56 }
 0x3d4   :  { %v8490_v59 = vcombine.high %v911_v51, %v915_v50 }
 0x3d5   :  { %6871 = vmatpush1.bf16.msra.mxu0 %v8431_v63  ;;  %v922_v63 = vld [vmem:[#allocation7 + $0xd30] sm:$0xff] }
 0x3d6   :  { %7035 = vmatpush1.bf16.msra.mxu1 %v8433_v0  ;;  %6872 = vmatprep.subr.bf16.mxu0 %v8440_v60  ;;  %v919_v0 = vld [vmem:[#allocation7 + $0xd18] sm:$0xff]  ;;  %v8496_v5 = vcombine.high %v918_v62, %v922_v63 }
 0x3d7   :  { %7036 = vmatprep.subr.bf16.mxu1 %v8442_v2  ;;  %v923_v60 = vld [vmem:[#allocation7 + $0xd38] sm:$0xff]  ;;  %v8489_v2 = vcombine.low %v911_v51, %v915_v50  ;;  %v958_v51 = vld [vmem:[#allocation7 + $0xe50] sm:$0xff] }
 0x3d8   :  { %v8498_v3 = vcombine.high %v919_v0, %v923_v60  ;;  %v962_v50 = vld [vmem:[#allocation7 + $0xe70] sm:$0xff] }
 0x3d9   :  { %6873 = vmatpush1.bf16.msra.mxu0 %v8439_v9  ;;  %v927_v9 = vld [vmem:[#allocation7 + $0xd58] sm:$0xff] }
 0x3da   :  { %7037 = vmatpush1.bf16.msra.mxu1 %v8441_v41  ;;  %6874 = vmatprep.subr.bf16.mxu0 %v8448_v11  ;;  %v931_v41 = vld [vmem:[#allocation7 + $0xd78] sm:$0xff]  ;;  %v8495_v11 = vcombine.low %v918_v62, %v922_v63  ;;  %v8536_v62 = vcombine.high %v958_v51, %v962_v50 }
 0x3db   :  { %7038 = vmatprep.subr.bf16.mxu1 %v8450_v13  ;;  %v8497_v13 = vcombine.low %v919_v0, %v923_v60  ;;  %v8506_v17 = vcombine.high %v927_v9, %v931_v41  ;;  %v966_v0 = vld [vmem:[#allocation7 + $0xe90] sm:$0xff] }
 0x3dc   :  { %v970_v60 = vld [vmem:[#allocation7 + $0xeb0] sm:$0xff] }
 0x3dd   :  { %6875 = vmatpush1.bf16.msra.mxu0 %v8447_v55  ;;  %v935_v55 = vld [vmem:[#allocation7 + $0xd98] sm:$0xff] }
 0x3de   :  { %7039 = vmatpush1.bf16.msra.mxu1 %v8449_v21  ;;  %6876 = vmatprep.subr.bf16.mxu0 %v8456_v15  ;;  %v939_v21 = vld [vmem:[#allocation7 + $0xdb8] sm:$0xff]  ;;  %v8503_v15 = vcombine.low %v926_v4, %v930_v6  ;;  %v8544_v4 = vcombine.high %v966_v0, %v970_v60 }
 0x3df   :  { %7040 = vmatprep.subr.bf16.mxu1 %v8458_v23  ;;  %v8505_v23 = vcombine.low %v927_v9, %v931_v41  ;;  %v8514_v29 = vcombine.high %v935_v55, %v939_v21  ;;  %v8513_v37 = vcombine.low %v935_v55, %v939_v21  ;;  %v974_v9 = vld [vmem:[#allocation7 + $0xed0] sm:$0xff] }
 0x3e0   :  { %v978_v41 = vld [vmem:[#allocation7 + $0xef0] sm:$0xff] }
 0x3e1   :  { %6877 = vmatpush1.bf16.msra.mxu0 %v8455_v30  ;;  %v942_v30 = vld [vmem:[#allocation7 + $0xdd0] sm:$0xff]  ;;  %v8552_v19 = vcombine.high %v974_v9, %v978_v41 }
 0x3e2   :  { %7041 = vmatpush1.bf16.msra.mxu1 %v8457_v26  ;;  %6887 = vmatprep.subr.bf16.mxu0 %v8464_v31  ;;  %v946_v26 = vld [vmem:[#allocation7 + $0xdf0] sm:$0xff] }
 0x3e3   :  { %7051 = vmatprep.subr.bf16.mxu1 %v8466_v53  ;;  %v8520_v43 = vcombine.high %v942_v30, %v946_v26  ;;  %v982_v55 = vld [vmem:[#allocation7 + $0xf10] sm:$0xff] }
 0x3e4   :  { %6879 = vmatmul.mubr.bf16.vlgmr.msra.gmra.mrb[12].mxu0 %v9328_v10  ;;  %v986_v21 = vld [vmem:[#allocation7 + $0xf30] sm:$0xff] }
 0x3e5   :  { %7043 = vmatmul.mubr.bf16.vlgmr.msra.gmra.mrb[12].mxu1 %v9328_v10  ;;  %6888 = vmatpush1.bf16.msra.mxu0 %v8463_v7  ;;  %v8481_v10 = vcombine.low %v903_v44, %v907_v45  ;;  %v950_v44 = vld [vmem:[#allocation7 + $0xe10] sm:$0xff] }
 0x3e6   :  { %6919 = vmatprep.mubr.bf16.mxu0 %v9332_v61  ;;  %7052 = vmatpush1.bf16.msra.mxu1 %v8465_v36  ;;  %v954_v45 = vld [vmem:[#allocation7 + $0xe30] sm:$0xff] }
 0x3e7   :  { %7083 = vmatprep.mubr.bf16.mxu1 %v9332_v61  ;;  %6889 = vmatprep.subr.bf16.mxu0 %v8472_v18  ;;  %v8487_v61 = vcombine.low %v910_v54, %v914_v56  ;;  %v8528_v54 = vcombine.high %v950_v44, %v954_v45 }
 0x3e8   :  { %7053 = vmatprep.subr.bf16.mxu1 %v8474_v39  ;;  %v8522_v39 = vcombine.high %v943_v24, %v947_v33 }
 0x3e9   :  { %6890 = vmatpush1.bf16.msra.mxu0 %v8471_v46  ;;  %v951_v46 = vld [vmem:[#allocation7 + $0xe18] sm:$0xff] }
 0x3ea   :  { %7054 = vmatpush1.bf16.msra.mxu1 %v8473_v47  ;;  %6891 = vmatprep.subr.bf16.mxu0 %v8480_v48  ;;  %v955_v47 = vld [vmem:[#allocation7 + $0xe38] sm:$0xff]  ;;  %v8519_v48 = vcombine.low %v942_v30, %v946_v26  ;;  %v8560_v30 = vcombine.high %v982_v55, %v986_v21 }
 0x3eb   :  { %7055 = vmatprep.subr.bf16.mxu1 %v8482_v52  ;;  %v8521_v52 = vcombine.low %v943_v24, %v947_v33  ;;  %v8530_v56 = vcombine.high %v951_v46, %v955_v47  ;;  %v990_v24 = vld [vmem:[#allocation7 + $0xf50] sm:$0xff] }
 0x3ec   :  { %v994_v33 = vld [vmem:[#allocation7 + $0xf70] sm:$0xff] }
 0x3ed   :  { %6892 = vmatpush1.bf16.msra.mxu0 %v8479_v57  ;;  %v959_v57 = vld [vmem:[#allocation7 + $0xe58] sm:$0xff] }
 0x3ee   :  { %7056 = vmatpush1.bf16.msra.mxu1 %v8481_v10  ;;  %6893 = vmatprep.subr.bf16.mxu0 %v8488_v1  ;;  %v963_v10 = vld [vmem:[#allocation7 + $0xe78] sm:$0xff]  ;;  %v8527_v1 = vcombine.low %v950_v44, %v954_v45 }
 0x3ef   :  { %7057 = vmatprep.subr.bf16.mxu1 %v8490_v59  ;;  %v8529_v59 = vcombine.low %v951_v46, %v955_v47  ;;  %v8538_v63 = vcombine.high %v959_v57, %v963_v10  ;;  %v999_v44 = vld [vmem:[#allocation7 + $0xf98] sm:$0xff]  ;;  %v9369_v46 = vld [vmem:[#allocation9] sm:$0xff]  ;;  %v8567_v47 = vcombine.low %v990_v24, %v994_v33 }
 0x3f0   :  { %v1003_v45 = vld [vmem:[#allocation7 + $0xfb8] sm:$0xff] }
 0x3f1   :  { %6894 = vmatpush1.bf16.msra.mxu0 %v8487_v61  ;;  %v967_v61 = vld [vmem:[#allocation7 + $0xe98] sm:$0xff] }
 0x3f2   :  { %7058 = vmatpush1.bf16.msra.mxu1 %v8489_v2  ;;  %6895 = vmatprep.subr.bf16.mxu0 %v8496_v5  ;;  %v971_v2 = vld [vmem:[#allocation7 + $0xeb8] sm:$0xff]  ;;  %v8535_v5 = vcombine.low %v958_v51, %v962_v50  ;;  %v1010_v51 = vld [vmem:[#allocation7 + $0xff0] sm:$0xff]  ;;  %v3843_v50 = vrot.slane %v9369_v46, %v1165_v38 }
 0x3f3   :  { %7059 = vmatprep.subr.bf16.mxu1 %v8498_v3  ;;  %v8537_v3 = vcombine.low %v959_v57, %v963_v10  ;;  %v8546_v6 = vcombine.high %v967_v61, %v971_v2  ;;  %v1007_v57 = vld [vmem:[#allocation7 + $0xfd8] sm:$0xff] }
 0x3f4   :  { %v1011_v10 = vld [vmem:[#allocation7 + $0xff8] sm:$0xff] }
 0x3f5   :  { %6896 = vmatpush1.bf16.msra.mxu0 %v8495_v11  ;;  %v975_v11 = vld [vmem:[#allocation7 + $0xed8] sm:$0xff] }
 0x3f6   :  { %7060 = vmatpush1.bf16.msra.mxu1 %v8497_v13  ;;  %6897 = vmatprep.subr.bf16.mxu0 %v8504_v16  ;;  %v979_v13 = vld [vmem:[#allocation7 + $0xef8] sm:$0xff]  ;;  %v8543_v16 = vcombine.low %v966_v0, %v970_v60  ;;  %v8586_v0 = vcombine.high %v1007_v57, %v1011_v10 }
 0x3f7   :  { %v9361_v25 = vpop.f32.mrb[8].mxu0  ;;  %v9363_v27 = vpop.f32.mrb[8].mxu1  ;;  %7061 = vmatprep.subr.bf16.mxu1 %v8506_v17  ;;  %v8545_v17 = vcombine.low %v967_v61, %v971_v2  ;;  %v8554_v20 = vcombine.high %v975_v11, %v979_v13  ;;  %v8585_v2 = vcombine.low %v1007_v57, %v1011_v10  ;;  %v8901_v57 = vld [vmem:[%s9604_s5 + $0x148] sm:$0xff]  }
 0x3f8   :  { %v9365_v31 = vpop.f32.mrb[9].mxu0  ;;  %v9367_v53 = vpop.f32.mrb[9].mxu1 }
 0x3f9   :  { %v6597_v7 = vpop.f32.mrb[10].mxu0  ;;  %v6761_v34 = vpop.f32.mrb[10].mxu1  ;;  %6898 = vmatpush1.bf16.msra.mxu0 %v8503_v15  ;;  %v983_v15 = vld [vmem:[#allocation7 + $0xf18] sm:$0xff]  ;;  %v8749_v60 = vadd.f32 %v9365_v31, %v3843_v50 }
 0x3fa   :  { %7062 = vmatpush1.bf16.msra.mxu1 %v8505_v23  ;;  %v6598_v36 = vpop.f32.mrb[11].mxu0  ;;  %v6762_v18 = vpop.f32.mrb[11].mxu1  ;;  %6899 = vmatprep.subr.bf16.mxu0 %v8512_v12  ;;  %v987_v23 = vld [vmem:[#allocation7 + $0xf38] sm:$0xff]  ;;  %v8551_v12 = vcombine.low %v974_v9, %v978_v41  ;;  %v8870_v41 = vld [vmem:[%s9604_s5 + $0xc8] sm:$0xff]  }
 0x3fb   :  { %7063 = vmatprep.subr.bf16.mxu1 %v8514_v29  ;;  %v8553_v29 = vcombine.low %v975_v11, %v979_v13  ;;  %v8562_v26 = vcombine.high %v983_v15, %v987_v23  ;;  %v991_v7 = vld [vmem:[#allocation7 + $0xf58] sm:$0xff]  ;;  %v8561_v36 = vcombine.low %v983_v15, %v987_v23  ;;  %v8568_v18 = vcombine.high %v990_v24, %v994_v33  ;;  %v8871_v13 = vld [vmem:[%s9604_s5 + $0x8] sm:$0xff]  }
 0x3fc   :  { %v995_v34 = vld [vmem:[#allocation7 + $0xf78] sm:$0xff]  ;;  %v8885_v24 = vld [vmem:[%s9604_s5 + $0x68] sm:$0xff]  }
 0x3fd   :  { %6900 = vmatpush1.bf16.msra.mxu0 %v8511_v8  ;;  %v8559_v8 = vcombine.low %v982_v55, %v986_v21  ;;  %v8867_v31 = vld [vmem:[%s9604_s5] sm:$0xff]   ;;  %v8877_v55 = vld [vmem:[%s9604_s5 + $0x58] sm:$0xff]   ;;  %v8886_v33 = vld [vmem:[%s9604_s5 + $0xe8] sm:$0xff]  }
 0x3fe   :  { %7064 = vmatpush1.bf16.msra.mxu1 %v8513_v37  ;;  %6901 = vmatprep.subr.bf16.mxu0 %v8520_v43  ;;  %v8570_v37 = vcombine.high %v991_v7, %v995_v34  ;;  %v998_v43 = vld [vmem:[#allocation7 + $0xf90] sm:$0xff]  ;;  %v8900_v50 = vld [vmem:[%s9604_s5 + $0x180] sm:$0xff]  }
 0x3ff   :  { %7065 = vmatprep.subr.bf16.mxu1 %v8522_v39  ;;  %v1002_v39 = vld [vmem:[#allocation7 + $0xfb0] sm:$0xff] }
 0x400   :  { %v8878_v21 = vld [vmem:[%s9604_s5 + $0xd8] sm:$0xff]  }
 0x401   :  { %6902 = vmatpush1.bf16.msra.mxu0 %v8519_v48  ;;  %v8569_v48 = vcombine.low %v991_v7, %v995_v34  ;;  %v8879_v15 = vld [vmem:[%s9604_s5 + $0x18] sm:$0xff]   ;;  %v8887_v7 = vld [vmem:[%s9604_s5 + $0x28] sm:$0xff]   ;;  %v3839_v34 = vrot.slane %v9369_v46, %v1161_v22  ;;  %v8891_v22 = vld [vmem:[%s9604_s5 + $0x30] sm:$0xff]  }
 0x402   :  { %7066 = vmatpush1.bf16.msra.mxu1 %v8521_v52  ;;  %6903 = vmatprep.subr.bf16.mxu0 %v8528_v54  ;;  %v8576_v52 = vcombine.high %v998_v43, %v1002_v39  ;;  %v8578_v54 = vcombine.high %v999_v44, %v1003_v45  ;;  %v8880_v23 = vld [vmem:[%s9604_s5 + $0x98] sm:$0xff]  }
 0x403   :  { %7067 = vmatprep.subr.bf16.mxu1 %v8530_v56  ;;  %v1006_v56 = vld [vmem:[#allocation7 + $0xfd0] sm:$0xff] }
 0x404   :  { %v8583_v38 = vcombine.low %v1006_v56, %v1010_v51 }
 0x405   :  { %6904 = vmatpush1.bf16.msra.mxu0 %v8527_v1  ;;  %v3851_v1 = vrot.slane %v9369_v46, %v1173_v28  ;;  %v8865_v28 = vld [vmem:[%s9604_s5 + $0x40] sm:$0xff]  }
 0x406   :  { %7068 = vmatpush1.bf16.msra.mxu1 %v8529_v59  ;;  %6905 = vmatprep.subr.bf16.mxu0 %v8536_v62  ;;  %v8575_v59 = vcombine.low %v998_v43, %v1002_v39  ;;  %v8577_v62 = vcombine.low %v999_v44, %v1003_v45  ;;  %v8748_v43 = vadd.f32 %v9361_v25, %v3839_v34  ;;  %v8892_v39 = vld [vmem:[%s9604_s5 + $0xb0] sm:$0xff]   ;;  %v8894_v45 = vld [vmem:[%s9604_s5 + $0xf8] sm:$0xff]  }
 0x407   :  { %7069 = vmatprep.subr.bf16.mxu1 %v8538_v63  ;;  %v8584_v63 = vcombine.high %v1006_v56, %v1010_v51  ;;  %v8751_v61 = vadd.f32 %v9367_v53, %v3851_v1  ;;  %v8868_v53 = vld [vmem:[%s9604_s5 + $0x80] sm:$0xff]   ;;  %v8895_v25 = vld [vmem:[%s9604_s5 + $0x38] sm:$0xff]   ;;  %v8902_v1 = vld [vmem:[%s9604_s5 + $0x1c8] sm:$0xff]  }
 0x408   :  { %v8899_v56 = vld [vmem:[%s9604_s5 + $0x100] sm:$0xff]  }
 0x409   :  { %6906 = vmatpush1.bf16.msra.mxu0 %v8535_v5  ;;  %v8866_v5 = vld [vmem:[%s9604_s5 + $0xc0] sm:$0xff]  }
 0x40a   :  { %7070 = vmatpush1.bf16.msra.mxu1 %v8537_v3  ;;  %6907 = vmatprep.subr.bf16.mxu0 %v8544_v4  ;;  %v7093_v3 = vmax.f32 %v8749_v60, 0.0  ;;  %v7095_v4 = vmax.f32 %v8751_v61, 0.0  ;;  %v8907_v60 = vld [vmem:[%s9604_s5 + $0x110] sm:$0xff]  }
 0x40b   :  { %7071 = vmatprep.subr.bf16.mxu1 %v8546_v6  ;;  %v8869_v6 = vld [vmem:[%s9604_s5 + $0x48] sm:$0xff]   ;;  %v8908_v61 = vld [vmem:[%s9604_s5 + $0x190] sm:$0xff]  }
 0x40c   :  { %v7101_v9 = vpack.c.bf16 %v7093_v3, %v7093_v3  ;;  %v7103_v11 = vpack.c.bf16 %v7095_v4, %v7095_v4  ;;  %v8913_v3 = vld [vmem:[%s9604_s5 + $0x160] sm:$0xff]  }
 0x40d   :  { %6908 = vmatpush1.bf16.msra.mxu0 %v8543_v16  ;;  %v8872_v16 = vld [vmem:[%s9604_s5 + $0x88] sm:$0xff]   ;;  %v8914_v4 = vld [vmem:[%s9604_s5 + $0x1e0] sm:$0xff]  }
 0x40e   :  { %7072 = vmatpush1.bf16.msra.mxu1 %v8545_v17  ;;  %6909 = vmatprep.subr.bf16.mxu0 %v8552_v19  ;;  %v8873_v17 = vld [vmem:[%s9604_s5 + $0x50] sm:$0xff]  }
 0x40f   :  { %7073 = vmatprep.subr.bf16.mxu1 %v8554_v20  ;;  %v8875_v19 = vld [vmem:[%s9604_s5 + $0x10] sm:$0xff]  }
 0x410   :  { %v8876_v20 = vld [vmem:[%s9604_s5 + $0x90] sm:$0xff]  }
 0x411   :  { %6910 = vmatpush1.bf16.msra.mxu0 %v8551_v12  ;;  %v8881_v12 = vld [vmem:[%s9604_s5 + $0x60] sm:$0xff]  }
 0x412   :  { %7074 = vmatpush1.bf16.msra.mxu1 %v8553_v29  ;;  %6911 = vmatprep.subr.bf16.mxu0 %v8560_v30  ;;  %v8882_v29 = vld [vmem:[%s9604_s5 + $0xe0] sm:$0xff]  }
 0x413   :  { %7075 = vmatprep.subr.bf16.mxu1 %v8562_v26  ;;  %v8883_v30 = vld [vmem:[%s9604_s5 + $0x20] sm:$0xff]  }
 0x414   :  { %v8884_v26 = vld [vmem:[%s9604_s5 + $0xa0] sm:$0xff]  }
 0x415   :  { %6912 = vmatpush1.bf16.msra.mxu0 %v8559_v8  ;;  %v8888_v8 = vld [vmem:[%s9604_s5 + $0xa8] sm:$0xff]  }
 0x416   :  { %7076 = vmatpush1.bf16.msra.mxu1 %v8561_v36  ;;  %6913 = vmatprep.subr.bf16.mxu0 %v8568_v18  ;;  %v8889_v36 = vld [vmem:[%s9604_s5 + $0x70] sm:$0xff]   ;;  %v3847_v18 = vrot.slane %v9369_v46, %v1169_v49  ;;  %v8893_v49 = vld [vmem:[%s9604_s5 + $0x78] sm:$0xff]  }
 0x417   :  { %7077 = vmatprep.subr.bf16.mxu1 %v8570_v37  ;;  %v8890_v37 = vld [vmem:[%s9604_s5 + $0xf0] sm:$0xff]  }
 0x418   :  { %v8750_v44 = vadd.f32 %v9363_v27, %v3847_v18  ;;  %v8897_v27 = vld [vmem:[%s9604_s5 + $0x140] sm:$0xff]  }
 0x419   :  { %6914 = vmatpush1.bf16.msra.mxu0 %v8567_v47  ;;  %v7092_v47 = vmax.f32 %v8748_v43, 0.0 }
 0x41a   :  { %7078 = vmatpush1.bf16.msra.mxu1 %v8569_v48  ;;  %6915 = vmatprep.subr.bf16.mxu0 %v8576_v52  ;;  %v8896_v48 = vld [vmem:[%s9604_s5 + $0xb8] sm:$0xff]   ;;  %v7094_v52 = vmax.f32 %v8750_v44, 0.0 }
 0x41b   :  { %7079 = vmatprep.subr.bf16.mxu1 %v8578_v54  ;;  %v8898_v54 = vld [vmem:[%s9604_s5 + $0x1c0] sm:$0xff]   ;;  %v7100_v51 = vpack.c.bf16 %v7092_v47, %v7092_v47 }
 0x41c   :  { %v7102_v10 = vpack.c.bf16 %v7094_v52, %v7094_v52 }
 0x41d   :  { %6916 = vmatpush1.bf16.msra.mxu0 %v8575_v59  ;;  %v8903_v59 = vld [vmem:[%s9604_s5 + $0x108] sm:$0xff]  }
 0x41e   :  { %7080 = vmatpush1.bf16.msra.mxu1 %v8577_v62  ;;  %6917 = vmatprep.subr.bf16.mxu0 %v8584_v63  ;;  %v8904_v62 = vld [vmem:[%s9604_s5 + $0x188] sm:$0xff]   ;;  %v8905_v63 = vld [vmem:[%s9604_s5 + $0x150] sm:$0xff]  }
 0x41f   :  { %7081 = vmatprep.subr.bf16.mxu1 %v8586_v0  ;;  %v8906_v0 = vld [vmem:[%s9604_s5 + $0x1d0] sm:$0xff]  }
 0x421   :  { %6918 = vmatpush1.bf16.msra.mxu0 %v8583_v38  ;;  %v8909_v38 = vld [vmem:[%s9604_s5 + $0x158] sm:$0xff]  }
 0x422   :  { %7082 = vmatpush1.bf16.msra.mxu1 %v8585_v2  ;;  %8652 = vmatprep.subr.bf16.mxu0 %v8865_v28  ;;  %v8910_v2 = vld [vmem:[%s9604_s5 + $0x1d8] sm:$0xff]  }
 0x423   :  { %8674 = vmatprep.subr.bf16.mxu1 %v8866_v5  ;;  %v8911_v28 = vld [vmem:[%s9604_s5 + $0x118] sm:$0xff]  }
 0x424   :  { %6920 = vmatmul.mubr.bf16.vlgmr.msra.gmra.mrb[12].mxu0 %v9343_v58  ;;  %v8912_v5 = vld [vmem:[%s9604_s5 + $0x198] sm:$0xff]  }
 0x425   :  { %7084 = vmatmul.mubr.bf16.vlgmr.msra.gmra.mrb[12].mxu1 %v9343_v58  ;;  %8653 = vmatpush3.bf16.msra.mxu0 %v8867_v31  ;;  %v8874_v58 = vld [vmem:[%s9604_s5 + $0xd0] sm:$0xff]   ;;  %v8915_v31 = vld [vmem:[%s9604_s5 + $0x120] sm:$0xff]  }
 0x426   :  { %7530 = vmatprep.mubr.bf16.mxu0 %v7101_v9  ;;  %8675 = vmatpush3.bf16.msra.mxu1 %v8868_v53  ;;  %v8916_v53 = vld [vmem:[%s9604_s5 + $0x1a0] sm:$0xff]   ;;  %v8918_v9 = vld [vmem:[%s9604_s5 + $0x1e8] sm:$0xff]  }
 0x427   :  { %7570 = vmatprep.mubr.bf16.mxu1 %v7103_v11  ;;  %8654 = vmatprep.subr.bf16.mxu0 %v8869_v6  ;;  %v8917_v6 = vld [vmem:[%s9604_s5 + $0x168] sm:$0xff]  }
 0x428   :  { %8676 = vmatprep.subr.bf16.mxu1 %v8870_v41  ;;  %v8919_v41 = vld [vmem:[%s9604_s5 + $0x128] sm:$0xff]  }
 0x429   :  { %8655 = vmatpush3.bf16.msra.mxu0 %v8871_v13  ;;  %v8920_v11 = vld [vmem:[%s9604_s5 + $0x1a8] sm:$0xff]   ;;  %v8921_v13 = vld [vmem:[%s9604_s5 + $0x170] sm:$0xff]  }
 0x42a   :  { %8677 = vmatpush3.bf16.msra.mxu1 %v8872_v16  ;;  %8656 = vmatprep.subr.bf16.mxu0 %v8873_v17  ;;  %v8922_v16 = vld [vmem:[%s9604_s5 + $0x1f0] sm:$0xff]  }
 0x42b   :  { %8678 = vmatprep.subr.bf16.mxu1 %v8874_v58  ;;  %v8923_v17 = vld [vmem:[%s9604_s5 + $0x130] sm:$0xff]  }
 0x42c   :  { %v8924_v58 = vld [vmem:[%s9604_s5 + $0x1b0] sm:$0xff]  }
 0x42d   :  { %8657 = vmatpush3.bf16.msra.mxu0 %v8875_v19  ;;  %v8925_v19 = vld [vmem:[%s9604_s5 + $0x178] sm:$0xff]  }
 0x42e   :  { %8679 = vmatpush3.bf16.msra.mxu1 %v8876_v20  ;;  %8658 = vmatprep.subr.bf16.mxu0 %v8877_v55  ;;  %v8926_v20 = vld [vmem:[%s9604_s5 + $0x1f8] sm:$0xff]  }
 0x42f   :  { %8680 = vmatprep.subr.bf16.mxu1 %v8878_v21  ;;  %v8927_v55 = vld [vmem:[%s9604_s5 + $0x138] sm:$0xff]  }
 0x430   :  { %v8928_v21 = vld [vmem:[%s9604_s5 + $0x1b8] sm:$0xff]  }
 0x431   :  { %8659 = vmatpush3.bf16.msra.mxu0 %v8879_v15  ;;  %v3855_v15 = vrot.slane %v9369_v46, %v1177_v40 }
 0x432   :  { %8681 = vmatpush3.bf16.msra.mxu1 %v8880_v23  ;;  %8660 = vmatprep.subr.bf16.mxu0 %v8881_v12  ;;  %v3863_v23 = vrot.slane %v9369_v46, %v1185_v14  ;;  %v3859_v12 = vrot.slane %v9369_v46, %v1181_v35 }
 0x433   :  { %8682 = vmatprep.subr.bf16.mxu1 %v8882_v29  ;;  %v3867_v29 = vrot.slane %v9369_v46, %v1189_v42 }
 0x435   :  { %8661 = vmatpush3.bf16.msra.mxu0 %v8883_v30 }
 0x436   :  { %8683 = vmatpush3.bf16.msra.mxu1 %v8884_v26  ;;  %8662 = vmatprep.subr.bf16.mxu0 %v8885_v24 }
 0x437   :  { %8684 = vmatprep.subr.bf16.mxu1 %v8886_v33 }
 0x439   :  { %8663 = vmatpush3.bf16.msra.mxu0 %v8887_v7 }
 0x43a   :  { %8685 = vmatpush3.bf16.msra.mxu1 %v8888_v8  ;;  %8664 = vmatprep.subr.bf16.mxu0 %v8889_v36 }
 0x43b   :  { %8686 = vmatprep.subr.bf16.mxu1 %v8890_v37 }
 0x43d   :  { %8665 = vmatpush3.bf16.msra.mxu0 %v8891_v22 }
 0x43e   :  { %8687 = vmatpush3.bf16.msra.mxu1 %v8892_v39  ;;  %8666 = vmatprep.subr.bf16.mxu0 %v8893_v49 }
 0x43f   :  { %8688 = vmatprep.subr.bf16.mxu1 %v8894_v45 }
 0x441   :  { %8667 = vmatpush3.bf16.msra.mxu0 %v8895_v25  ;;  %v8587_v25 = vld [vmem:[#allocation10] ss:$0 sm:$0xff] }
 0x442   :  { %8689 = vmatpush3.bf16.msra.mxu1 %v8896_v48  ;;  %8696 = vmatprep.subr.bf16.mxu0 %v8897_v27 }
 0x443   :  { %8718 = vmatprep.subr.bf16.mxu1 %v8898_v54 }
 0x444   :  { %7531 = vmatmul.mubr.bf16.vlgmr.msra.gmra.mrb[16].mxu0 %v7100_v51 }
 0x445   :  { %7571 = vmatmul.mubr.bf16.vlgmr.msra.gmra.mrb[16].mxu1 %v7102_v10  ;;  %8697 = vmatpush3.bf16.msra.mxu0 %v8899_v56 }
 0x446   :  { %8719 = vmatpush3.bf16.msra.mxu1 %v8900_v50  ;;  %8698 = vmatprep.subr.bf16.mxu0 %v8901_v57 }
 0x447   :  { %8720 = vmatprep.subr.bf16.mxu1 %v8902_v1 }
 0x449   :  { %8699 = vmatpush3.bf16.msra.mxu0 %v8903_v59 }
 0x44a   :  { %8721 = vmatpush3.bf16.msra.mxu1 %v8904_v62  ;;  %8700 = vmatprep.subr.bf16.mxu0 %v8905_v63 }
 0x44b   :  { %8722 = vmatprep.subr.bf16.mxu1 %v8906_v0 }
 0x44d   :  { %8701 = vmatpush3.bf16.msra.mxu0 %v8907_v60 }
 0x44e   :  { %8723 = vmatpush3.bf16.msra.mxu1 %v8908_v61  ;;  %8702 = vmatprep.subr.bf16.mxu0 %v8909_v38 }
 0x44f   :  { %8724 = vmatprep.subr.bf16.mxu1 %v8910_v2 }
 0x451   :  { %8703 = vmatpush3.bf16.msra.mxu0 %v8911_v28 }
 0x452   :  { %8725 = vmatpush3.bf16.msra.mxu1 %v8912_v5  ;;  %8704 = vmatprep.subr.bf16.mxu0 %v8913_v3 }
 0x453   :  { %8726 = vmatprep.subr.bf16.mxu1 %v8914_v4 }
 0x455   :  { %8705 = vmatpush3.bf16.msra.mxu0 %v8915_v31 }
 0x456   :  { %8727 = vmatpush3.bf16.msra.mxu1 %v8916_v53  ;;  %8706 = vmatprep.subr.bf16.mxu0 %v8917_v6 }
 0x457   :  { %8728 = vmatprep.subr.bf16.mxu1 %v8918_v9 }
 0x459   :  { %8707 = vmatpush3.bf16.msra.mxu0 %v8919_v41 }
 0x45a   :  { %8729 = vmatpush3.bf16.msra.mxu1 %v8920_v11  ;;  %8708 = vmatprep.subr.bf16.mxu0 %v8921_v13 }
 0x45b   :  { %8730 = vmatprep.subr.bf16.mxu1 %v8922_v16 }
 0x45d   :  { %8709 = vmatpush3.bf16.msra.mxu0 %v8923_v17 }
 0x45e   :  { %8731 = vmatpush3.bf16.msra.mxu1 %v8924_v58  ;;  %8710 = vmatprep.subr.bf16.mxu0 %v8925_v19 }
 0x45f   :  { %8732 = vmatprep.subr.bf16.mxu1 %v8926_v20 }
 0x461   :  { %8711 = vmatpush3.bf16.msra.mxu0 %v8927_v55 }
 0x462   :  { %8733 = vmatpush3.bf16.msra.mxu1 %v8928_v21 }
 0x4f7   :  { %v6921_v30 = vpop.f32.mrb[12].mxu0 }
 0x4f8   :  { %v8752_v26 = vadd.f32 %v6921_v30, %v3855_v15  ;;  %v7085_v24 = vpop.f32.mrb[12].mxu1  ;;  %v6923_v33 = vpop.f32.mrb[13].mxu0 }
 0x4f9   :  { %v8754_v7 = vadd.f32 %v7085_v24, %v3863_v23  ;;  %v8753_v34 = vadd.f32 %v6923_v33, %v3859_v12  ;;  %v7087_v8 = vpop.f32.mrb[13].mxu1  ;;  %v6925_v40 = vpop.f32.mrb[14].mxu0 }
 0x4fa   :  { %v7096_v36 = vmax.f32 %v8752_v26, 0.0  ;;  %v8755_v18 = vadd.f32 %v7087_v8, %v3867_v29  ;;  %v7089_v37 = vpop.f32.mrb[14].mxu1  ;;  %v6926_v14 = vpop.f32.mrb[15].mxu0 }
 0x4fb   :  { %v7098_v22 = vmax.f32 %v8754_v7, 0.0  ;;  %v7097_v43 = vmax.f32 %v8753_v34, 0.0  ;;  %v7090_v39 = vpop.f32.mrb[15].mxu1 }
 0x4fc   :  { %v7099_v35 = vmax.f32 %v8755_v18, 0.0  ;;  %v7104_v32 = vpack.c.bf16 %v7096_v36, %v7096_v36 }
 0x4fd   :  { %v7105_v49 = vpack.c.bf16 %v7097_v43, %v7097_v43  ;;  %v7106_v42 = vpack.c.bf16 %v7098_v22, %v7098_v22 }
 0x4fe   :  { %v7107_v44 = vpack.c.bf16 %v7099_v35, %v7099_v35 }
 0x4ff   :  { %7610 = vmatprep.mubr.bf16.mxu0 %v7105_v49 }
 0x500   :  { %7650 = vmatprep.mubr.bf16.mxu1 %v7107_v44  ;;  %7611 = vmatmul.mubr.bf16.vlgmr.msra.gmra.mrb[20].mxu0 %v7104_v32 }
 0x501   :  { %7651 = vmatmul.mubr.bf16.vlgmr.msra.gmra.mrb[20].mxu1 %v7106_v42 }
 0x517   :  { %v8668_v46 = vpop.f32.mrb[16].mxu0 }
 0x518   :  { %v8690_v45 = vpop.f32.mrb[16].mxu1  ;;  %v8669_v47 = vpop.f32.mrb[17].mxu0 }
 0x519   :  { %v8670_v48 = vadd.f32 %v8669_v47, %v8668_v46  ;;  %v8691_v27 = vpop.f32.mrb[17].mxu1  ;;  %v8671_v52 = vpop.f32.mrb[18].mxu0 }
 0x51a   :  { %v8692_v54 = vadd.f32 %v8691_v27, %v8690_v45  ;;  %v8693_v56 = vpop.f32.mrb[18].mxu1  ;;  %v8672_v51 = vpop.f32.mrb[19].mxu0 }
 0x51b   :  { %v7533_v50 = vadd.f32 %v8670_v48, %v8587_v25  ;;  %v8694_v57 = vpop.f32.mrb[19].mxu1 }
 0x51d   :  { %v7573_v10 = vadd.f32 %v8692_v54, %v7533_v50 }
 0x5d3   :  { %v8712_v1 = vpop.f32.mrb[20].mxu0 }
 0x5d4   :  { %v8734_v59 = vpop.f32.mrb[20].mxu1  ;;  %v8713_v62 = vpop.f32.mrb[21].mxu0 }
 0x5d5   :  { %v8714_v63 = vadd.f32 %v8713_v62, %v8712_v1  ;;  %v8735_v0 = vpop.f32.mrb[21].mxu1  ;;  %v8715_v60 = vpop.f32.mrb[22].mxu0 }
 0x5d6   :  { %v8736_v61 = vadd.f32 %v8735_v0, %v8734_v59  ;;  %v8737_v38 = vpop.f32.mrb[22].mxu1  ;;  %v8716_v2 = vpop.f32.mrb[23].mxu0 }
 0x5d7   :  { %v7613_v28 = vadd.f32 %v8714_v63, %v7573_v10  ;;  %v8738_v5 = vpop.f32.mrb[23].mxu1 }
 0x5d9   :  { %v7653_v3 = vadd.f32 %v8736_v61, %v7613_v28 }
 0x5db   :  { %v7658_v4 = vand.u32 2147483647, %v7653_v3  ;;  %7661 = vst.msk [vmem:[%s9606_s7] sm:$0xf] %vm7660_vm1, %v7653_v3 }
 0x5dd   :  { %v7659_v31 = vadd.f32 1e-06, %v7658_v4 }
 0x5df   :  { %7663 = vrot.lane.b32.xlu0 %v7659_v31, %s9079_s16 }
 0x651   :  { %v7664_v53 = vpop.permute.xlu0 %7663 }
 0x652   :  { %7666 = vst.msk [vmem:[%s9607_s8] sm:$0xf] %vm7660_vm1, %v7664_v53 }
 0x653   :  { %7675 = vsyncpa [#allocation3], 1 }
 0x654   :  { %7676 = vsyncpa [#allocation5], 1 }
 0x655   :  { %7677 = vsyncpa [#allocation8], 1 }
 0x656   :  { %7678 = vsyncpa [#allocation11], 1 }

// kernel: simple_vae_forward.3
= control target key start
LH: loop header
LB: loop body
LE: loop exit
PB: predicated region body
PF: predicated region fallthrough
CT: control target
= control target key end

     0   :  { %v9717_v8 = vmov 0   ;;  %vm44_vm0 = vcmask 261120   ;;  %s13016_s0 = inlined_call_operand.vmem [shape: f32[8,32], index: 0, kind: input, shape index: {}]   ;;  %s13017_s1 = inlined_call_operand.vmem [shape: f32[8,32], index: 1, kind: input, shape index: {}]   ;;  %s13018_s2 = inlined_call_operand.vmem [shape: f32[8,32], index: 2, kind: input, shape index: {}]   ;;  %s13019_s3 = inlined_call_operand.vmem [shape: f32[8,784], index: 3, kind: input, shape index: {}]   ;;  %s13020_s4 = inlined_call_operand.vmem [shape: bf16[32,1024], index: 4, kind: input, shape index: {}]   ;;  %s13021_s5 = inlined_call_operand.vmem [shape: f32[1,1024], index: 5, kind: input, shape index: {}]   ;;  %s13022_s6 = inlined_call_operand.vmem [shape: bf16[1024,1024], index: 6, kind: input, shape index: {}]   ;;  %s13023_s7 = inlined_call_operand.vmem [shape: f32[1,1024], index: 7, kind: input, shape index: {}]   ;;  %s13024_s8 = inlined_call_operand.vmem [shape: bf16[1024,784], index: 8, kind: input, shape index: {}]   ;;  %s13025_s9 = inlined_call_operand.vmem [shape: f32[1,784], index: 9, kind: input, shape index: {}]   ;;  %s13026_s10 = inlined_call_operand.hbm [shape: f32[8,32], index: 10, kind: output, shape index: {0}]   ;;  %s13027_s11 = inlined_call_operand.vmem [shape: f32[8,1], index: 11, kind: output, shape index: {1}]  }
   0x1   :  { %v46_v0 = vld [vmem:[%s13020_s4] sm:$0xff]  ;;  %v47_v2 = vld [vmem:[%s13020_s4 + $0x8] sm:$0xff]  ;;  %1246 = vmatprep.mubr.bf16.mxu0 %v9717_v8  ;;  %1287 = vmatprep.mubr.bf16.mxu1 %v9717_v8  ;;  %v48_v18 = vld [vmem:[%s13020_s4 + $0x10] sm:$0xff] }
   0x2   :  { %v50_v1 = vld [vmem:[%s13020_s4 + $0x20] sm:$0xff]  ;;  %v51_v4 = vld [vmem:[%s13020_s4 + $0x28] sm:$0xff]  ;;  %v52_v21 = vld [vmem:[%s13020_s4 + $0x30] sm:$0xff] }
   0x3   :  { %v7855_v3 = vcombine.high %v46_v0, %v50_v1  ;;  %v7854_v5 = vcombine.low %v46_v0, %v50_v1  ;;  %v54_v6 = vld [vmem:[%s13020_s4 + $0x40] sm:$0xff]  ;;  %v7857_v9 = vcombine.high %v47_v2, %v51_v4  ;;  %v7856_v10 = vcombine.low %v47_v2, %v51_v4  ;;  %v55_v12 = vld [vmem:[%s13020_s4 + $0x48] sm:$0xff]  ;;  %v49_v24 = vld [vmem:[%s13020_s4 + $0x18] sm:$0xff] }
   0x4   :  { %v58_v7 = vld [vmem:[%s13020_s4 + $0x60] sm:$0xff]  ;;  %v59_v13 = vld [vmem:[%s13020_s4 + $0x68] sm:$0xff]  ;;  %v7859_v23 = vcombine.high %v48_v18, %v52_v21  ;;  %v53_v25 = vld [vmem:[%s13020_s4 + $0x38] sm:$0xff]  ;;  %v7858_v31 = vcombine.low %v48_v18, %v52_v21 }
   0x5   :  { %v7863_v11 = vcombine.high %v54_v6, %v58_v7  ;;  %v39_v14 = vld [vmem:[%s13016_s0] sm:$0xff]  ;;  %1214 = vmatprep.subr.bf16.mxu0 %v7855_v3  ;;  %v7865_v15 = vcombine.high %v55_v12, %v59_v13  ;;  %1255 = vmatprep.subr.bf16.mxu1 %v7857_v9  ;;  %v7862_v19 = vcombine.low %v54_v6, %v58_v7  ;;  %v56_v27 = vld [vmem:[%s13020_s4 + $0x50] sm:$0xff]  ;;  %v57_v32 = vld [vmem:[%s13020_s4 + $0x58] sm:$0xff] }
   0x6   :  { %v40_v16 = vld [vmem:[%s13017_s1] sm:$0xff]  ;;  %1215 = vmatpush1.bf16.msra.mxu0 %v7854_v5  ;;  %1256 = vmatpush1.bf16.msra.mxu1 %v7856_v10  ;;  %v7864_v22 = vcombine.low %v55_v12, %v59_v13  ;;  %v60_v28 = vld [vmem:[%s13020_s4 + $0x70] sm:$0xff]  ;;  %v7861_v29 = vcombine.high %v49_v24, %v53_v25  ;;  %v61_v33 = vld [vmem:[%s13020_s4 + $0x78] sm:$0xff]  ;;  %v7860_v35 = vcombine.low %v49_v24, %v53_v25 }
   0x7   :  { %v41_v17 = vld [vmem:[%s13018_s2] sm:$0xff]  ;;  %1216 = vmatprep.subr.bf16.mxu0 %v7863_v11  ;;  %1257 = vmatprep.subr.bf16.mxu1 %v7865_v15  ;;  %v7867_v34 = vcombine.high %v56_v27, %v60_v28  ;;  %v7869_v38 = vcombine.high %v57_v32, %v61_v33  ;;  %v7866_v39 = vcombine.low %v56_v27, %v60_v28 }
   0x8   :  { %v42_v20 = vmul.f32 %v41_v17, %v39_v14  ;;  %v191_v36 = vld [vmem:[%s13022_s6 + $0x400] sm:$0xff]  ;;  %v7868_v43 = vcombine.low %v57_v32, %v61_v33 }
   0x9   :  { %v195_v37 = vld [vmem:[%s13022_s6 + $0x420] sm:$0xff] }
   0xa   :  { %v9824_v26 = vadd.f32 %v42_v20, %v40_v16  ;;  %1217 = vmatpush1.bf16.msra.mxu0 %v7862_v19  ;;  %1258 = vmatpush1.bf16.msra.mxu1 %v7864_v22  ;;  %v63_v40 = vld [vmem:[%s13022_s6] sm:$0xff]  ;;  %v8003_v42 = vcombine.high %v191_v36, %v195_v37  ;;  %v8002_v47 = vcombine.low %v191_v36, %v195_v37 }
   0xb   :  { %1296 = vmatprep.subr.bf16.mxu0 %v7859_v23  ;;  %1337 = vmatprep.subr.bf16.mxu1 %v7861_v29  ;;  %v67_v41 = vld [vmem:[%s13022_s6 + $0x20] sm:$0xff] }
   0xc   :  { %v1089_v30 = vpack.c.bf16 %v9824_v26, %v9824_v26  ;;  %45 = vst.msk [vmem:[#allocation2] sm:$0xff] %vm44_vm0, %v9824_v26  ;;  %v199_v44 = vld [vmem:[%s13022_s6 + $0x440] sm:$0xff]  ;;  %v7875_v46 = vcombine.high %v63_v40, %v67_v41  ;;  %v7874_v51 = vcombine.low %v63_v40, %v67_v41 }
   0xd   :  { %v203_v45 = vld [vmem:[%s13022_s6 + $0x460] sm:$0xff] }
   0xe   :  { %7870 = vmatmul.mubr.msk.bf16.vlgmr.msra.gmra.mrb[0].mxu0 %vm44_vm0, %v1089_v30  ;;  %7871 = vmatmul.mubr.msk.bf16.vlgmr.msra.gmra.mrb[0].mxu1 %vm44_vm0, %v1089_v30  ;;  %v71_v48 = vld [vmem:[%s13022_s6 + $0x40] sm:$0xff]  ;;  %v8011_v50 = vcombine.high %v199_v44, %v203_v45  ;;  %v8010_v55 = vcombine.low %v199_v44, %v203_v45 }
   0xf   :  { %1297 = vmatpush1.bf16.msra.mxu0 %v7858_v31  ;;  %1328 = vmatprep.mubr.bf16.mxu0 %v9717_v8  ;;  %v75_v49 = vld [vmem:[%s13022_s6 + $0x60] sm:$0xff] }
  0x10   :  { %1298 = vmatprep.subr.bf16.mxu0 %v7867_v34  ;;  %1338 = vmatpush1.bf16.msra.mxu1 %v7860_v35  ;;  %v207_v52 = vld [vmem:[%s13022_s6 + $0x480] sm:$0xff]  ;;  %v7883_v54 = vcombine.high %v71_v48, %v75_v49  ;;  %v7882_v59 = vcombine.low %v71_v48, %v75_v49 }
  0x11   :  { %1369 = vmatprep.mubr.bf16.mxu1 %v9717_v8  ;;  %1339 = vmatprep.subr.bf16.mxu1 %v7869_v38  ;;  %v211_v53 = vld [vmem:[%s13022_s6 + $0x4a0] sm:$0xff] }
  0x12   :  { %v79_v56 = vld [vmem:[%s13022_s6 + $0x80] sm:$0xff]  ;;  %v8019_v58 = vcombine.high %v207_v52, %v211_v53  ;;  %v8018_v63 = vcombine.low %v207_v52, %v211_v53 }
  0x13   :  { %1299 = vmatpush1.bf16.msra.mxu0 %v7866_v39  ;;  %v83_v57 = vld [vmem:[%s13022_s6 + $0xa0] sm:$0xff] }
  0x14   :  { %4036 = vmatprep.subr.bf16.mxu0 %v8003_v42  ;;  %1340 = vmatpush1.bf16.msra.mxu1 %v7868_v43  ;;  %v215_v60 = vld [vmem:[%s13022_s6 + $0x4c0] sm:$0xff]  ;;  %v7891_v62 = vcombine.high %v79_v56, %v83_v57  ;;  %v7890_v5 = vcombine.low %v79_v56, %v83_v57 }
  0x15   :  { %3995 = vmatprep.subr.bf16.mxu1 %v7875_v46  ;;  %v219_v61 = vld [vmem:[%s13022_s6 + $0x4e0] sm:$0xff] }
  0x16   :  { %7872 = vmatmul.mubr.msk.bf16.vlgmr.msra.gmra.mrb[4].mxu0 %vm44_vm0, %v1089_v30  ;;  %v87_v0 = vld [vmem:[%s13022_s6 + $0xc0] sm:$0xff]  ;;  %v8027_v3 = vcombine.high %v215_v60, %v219_v61  ;;  %v8026_v9 = vcombine.low %v215_v60, %v219_v61 }
  0x17   :  { %4037 = vmatpush1.bf16.msra.mxu0 %v8002_v47  ;;  %7873 = vmatmul.mubr.msk.bf16.vlgmr.msra.gmra.mrb[4].mxu1 %vm44_vm0, %v1089_v30  ;;  %v91_v1 = vld [vmem:[%s13022_s6 + $0xe0] sm:$0xff] }
  0x18   :  { %4038 = vmatprep.subr.bf16.mxu0 %v8011_v50  ;;  %3996 = vmatpush1.bf16.msra.mxu1 %v7874_v51  ;;  %v223_v2 = vld [vmem:[%s13022_s6 + $0x500] sm:$0xff]  ;;  %v7899_v8 = vcombine.high %v87_v0, %v91_v1  ;;  %v7898_v13 = vcombine.low %v87_v0, %v91_v1 }
  0x19   :  { %3997 = vmatprep.subr.bf16.mxu1 %v7883_v54  ;;  %v227_v4 = vld [vmem:[%s13022_s6 + $0x520] sm:$0xff] }
  0x1a   :  { %v95_v6 = vld [vmem:[%s13022_s6 + $0x100] sm:$0xff]  ;;  %v8035_v12 = vcombine.high %v223_v2, %v227_v4  ;;  %v8034_v17 = vcombine.low %v223_v2, %v227_v4 }
  0x1b   :  { %4039 = vmatpush1.bf16.msra.mxu0 %v8010_v55  ;;  %v99_v7 = vld [vmem:[%s13022_s6 + $0x120] sm:$0xff] }
  0x1c   :  { %4040 = vmatprep.subr.bf16.mxu0 %v8019_v58  ;;  %3998 = vmatpush1.bf16.msra.mxu1 %v7882_v59  ;;  %v231_v10 = vld [vmem:[%s13022_s6 + $0x540] sm:$0xff]  ;;  %v7907_v16 = vcombine.high %v95_v6, %v99_v7  ;;  %v7906_v21 = vcombine.low %v95_v6, %v99_v7 }
  0x1d   :  { %3999 = vmatprep.subr.bf16.mxu1 %v7891_v62  ;;  %v235_v11 = vld [vmem:[%s13022_s6 + $0x560] sm:$0xff] }
  0x1e   :  { %v103_v14 = vld [vmem:[%s13022_s6 + $0x140] sm:$0xff]  ;;  %v8043_v20 = vcombine.high %v231_v10, %v235_v11  ;;  %v8042_v25 = vcombine.low %v231_v10, %v235_v11 }
  0x1f   :  { %4041 = vmatpush1.bf16.msra.mxu0 %v8018_v63  ;;  %v107_v15 = vld [vmem:[%s13022_s6 + $0x160] sm:$0xff] }
  0x20   :  { %4042 = vmatprep.subr.bf16.mxu0 %v8027_v3  ;;  %4000 = vmatpush1.bf16.msra.mxu1 %v7890_v5  ;;  %v239_v18 = vld [vmem:[%s13022_s6 + $0x580] sm:$0xff]  ;;  %v7915_v24 = vcombine.high %v103_v14, %v107_v15  ;;  %v7914_v30 = vcombine.low %v103_v14, %v107_v15 }
  0x21   :  { %4001 = vmatprep.subr.bf16.mxu1 %v7899_v8  ;;  %v243_v19 = vld [vmem:[%s13022_s6 + $0x5a0] sm:$0xff] }
  0x22   :  { %v111_v22 = vld [vmem:[%s13022_s6 + $0x180] sm:$0xff]  ;;  %v8051_v29 = vcombine.high %v239_v18, %v243_v19  ;;  %v8050_v34 = vcombine.low %v239_v18, %v243_v19 }
  0x23   :  { %4043 = vmatpush1.bf16.msra.mxu0 %v8026_v9  ;;  %v115_v23 = vld [vmem:[%s13022_s6 + $0x1a0] sm:$0xff] }
  0x24   :  { %4044 = vmatprep.subr.bf16.mxu0 %v8035_v12  ;;  %4002 = vmatpush1.bf16.msra.mxu1 %v7898_v13  ;;  %v247_v27 = vld [vmem:[%s13022_s6 + $0x5c0] sm:$0xff]  ;;  %v7923_v33 = vcombine.high %v111_v22, %v115_v23  ;;  %v7922_v38 = vcombine.low %v111_v22, %v115_v23 }
  0x25   :  { %4003 = vmatprep.subr.bf16.mxu1 %v7907_v16  ;;  %v251_v28 = vld [vmem:[%s13022_s6 + $0x5e0] sm:$0xff] }
  0x26   :  { %v119_v31 = vld [vmem:[%s13022_s6 + $0x1c0] sm:$0xff]  ;;  %v8059_v37 = vcombine.high %v247_v27, %v251_v28  ;;  %v8058_v42 = vcombine.low %v247_v27, %v251_v28 }
  0x27   :  { %4045 = vmatpush1.bf16.msra.mxu0 %v8034_v17  ;;  %v123_v32 = vld [vmem:[%s13022_s6 + $0x1e0] sm:$0xff] }
  0x28   :  { %4046 = vmatprep.subr.bf16.mxu0 %v8043_v20  ;;  %4004 = vmatpush1.bf16.msra.mxu1 %v7906_v21  ;;  %v255_v35 = vld [vmem:[%s13022_s6 + $0x600] sm:$0xff]  ;;  %v7931_v41 = vcombine.high %v119_v31, %v123_v32  ;;  %v7930_v46 = vcombine.low %v119_v31, %v123_v32 }
  0x29   :  { %4005 = vmatprep.subr.bf16.mxu1 %v7915_v24  ;;  %v259_v36 = vld [vmem:[%s13022_s6 + $0x620] sm:$0xff] }
  0x2a   :  { %v127_v39 = vld [vmem:[%s13022_s6 + $0x200] sm:$0xff]  ;;  %v8067_v45 = vcombine.high %v255_v35, %v259_v36  ;;  %v8066_v50 = vcombine.low %v255_v35, %v259_v36 }
  0x2b   :  { %4047 = vmatpush1.bf16.msra.mxu0 %v8042_v25  ;;  %v131_v40 = vld [vmem:[%s13022_s6 + $0x220] sm:$0xff] }
  0x2c   :  { %4048 = vmatprep.subr.bf16.mxu0 %v8051_v29  ;;  %4006 = vmatpush1.bf16.msra.mxu1 %v7914_v30  ;;  %v263_v43 = vld [vmem:[%s13022_s6 + $0x640] sm:$0xff]  ;;  %v7939_v49 = vcombine.high %v127_v39, %v131_v40  ;;  %v7938_v54 = vcombine.low %v127_v39, %v131_v40 }
  0x2d   :  { %4007 = vmatprep.subr.bf16.mxu1 %v7923_v33  ;;  %v267_v44 = vld [vmem:[%s13022_s6 + $0x660] sm:$0xff] }
  0x2e   :  { %v135_v47 = vld [vmem:[%s13022_s6 + $0x240] sm:$0xff]  ;;  %v8075_v53 = vcombine.high %v263_v43, %v267_v44  ;;  %v8074_v58 = vcombine.low %v263_v43, %v267_v44  ;;  %v64_v43 = vld [vmem:[%s13022_s6 + $0x8] sm:$0xff] }
  0x2f   :  { %4049 = vmatpush1.bf16.msra.mxu0 %v8050_v34  ;;  %v139_v48 = vld [vmem:[%s13022_s6 + $0x260] sm:$0xff] }
  0x30   :  { %4050 = vmatprep.subr.bf16.mxu0 %v8059_v37  ;;  %4008 = vmatpush1.bf16.msra.mxu1 %v7922_v38  ;;  %v271_v51 = vld [vmem:[%s13022_s6 + $0x680] sm:$0xff]  ;;  %v7947_v57 = vcombine.high %v135_v47, %v139_v48  ;;  %v7946_v62 = vcombine.low %v135_v47, %v139_v48 }
  0x31   :  { %4009 = vmatprep.subr.bf16.mxu1 %v7931_v41  ;;  %v275_v52 = vld [vmem:[%s13022_s6 + $0x6a0] sm:$0xff] }
  0x32   :  { %v143_v55 = vld [vmem:[%s13022_s6 + $0x280] sm:$0xff]  ;;  %v8083_v61 = vcombine.high %v271_v51, %v275_v52  ;;  %v8082_v2 = vcombine.low %v271_v51, %v275_v52 }
  0x33   :  { %4051 = vmatpush1.bf16.msra.mxu0 %v8058_v42  ;;  %v147_v56 = vld [vmem:[%s13022_s6 + $0x2a0] sm:$0xff] }
  0x34   :  { %4052 = vmatprep.subr.bf16.mxu0 %v8067_v45  ;;  %4010 = vmatpush1.bf16.msra.mxu1 %v7930_v46  ;;  %v279_v59 = vld [vmem:[%s13022_s6 + $0x6c0] sm:$0xff]  ;;  %v7955_v1 = vcombine.high %v143_v55, %v147_v56  ;;  %v7954_v6 = vcombine.low %v143_v55, %v147_v56  ;;  %v68_v45 = vld [vmem:[%s13022_s6 + $0x28] sm:$0xff] }
  0x35   :  { %4011 = vmatprep.subr.bf16.mxu1 %v7939_v49  ;;  %v283_v60 = vld [vmem:[%s13022_s6 + $0x6e0] sm:$0xff]  ;;  %v7876_v47 = vcombine.low %v64_v43, %v68_v45  ;;  %v7877_v48 = vcombine.high %v64_v43, %v68_v45  ;;  %v1091_v49 = vlaneseq }
  0x36   :  { %v151_v63 = vld [vmem:[%s13022_s6 + $0x2c0] sm:$0xff]  ;;  %v8091_v5 = vcombine.high %v279_v59, %v283_v60  ;;  %v8090_v10 = vcombine.low %v279_v59, %v283_v60 }
  0x37   :  { %4053 = vmatpush1.bf16.msra.mxu0 %v8066_v50  ;;  %v155_v0 = vld [vmem:[%s13022_s6 + $0x2e0] sm:$0xff]  ;;  %v10058_v50 = vshrl.u32 %v1091_v49, 7 }
  0x38   :  { %4054 = vmatprep.subr.bf16.mxu0 %v8075_v53  ;;  %4012 = vmatpush1.bf16.msra.mxu1 %v7938_v54  ;;  %v287_v3 = vld [vmem:[%s13022_s6 + $0x700] sm:$0xff]  ;;  %v7963_v9 = vcombine.high %v151_v63, %v155_v0  ;;  %v7962_v14 = vcombine.low %v151_v63, %v155_v0 }
  0x39   :  { %4013 = vmatprep.subr.bf16.mxu1 %v7947_v57  ;;  %v291_v4 = vld [vmem:[%s13022_s6 + $0x720] sm:$0xff]  ;;  %v10066_v52 = vsub.s32 0, %v10058_v50  ;;  %v10069_v53 = vsub.s32 2, %v10058_v50  ;;  %v10072_v54 = vsub.s32 1, %v10058_v50  ;;  %v10075_v55 = vsub.s32 3, %v10058_v50 }
  0x3a   :  { %v159_v7 = vld [vmem:[%s13022_s6 + $0x300] sm:$0xff]  ;;  %v8099_v13 = vcombine.high %v287_v3, %v291_v4  ;;  %v8098_v18 = vcombine.low %v287_v3, %v291_v4 }
  0x3b   :  { %4055 = vmatpush1.bf16.msra.mxu0 %v8074_v58  ;;  %v163_v8 = vld [vmem:[%s13022_s6 + $0x320] sm:$0xff] }
  0x3c   :  { %4056 = vmatprep.subr.bf16.mxu0 %v8083_v61  ;;  %4014 = vmatpush1.bf16.msra.mxu1 %v7946_v62  ;;  %v295_v11 = vld [vmem:[%s13022_s6 + $0x740] sm:$0xff]  ;;  %v7971_v17 = vcombine.high %v159_v7, %v163_v8  ;;  %v7970_v20 = vcombine.low %v159_v7, %v163_v8  ;;  %v10086_v61 = vsub.s32 5, %v10058_v50 }
  0x3d   :  { %4015 = vmatprep.subr.bf16.mxu1 %v7955_v1  ;;  %v299_v12 = vld [vmem:[%s13022_s6 + $0x760] sm:$0xff] }
  0x3e   :  { %v167_v15 = vld [vmem:[%s13022_s6 + $0x340] sm:$0xff]  ;;  %v8107_v19 = vcombine.high %v295_v11, %v299_v12  ;;  %v8106_v22 = vcombine.low %v295_v11, %v299_v12 }
  0x3f   :  { %4057 = vmatpush1.bf16.msra.mxu0 %v8082_v2  ;;  %v171_v16 = vld [vmem:[%s13022_s6 + $0x360] sm:$0xff] }
  0x40   :  { %4058 = vmatprep.subr.bf16.mxu0 %v8091_v5  ;;  %4016 = vmatpush1.bf16.msra.mxu1 %v7954_v6  ;;  %v7979_v21 = vcombine.high %v167_v15, %v171_v16  ;;  %v7978_v23 = vcombine.low %v167_v15, %v171_v16  ;;  %v175_v24 = vld [vmem:[%s13022_s6 + $0x380] sm:$0xff] }
  0x41   :  { %4017 = vmatprep.subr.bf16.mxu1 %v7963_v9  ;;  %v179_v25 = vld [vmem:[%s13022_s6 + $0x3a0] sm:$0xff] }
  0x42   :  { %v303_v27 = vld [vmem:[%s13022_s6 + $0x780] sm:$0xff]  ;;  %v7987_v28 = vcombine.high %v175_v24, %v179_v25  ;;  %v7986_v30 = vcombine.low %v175_v24, %v179_v25  ;;  %v80_v24 = vld [vmem:[%s13022_s6 + $0x88] sm:$0xff] }
  0x43   :  { %4059 = vmatpush1.bf16.msra.mxu0 %v8090_v10  ;;  %v307_v29 = vld [vmem:[%s13022_s6 + $0x7a0] sm:$0xff]  ;;  %v72_v10 = vld [vmem:[%s13022_s6 + $0x48] sm:$0xff] }
  0x44   :  { %4060 = vmatprep.subr.bf16.mxu0 %v8099_v13  ;;  %4018 = vmatpush1.bf16.msra.mxu1 %v7962_v14  ;;  %v8114_v31 = vcombine.low %v303_v27, %v307_v29  ;;  %v8115_v32 = vcombine.high %v303_v27, %v307_v29  ;;  %v183_v33 = vld [vmem:[%s13022_s6 + $0x3c0] sm:$0xff]  ;;  %v76_v14 = vld [vmem:[%s13022_s6 + $0x68] sm:$0xff] }
  0x45   :  { %4019 = vmatprep.subr.bf16.mxu1 %v7971_v17  ;;  %v187_v34 = vld [vmem:[%s13022_s6 + $0x3e0] sm:$0xff]  ;;  %v7885_v27 = vcombine.high %v72_v10, %v76_v14 }
  0x46   :  { %v311_v35 = vld [vmem:[%s13022_s6 + $0x7c0] sm:$0xff]  ;;  %v7995_v36 = vcombine.high %v183_v33, %v187_v34  ;;  %v7994_v38 = vcombine.low %v183_v33, %v187_v34 }
  0x47   :  { %4061 = vmatpush1.bf16.msra.mxu0 %v8098_v18  ;;  %v315_v37 = vld [vmem:[%s13022_s6 + $0x7e0] sm:$0xff] }
  0x48   :  { %4062 = vmatprep.subr.bf16.mxu0 %v8107_v19  ;;  %4020 = vmatpush1.bf16.msra.mxu1 %v7970_v20  ;;  %v8122_v39 = vcombine.low %v311_v35, %v315_v37  ;;  %v8123_v40 = vcombine.high %v311_v35, %v315_v37  ;;  %v10041_v41 = vld [vmem:[%s13022_s6 + $0x800] sm:$0xff] }
  0x49   :  { %4021 = vmatprep.subr.bf16.mxu1 %v7979_v21  ;;  %v10046_v42 = vld [vmem:[%s13022_s6 + $0x820] sm:$0xff] }
  0x4a   :  { %v8131_v44 = vcombine.high %v10041_v41, %v10046_v42  ;;  %v8130_v46 = vcombine.low %v10041_v41, %v10046_v42  ;;  %v10063_v51 = vld [vmem:[%s13021_s5] sm:$0xff]  ;;  %v88_v41 = vld [vmem:[%s13022_s6 + $0xc8] sm:$0xff] }
  0x4b   :  { %4063 = vmatpush1.bf16.msra.mxu0 %v8106_v22  ;;  %v1094_v56 = vrot.slane %v10063_v51, %v10066_v52  ;;  %v1102_v57 = vrot.slane %v10063_v51, %v10069_v53  ;;  %v1098_v58 = vrot.slane %v10063_v51, %v10072_v54  ;;  %v1106_v59 = vrot.slane %v10063_v51, %v10075_v55  ;;  %v327_v8 = vld [vmem:[%s13022_s6 + $0x840] sm:$0xff]  ;;  %v92_v42 = vld [vmem:[%s13022_s6 + $0xe8] sm:$0xff] }
  0x4c   :  { %4022 = vmatpush1.bf16.msra.mxu1 %v7978_v23  ;;  %4064 = vmatprep.subr.bf16.mxu0 %v8115_v32  ;;  %v331_v9 = vld [vmem:[%s13022_s6 + $0x860] sm:$0xff]  ;;  %v1114_v19 = vrot.slane %v10063_v51, %v10086_v61 }
  0x4d   :  { %4023 = vmatprep.subr.bf16.mxu1 %v7987_v28  ;;  %v335_v22 = vld [vmem:[%s13022_s6 + $0x880] sm:$0xff]  ;;  %v8139_v25 = vcombine.high %v327_v8, %v331_v9  ;;  %v84_v28 = vld [vmem:[%s13022_s6 + $0xa8] sm:$0xff]  ;;  %v8138_v35 = vcombine.low %v327_v8, %v331_v9 }
  0x4e   :  { %v339_v23 = vld [vmem:[%s13022_s6 + $0x8a0] sm:$0xff] }
  0x4f   :  { %4065 = vmatpush1.bf16.msra.mxu0 %v8114_v31  ;;  %v7884_v31 = vcombine.low %v72_v10, %v76_v14  ;;  %v347_v45 = vld [vmem:[%s13022_s6 + $0x8e0] sm:$0xff]  ;;  %v8146_v49 = vcombine.low %v335_v22, %v339_v23  ;;  %v116_v14 = vld [vmem:[%s13022_s6 + $0x1a8] sm:$0xff] }
  0x50   :  { %4024 = vmatpush1.bf16.msra.mxu1 %v7986_v30  ;;  %4066 = vmatprep.subr.bf16.mxu0 %v8123_v40  ;;  %v343_v40 = vld [vmem:[%s13022_s6 + $0x8c0] sm:$0xff] }
  0x51   :  { %4025 = vmatprep.subr.bf16.mxu1 %v7995_v36  ;;  %v7893_v36 = vcombine.high %v80_v24, %v84_v28  ;;  %v367_v10 = vld [vmem:[%s13022_s6 + $0x980] sm:$0xff] }
  0x53   :  { %4067 = vmatpush1.bf16.msra.mxu0 %v8122_v39  ;;  %v8147_v39 = vcombine.high %v335_v22, %v339_v23 }
  0x54   :  { %4026 = vmatpush1.bf16.msra.mxu1 %v7994_v38  ;;  %4077 = vmatprep.subr.bf16.mxu0 %v8131_v44 }
  0x55   :  { %4159 = vmatprep.subr.bf16.mxu1 %v7877_v48 }
  0xe1   :  { %v1248_v60 = vpop.f32.mrb[0].mxu0  ;;  %v1289_v63 = vpop.f32.mrb[0].mxu1 }
  0xe2   :  { %v1249_v62 = vadd.f32 %v1248_v60, %v1094_v56  ;;  %v1250_v0 = vpop.f32.mrb[1].mxu0  ;;  %v1290_v1 = vadd.f32 %v1289_v63, %v1102_v57  ;;  %v1291_v3 = vpop.f32.mrb[1].mxu1  ;;  %v7901_v56 = vcombine.high %v88_v41, %v92_v42  ;;  %v351_v57 = vld [vmem:[%s13022_s6 + $0x900] sm:$0xff]  ;;  %v8155_v60 = vcombine.high %v343_v40, %v347_v45 }
  0xe3   :  { %v1251_v2 = vadd.f32 %v1250_v0, %v1098_v58  ;;  %v1252_v4 = vpop.f32.mrb[2].mxu0  ;;  %v1292_v6 = vadd.f32 %v1291_v3, %v1106_v59  ;;  %v1293_v11 = vpop.f32.mrb[2].mxu1  ;;  %v355_v58 = vld [vmem:[%s13022_s6 + $0x920] sm:$0xff]  ;;  %v96_v59 = vld [vmem:[%s13022_s6 + $0x108] sm:$0xff]  ;;  %v7900_v63 = vcombine.low %v88_v41, %v92_v42  ;;  %v8154_v0 = vcombine.low %v343_v40, %v347_v45 }
  0xe4   :  { %v1378_v5 = vmax.f32 %v1249_v62, 0.0  ;;  %v1253_v7 = vpop.f32.mrb[3].mxu0  ;;  %v1380_v12 = vmax.f32 %v1290_v1, 0.0  ;;  %v1294_v15 = vpop.f32.mrb[3].mxu1  ;;  %v100_v62 = vld [vmem:[%s13022_s6 + $0x128] sm:$0xff]  ;;  %v363_v3 = vld [vmem:[%s13022_s6 + $0x960] sm:$0xff]  ;;  %v8162_v8 = vcombine.low %v351_v57, %v355_v58 }
  0xe5   :  { %v1379_v13 = vmax.f32 %v1251_v2, 0.0  ;;  %v1381_v16 = vmax.f32 %v1292_v6, 0.0  ;;  %v7909_v1 = vcombine.high %v96_v59, %v100_v62  ;;  %v359_v2 = vld [vmem:[%s13022_s6 + $0x940] sm:$0xff]  ;;  %v104_v4 = vld [vmem:[%s13022_s6 + $0x148] sm:$0xff]  ;;  %v7908_v7 = vcombine.low %v96_v59, %v100_v62 }
  0xe6   :  { %v10100_v17 = vpack.c.bf16 %v1380_v12, %v1380_v12  ;;  %v10106_v20 = vpack.c.bf16 %v1378_v5, %v1378_v5  ;;  %v8163_v5 = vcombine.high %v351_v57, %v355_v58  ;;  %v108_v6 = vld [vmem:[%s13022_s6 + $0x168] sm:$0xff]  ;;  %v371_v11 = vld [vmem:[%s13022_s6 + $0x9a0] sm:$0xff] }
  0xe7   :  { %v10102_v18 = vpack.c.bf16 %v1379_v13, %v1379_v13  ;;  %v10108_v21 = vpack.c.bf16 %v1381_v16, %v1381_v16  ;;  %v7917_v9 = vcombine.high %v104_v4, %v108_v6  ;;  %v112_v12 = vld [vmem:[%s13022_s6 + $0x188] sm:$0xff]  ;;  %v8171_v13 = vcombine.high %v359_v2, %v363_v3 }
  0xe8   :  { %v7916_v15 = vcombine.low %v104_v4, %v108_v6 }
  0xe9   :  { %4027 = vmatprep.mubr.bf16.mxu1 %v10102_v18  ;;  %v10123_v29 = vpop.f32.mrb[4].mxu0  ;;  %4068 = vmatprep.mubr.bf16.mxu0 %v10108_v21 }
  0xea   :  { %4028 = vmatmul.mubr.bf16.vlgmr.msra.gmra.mrb[8].mxu1 %v10106_v20  ;;  %v1332_v30 = vpop.f32.mrb[5].mxu0  ;;  %4069 = vmatmul.mubr.bf16.vlgmr.msra.gmra.mrb[8].mxu0 %v10100_v17  ;;  %v10128_v34 = vpop.f32.mrb[4].mxu1 }
  0xeb   :  { %4160 = vmatpush1.bf16.msra.mxu1 %v7876_v47  ;;  %v1333_v32 = vadd.f32 %v1332_v30, %v1114_v19  ;;  %v1334_v33 = vpop.f32.mrb[6].mxu0  ;;  %4078 = vmatpush1.bf16.msra.mxu0 %v8130_v46  ;;  %v10131_v38 = vpop.f32.mrb[5].mxu1  ;;  %v7892_v47 = vcombine.low %v80_v24, %v84_v28 }
  0xec   :  { %4191 = vmatprep.mubr.bf16.mxu1 %v10102_v18  ;;  %v1335_v37 = vpop.f32.mrb[7].mxu0  ;;  %4079 = vmatprep.subr.bf16.mxu0 %v8139_v25  ;;  %v1375_v44 = vpop.f32.mrb[6].mxu1 }
  0xed   :  { %4161 = vmatprep.subr.bf16.mxu1 %v7885_v27  ;;  %v1383_v43 = vmax.f32 %v1333_v32, 0.0  ;;  %v1376_v46 = vpop.f32.mrb[7].mxu1 }
  0xef   :  { %4162 = vmatpush1.bf16.msra.mxu1 %v7884_v31  ;;  %v10145_v48 = vpack.c.bf16 %v1383_v43, %v1383_v43  ;;  %4080 = vmatpush1.bf16.msra.mxu0 %v8138_v35 }
  0xf0   :  { %4163 = vmatprep.subr.bf16.mxu1 %v7893_v36  ;;  %4081 = vmatprep.subr.bf16.mxu0 %v8147_v39 }
  0xf1   :  { %4109 = vmatprep.mubr.bf16.mxu0 %v10145_v48 }
  0xf3   :  { %4164 = vmatpush1.bf16.msra.mxu1 %v7892_v47  ;;  %4082 = vmatpush1.bf16.msra.mxu0 %v8146_v49 }
  0xf4   :  { %4165 = vmatprep.subr.bf16.mxu1 %v7901_v56  ;;  %4083 = vmatprep.subr.bf16.mxu0 %v8155_v60 }
  0xf7   :  { %4166 = vmatpush1.bf16.msra.mxu1 %v7900_v63  ;;  %4084 = vmatpush1.bf16.msra.mxu0 %v8154_v0 }
  0xf8   :  { %4167 = vmatprep.subr.bf16.mxu1 %v7909_v1  ;;  %4085 = vmatprep.subr.bf16.mxu0 %v8163_v5 }
  0xfb   :  { %4168 = vmatpush1.bf16.msra.mxu1 %v7908_v7 }
  0xfc   :  { %17 = vsyncpa [#allocation3], 0  ;;  %4086 = vmatpush1.bf16.msra.mxu0 %v8162_v8  ;;  %v8170_v16 = vcombine.low %v359_v2, %v363_v3  ;;  %4169 = vmatprep.subr.bf16.mxu1 %v7917_v9  ;;  %v7925_v19 = vcombine.high %v112_v12, %v116_v14  ;;  %v8179_v22 = vcombine.high %v367_v10, %v371_v11  ;;  %v120_v23 = vld [vmem:[%s13022_s6 + $0x1c8] sm:$0xff]  ;;  %v375_v25 = vld [vmem:[%s13022_s6 + $0x9c0] sm:$0xff]  ;;  %vm7822_vm1 = vcmask 130048  }
  0xfd   :  { %4087 = vmatprep.subr.bf16.mxu0 %v8171_v13  ;;  %v124_v24 = vld [vmem:[%s13022_s6 + $0x1e8] sm:$0xff]  ;;  %v379_v27 = vld [vmem:[%s13022_s6 + $0x9e0] sm:$0xff]  ;;  %v7924_v28 = vcombine.low %v112_v12, %v116_v14  ;;  %v8178_v30 = vcombine.low %v367_v10, %v371_v11 }
  0xfe   :  { %v7933_v31 = vcombine.high %v120_v23, %v124_v24  ;;  %v8187_v32 = vcombine.high %v375_v25, %v379_v27  ;;  %v128_v33 = vld [vmem:[%s13022_s6 + $0x208] sm:$0xff]  ;;  %v383_v36 = vld [vmem:[%s13022_s6 + $0xa00] sm:$0xff]  ;;  %v7932_v39 = vcombine.low %v120_v23, %v124_v24  ;;  %v8186_v40 = vcombine.low %v375_v25, %v379_v27 }
  0xff   :  { %4170 = vmatpush1.bf16.msra.mxu1 %v7916_v15  ;;  %v132_v35 = vld [vmem:[%s13022_s6 + $0x228] sm:$0xff]  ;;  %v387_v37 = vld [vmem:[%s13022_s6 + $0xa20] sm:$0xff] }
 0x100   :  { %4088 = vmatpush1.bf16.msra.mxu0 %v8170_v16  ;;  %4171 = vmatprep.subr.bf16.mxu1 %v7925_v19  ;;  %v7941_v41 = vcombine.high %v128_v33, %v132_v35  ;;  %v8195_v42 = vcombine.high %v383_v36, %v387_v37  ;;  %v136_v43 = vld [vmem:[%s13022_s6 + $0x248] sm:$0xff]  ;;  %v391_v45 = vld [vmem:[%s13022_s6 + $0xa40] sm:$0xff]  ;;  %v7940_v47 = vcombine.low %v128_v33, %v132_v35 }
 0x101   :  { %4089 = vmatprep.subr.bf16.mxu0 %v8179_v22  ;;  %v140_v44 = vld [vmem:[%s13022_s6 + $0x268] sm:$0xff]  ;;  %v395_v46 = vld [vmem:[%s13022_s6 + $0xa60] sm:$0xff]  ;;  %v8194_v49 = vcombine.low %v383_v36, %v387_v37 }
 0x102   :  { %v7949_v56 = vcombine.high %v136_v43, %v140_v44  ;;  %v8203_v57 = vcombine.high %v391_v45, %v395_v46  ;;  %v144_v58 = vld [vmem:[%s13022_s6 + $0x288] sm:$0xff]  ;;  %v399_v60 = vld [vmem:[%s13022_s6 + $0xa80] sm:$0xff]  ;;  %v7948_v63 = vcombine.low %v136_v43, %v140_v44  ;;  %v8202_v0 = vcombine.low %v391_v45, %v395_v46 }
 0x103   :  { %4172 = vmatpush1.bf16.msra.mxu1 %v7924_v28  ;;  %v148_v59 = vld [vmem:[%s13022_s6 + $0x2a8] sm:$0xff]  ;;  %v403_v62 = vld [vmem:[%s13022_s6 + $0xaa0] sm:$0xff] }
 0x104   :  { %4090 = vmatpush1.bf16.msra.mxu0 %v8178_v30  ;;  %4173 = vmatprep.subr.bf16.mxu1 %v7933_v31  ;;  %v7957_v1 = vcombine.high %v144_v58, %v148_v59  ;;  %v8211_v2 = vcombine.high %v399_v60, %v403_v62  ;;  %v152_v3 = vld [vmem:[%s13022_s6 + $0x2c8] sm:$0xff]  ;;  %v407_v5 = vld [vmem:[%s13022_s6 + $0xac0] sm:$0xff]  ;;  %v7956_v7 = vcombine.low %v144_v58, %v148_v59  ;;  %v10269_v30 = vsub.s32 4, %v10058_v50 }
 0x105   :  { %4091 = vmatprep.subr.bf16.mxu0 %v8187_v32  ;;  %v156_v4 = vld [vmem:[%s13022_s6 + $0x2e8] sm:$0xff]  ;;  %v411_v6 = vld [vmem:[%s13022_s6 + $0xae0] sm:$0xff]  ;;  %v8210_v8 = vcombine.low %v399_v60, %v403_v62 }
 0x106   :  { %v7965_v9 = vcombine.high %v152_v3, %v156_v4  ;;  %v8219_v10 = vcombine.high %v407_v5, %v411_v6  ;;  %v160_v11 = vld [vmem:[%s13022_s6 + $0x308] sm:$0xff]  ;;  %v415_v13 = vld [vmem:[%s13022_s6 + $0xb00] sm:$0xff]  ;;  %v7964_v15 = vcombine.low %v152_v3, %v156_v4  ;;  %v8218_v16 = vcombine.low %v407_v5, %v411_v6 }
 0x107   :  { %4174 = vmatpush1.bf16.msra.mxu1 %v7932_v39  ;;  %v164_v12 = vld [vmem:[%s13022_s6 + $0x328] sm:$0xff]  ;;  %v419_v14 = vld [vmem:[%s13022_s6 + $0xb20] sm:$0xff] }
 0x108   :  { %4092 = vmatpush1.bf16.msra.mxu0 %v8186_v40  ;;  %4175 = vmatprep.subr.bf16.mxu1 %v7941_v41  ;;  %v7973_v19 = vcombine.high %v160_v11, %v164_v12  ;;  %v8227_v22 = vcombine.high %v415_v13, %v419_v14  ;;  %v168_v23 = vld [vmem:[%s13022_s6 + $0x348] sm:$0xff]  ;;  %v423_v25 = vld [vmem:[%s13022_s6 + $0xb40] sm:$0xff]  ;;  %v7972_v28 = vcombine.low %v160_v11, %v164_v12  ;;  %v1121_v40 = vsub.s32 7, %v10058_v50 }
 0x109   :  { %4093 = vmatprep.subr.bf16.mxu0 %v8195_v42  ;;  %v172_v24 = vld [vmem:[%s13022_s6 + $0x368] sm:$0xff]  ;;  %v427_v27 = vld [vmem:[%s13022_s6 + $0xb60] sm:$0xff]  ;;  %v8226_v31 = vcombine.low %v415_v13, %v419_v14  ;;  %v1110_v42 = vrot.slane %v10063_v51, %v10269_v30 }
 0x10a   :  { %v7981_v32 = vcombine.high %v168_v23, %v172_v24  ;;  %v8235_v33 = vcombine.high %v423_v25, %v427_v27  ;;  %v176_v35 = vld [vmem:[%s13022_s6 + $0x388] sm:$0xff]  ;;  %v431_v37 = vld [vmem:[%s13022_s6 + $0xb80] sm:$0xff]  ;;  %v7980_v41 = vcombine.low %v168_v23, %v172_v24  ;;  %v8234_v43 = vcombine.low %v423_v25, %v427_v27 }
 0x10b   :  { %4176 = vmatpush1.bf16.msra.mxu1 %v7940_v47  ;;  %v180_v36 = vld [vmem:[%s13022_s6 + $0x3a8] sm:$0xff]  ;;  %v435_v39 = vld [vmem:[%s13022_s6 + $0xba0] sm:$0xff]  ;;  %v1331_v58 = vadd.f32 %v10123_v29, %v1110_v42 }
 0x10c   :  { %4094 = vmatpush1.bf16.msra.mxu0 %v8194_v49  ;;  %4177 = vmatprep.subr.bf16.mxu1 %v7949_v56  ;;  %v7989_v44 = vcombine.high %v176_v35, %v180_v36  ;;  %v8243_v45 = vcombine.high %v431_v37, %v435_v39  ;;  %v184_v46 = vld [vmem:[%s13022_s6 + $0x3c8] sm:$0xff]  ;;  %v439_v49 = vld [vmem:[%s13022_s6 + $0xbc0] sm:$0xff]  ;;  %v7988_v59 = vcombine.low %v176_v35, %v180_v36 }
 0x10d   :  { %4095 = vmatprep.subr.bf16.mxu0 %v8203_v57  ;;  %v188_v47 = vld [vmem:[%s13022_s6 + $0x3e8] sm:$0xff]  ;;  %v443_v56 = vld [vmem:[%s13022_s6 + $0xbe0] sm:$0xff]  ;;  %v1122_v57 = vrot.slane %v10063_v51, %v1121_v40  ;;  %v8242_v60 = vcombine.low %v431_v37, %v435_v39  ;;  %v1382_v4 = vmax.f32 %v1331_v58, 0.0 }
 0x10e   :  { %v7997_v62 = vcombine.high %v184_v46, %v188_v47  ;;  %v451_v29 = vld [vmem:[%s13022_s6 + $0xc20] sm:$0xff]  ;;  %v7996_v5 = vcombine.low %v184_v46, %v188_v47  ;;  %v8250_v6 = vcombine.low %v439_v49, %v443_v56  ;;  %v204_v11 = vld [vmem:[%s13022_s6 + $0x468] sm:$0xff] }
 0x10f   :  { %4178 = vmatpush1.bf16.msra.mxu1 %v7948_v63  ;;  %v8251_v63 = vcombine.high %v439_v49, %v443_v56  ;;  %v1374_v3 = vadd.f32 %v10131_v38, %v1122_v57  ;;  %v200_v38 = vld [vmem:[%s13022_s6 + $0x448] sm:$0xff]  ;;  %v10327_v13 = vpack.c.bf16 %v1382_v4, %v1382_v4  ;;  %v463_v24 = vld [vmem:[%s13022_s6 + $0xc80] sm:$0xff] }
 0x110   :  { %4096 = vmatpush1.bf16.msra.mxu0 %v8202_v0  ;;  %4179 = vmatprep.subr.bf16.mxu1 %v7957_v1  ;;  %v192_v0 = vld [vmem:[%s13022_s6 + $0x408] sm:$0xff]  ;;  %v467_v25 = vld [vmem:[%s13022_s6 + $0xca0] sm:$0xff] }
 0x111   :  { %4097 = vmatprep.subr.bf16.mxu0 %v8211_v2  ;;  %v196_v1 = vld [vmem:[%s13022_s6 + $0x428] sm:$0xff]  ;;  %v447_v2 = vld [vmem:[%s13022_s6 + $0xc00] sm:$0xff]  ;;  %v1385_v12 = vmax.f32 %v1374_v3, 0.0  ;;  %v8274_v42 = vcombine.low %v463_v24, %v467_v25 }
 0x112   :  { %v8004_v14 = vcombine.low %v192_v0, %v196_v1  ;;  %v212_v23 = vld [vmem:[%s13022_s6 + $0x4a8] sm:$0xff]  ;;  %v471_v37 = vld [vmem:[%s13022_s6 + $0xcc0] sm:$0xff] }
 0x113   :  { %4180 = vmatpush1.bf16.msra.mxu1 %v7956_v7  ;;  %v8005_v7 = vcombine.high %v192_v0, %v196_v1  ;;  %v10342_v27 = vpack.c.bf16 %v1385_v12, %v1385_v12  ;;  %v216_v35 = vld [vmem:[%s13022_s6 + $0x4c8] sm:$0xff]  ;;  %v475_v39 = vld [vmem:[%s13022_s6 + $0xce0] sm:$0xff] }
 0x114   :  { %4098 = vmatpush1.bf16.msra.mxu0 %v8210_v8  ;;  %4181 = vmatprep.subr.bf16.mxu1 %v7965_v9  ;;  %v8259_v8 = vcombine.high %v447_v2, %v451_v29  ;;  %v455_v9 = vld [vmem:[%s13022_s6 + $0xc40] sm:$0xff]  ;;  %v220_v36 = vld [vmem:[%s13022_s6 + $0x4e8] sm:$0xff]  ;;  %v8282_v57 = vcombine.low %v471_v37, %v475_v39 }
 0x115   :  { %4099 = vmatprep.subr.bf16.mxu0 %v8219_v10  ;;  %v459_v10 = vld [vmem:[%s13022_s6 + $0xc60] sm:$0xff]  ;;  %v228_v46 = vld [vmem:[%s13022_s6 + $0x528] sm:$0xff]  ;;  %v8028_v56 = vcombine.low %v216_v35, %v220_v36 }
 0x116   :  { %v479_v47 = vld [vmem:[%s13022_s6 + $0xd00] sm:$0xff]  ;;  %v240_v4 = vld [vmem:[%s13022_s6 + $0x588] sm:$0xff] }
 0x117   :  { %4182 = vmatpush1.bf16.msra.mxu1 %v7964_v15  ;;  %v8258_v15 = vcombine.low %v447_v2, %v451_v29  ;;  %v483_v49 = vld [vmem:[%s13022_s6 + $0xd20] sm:$0xff]  ;;  %v252_v12 = vld [vmem:[%s13022_s6 + $0x5e8] sm:$0xff] }
 0x118   :  { %4100 = vmatpush1.bf16.msra.mxu0 %v8218_v16  ;;  %4183 = vmatprep.subr.bf16.mxu1 %v7973_v19  ;;  %v8267_v16 = vcombine.high %v455_v9, %v459_v10  ;;  %v8013_v19 = vcombine.high %v200_v38, %v204_v11  ;;  %v491_v0 = vld [vmem:[%s13022_s6 + $0xd60] sm:$0xff]  ;;  %v8290_v2 = vcombine.low %v479_v47, %v483_v49 }
 0x119   :  { %4101 = vmatprep.subr.bf16.mxu0 %v8227_v22  ;;  %v208_v22 = vld [vmem:[%s13022_s6 + $0x488] sm:$0xff] }
 0x11b   :  { %4184 = vmatpush1.bf16.msra.mxu1 %v7972_v28  ;;  %v8012_v28 = vcombine.low %v200_v38, %v204_v11  ;;  %v248_v11 = vld [vmem:[%s13022_s6 + $0x5c8] sm:$0xff] }
 0x11c   :  { %4102 = vmatpush1.bf16.msra.mxu0 %v8226_v31  ;;  %4185 = vmatprep.subr.bf16.mxu1 %v7981_v32  ;;  %v8266_v31 = vcombine.low %v455_v9, %v459_v10  ;;  %v8021_v32 = vcombine.high %v208_v22, %v212_v23 }
 0x11d   :  { %4103 = vmatprep.subr.bf16.mxu0 %v8235_v33  ;;  %v8275_v33 = vcombine.high %v463_v24, %v467_v25  ;;  %v256_v24 = vld [vmem:[%s13022_s6 + $0x608] sm:$0xff] }
 0x11e   :  { %v260_v25 = vld [vmem:[%s13022_s6 + $0x628] sm:$0xff] }
 0x11f   :  { %4186 = vmatpush1.bf16.msra.mxu1 %v7980_v41  ;;  %v8020_v41 = vcombine.low %v208_v22, %v212_v23  ;;  %v8061_v22 = vcombine.high %v248_v11, %v252_v12 }
 0x120   :  { %4104 = vmatpush1.bf16.msra.mxu0 %v8234_v43  ;;  %4187 = vmatprep.subr.bf16.mxu1 %v7989_v44  ;;  %v8029_v43 = vcombine.high %v216_v35, %v220_v36  ;;  %v8283_v44 = vcombine.high %v471_v37, %v475_v39  ;;  %v8069_v35 = vcombine.high %v256_v24, %v260_v25  ;;  %v264_v37 = vld [vmem:[%s13022_s6 + $0x648] sm:$0xff] }
 0x121   :  { %4105 = vmatprep.subr.bf16.mxu0 %v8243_v45  ;;  %v224_v45 = vld [vmem:[%s13022_s6 + $0x508] sm:$0xff] }
 0x122   :  { %v8037_v58 = vcombine.high %v224_v45, %v228_v46  ;;  %v8036_v1 = vcombine.low %v224_v45, %v228_v46  ;;  %v268_v39 = vld [vmem:[%s13022_s6 + $0x668] sm:$0xff] }
 0x123   :  { %4188 = vmatpush1.bf16.msra.mxu1 %v7988_v59  ;;  %v8291_v59 = vcombine.high %v479_v47, %v483_v49  ;;  %v8077_v45 = vcombine.high %v264_v37, %v268_v39  ;;  %v272_v47 = vld [vmem:[%s13022_s6 + $0x688] sm:$0xff] }
 0x124   :  { %4106 = vmatpush1.bf16.msra.mxu0 %v8242_v60  ;;  %4189 = vmatprep.subr.bf16.mxu1 %v7997_v62  ;;  %v232_v60 = vld [vmem:[%s13022_s6 + $0x548] sm:$0xff] }
 0x125   :  { %4107 = vmatprep.subr.bf16.mxu0 %v8251_v63  ;;  %v236_v62 = vld [vmem:[%s13022_s6 + $0x568] sm:$0xff]  ;;  %v487_v63 = vld [vmem:[%s13022_s6 + $0xd40] sm:$0xff] }
 0x126   :  { %v8045_v29 = vcombine.high %v232_v60, %v236_v62  ;;  %v8299_v3 = vcombine.high %v487_v63, %v491_v0  ;;  %v8298_v9 = vcombine.low %v487_v63, %v491_v0  ;;  %v276_v49 = vld [vmem:[%s13022_s6 + $0x6a8] sm:$0xff] }
 0x127   :  { %4190 = vmatpush1.bf16.msra.mxu1 %v7996_v5  ;;  %v244_v5 = vld [vmem:[%s13022_s6 + $0x5a8] sm:$0xff] }
 0x128   :  { %4108 = vmatpush1.bf16.msra.mxu0 %v8250_v6  ;;  %4200 = vmatprep.subr.bf16.mxu1 %v8005_v7  ;;  %v495_v6 = vld [vmem:[%s13022_s6 + $0xd80] sm:$0xff]  ;;  %v8053_v10 = vcombine.high %v240_v4, %v244_v5  ;;  %v280_v63 = vld [vmem:[%s13022_s6 + $0x6c8] sm:$0xff] }
 0x129   :  { %4118 = vmatprep.subr.bf16.mxu0 %v8259_v8  ;;  %v499_v7 = vld [vmem:[%s13022_s6 + $0xda0] sm:$0xff]  ;;  %v8044_v8 = vcombine.low %v232_v60, %v236_v62  ;;  %v8085_v60 = vcombine.high %v272_v47, %v276_v49  ;;  %v284_v0 = vld [vmem:[%s13022_s6 + $0x6e8] sm:$0xff] }
 0x12a   :  { %4192 = vmatmul.mubr.bf16.vlgmr.msra.gmra.mrb[12].mxu1 %v10106_v20  ;;  %v8307_v38 = vcombine.high %v495_v6, %v499_v7 }
 0x12b   :  { %4110 = vmatmul.mubr.bf16.vlgmr.msra.gmra.mrb[8].mxu0 %v10327_v13  ;;  %4201 = vmatpush1.bf16.msra.mxu1 %v8004_v14  ;;  %v503_v14 = vld [vmem:[%s13022_s6 + $0xdc0] sm:$0xff] }
 0x12c   :  { %4119 = vmatpush1.bf16.msra.mxu0 %v8258_v15  ;;  %4232 = vmatprep.mubr.bf16.mxu1 %v10108_v21  ;;  %v507_v15 = vld [vmem:[%s13022_s6 + $0xde0] sm:$0xff] }
 0x12d   :  { %4120 = vmatprep.subr.bf16.mxu0 %v8267_v16  ;;  %4202 = vmatprep.subr.bf16.mxu1 %v8013_v19  ;;  %v8052_v16 = vcombine.low %v240_v4, %v244_v5  ;;  %v8306_v19 = vcombine.low %v495_v6, %v499_v7  ;;  %v8315_v23 = vcombine.high %v503_v14, %v507_v15  ;;  %v288_v6 = vld [vmem:[%s13022_s6 + $0x708] sm:$0xff] }
 0x12e   :  { %4150 = vmatprep.mubr.bf16.mxu0 %v10342_v27  ;;  %v8093_v4 = vcombine.high %v280_v63, %v284_v0  ;;  %v292_v7 = vld [vmem:[%s13022_s6 + $0x728] sm:$0xff] }
 0x12f   :  { %4203 = vmatpush1.bf16.msra.mxu1 %v8012_v28  ;;  %v511_v28 = vld [vmem:[%s13022_s6 + $0xe00] sm:$0xff] }
 0x130   :  { %4121 = vmatpush1.bf16.msra.mxu0 %v8266_v31  ;;  %4204 = vmatprep.subr.bf16.mxu1 %v8021_v32  ;;  %v515_v31 = vld [vmem:[%s13022_s6 + $0xe20] sm:$0xff]  ;;  %v8060_v32 = vcombine.low %v248_v11, %v252_v12  ;;  %v8101_v11 = vcombine.high %v288_v6, %v292_v7 }
 0x131   :  { %4122 = vmatprep.subr.bf16.mxu0 %v8275_v33  ;;  %v8314_v33 = vcombine.low %v503_v14, %v507_v15  ;;  %v8323_v36 = vcombine.high %v511_v28, %v515_v31  ;;  %v296_v14 = vld [vmem:[%s13022_s6 + $0x748] sm:$0xff] }
 0x132   :  { %v300_v15 = vld [vmem:[%s13022_s6 + $0x768] sm:$0xff] }
 0x133   :  { %4205 = vmatpush1.bf16.msra.mxu1 %v8020_v41  ;;  %v519_v41 = vld [vmem:[%s13022_s6 + $0xe40] sm:$0xff] }
 0x134   :  { %4123 = vmatpush1.bf16.msra.mxu0 %v8274_v42  ;;  %4206 = vmatprep.subr.bf16.mxu1 %v8029_v43  ;;  %v523_v42 = vld [vmem:[%s13022_s6 + $0xe60] sm:$0xff]  ;;  %v8068_v43 = vcombine.low %v256_v24, %v260_v25  ;;  %v8109_v25 = vcombine.high %v296_v14, %v300_v15 }
 0x135   :  { %4124 = vmatprep.subr.bf16.mxu0 %v8283_v44  ;;  %v8322_v44 = vcombine.low %v511_v28, %v515_v31  ;;  %v8331_v46 = vcombine.high %v519_v41, %v523_v42  ;;  %v304_v31 = vld [vmem:[%s13022_s6 + $0x788] sm:$0xff] }
 0x137   :  { %4207 = vmatpush1.bf16.msra.mxu1 %v8028_v56  ;;  %v527_v56 = vld [vmem:[%s13022_s6 + $0xe80] sm:$0xff] }
 0x138   :  { %4125 = vmatpush1.bf16.msra.mxu0 %v8282_v57  ;;  %4208 = vmatprep.subr.bf16.mxu1 %v8037_v58  ;;  %v531_v57 = vld [vmem:[%s13022_s6 + $0xea0] sm:$0xff]  ;;  %v8076_v58 = vcombine.low %v264_v37, %v268_v39 }
 0x139   :  { %4126 = vmatprep.subr.bf16.mxu0 %v8291_v59  ;;  %v8330_v59 = vcombine.low %v519_v41, %v523_v42  ;;  %v8339_v62 = vcombine.high %v527_v56, %v531_v57 }
 0x13b   :  { %4209 = vmatpush1.bf16.msra.mxu1 %v8036_v1  ;;  %v535_v1 = vld [vmem:[%s13022_s6 + $0xec0] sm:$0xff] }
 0x13c   :  { %4127 = vmatpush1.bf16.msra.mxu0 %v8290_v2  ;;  %4210 = vmatprep.subr.bf16.mxu1 %v8045_v29  ;;  %v539_v2 = vld [vmem:[%s13022_s6 + $0xee0] sm:$0xff]  ;;  %v8084_v29 = vcombine.low %v272_v47, %v276_v49 }
 0x13d   :  { %4128 = vmatprep.subr.bf16.mxu0 %v8299_v3  ;;  %v8338_v3 = vcombine.low %v527_v56, %v531_v57  ;;  %v8347_v5 = vcombine.high %v535_v1, %v539_v2 }
 0x13f   :  { %4211 = vmatpush1.bf16.msra.mxu1 %v8044_v8  ;;  %v543_v8 = vld [vmem:[%s13022_s6 + $0xf00] sm:$0xff] }
 0x140   :  { %4129 = vmatpush1.bf16.msra.mxu0 %v8298_v9  ;;  %4212 = vmatprep.subr.bf16.mxu1 %v8053_v10  ;;  %v547_v9 = vld [vmem:[%s13022_s6 + $0xf20] sm:$0xff]  ;;  %v8092_v10 = vcombine.low %v280_v63, %v284_v0 }
 0x141   :  { %4130 = vmatprep.subr.bf16.mxu0 %v8307_v38  ;;  %v8346_v38 = vcombine.low %v535_v1, %v539_v2  ;;  %v8355_v12 = vcombine.high %v543_v8, %v547_v9  ;;  %v8354_v24 = vcombine.low %v543_v8, %v547_v9 }
 0x143   :  { %4213 = vmatpush1.bf16.msra.mxu1 %v8052_v16  ;;  %v551_v16 = vld [vmem:[%s13022_s6 + $0xf40] sm:$0xff] }
 0x144   :  { %4131 = vmatpush1.bf16.msra.mxu0 %v8306_v19  ;;  %4214 = vmatprep.subr.bf16.mxu1 %v8061_v22  ;;  %v555_v19 = vld [vmem:[%s13022_s6 + $0xf60] sm:$0xff]  ;;  %v8100_v22 = vcombine.low %v288_v6, %v292_v7  ;;  %v73_v6 = vld [vmem:[%s13022_s6 + $0x50] sm:$0xff] }
 0x145   :  { %4132 = vmatprep.subr.bf16.mxu0 %v8315_v23  ;;  %v10480_v23 = vsub.s32 6, %v10058_v50  ;;  %v8363_v28 = vcombine.high %v551_v16, %v555_v19  ;;  %v8362_v39 = vcombine.low %v551_v16, %v555_v19  ;;  %v77_v7 = vld [vmem:[%s13022_s6 + $0x70] sm:$0xff] }
 0x146   :  { %v7886_v16 = vcombine.low %v73_v6, %v77_v7  ;;  %v9374_v50 = vld [vmem:[%s13024_s8 + $0xbd8] ss:$28 sps:$4 sm:$0xff]  }
 0x147   :  { %4215 = vmatpush1.bf16.msra.mxu1 %v8060_v32  ;;  %v308_v32 = vld [vmem:[%s13022_s6 + $0x7a8] sm:$0xff]  ;;  %v1118_v37 = vrot.slane %v10063_v51, %v10480_v23  ;;  %v571_v51 = vld [vmem:[%s13022_s6 + $0xfe0] sm:$0xff] }
 0x148   :  { %4133 = vmatpush1.bf16.msra.mxu0 %v8314_v33  ;;  %4216 = vmatprep.subr.bf16.mxu1 %v8069_v35  ;;  %v559_v33 = vld [vmem:[%s13022_s6 + $0xf80] sm:$0xff]  ;;  %v8117_v41 = vcombine.high %v304_v31, %v308_v32  ;;  %v8116_v47 = vcombine.low %v304_v31, %v308_v32  ;;  %v93_v31 = vld [vmem:[%s13022_s6 + $0xf0] sm:$0xff] }
 0x149   :  { %4134 = vmatprep.subr.bf16.mxu0 %v8323_v36  ;;  %v563_v35 = vld [vmem:[%s13022_s6 + $0xfa0] sm:$0xff]  ;;  %v8108_v36 = vcombine.low %v296_v14, %v300_v15  ;;  %v85_v14 = vld [vmem:[%s13022_s6 + $0xb0] sm:$0xff] }
 0x14a   :  { %v8371_v42 = vcombine.high %v559_v33, %v563_v35  ;;  %v8370_v49 = vcombine.low %v559_v33, %v563_v35 }
 0x14b   :  { %4217 = vmatpush1.bf16.msra.mxu1 %v8068_v43  ;;  %v312_v43 = vld [vmem:[%s13022_s6 + $0x7c8] sm:$0xff] }
 0x14c   :  { %4135 = vmatpush1.bf16.msra.mxu0 %v8322_v44  ;;  %4218 = vmatprep.subr.bf16.mxu1 %v8077_v45  ;;  %v316_v44 = vld [vmem:[%s13022_s6 + $0x7e8] sm:$0xff]  ;;  %v567_v45 = vld [vmem:[%s13022_s6 + $0xfc0] sm:$0xff] }
 0x14d   :  { %4136 = vmatprep.subr.bf16.mxu0 %v8331_v46  ;;  %v1372_v46 = vadd.f32 %v10128_v34, %v1118_v37  ;;  %v8125_v56 = vcombine.high %v312_v43, %v316_v44  ;;  %v8379_v57 = vcombine.high %v567_v45, %v571_v51  ;;  %v69_v34 = vld [vmem:[%s13022_s6 + $0x30] sm:$0xff]  ;;  %v8124_v63 = vcombine.low %v312_v43, %v316_v44  ;;  %v352_v37 = vld [vmem:[%s13022_s6 + $0x908] sm:$0xff] }
 0x14e   :  { %v8378_v0 = vcombine.low %v567_v45, %v571_v51 }
 0x14f   :  { %4219 = vmatpush1.bf16.msra.mxu1 %v8076_v58  ;;  %v320_v58 = vld [vmem:[%s13022_s6 + $0x808] sm:$0xff] }
 0x150   :  { %4137 = vmatpush1.bf16.msra.mxu0 %v8330_v59  ;;  %4220 = vmatprep.subr.bf16.mxu1 %v8085_v60  ;;  %v324_v59 = vld [vmem:[%s13022_s6 + $0x828] sm:$0xff]  ;;  %v65_v60 = vld [vmem:[%s13022_s6 + $0x10] sm:$0xff] }
 0x151   :  { %4138 = vmatprep.subr.bf16.mxu0 %v8339_v62  ;;  %v1384_v62 = vmax.f32 %v1372_v46, 0.0  ;;  %v8133_v1 = vcombine.high %v320_v58, %v324_v59  ;;  %v7879_v2 = vcombine.high %v65_v60, %v69_v34  ;;  %v7878_v8 = vcombine.low %v65_v60, %v69_v34  ;;  %v360_v46 = vld [vmem:[%s13022_s6 + $0x948] sm:$0xff] }
 0x152   :  { %v368_v34 = vld [vmem:[%s13022_s6 + $0x988] sm:$0xff] }
 0x153   :  { %4221 = vmatpush1.bf16.msra.mxu1 %v8084_v29  ;;  %v328_v29 = vld [vmem:[%s13022_s6 + $0x848] sm:$0xff] }
 0x154   :  { %4139 = vmatpush1.bf16.msra.mxu0 %v8338_v3  ;;  %4222 = vmatprep.subr.bf16.mxu1 %v8093_v4  ;;  %v332_v3 = vld [vmem:[%s13022_s6 + $0x868] sm:$0xff]  ;;  %v10527_v4 = vpack.c.bf16 %v1384_v62, %v1384_v62 }
 0x155   :  { %4140 = vmatprep.subr.bf16.mxu0 %v8347_v5  ;;  %v8132_v5 = vcombine.low %v320_v58, %v324_v59  ;;  %v8141_v9 = vcombine.high %v328_v29, %v332_v3  ;;  %v8140_v15 = vcombine.low %v328_v29, %v332_v3  ;;  %v372_v62 = vld [vmem:[%s13022_s6 + $0x9a8] sm:$0xff] }
 0x156   :  { %v8181_v29 = vcombine.high %v368_v34, %v372_v62 }
 0x157   :  { %4223 = vmatpush1.bf16.msra.mxu1 %v8092_v10  ;;  %v336_v10 = vld [vmem:[%s13022_s6 + $0x888] sm:$0xff] }
 0x158   :  { %4141 = vmatpush1.bf16.msra.mxu0 %v8346_v38  ;;  %4224 = vmatprep.subr.bf16.mxu1 %v8101_v11  ;;  %v340_v38 = vld [vmem:[%s13022_s6 + $0x8a8] sm:$0xff]  ;;  %v7887_v11 = vcombine.high %v73_v6, %v77_v7  ;;  %v121_v7 = vld [vmem:[%s13022_s6 + $0x1d0] sm:$0xff] }
 0x159   :  { %4142 = vmatprep.subr.bf16.mxu0 %v8355_v12  ;;  %v81_v12 = vld [vmem:[%s13022_s6 + $0x90] sm:$0xff]  ;;  %v8149_v19 = vcombine.high %v336_v10, %v340_v38  ;;  %v8148_v32 = vcombine.low %v336_v10, %v340_v38  ;;  %v380_v6 = vld [vmem:[%s13022_s6 + $0x9e8] sm:$0xff] }
 0x15a   :  { %v7894_v33 = vcombine.low %v81_v12, %v85_v14 }
 0x15b   :  { %4225 = vmatpush1.bf16.msra.mxu1 %v8100_v22  ;;  %v7895_v22 = vcombine.high %v81_v12, %v85_v14  ;;  %v384_v12 = vld [vmem:[%s13022_s6 + $0xa08] sm:$0xff] }
 0x15c   :  { %4143 = vmatpush1.bf16.msra.mxu0 %v8354_v24  ;;  %4226 = vmatprep.subr.bf16.mxu1 %v8109_v25  ;;  %v344_v24 = vld [vmem:[%s13022_s6 + $0x8c8] sm:$0xff] }
 0x15d   :  { %4144 = vmatprep.subr.bf16.mxu0 %v8363_v28  ;;  %v348_v25 = vld [vmem:[%s13022_s6 + $0x8e8] sm:$0xff]  ;;  %v89_v28 = vld [vmem:[%s13022_s6 + $0xd0] sm:$0xff] }
 0x15e   :  { %v8157_v35 = vcombine.high %v344_v24, %v348_v25  ;;  %v8156_v43 = vcombine.low %v344_v24, %v348_v25  ;;  %v7902_v44 = vcombine.low %v89_v28, %v93_v31  ;;  %v388_v14 = vld [vmem:[%s13022_s6 + $0xa28] sm:$0xff] }
 0x15f   :  { %4227 = vmatpush1.bf16.msra.mxu1 %v8108_v36  ;;  %v7903_v36 = vcombine.high %v89_v28, %v93_v31  ;;  %v8197_v24 = vcombine.high %v384_v12, %v388_v14  ;;  %v392_v28 = vld [vmem:[%s13022_s6 + $0xa48] sm:$0xff] }
 0x160   :  { %4145 = vmatpush1.bf16.msra.mxu0 %v8362_v39  ;;  %4228 = vmatprep.subr.bf16.mxu1 %v8117_v41  ;;  %v356_v39 = vld [vmem:[%s13022_s6 + $0x928] sm:$0xff]  ;;  %v97_v41 = vld [vmem:[%s13022_s6 + $0x110] sm:$0xff] }
 0x161   :  { %4146 = vmatprep.subr.bf16.mxu0 %v8371_v42  ;;  %v101_v42 = vld [vmem:[%s13022_s6 + $0x130] sm:$0xff]  ;;  %v8165_v45 = vcombine.high %v352_v37, %v356_v39  ;;  %v396_v31 = vld [vmem:[%s13022_s6 + $0xa68] sm:$0xff] }
 0x162   :  { %v7911_v51 = vcombine.high %v97_v41, %v101_v42  ;;  %v7910_v58 = vcombine.low %v97_v41, %v101_v42  ;;  %v400_v41 = vld [vmem:[%s13022_s6 + $0xa88] sm:$0xff] }
 0x163   :  { %4229 = vmatpush1.bf16.msra.mxu1 %v8116_v47  ;;  %v364_v47 = vld [vmem:[%s13022_s6 + $0x968] sm:$0xff] }
 0x164   :  { %4147 = vmatpush1.bf16.msra.mxu0 %v8370_v49  ;;  %4230 = vmatprep.subr.bf16.mxu1 %v8125_v56  ;;  %v105_v49 = vld [vmem:[%s13022_s6 + $0x150] sm:$0xff]  ;;  %v8173_v59 = vcombine.high %v360_v46, %v364_v47  ;;  %v404_v42 = vld [vmem:[%s13022_s6 + $0xaa8] sm:$0xff] }
 0x165   :  { %4148 = vmatprep.subr.bf16.mxu0 %v8379_v57  ;;  %v109_v56 = vld [vmem:[%s13022_s6 + $0x170] sm:$0xff]  ;;  %v8164_v57 = vcombine.low %v352_v37, %v356_v39  ;;  %v8205_v37 = vcombine.high %v392_v28, %v396_v31 }
 0x166   :  { %v7919_v60 = vcombine.high %v105_v49, %v109_v56 }
 0x167   :  { %4231 = vmatpush1.bf16.msra.mxu1 %v8124_v63  ;;  %v113_v63 = vld [vmem:[%s13022_s6 + $0x190] sm:$0xff] }
 0x168   :  { %4149 = vmatpush1.bf16.msra.mxu0 %v8378_v0  ;;  %4241 = vmatprep.subr.bf16.mxu1 %v8133_v1  ;;  %v117_v0 = vld [vmem:[%s13022_s6 + $0x1b0] sm:$0xff]  ;;  %v8172_v1 = vcombine.low %v360_v46, %v364_v47  ;;  %v8213_v46 = vcombine.high %v400_v41, %v404_v42 }
 0x169   :  { %4323 = vmatprep.subr.bf16.mxu0 %v7879_v2  ;;  %v7918_v2 = vcombine.low %v105_v49, %v109_v56  ;;  %v7927_v3 = vcombine.high %v113_v63, %v117_v0  ;;  %v7926_v10 = vcombine.low %v113_v63, %v117_v0  ;;  %v408_v49 = vld [vmem:[%s13022_s6 + $0xac8] sm:$0xff] }
 0x16a   :  { %4233 = vmatmul.mubr.bf16.vlgmr.msra.gmra.mrb[12].mxu1 %v10100_v17  ;;  %v412_v56 = vld [vmem:[%s13022_s6 + $0xae8] sm:$0xff] }
 0x16b   :  { %4151 = vmatmul.mubr.bf16.vlgmr.msra.gmra.mrb[8].mxu0 %v10527_v4  ;;  %4242 = vmatpush1.bf16.msra.mxu1 %v8132_v5  ;;  %v376_v5 = vld [vmem:[%s13022_s6 + $0x9c8] sm:$0xff] }
 0x16c   :  { %4273 = vmatprep.mubr.bf16.mxu1 %v10145_v48  ;;  %4324 = vmatpush1.bf16.msra.mxu0 %v7878_v8  ;;  %v125_v8 = vld [vmem:[%s13022_s6 + $0x1f0] sm:$0xff]  ;;  %v8189_v38 = vcombine.high %v376_v5, %v380_v6  ;;  %v416_v63 = vld [vmem:[%s13022_s6 + $0xb08] sm:$0xff] }
 0x16d   :  { %4355 = vmatprep.mubr.bf16.mxu0 %v10102_v18  ;;  %4243 = vmatprep.subr.bf16.mxu1 %v8141_v9  ;;  %v8180_v9 = vcombine.low %v368_v34, %v372_v62  ;;  %v8221_v34 = vcombine.high %v408_v49, %v412_v56  ;;  %v420_v0 = vld [vmem:[%s13022_s6 + $0xb28] sm:$0xff] }
 0x16e   :  { %4325 = vmatprep.subr.bf16.mxu0 %v7887_v11  ;;  %v7935_v11 = vcombine.high %v121_v7, %v125_v8 }
 0x16f   :  { %4244 = vmatpush1.bf16.msra.mxu1 %v8140_v15  ;;  %v129_v15 = vld [vmem:[%s13022_s6 + $0x210] sm:$0xff] }
 0x170   :  { %4326 = vmatpush1.bf16.msra.mxu0 %v7886_v16  ;;  %4245 = vmatprep.subr.bf16.mxu1 %v8149_v19  ;;  %v133_v16 = vld [vmem:[%s13022_s6 + $0x230] sm:$0xff]  ;;  %v8188_v19 = vcombine.low %v376_v5, %v380_v6  ;;  %v8229_v5 = vcombine.high %v416_v63, %v420_v0 }
 0x171   :  { %4327 = vmatprep.subr.bf16.mxu0 %v7895_v22  ;;  %v7934_v22 = vcombine.low %v121_v7, %v125_v8  ;;  %v7943_v25 = vcombine.high %v129_v15, %v133_v16  ;;  %v424_v7 = vld [vmem:[%s13022_s6 + $0xb48] sm:$0xff] }
 0x172   :  { %v428_v8 = vld [vmem:[%s13022_s6 + $0xb68] sm:$0xff] }
 0x173   :  { %4246 = vmatpush1.bf16.msra.mxu1 %v8148_v32  ;;  %v137_v32 = vld [vmem:[%s13022_s6 + $0x250] sm:$0xff] }
 0x174   :  { %4328 = vmatpush1.bf16.msra.mxu0 %v7894_v33  ;;  %4247 = vmatprep.subr.bf16.mxu1 %v8157_v35  ;;  %v141_v33 = vld [vmem:[%s13022_s6 + $0x270] sm:$0xff]  ;;  %v8196_v35 = vcombine.low %v384_v12, %v388_v14  ;;  %v8237_v12 = vcombine.high %v424_v7, %v428_v8 }
 0x175   :  { %4329 = vmatprep.subr.bf16.mxu0 %v7903_v36  ;;  %v7942_v36 = vcombine.low %v129_v15, %v133_v16  ;;  %v7951_v39 = vcombine.high %v137_v32, %v141_v33  ;;  %v432_v15 = vld [vmem:[%s13022_s6 + $0xb88] sm:$0xff] }
 0x176   :  { %v436_v16 = vld [vmem:[%s13022_s6 + $0xba8] sm:$0xff] }
 0x177   :  { %4248 = vmatpush1.bf16.msra.mxu1 %v8156_v43  ;;  %v145_v43 = vld [vmem:[%s13022_s6 + $0x290] sm:$0xff] }
 0x178   :  { %4330 = vmatpush1.bf16.msra.mxu0 %v7902_v44  ;;  %4249 = vmatprep.subr.bf16.mxu1 %v8165_v45  ;;  %v149_v44 = vld [vmem:[%s13022_s6 + $0x2b0] sm:$0xff]  ;;  %v8204_v45 = vcombine.low %v392_v28, %v396_v31  ;;  %v8245_v28 = vcombine.high %v432_v15, %v436_v16 }
 0x179   :  { %4331 = vmatprep.subr.bf16.mxu0 %v7911_v51  ;;  %v7950_v51 = vcombine.low %v137_v32, %v141_v33  ;;  %v7959_v47 = vcombine.high %v145_v43, %v149_v44  ;;  %v440_v32 = vld [vmem:[%s13022_s6 + $0xbc8] sm:$0xff] }
 0x17a   :  { %v444_v33 = vld [vmem:[%s13022_s6 + $0xbe8] sm:$0xff] }
 0x17b   :  { %4250 = vmatpush1.bf16.msra.mxu1 %v8164_v57  ;;  %v153_v57 = vld [vmem:[%s13022_s6 + $0x2d0] sm:$0xff] }
 0x17c   :  { %4332 = vmatpush1.bf16.msra.mxu0 %v7910_v58  ;;  %4251 = vmatprep.subr.bf16.mxu1 %v8173_v59  ;;  %v157_v58 = vld [vmem:[%s13022_s6 + $0x2f0] sm:$0xff]  ;;  %v8212_v59 = vcombine.low %v400_v41, %v404_v42  ;;  %v8253_v41 = vcombine.high %v440_v32, %v444_v33 }
 0x17d   :  { %4333 = vmatprep.subr.bf16.mxu0 %v7919_v60  ;;  %v7958_v60 = vcombine.low %v145_v43, %v149_v44  ;;  %v7967_v62 = vcombine.high %v153_v57, %v157_v58  ;;  %v448_v43 = vld [vmem:[%s13022_s6 + $0xc08] sm:$0xff] }
 0x17e   :  { %v452_v44 = vld [vmem:[%s13022_s6 + $0xc28] sm:$0xff] }
 0x17f   :  { %4252 = vmatpush1.bf16.msra.mxu1 %v8172_v1  ;;  %v161_v1 = vld [vmem:[%s13022_s6 + $0x310] sm:$0xff] }
 0x180   :  { %4334 = vmatpush1.bf16.msra.mxu0 %v7918_v2  ;;  %4253 = vmatprep.subr.bf16.mxu1 %v8181_v29  ;;  %v165_v2 = vld [vmem:[%s13022_s6 + $0x330] sm:$0xff]  ;;  %v8220_v29 = vcombine.low %v408_v49, %v412_v56  ;;  %v8261_v49 = vcombine.high %v448_v43, %v452_v44 }
 0x181   :  { %4335 = vmatprep.subr.bf16.mxu0 %v7927_v3  ;;  %v7966_v3 = vcombine.low %v153_v57, %v157_v58  ;;  %v7975_v6 = vcombine.high %v161_v1, %v165_v2  ;;  %v456_v57 = vld [vmem:[%s13022_s6 + $0xc48] sm:$0xff] }
 0x182   :  { %v460_v58 = vld [vmem:[%s13022_s6 + $0xc68] sm:$0xff] }
 0x183   :  { %4254 = vmatpush1.bf16.msra.mxu1 %v8180_v9  ;;  %v169_v9 = vld [vmem:[%s13022_s6 + $0x350] sm:$0xff] }
 0x184   :  { %4336 = vmatpush1.bf16.msra.mxu0 %v7926_v10  ;;  %4255 = vmatprep.subr.bf16.mxu1 %v8189_v38  ;;  %v173_v10 = vld [vmem:[%s13022_s6 + $0x370] sm:$0xff]  ;;  %v8228_v38 = vcombine.low %v416_v63, %v420_v0  ;;  %v8269_v63 = vcombine.high %v456_v57, %v460_v58  ;;  %v464_v0 = vld [vmem:[%s13022_s6 + $0xc88] sm:$0xff] }
 0x185   :  { %4337 = vmatprep.subr.bf16.mxu0 %v7935_v11  ;;  %v7974_v11 = vcombine.low %v161_v1, %v165_v2  ;;  %v7983_v14 = vcombine.high %v169_v9, %v173_v10  ;;  %v468_v1 = vld [vmem:[%s13022_s6 + $0xca8] sm:$0xff] }
 0x187   :  { %4256 = vmatpush1.bf16.msra.mxu1 %v8188_v19  ;;  %v177_v19 = vld [vmem:[%s13022_s6 + $0x390] sm:$0xff] }
 0x188   :  { %4338 = vmatpush1.bf16.msra.mxu0 %v7934_v22  ;;  %4257 = vmatprep.subr.bf16.mxu1 %v8197_v24  ;;  %v181_v22 = vld [vmem:[%s13022_s6 + $0x3b0] sm:$0xff]  ;;  %v8236_v24 = vcombine.low %v424_v7, %v428_v8  ;;  %v8277_v7 = vcombine.high %v464_v0, %v468_v1 }
 0x189   :  { %4339 = vmatprep.subr.bf16.mxu0 %v7943_v25  ;;  %v7982_v25 = vcombine.low %v169_v9, %v173_v10  ;;  %v7991_v31 = vcombine.high %v177_v19, %v181_v22  ;;  %v472_v9 = vld [vmem:[%s13022_s6 + $0xcc8] sm:$0xff] }
 0x18a   :  { %v476_v10 = vld [vmem:[%s13022_s6 + $0xce8] sm:$0xff] }
 0x18b   :  { %4258 = vmatpush1.bf16.msra.mxu1 %v8196_v35  ;;  %v185_v35 = vld [vmem:[%s13022_s6 + $0x3d0] sm:$0xff] }
 0x18c   :  { %4340 = vmatpush1.bf16.msra.mxu0 %v7942_v36  ;;  %4259 = vmatprep.subr.bf16.mxu1 %v8205_v37  ;;  %v189_v36 = vld [vmem:[%s13022_s6 + $0x3f0] sm:$0xff]  ;;  %v8244_v37 = vcombine.low %v432_v15, %v436_v16  ;;  %v8285_v15 = vcombine.high %v472_v9, %v476_v10 }
 0x18d   :  { %4341 = vmatprep.subr.bf16.mxu0 %v7951_v39  ;;  %v7990_v39 = vcombine.low %v177_v19, %v181_v22  ;;  %v7999_v42 = vcombine.high %v185_v35, %v189_v36  ;;  %v480_v19 = vld [vmem:[%s13022_s6 + $0xd08] sm:$0xff] }
 0x18e   :  { %v484_v22 = vld [vmem:[%s13022_s6 + $0xd28] sm:$0xff] }
 0x18f   :  { %4260 = vmatpush1.bf16.msra.mxu1 %v8204_v45  ;;  %v193_v45 = vld [vmem:[%s13022_s6 + $0x410] sm:$0xff] }
 0x190   :  { %4342 = vmatpush1.bf16.msra.mxu0 %v7950_v51  ;;  %4261 = vmatprep.subr.bf16.mxu1 %v8213_v46  ;;  %v197_v51 = vld [vmem:[%s13022_s6 + $0x430] sm:$0xff]  ;;  %v8252_v46 = vcombine.low %v440_v32, %v444_v33  ;;  %v8293_v32 = vcombine.high %v480_v19, %v484_v22 }
 0x191   :  { %4343 = vmatprep.subr.bf16.mxu0 %v7959_v47  ;;  %v7998_v47 = vcombine.low %v185_v35, %v189_v36  ;;  %v8007_v56 = vcombine.high %v193_v45, %v197_v51  ;;  %v488_v35 = vld [vmem:[%s13022_s6 + $0xd48] sm:$0xff] }
 0x192   :  { %v492_v36 = vld [vmem:[%s13022_s6 + $0xd68] sm:$0xff] }
 0x193   :  { %4262 = vmatpush1.bf16.msra.mxu1 %v8212_v59  ;;  %v8260_v59 = vcombine.low %v448_v43, %v452_v44  ;;  %v8301_v43 = vcombine.high %v488_v35, %v492_v36 }
 0x194   :  { %4344 = vmatpush1.bf16.msra.mxu0 %v7958_v60  ;;  %4263 = vmatprep.subr.bf16.mxu1 %v8221_v34  ;;  %v201_v60 = vld [vmem:[%s13022_s6 + $0x450] sm:$0xff] }
 0x195   :  { %4345 = vmatprep.subr.bf16.mxu0 %v7967_v62  ;;  %v205_v34 = vld [vmem:[%s13022_s6 + $0x470] sm:$0xff]  ;;  %v8006_v62 = vcombine.low %v193_v45, %v197_v51  ;;  %v496_v45 = vld [vmem:[%s13022_s6 + $0xd88] sm:$0xff] }
 0x196   :  { %v8015_v2 = vcombine.high %v201_v60, %v205_v34  ;;  %v500_v51 = vld [vmem:[%s13022_s6 + $0xda8] sm:$0xff] }
 0x197   :  { %4264 = vmatpush1.bf16.msra.mxu1 %v8220_v29  ;;  %v209_v29 = vld [vmem:[%s13022_s6 + $0x490] sm:$0xff] }
 0x198   :  { %4346 = vmatpush1.bf16.msra.mxu0 %v7966_v3  ;;  %4265 = vmatprep.subr.bf16.mxu1 %v8229_v5  ;;  %v213_v3 = vld [vmem:[%s13022_s6 + $0x4b0] sm:$0xff]  ;;  %v8268_v5 = vcombine.low %v456_v57, %v460_v58  ;;  %v8309_v57 = vcombine.high %v496_v45, %v500_v51 }
 0x199   :  { %4347 = vmatprep.subr.bf16.mxu0 %v7975_v6  ;;  %v8014_v6 = vcombine.low %v201_v60, %v205_v34  ;;  %v8023_v8 = vcombine.high %v209_v29, %v213_v3  ;;  %v504_v60 = vld [vmem:[%s13022_s6 + $0xdc8] sm:$0xff] }
 0x19a   :  { %v508_v34 = vld [vmem:[%s13022_s6 + $0xde8] sm:$0xff] }
 0x19b   :  { %4266 = vmatpush1.bf16.msra.mxu1 %v8228_v38  ;;  %v217_v38 = vld [vmem:[%s13022_s6 + $0x4d0] sm:$0xff] }
 0x19c   :  { %4348 = vmatpush1.bf16.msra.mxu0 %v7974_v11  ;;  %4267 = vmatprep.subr.bf16.mxu1 %v8237_v12  ;;  %v221_v11 = vld [vmem:[%s13022_s6 + $0x4f0] sm:$0xff]  ;;  %v8276_v12 = vcombine.low %v464_v0, %v468_v1 }
 0x19d   :  { %4349 = vmatprep.subr.bf16.mxu0 %v7983_v14  ;;  %v8022_v14 = vcombine.low %v209_v29, %v213_v3  ;;  %v8031_v16 = vcombine.high %v217_v38, %v221_v11  ;;  %v253_v0 = vld [vmem:[%s13022_s6 + $0x5f0] sm:$0xff] }
 0x19f   :  { %4268 = vmatpush1.bf16.msra.mxu1 %v8236_v24  ;;  %v225_v24 = vld [vmem:[%s13022_s6 + $0x510] sm:$0xff] }
 0x1a0   :  { %4350 = vmatpush1.bf16.msra.mxu0 %v7982_v25  ;;  %4269 = vmatprep.subr.bf16.mxu1 %v8245_v28  ;;  %v229_v25 = vld [vmem:[%s13022_s6 + $0x530] sm:$0xff]  ;;  %v8284_v28 = vcombine.low %v472_v9, %v476_v10 }
 0x1a1   :  { %4351 = vmatprep.subr.bf16.mxu0 %v7991_v31  ;;  %v8030_v31 = vcombine.low %v217_v38, %v221_v11  ;;  %v8039_v33 = vcombine.high %v225_v24, %v229_v25  ;;  %v257_v9 = vld [vmem:[%s13022_s6 + $0x610] sm:$0xff]  ;;  %v8316_v38 = vcombine.low %v504_v60, %v508_v34 }
 0x1a2   :  { %v261_v10 = vld [vmem:[%s13022_s6 + $0x630] sm:$0xff] }
 0x1a3   :  { %4270 = vmatpush1.bf16.msra.mxu1 %v8244_v37  ;;  %v233_v37 = vld [vmem:[%s13022_s6 + $0x550] sm:$0xff] }
 0x1a4   :  { %4352 = vmatpush1.bf16.msra.mxu0 %v7990_v39  ;;  %4271 = vmatprep.subr.bf16.mxu1 %v8253_v41  ;;  %v237_v39 = vld [vmem:[%s13022_s6 + $0x570] sm:$0xff]  ;;  %v8292_v41 = vcombine.low %v480_v19, %v484_v22 }
 0x1a5   :  { %4353 = vmatprep.subr.bf16.mxu0 %v7999_v42  ;;  %v8038_v42 = vcombine.low %v225_v24, %v229_v25  ;;  %v8047_v44 = vcombine.high %v233_v37, %v237_v39  ;;  %v265_v19 = vld [vmem:[%s13022_s6 + $0x650] sm:$0xff]  ;;  %v8070_v25 = vcombine.low %v257_v9, %v261_v10 }
 0x1a6   :  { %v269_v22 = vld [vmem:[%s13022_s6 + $0x670] sm:$0xff] }
 0x1a7   :  { %4272 = vmatpush1.bf16.msra.mxu1 %v8252_v46  ;;  %v241_v46 = vld [vmem:[%s13022_s6 + $0x590] sm:$0xff] }
 0x1a8   :  { %4354 = vmatpush1.bf16.msra.mxu0 %v7998_v47  ;;  %4282 = vmatprep.subr.bf16.mxu1 %v8261_v49  ;;  %v245_v47 = vld [vmem:[%s13022_s6 + $0x5b0] sm:$0xff]  ;;  %v8300_v49 = vcombine.low %v488_v35, %v492_v36 }
 0x1a9   :  { %4364 = vmatprep.subr.bf16.mxu0 %v8007_v56  ;;  %v8046_v56 = vcombine.low %v233_v37, %v237_v39  ;;  %v8054_v3 = vcombine.low %v241_v46, %v245_v47  ;;  %v273_v35 = vld [vmem:[%s13022_s6 + $0x690] sm:$0xff]  ;;  %v8078_v39 = vcombine.low %v265_v19, %v269_v22 }
 0x1aa   :  { %4274 = vmatmul.mubr.bf16.vlgmr.msra.gmra.mrb[12].mxu1 %v10327_v13  ;;  %v277_v36 = vld [vmem:[%s13022_s6 + $0x6b0] sm:$0xff] }
 0x1ab   :  { %4356 = vmatmul.mubr.bf16.vlgmr.msra.gmra.mrb[12].mxu0 %v10106_v20  ;;  %4283 = vmatpush1.bf16.msra.mxu1 %v8260_v59  ;;  %v8055_v59 = vcombine.high %v241_v46, %v245_v47  ;;  %v8086_v47 = vcombine.low %v273_v35, %v277_v36 }
 0x1ac   :  { %4314 = vmatprep.mubr.bf16.mxu1 %v10342_v27  ;;  %4365 = vmatpush1.bf16.msra.mxu0 %v8006_v62 }
 0x1ad   :  { %4396 = vmatprep.mubr.bf16.mxu0 %v10108_v21  ;;  %4284 = vmatprep.subr.bf16.mxu1 %v8269_v63  ;;  %v249_v63 = vld [vmem:[%s13022_s6 + $0x5d0] sm:$0xff] }
 0x1ae   :  { %4366 = vmatprep.subr.bf16.mxu0 %v8015_v2  ;;  %v8308_v2 = vcombine.low %v496_v45, %v500_v51  ;;  %v8062_v11 = vcombine.low %v249_v63, %v253_v0  ;;  %v281_v45 = vld [vmem:[%s13022_s6 + $0x6d0] sm:$0xff] }
 0x1af   :  { %4285 = vmatpush1.bf16.msra.mxu1 %v8268_v5  ;;  %v8317_v5 = vcombine.high %v504_v60, %v508_v34  ;;  %v285_v51 = vld [vmem:[%s13022_s6 + $0x6f0] sm:$0xff] }
 0x1b0   :  { %4367 = vmatpush1.bf16.msra.mxu0 %v8014_v6  ;;  %4286 = vmatprep.subr.bf16.mxu1 %v8277_v7  ;;  %v8063_v6 = vcombine.high %v249_v63, %v253_v0  ;;  %v512_v7 = vld [vmem:[%s13022_s6 + $0xe08] sm:$0xff]  ;;  %v289_v60 = vld [vmem:[%s13022_s6 + $0x710] sm:$0xff]  ;;  %v8094_v0 = vcombine.low %v281_v45, %v285_v51 }
 0x1b1   :  { %4368 = vmatprep.subr.bf16.mxu0 %v8023_v8  ;;  %v516_v8 = vld [vmem:[%s13022_s6 + $0xe28] sm:$0xff]  ;;  %v293_v34 = vld [vmem:[%s13022_s6 + $0x730] sm:$0xff] }
 0x1b2   :  { %v8324_v24 = vcombine.low %v512_v7, %v516_v8 }
 0x1b3   :  { %4287 = vmatpush1.bf16.msra.mxu1 %v8276_v12  ;;  %v8325_v12 = vcombine.high %v512_v7, %v516_v8  ;;  %v8102_v8 = vcombine.low %v289_v60, %v293_v34 }
 0x1b4   :  { %4369 = vmatpush1.bf16.msra.mxu0 %v8022_v14  ;;  %4288 = vmatprep.subr.bf16.mxu1 %v8285_v15  ;;  %v8071_v14 = vcombine.high %v257_v9, %v261_v10  ;;  %v520_v15 = vld [vmem:[%s13022_s6 + $0xe48] sm:$0xff] }
 0x1b5   :  { %4370 = vmatprep.subr.bf16.mxu0 %v8031_v16  ;;  %v524_v16 = vld [vmem:[%s13022_s6 + $0xe68] sm:$0xff] }
 0x1b6   :  { %v8332_v37 = vcombine.low %v520_v15, %v524_v16 }
 0x1b7   :  { %4289 = vmatpush1.bf16.msra.mxu1 %v8284_v28  ;;  %v8333_v28 = vcombine.high %v520_v15, %v524_v16 }
 0x1b8   :  { %4371 = vmatpush1.bf16.msra.mxu0 %v8030_v31  ;;  %4290 = vmatprep.subr.bf16.mxu1 %v8293_v32  ;;  %v8079_v31 = vcombine.high %v265_v19, %v269_v22  ;;  %v528_v32 = vld [vmem:[%s13022_s6 + $0xe88] sm:$0xff] }
 0x1b9   :  { %4372 = vmatprep.subr.bf16.mxu0 %v8039_v33  ;;  %v532_v33 = vld [vmem:[%s13022_s6 + $0xea8] sm:$0xff] }
 0x1ba   :  { %v8340_v46 = vcombine.low %v528_v32, %v532_v33 }
 0x1bb   :  { %4291 = vmatpush1.bf16.msra.mxu1 %v8292_v41  ;;  %v8341_v41 = vcombine.high %v528_v32, %v532_v33 }
 0x1bc   :  { %4373 = vmatpush1.bf16.msra.mxu0 %v8038_v42  ;;  %4292 = vmatprep.subr.bf16.mxu1 %v8301_v43  ;;  %v8087_v42 = vcombine.high %v273_v35, %v277_v36  ;;  %v536_v43 = vld [vmem:[%s13022_s6 + $0xec8] sm:$0xff] }
 0x1bd   :  { %v10795_v58 = vpop.f32.mrb[8].mxu1  ;;  %4374 = vmatprep.subr.bf16.mxu0 %v8047_v44  ;;  %v540_v44 = vld [vmem:[%s13022_s6 + $0xee8] sm:$0xff] }
 0x1be   :  { %v10803_v62 = vpop.f32.mrb[9].mxu1  ;;  %v8348_v63 = vcombine.low %v536_v43, %v540_v44 }
 0x1bf   :  { %4293 = vmatpush1.bf16.msra.mxu1 %v8300_v49  ;;  %v4033_v1 = vpop.f32.mrb[10].mxu1  ;;  %v8349_v49 = vcombine.high %v536_v43, %v540_v44 }
 0x1c0   :  { %4375 = vmatpush1.bf16.msra.mxu0 %v8046_v56  ;;  %v4034_v29 = vpop.f32.mrb[11].mxu1  ;;  %4294 = vmatprep.subr.bf16.mxu1 %v8309_v57  ;;  %v8095_v56 = vcombine.high %v281_v45, %v285_v51  ;;  %v544_v57 = vld [vmem:[%s13022_s6 + $0xf08] sm:$0xff] }
 0x1c1   :  { %4376 = vmatprep.subr.bf16.mxu0 %v8055_v59  ;;  %v548_v59 = vld [vmem:[%s13022_s6 + $0xf28] sm:$0xff] }
 0x1c2   :  { %v8357_v1 = vcombine.high %v544_v57, %v548_v59  ;;  %v552_v29 = vld [vmem:[%s13022_s6 + $0xf48] sm:$0xff]  ;;  %v8356_v7 = vcombine.low %v544_v57, %v548_v59  ;;  %v78_v57 = vld [vmem:[%s13022_s6 + $0x78] sm:$0xff] }
 0x1c3   :  { %4295 = vmatpush1.bf16.msra.mxu1 %v8308_v2  ;;  %v8103_v2 = vcombine.high %v289_v60, %v293_v34  ;;  %v82_v34 = vld [vmem:[%s13022_s6 + $0x98] sm:$0xff] }
 0x1c4   :  { %4377 = vmatpush1.bf16.msra.mxu0 %v8054_v3  ;;  %4296 = vmatprep.subr.bf16.mxu1 %v8317_v5  ;;  %v556_v3 = vld [vmem:[%s13022_s6 + $0xf68] sm:$0xff]  ;;  %v297_v5 = vld [vmem:[%s13022_s6 + $0x750] sm:$0xff] }
 0x1c5   :  { %4378 = vmatprep.subr.bf16.mxu0 %v8063_v6  ;;  %v301_v6 = vld [vmem:[%s13022_s6 + $0x770] sm:$0xff]  ;;  %v8365_v9 = vcombine.high %v552_v29, %v556_v3  ;;  %v8364_v15 = vcombine.low %v552_v29, %v556_v3 }
 0x1c6   :  { %v8111_v10 = vcombine.high %v297_v5, %v301_v6  ;;  %v8110_v16 = vcombine.low %v297_v5, %v301_v6 }
 0x1c7   :  { %4297 = vmatpush1.bf16.msra.mxu1 %v8316_v38  ;;  %v560_v38 = vld [vmem:[%s13022_s6 + $0xf88] sm:$0xff] }
 0x1c8   :  { %4379 = vmatpush1.bf16.msra.mxu0 %v8062_v11  ;;  %4298 = vmatprep.subr.bf16.mxu1 %v8325_v12  ;;  %v564_v11 = vld [vmem:[%s13022_s6 + $0xfa8] sm:$0xff]  ;;  %v305_v12 = vld [vmem:[%s13022_s6 + $0x790] sm:$0xff] }
 0x1c9   :  { %4380 = vmatprep.subr.bf16.mxu0 %v8071_v14  ;;  %v309_v14 = vld [vmem:[%s13022_s6 + $0x7b0] sm:$0xff]  ;;  %v8373_v19 = vcombine.high %v560_v38, %v564_v11  ;;  %v8372_v32 = vcombine.low %v560_v38, %v564_v11 }
 0x1ca   :  { %v8119_v22 = vcombine.high %v305_v12, %v309_v14  ;;  %v8118_v33 = vcombine.low %v305_v12, %v309_v14  ;;  %v98_v14 = vld [vmem:[%s13022_s6 + $0x118] sm:$0xff] }
 0x1cb   :  { %4299 = vmatpush1.bf16.msra.mxu1 %v8324_v24  ;;  %v568_v24 = vld [vmem:[%s13022_s6 + $0xfc8] sm:$0xff] }
 0x1cc   :  { %4381 = vmatpush1.bf16.msra.mxu0 %v8070_v25  ;;  %4300 = vmatprep.subr.bf16.mxu1 %v8333_v28  ;;  %v572_v25 = vld [vmem:[%s13022_s6 + $0xfe8] sm:$0xff]  ;;  %v313_v28 = vld [vmem:[%s13022_s6 + $0x7d0] sm:$0xff] }
 0x1cd   :  { %4382 = vmatprep.subr.bf16.mxu0 %v8079_v31  ;;  %v317_v31 = vld [vmem:[%s13022_s6 + $0x7f0] sm:$0xff]  ;;  %v8381_v35 = vcombine.high %v568_v24, %v572_v25  ;;  %v8380_v43 = vcombine.low %v568_v24, %v572_v25 }
 0x1ce   :  { %v8127_v36 = vcombine.high %v313_v28, %v317_v31  ;;  %v8126_v44 = vcombine.low %v313_v28, %v317_v31  ;;  %v106_v31 = vld [vmem:[%s13022_s6 + $0x158] sm:$0xff] }
 0x1cf   :  { %4301 = vmatpush1.bf16.msra.mxu1 %v8332_v37  ;;  %v66_v37 = vld [vmem:[%s13022_s6 + $0x18] sm:$0xff] }
 0x1d0   :  { %4383 = vmatpush1.bf16.msra.mxu0 %v8078_v39  ;;  %4302 = vmatprep.subr.bf16.mxu1 %v8341_v41  ;;  %v70_v39 = vld [vmem:[%s13022_s6 + $0x38] sm:$0xff]  ;;  %v321_v41 = vld [vmem:[%s13022_s6 + $0x810] sm:$0xff] }
 0x1d1   :  { %4384 = vmatprep.subr.bf16.mxu0 %v8087_v42  ;;  %v325_v42 = vld [vmem:[%s13022_s6 + $0x830] sm:$0xff]  ;;  %v7881_v45 = vcombine.high %v66_v37, %v70_v39 }
 0x1d2   :  { %v8135_v51 = vcombine.high %v321_v41, %v325_v42  ;;  %v8134_v59 = vcombine.low %v321_v41, %v325_v42  ;;  %v114_v42 = vld [vmem:[%s13022_s6 + $0x198] sm:$0xff] }
 0x1d3   :  { %4303 = vmatpush1.bf16.msra.mxu1 %v8340_v46  ;;  %v329_v46 = vld [vmem:[%s13022_s6 + $0x850] sm:$0xff] }
 0x1d4   :  { %4385 = vmatpush1.bf16.msra.mxu0 %v8086_v47  ;;  %4304 = vmatprep.subr.bf16.mxu1 %v8349_v49  ;;  %v333_v47 = vld [vmem:[%s13022_s6 + $0x870] sm:$0xff]  ;;  %v7880_v49 = vcombine.low %v66_v37, %v70_v39 }
 0x1d5   :  { %4386 = vmatprep.subr.bf16.mxu0 %v8095_v56  ;;  %v74_v56 = vld [vmem:[%s13022_s6 + $0x58] sm:$0xff]  ;;  %v8143_v60 = vcombine.high %v329_v46, %v333_v47  ;;  %v8142_v3 = vcombine.low %v329_v46, %v333_v47 }
 0x1d6   :  { %v7888_v29 = vcombine.low %v74_v56, %v78_v57 }
 0x1d7   :  { %4305 = vmatpush1.bf16.msra.mxu1 %v8348_v63  ;;  %v86_v63 = vld [vmem:[%s13022_s6 + $0xb8] sm:$0xff] }
 0x1d8   :  { %4387 = vmatpush1.bf16.msra.mxu0 %v8094_v0  ;;  %4306 = vmatprep.subr.bf16.mxu1 %v8357_v1  ;;  %v7889_v0 = vcombine.high %v74_v56, %v78_v57  ;;  %v337_v1 = vld [vmem:[%s13022_s6 + $0x890] sm:$0xff]  ;;  %v7897_v5 = vcombine.high %v82_v34, %v86_v63  ;;  %v122_v56 = vld [vmem:[%s13022_s6 + $0x1d8] sm:$0xff] }
 0x1d9   :  { %4388 = vmatprep.subr.bf16.mxu0 %v8103_v2  ;;  %v341_v2 = vld [vmem:[%s13022_s6 + $0x8b0] sm:$0xff]  ;;  %v126_v57 = vld [vmem:[%s13022_s6 + $0x1f8] sm:$0xff] }
 0x1da   :  { %v8151_v6 = vcombine.high %v337_v1, %v341_v2  ;;  %v8150_v38 = vcombine.low %v337_v1, %v341_v2  ;;  %v130_v2 = vld [vmem:[%s13022_s6 + $0x218] sm:$0xff] }
 0x1db   :  { %4307 = vmatpush1.bf16.msra.mxu1 %v8356_v7  ;;  %v90_v7 = vld [vmem:[%s13022_s6 + $0xd8] sm:$0xff] }
 0x1dc   :  { %4389 = vmatpush1.bf16.msra.mxu0 %v8102_v8  ;;  %4308 = vmatprep.subr.bf16.mxu1 %v8365_v9  ;;  %v94_v8 = vld [vmem:[%s13022_s6 + $0xf8] sm:$0xff]  ;;  %v345_v9 = vld [vmem:[%s13022_s6 + $0x8d0] sm:$0xff] }
 0x1dd   :  { %4390 = vmatprep.subr.bf16.mxu0 %v8111_v10  ;;  %v349_v10 = vld [vmem:[%s13022_s6 + $0x8f0] sm:$0xff]  ;;  %v7905_v11 = vcombine.high %v90_v7, %v94_v8 }
 0x1de   :  { %v8159_v12 = vcombine.high %v345_v9, %v349_v10  ;;  %v8158_v24 = vcombine.low %v345_v9, %v349_v10  ;;  %v138_v10 = vld [vmem:[%s13022_s6 + $0x258] sm:$0xff] }
 0x1df   :  { %4309 = vmatpush1.bf16.msra.mxu1 %v8364_v15  ;;  %v102_v15 = vld [vmem:[%s13022_s6 + $0x138] sm:$0xff] }
 0x1e0   :  { %4391 = vmatpush1.bf16.msra.mxu0 %v8110_v16  ;;  %4310 = vmatprep.subr.bf16.mxu1 %v8373_v19  ;;  %v353_v16 = vld [vmem:[%s13022_s6 + $0x910] sm:$0xff]  ;;  %v7913_v25 = vcombine.high %v98_v14, %v102_v15 }
 0x1e1   :  { %4392 = vmatprep.subr.bf16.mxu0 %v8119_v22  ;;  %v357_v19 = vld [vmem:[%s13022_s6 + $0x930] sm:$0xff]  ;;  %v7904_v22 = vcombine.low %v90_v7, %v94_v8 }
 0x1e2   :  { %v8167_v28 = vcombine.high %v353_v16, %v357_v19  ;;  %v8166_v37 = vcombine.low %v353_v16, %v357_v19  ;;  %v146_v19 = vld [vmem:[%s13022_s6 + $0x298] sm:$0xff] }
 0x1e3   :  { %4311 = vmatpush1.bf16.msra.mxu1 %v8372_v32  ;;  %v110_v32 = vld [vmem:[%s13022_s6 + $0x178] sm:$0xff] }
 0x1e4   :  { %4393 = vmatpush1.bf16.msra.mxu0 %v8118_v33  ;;  %4312 = vmatprep.subr.bf16.mxu1 %v8381_v35  ;;  %v361_v33 = vld [vmem:[%s13022_s6 + $0x950] sm:$0xff]  ;;  %v7921_v39 = vcombine.high %v106_v31, %v110_v32 }
 0x1e5   :  { %4394 = vmatprep.subr.bf16.mxu0 %v8127_v36  ;;  %v365_v35 = vld [vmem:[%s13022_s6 + $0x970] sm:$0xff]  ;;  %v7912_v36 = vcombine.low %v98_v14, %v102_v15 }
 0x1e6   :  { %v8175_v41 = vcombine.high %v361_v33, %v365_v35  ;;  %v8174_v46 = vcombine.low %v361_v33, %v365_v35  ;;  %v154_v35 = vld [vmem:[%s13022_s6 + $0x2d8] sm:$0xff] }
 0x1e7   :  { %4313 = vmatpush1.bf16.msra.mxu1 %v8380_v43  ;;  %v118_v43 = vld [vmem:[%s13022_s6 + $0x1b8] sm:$0xff] }
 0x1e8   :  { %4395 = vmatpush1.bf16.msra.mxu0 %v8126_v44  ;;  %4487 = vmatprep.subr.bf16.mxu1 %v7881_v45  ;;  %v369_v44 = vld [vmem:[%s13022_s6 + $0x990] sm:$0xff]  ;;  %v7929_v47 = vcombine.high %v114_v42, %v118_v43 }
 0x1e9   :  { %4405 = vmatprep.subr.bf16.mxu0 %v8135_v51  ;;  %v373_v45 = vld [vmem:[%s13022_s6 + $0x9b0] sm:$0xff]  ;;  %v7920_v51 = vcombine.low %v106_v31, %v110_v32 }
 0x1ea   :  { %4315 = vmatmul.mubr.bf16.vlgmr.msra.gmra.mrb[12].mxu1 %v10527_v4 }
 0x1eb   :  { %4397 = vmatmul.mubr.bf16.vlgmr.msra.gmra.mrb[12].mxu0 %v10100_v17  ;;  %4488 = vmatpush1.bf16.msra.mxu1 %v7880_v49  ;;  %v8183_v49 = vcombine.high %v369_v44, %v373_v45 }
 0x1ec   :  { %4406 = vmatpush1.bf16.msra.mxu0 %v8134_v59  ;;  %4437 = vmatprep.mubr.bf16.mxu0 %v10145_v48  ;;  %v377_v59 = vld [vmem:[%s13022_s6 + $0x9d0] sm:$0xff] }
 0x1ed   :  { %4519 = vmatprep.mubr.bf16.mxu1 %v10102_v18  ;;  %4407 = vmatprep.subr.bf16.mxu0 %v8143_v60  ;;  %v7896_v18 = vcombine.low %v82_v34, %v86_v63  ;;  %v381_v60 = vld [vmem:[%s13022_s6 + $0x9f0] sm:$0xff]  ;;  %v7928_v34 = vcombine.low %v114_v42, %v118_v43  ;;  %v8182_v63 = vcombine.low %v369_v44, %v373_v45  ;;  %v162_v45 = vld [vmem:[%s13022_s6 + $0x318] sm:$0xff] }
 0x1ee   :  { %4489 = vmatprep.subr.bf16.mxu1 %v7889_v0  ;;  %v7937_v0 = vcombine.high %v122_v56, %v126_v57  ;;  %v8191_v1 = vcombine.high %v377_v59, %v381_v60  ;;  %v8190_v7 = vcombine.low %v377_v59, %v381_v60  ;;  %v170_v60 = vld [vmem:[%s13022_s6 + $0x358] sm:$0xff] }
 0x1ef   :  { %4490 = vmatpush1.bf16.msra.mxu1 %v7888_v29  ;;  %v134_v29 = vld [vmem:[%s13022_s6 + $0x238] sm:$0xff] }
 0x1f0   :  { %4408 = vmatpush1.bf16.msra.mxu0 %v8142_v3  ;;  %4491 = vmatprep.subr.bf16.mxu1 %v7897_v5  ;;  %v385_v3 = vld [vmem:[%s13022_s6 + $0xa10] sm:$0xff]  ;;  %v7945_v8 = vcombine.high %v130_v2, %v134_v29 }
 0x1f1   :  { %4409 = vmatprep.subr.bf16.mxu0 %v8151_v6  ;;  %v389_v5 = vld [vmem:[%s13022_s6 + $0xa30] sm:$0xff]  ;;  %v7936_v6 = vcombine.low %v122_v56, %v126_v57 }
 0x1f2   :  { %v8199_v9 = vcombine.high %v385_v3, %v389_v5  ;;  %v8198_v14 = vcombine.low %v385_v3, %v389_v5  ;;  %v178_v5 = vld [vmem:[%s13022_s6 + $0x398] sm:$0xff] }
 0x1f3   :  { %4492 = vmatpush1.bf16.msra.mxu1 %v7896_v18  ;;  %v142_v18 = vld [vmem:[%s13022_s6 + $0x278] sm:$0xff] }
 0x1f4   :  { %4410 = vmatpush1.bf16.msra.mxu0 %v8150_v38  ;;  %4493 = vmatprep.subr.bf16.mxu1 %v7905_v11  ;;  %v393_v38 = vld [vmem:[%s13022_s6 + $0xa50] sm:$0xff]  ;;  %v7953_v15 = vcombine.high %v138_v10, %v142_v18 }
 0x1f5   :  { %4411 = vmatprep.subr.bf16.mxu0 %v8159_v12  ;;  %v397_v11 = vld [vmem:[%s13022_s6 + $0xa70] sm:$0xff]  ;;  %v7944_v12 = vcombine.low %v130_v2, %v134_v29 }
 0x1f6   :  { %v8207_v16 = vcombine.high %v393_v38, %v397_v11  ;;  %v8206_v31 = vcombine.low %v393_v38, %v397_v11  ;;  %v186_v11 = vld [vmem:[%s13022_s6 + $0x3d8] sm:$0xff] }
 0x1f7   :  { %4494 = vmatpush1.bf16.msra.mxu1 %v7904_v22  ;;  %v150_v22 = vld [vmem:[%s13022_s6 + $0x2b8] sm:$0xff] }
 0x1f8   :  { %4412 = vmatpush1.bf16.msra.mxu0 %v8158_v24  ;;  %4495 = vmatprep.subr.bf16.mxu1 %v7913_v25  ;;  %v401_v24 = vld [vmem:[%s13022_s6 + $0xa90] sm:$0xff]  ;;  %v7961_v32 = vcombine.high %v146_v19, %v150_v22 }
 0x1f9   :  { %4413 = vmatprep.subr.bf16.mxu0 %v8167_v28  ;;  %v405_v25 = vld [vmem:[%s13022_s6 + $0xab0] sm:$0xff]  ;;  %v7952_v28 = vcombine.low %v138_v10, %v142_v18 }
 0x1fa   :  { %v8215_v33 = vcombine.high %v401_v24, %v405_v25  ;;  %v8214_v42 = vcombine.low %v401_v24, %v405_v25  ;;  %v194_v25 = vld [vmem:[%s13022_s6 + $0x418] sm:$0xff] }
 0x1fb   :  { %4496 = vmatpush1.bf16.msra.mxu1 %v7912_v36  ;;  %v158_v36 = vld [vmem:[%s13022_s6 + $0x2f8] sm:$0xff] }
 0x1fc   :  { %4414 = vmatpush1.bf16.msra.mxu0 %v8166_v37  ;;  %4497 = vmatprep.subr.bf16.mxu1 %v7921_v39  ;;  %v409_v37 = vld [vmem:[%s13022_s6 + $0xad0] sm:$0xff]  ;;  %v7969_v43 = vcombine.high %v154_v35, %v158_v36 }
 0x1fd   :  { %4415 = vmatprep.subr.bf16.mxu0 %v8175_v41  ;;  %v413_v39 = vld [vmem:[%s13022_s6 + $0xaf0] sm:$0xff]  ;;  %v7960_v41 = vcombine.low %v146_v19, %v150_v22 }
 0x1fe   :  { %v8223_v44 = vcombine.high %v409_v37, %v413_v39  ;;  %v8222_v56 = vcombine.low %v409_v37, %v413_v39  ;;  %v457_v39 = vld [vmem:[%s13022_s6 + $0xc50] sm:$0xff] }
 0x1ff   :  { %4498 = vmatpush1.bf16.msra.mxu1 %v7920_v51  ;;  %v166_v51 = vld [vmem:[%s13022_s6 + $0x338] sm:$0xff] }
 0x200   :  { %4416 = vmatpush1.bf16.msra.mxu0 %v8174_v46  ;;  %4499 = vmatprep.subr.bf16.mxu1 %v7929_v47  ;;  %v417_v46 = vld [vmem:[%s13022_s6 + $0xb10] sm:$0xff]  ;;  %v7977_v57 = vcombine.high %v162_v45, %v166_v51 }
 0x201   :  { %4417 = vmatprep.subr.bf16.mxu0 %v8183_v49  ;;  %v421_v47 = vld [vmem:[%s13022_s6 + $0xb30] sm:$0xff]  ;;  %v7968_v49 = vcombine.low %v154_v35, %v158_v36 }
 0x202   :  { %v8231_v59 = vcombine.high %v417_v46, %v421_v47  ;;  %v8230_v2 = vcombine.low %v417_v46, %v421_v47  ;;  %v210_v46 = vld [vmem:[%s13022_s6 + $0x498] sm:$0xff] }
 0x203   :  { %4500 = vmatpush1.bf16.msra.mxu1 %v7928_v34  ;;  %v174_v34 = vld [vmem:[%s13022_s6 + $0x378] sm:$0xff] }
 0x204   :  { %4418 = vmatpush1.bf16.msra.mxu0 %v8182_v63  ;;  %4501 = vmatprep.subr.bf16.mxu1 %v7937_v0  ;;  %v425_v63 = vld [vmem:[%s13022_s6 + $0xb50] sm:$0xff]  ;;  %v7985_v29 = vcombine.high %v170_v60, %v174_v34  ;;  %v214_v47 = vld [vmem:[%s13022_s6 + $0x4b8] sm:$0xff] }
 0x205   :  { %4419 = vmatprep.subr.bf16.mxu0 %v8191_v1  ;;  %v429_v0 = vld [vmem:[%s13022_s6 + $0xb70] sm:$0xff]  ;;  %v7976_v1 = vcombine.low %v162_v45, %v166_v51 }
 0x206   :  { %v8239_v3 = vcombine.high %v425_v63, %v429_v0  ;;  %v8238_v10 = vcombine.low %v425_v63, %v429_v0  ;;  %v218_v63 = vld [vmem:[%s13022_s6 + $0x4d8] sm:$0xff] }
 0x207   :  { %4502 = vmatpush1.bf16.msra.mxu1 %v7936_v6  ;;  %v182_v6 = vld [vmem:[%s13022_s6 + $0x3b8] sm:$0xff] }
 0x208   :  { %4420 = vmatpush1.bf16.msra.mxu0 %v8190_v7  ;;  %4503 = vmatprep.subr.bf16.mxu1 %v7945_v8  ;;  %v433_v7 = vld [vmem:[%s13022_s6 + $0xb90] sm:$0xff]  ;;  %v7993_v18 = vcombine.high %v178_v5, %v182_v6  ;;  %v222_v0 = vld [vmem:[%s13022_s6 + $0x4f8] sm:$0xff] }
 0x209   :  { %4421 = vmatprep.subr.bf16.mxu0 %v8199_v9  ;;  %v437_v8 = vld [vmem:[%s13022_s6 + $0xbb0] sm:$0xff]  ;;  %v7984_v9 = vcombine.low %v170_v60, %v174_v34  ;;  %v8025_v34 = vcombine.high %v210_v46, %v214_v47 }
 0x20a   :  { %v8247_v38 = vcombine.high %v433_v7, %v437_v8  ;;  %v8246_v19 = vcombine.low %v433_v7, %v437_v8  ;;  %v230_v7 = vld [vmem:[%s13022_s6 + $0x538] sm:$0xff]  ;;  %v481_v8 = vld [vmem:[%s13022_s6 + $0xd10] sm:$0xff] }
 0x20b   :  { %4504 = vmatpush1.bf16.msra.mxu1 %v7944_v12  ;;  %v190_v12 = vld [vmem:[%s13022_s6 + $0x3f8] sm:$0xff] }
 0x20c   :  { %4422 = vmatpush1.bf16.msra.mxu0 %v8198_v14  ;;  %4505 = vmatprep.subr.bf16.mxu1 %v7953_v15  ;;  %v441_v14 = vld [vmem:[%s13022_s6 + $0xbd0] sm:$0xff]  ;;  %v8001_v22 = vcombine.high %v186_v11, %v190_v12 }
 0x20d   :  { %4423 = vmatprep.subr.bf16.mxu0 %v8207_v16  ;;  %v445_v15 = vld [vmem:[%s13022_s6 + $0xbf0] sm:$0xff]  ;;  %v7992_v16 = vcombine.low %v178_v5, %v182_v6  ;;  %v226_v6 = vld [vmem:[%s13022_s6 + $0x518] sm:$0xff] }
 0x20e   :  { %v8255_v24 = vcombine.high %v441_v14, %v445_v15  ;;  %v8254_v35 = vcombine.low %v441_v14, %v445_v15  ;;  %v238_v14 = vld [vmem:[%s13022_s6 + $0x578] sm:$0xff]  ;;  %v11176_v15 = vld [vmem:[%s13023_s7] sm:$0xff] }
 0x20f   :  { %4506 = vmatpush1.bf16.msra.mxu1 %v7952_v28  ;;  %v198_v28 = vld [vmem:[%s13022_s6 + $0x438] sm:$0xff] }
 0x210   :  { %4424 = vmatpush1.bf16.msra.mxu0 %v8206_v31  ;;  %4507 = vmatprep.subr.bf16.mxu1 %v7961_v32  ;;  %v449_v31 = vld [vmem:[%s13022_s6 + $0xc10] sm:$0xff]  ;;  %v8009_v36 = vcombine.high %v194_v25, %v198_v28 }
 0x211   :  { %4425 = vmatprep.subr.bf16.mxu0 %v8215_v33  ;;  %v453_v32 = vld [vmem:[%s13022_s6 + $0xc30] sm:$0xff]  ;;  %v8000_v33 = vcombine.low %v186_v11, %v190_v12  ;;  %v234_v12 = vld [vmem:[%s13022_s6 + $0x558] sm:$0xff] }
 0x212   :  { %v8263_v37 = vcombine.high %v449_v31, %v453_v32  ;;  %v8262_v45 = vcombine.low %v449_v31, %v453_v32  ;;  %v242_v32 = vld [vmem:[%s13022_s6 + $0x598] sm:$0xff] }
 0x213   :  { %4508 = vmatpush1.bf16.msra.mxu1 %v7960_v41  ;;  %v461_v41 = vld [vmem:[%s13022_s6 + $0xc70] sm:$0xff] }
 0x214   :  { %4426 = vmatpush1.bf16.msra.mxu0 %v8214_v42  ;;  %4509 = vmatprep.subr.bf16.mxu1 %v7969_v43  ;;  %v8008_v42 = vcombine.low %v194_v25, %v198_v28  ;;  %v202_v43 = vld [vmem:[%s13022_s6 + $0x458] sm:$0xff]  ;;  %v8271_v51 = vcombine.high %v457_v39, %v461_v41  ;;  %v8270_v60 = vcombine.low %v457_v39, %v461_v41 }
 0x215   :  { %4427 = vmatprep.subr.bf16.mxu0 %v8223_v44  ;;  %v206_v44 = vld [vmem:[%s13022_s6 + $0x478] sm:$0xff]  ;;  %v8049_v25 = vcombine.high %v234_v12, %v238_v14  ;;  %v1398_v28 = vrot.slane %v11176_v15, %v10066_v52  ;;  %v8048_v39 = vcombine.low %v234_v12, %v238_v14 }
 0x217   :  { %4510 = vmatpush1.bf16.msra.mxu1 %v7968_v49  ;;  %v8017_v49 = vcombine.high %v202_v43, %v206_v44 }
 0x218   :  { %4428 = vmatpush1.bf16.msra.mxu0 %v8222_v56  ;;  %4511 = vmatprep.subr.bf16.mxu1 %v7977_v57  ;;  %v465_v56 = vld [vmem:[%s13022_s6 + $0xc90] sm:$0xff] }
 0x219   :  { %4429 = vmatprep.subr.bf16.mxu0 %v8231_v59  ;;  %v469_v57 = vld [vmem:[%s13022_s6 + $0xcb0] sm:$0xff]  ;;  %v8016_v59 = vcombine.low %v202_v43, %v206_v44  ;;  %v4030_v43 = vadd.f32 %v10795_v58, %v1398_v28 }
 0x21a   :  { %v509_v58 = vld [vmem:[%s13022_s6 + $0xdf0] sm:$0xff] }
 0x21b   :  { %4512 = vmatpush1.bf16.msra.mxu1 %v7976_v1  ;;  %v473_v1 = vld [vmem:[%s13022_s6 + $0xcd0] sm:$0xff] }
 0x21c   :  { %4430 = vmatpush1.bf16.msra.mxu0 %v8230_v2  ;;  %4513 = vmatprep.subr.bf16.mxu1 %v7985_v29  ;;  %v477_v2 = vld [vmem:[%s13022_s6 + $0xcf0] sm:$0xff]  ;;  %v8278_v29 = vcombine.low %v465_v56, %v469_v57 }
 0x21d   :  { %4431 = vmatprep.subr.bf16.mxu0 %v8239_v3  ;;  %v8033_v3 = vcombine.high %v218_v63, %v222_v0  ;;  %v8287_v5 = vcombine.high %v473_v1, %v477_v2 }
 0x21f   :  { %4514 = vmatpush1.bf16.msra.mxu1 %v7984_v9  ;;  %v485_v9 = vld [vmem:[%s13022_s6 + $0xd30] sm:$0xff] }
 0x220   :  { %4432 = vmatpush1.bf16.msra.mxu0 %v8238_v10  ;;  %4515 = vmatprep.subr.bf16.mxu1 %v7993_v18  ;;  %v8032_v10 = vcombine.low %v218_v63, %v222_v0  ;;  %v8286_v18 = vcombine.low %v473_v1, %v477_v2  ;;  %v8295_v11 = vcombine.high %v481_v8, %v485_v9  ;;  %v258_v1 = vld [vmem:[%s13022_s6 + $0x618] sm:$0xff] }
 0x221   :  { %4433 = vmatprep.subr.bf16.mxu0 %v8247_v38  ;;  %v8041_v38 = vcombine.high %v226_v6, %v230_v7  ;;  %v262_v2 = vld [vmem:[%s13022_s6 + $0x638] sm:$0xff] }
 0x223   :  { %4516 = vmatpush1.bf16.msra.mxu1 %v7992_v16  ;;  %v489_v16 = vld [vmem:[%s13022_s6 + $0xd50] sm:$0xff] }
 0x224   :  { %4434 = vmatpush1.bf16.msra.mxu0 %v8246_v19  ;;  %4517 = vmatprep.subr.bf16.mxu1 %v8001_v22  ;;  %v493_v19 = vld [vmem:[%s13022_s6 + $0xd70] sm:$0xff]  ;;  %v8040_v22 = vcombine.low %v226_v6, %v230_v7  ;;  %v8073_v6 = vcombine.high %v258_v1, %v262_v2 }
 0x225   :  { %4435 = vmatprep.subr.bf16.mxu0 %v8255_v24  ;;  %v8294_v24 = vcombine.low %v481_v8, %v485_v9  ;;  %v8303_v31 = vcombine.high %v489_v16, %v493_v19  ;;  %v8302_v41 = vcombine.low %v489_v16, %v493_v19  ;;  %v266_v8 = vld [vmem:[%s13022_s6 + $0x658] sm:$0xff] }
 0x226   :  { %v270_v9 = vld [vmem:[%s13022_s6 + $0x678] sm:$0xff] }
 0x227   :  { %4518 = vmatpush1.bf16.msra.mxu1 %v8000_v33  ;;  %v246_v33 = vld [vmem:[%s13022_s6 + $0x5b8] sm:$0xff]  ;;  %v8081_v12 = vcombine.high %v266_v8, %v270_v9 }
 0x228   :  { %4436 = vmatpush1.bf16.msra.mxu0 %v8254_v35  ;;  %4528 = vmatprep.subr.bf16.mxu1 %v8009_v36  ;;  %v1402_v35 = vrot.slane %v11176_v15, %v10072_v54  ;;  %v497_v36 = vld [vmem:[%s13022_s6 + $0xd90] sm:$0xff]  ;;  %v274_v16 = vld [vmem:[%s13022_s6 + $0x698] sm:$0xff] }
 0x229   :  { %4446 = vmatprep.subr.bf16.mxu0 %v8263_v37  ;;  %v501_v37 = vld [vmem:[%s13022_s6 + $0xdb0] sm:$0xff]  ;;  %v278_v19 = vld [vmem:[%s13022_s6 + $0x6b8] sm:$0xff] }
 0x22a   :  { %4520 = vmatmul.mubr.bf16.vlgmr.msra.gmra.mrb[16].mxu1 %v10106_v20  ;;  %v8279_v20 = vcombine.high %v465_v56, %v469_v57  ;;  %v8311_v44 = vcombine.high %v497_v36, %v501_v37 }
 0x22b   :  { %4438 = vmatmul.mubr.bf16.vlgmr.msra.gmra.mrb[12].mxu0 %v10327_v13  ;;  %4529 = vmatpush1.bf16.msra.mxu1 %v8008_v42  ;;  %v8057_v42 = vcombine.high %v242_v32, %v246_v33 }
 0x22c   :  { %4447 = vmatpush1.bf16.msra.mxu0 %v8262_v45  ;;  %4478 = vmatprep.mubr.bf16.mxu0 %v10342_v27  ;;  %v250_v45 = vld [vmem:[%s13022_s6 + $0x5d8] sm:$0xff] }
 0x22d   :  { %4560 = vmatprep.mubr.bf16.mxu1 %v10108_v21  ;;  %4448 = vmatprep.subr.bf16.mxu0 %v8271_v51  ;;  %v8024_v21 = vcombine.low %v210_v46, %v214_v47  ;;  %v254_v51 = vld [vmem:[%s13022_s6 + $0x5f8] sm:$0xff]  ;;  %v4032_v46 = vadd.f32 %v10803_v62, %v1402_v35 }
 0x22e   :  { %4530 = vmatprep.subr.bf16.mxu1 %v8017_v49  ;;  %v505_v49 = vld [vmem:[%s13022_s6 + $0xdd0] sm:$0xff]  ;;  %v8065_v62 = vcombine.high %v250_v45, %v254_v51  ;;  %v286_v35 = vld [vmem:[%s13022_s6 + $0x6f8] sm:$0xff] }
 0x22f   :  { %4531 = vmatpush1.bf16.msra.mxu1 %v8016_v59  ;;  %v8056_v59 = vcombine.low %v242_v32, %v246_v33  ;;  %v8319_v0 = vcombine.high %v505_v49, %v509_v58  ;;  %v282_v33 = vld [vmem:[%s13022_s6 + $0x6d8] sm:$0xff] }
 0x230   :  { %4449 = vmatpush1.bf16.msra.mxu0 %v8270_v60  ;;  %4532 = vmatprep.subr.bf16.mxu1 %v8025_v34 }
 0x231   :  { %4450 = vmatprep.subr.bf16.mxu0 %v8279_v20  ;;  %v8310_v20 = vcombine.low %v497_v36, %v501_v37  ;;  %v537_v36 = vld [vmem:[%s13022_s6 + $0xed0] sm:$0xff] }
 0x232   :  { %v541_v37 = vld [vmem:[%s13022_s6 + $0xef0] sm:$0xff] }
 0x233   :  { %4533 = vmatpush1.bf16.msra.mxu1 %v8024_v21  ;;  %v513_v21 = vld [vmem:[%s13022_s6 + $0xe10] sm:$0xff] }
 0x234   :  { %4451 = vmatpush1.bf16.msra.mxu0 %v8278_v29  ;;  %4534 = vmatprep.subr.bf16.mxu1 %v8033_v3  ;;  %v517_v29 = vld [vmem:[%s13022_s6 + $0xe30] sm:$0xff]  ;;  %v8064_v3 = vcombine.low %v250_v45, %v254_v51  ;;  %v294_v45 = vld [vmem:[%s13022_s6 + $0x738] sm:$0xff] }
 0x235   :  { %4452 = vmatprep.subr.bf16.mxu0 %v8287_v5  ;;  %v8318_v5 = vcombine.low %v505_v49, %v509_v58  ;;  %v8327_v7 = vcombine.high %v513_v21, %v517_v29  ;;  %v545_v51 = vld [vmem:[%s13022_s6 + $0xf10] sm:$0xff]  ;;  %v8350_v49 = vcombine.low %v537_v36, %v541_v37 }
 0x237   :  { %4535 = vmatpush1.bf16.msra.mxu1 %v8032_v10  ;;  %v521_v10 = vld [vmem:[%s13022_s6 + $0xe50] sm:$0xff] }
 0x238   :  { %4453 = vmatpush1.bf16.msra.mxu0 %v8286_v18  ;;  %4536 = vmatprep.subr.bf16.mxu1 %v8041_v38  ;;  %v525_v18 = vld [vmem:[%s13022_s6 + $0xe70] sm:$0xff]  ;;  %v8072_v38 = vcombine.low %v258_v1, %v262_v2 }
 0x239   :  { %4454 = vmatprep.subr.bf16.mxu0 %v8295_v11  ;;  %v8326_v11 = vcombine.low %v513_v21, %v517_v29  ;;  %v8335_v14 = vcombine.high %v521_v10, %v525_v18  ;;  %v8334_v28 = vcombine.low %v521_v10, %v525_v18  ;;  %v306_v21 = vld [vmem:[%s13022_s6 + $0x798] sm:$0xff] }
 0x23a   :  { %v310_v29 = vld [vmem:[%s13022_s6 + $0x7b8] sm:$0xff] }
 0x23b   :  { %4537 = vmatpush1.bf16.msra.mxu1 %v8040_v22  ;;  %v529_v22 = vld [vmem:[%s13022_s6 + $0xe90] sm:$0xff]  ;;  %v314_v10 = vld [vmem:[%s13022_s6 + $0x7d8] sm:$0xff] }
 0x23c   :  { %4455 = vmatpush1.bf16.msra.mxu0 %v8294_v24  ;;  %4538 = vmatprep.subr.bf16.mxu1 %v8049_v25  ;;  %v533_v24 = vld [vmem:[%s13022_s6 + $0xeb0] sm:$0xff]  ;;  %v8080_v25 = vcombine.low %v266_v8, %v270_v9  ;;  %v8121_v8 = vcombine.high %v306_v21, %v310_v29  ;;  %v318_v18 = vld [vmem:[%s13022_s6 + $0x7f8] sm:$0xff] }
 0x23d   :  { %4456 = vmatprep.subr.bf16.mxu0 %v8303_v31  ;;  %v8089_v31 = vcombine.high %v274_v16, %v278_v19  ;;  %v8343_v32 = vcombine.high %v529_v22, %v533_v24 }
 0x23e   :  { %v4152_v47 = vpop.f32.mrb[8].mxu0 }
 0x23f   :  { %v11214_v56 = vadd.f32 %v4152_v47, %v4030_v43  ;;  %v4154_v57 = vpop.f32.mrb[9].mxu0  ;;  %4539 = vmatpush1.bf16.msra.mxu1 %v8048_v39  ;;  %v8088_v39 = vcombine.low %v274_v16, %v278_v19  ;;  %v8351_v43 = vcombine.high %v537_v36, %v541_v37  ;;  %v8096_v47 = vcombine.low %v282_v33, %v286_v35 }
 0x240   :  { %v11216_v60 = vadd.f32 %v4154_v57, %v4032_v46  ;;  %v4156_v34 = vpop.f32.mrb[10].mxu0  ;;  %4457 = vmatpush1.bf16.msra.mxu0 %v8302_v41  ;;  %4540 = vmatprep.subr.bf16.mxu1 %v8057_v42  ;;  %v8342_v41 = vcombine.low %v529_v22, %v533_v24  ;;  %v8097_v42 = vcombine.high %v282_v33, %v286_v35  ;;  %v549_v46 = vld [vmem:[%s13022_s6 + $0xf30] sm:$0xff]  ;;  %v322_v22 = vld [vmem:[%s13022_s6 + $0x818] sm:$0xff] }
 0x241   :  { %v4157_v63 = vpop.f32.mrb[11].mxu0  ;;  %4458 = vmatprep.subr.bf16.mxu0 %v8311_v44  ;;  %v290_v44 = vld [vmem:[%s13022_s6 + $0x718] sm:$0xff]  ;;  %v8359_v57 = vcombine.high %v545_v51, %v549_v46  ;;  %v8129_v16 = vcombine.high %v314_v10, %v318_v18 }
 0x242   :  { %v8105_v58 = vcombine.high %v290_v44, %v294_v45  ;;  %v302_v34 = vld [vmem:[%s13022_s6 + $0x778] sm:$0xff]  ;;  %v8104_v63 = vcombine.low %v290_v44, %v294_v45  ;;  %v4652_v36 = vmax.f32 %v11216_v60, 0.0 }
 0x243   :  { %4541 = vmatpush1.bf16.msra.mxu1 %v8056_v59  ;;  %v298_v59 = vld [vmem:[%s13022_s6 + $0x758] sm:$0xff] }
 0x244   :  { %4459 = vmatpush1.bf16.msra.mxu0 %v8310_v20  ;;  %4542 = vmatprep.subr.bf16.mxu1 %v8065_v62  ;;  %v553_v20 = vld [vmem:[%s13022_s6 + $0xf50] sm:$0xff]  ;;  %v8113_v1 = vcombine.high %v298_v59, %v302_v34  ;;  %v326_v24 = vld [vmem:[%s13022_s6 + $0x838] sm:$0xff]  ;;  %v11343_v44 = vpack.c.bf16 %v4652_v36, %v4652_v36 }
 0x245   :  { %4460 = vmatprep.subr.bf16.mxu0 %v8319_v0  ;;  %v557_v62 = vld [vmem:[%s13022_s6 + $0xf70] sm:$0xff]  ;;  %v8358_v0 = vcombine.low %v545_v51, %v549_v46  ;;  %v330_v33 = vld [vmem:[%s13022_s6 + $0x858] sm:$0xff]  ;;  %v8136_v37 = vcombine.low %v322_v22, %v326_v24 }
 0x246   :  { %v8367_v2 = vcombine.high %v553_v20, %v557_v62  ;;  %v334_v35 = vld [vmem:[%s13022_s6 + $0x878] sm:$0xff] }
 0x247   :  { %4543 = vmatpush1.bf16.msra.mxu1 %v8064_v3  ;;  %v561_v3 = vld [vmem:[%s13022_s6 + $0xf90] sm:$0xff]  ;;  %v9025_v60 = vld [vmem:[%s13024_s8 + $0x3c] ss:$28 sps:$4 sm:$0xff]   ;;  %v8144_v45 = vcombine.low %v330_v33, %v334_v35 }
 0x248   :  { %4461 = vmatpush1.bf16.msra.mxu0 %v8318_v5  ;;  %4544 = vmatprep.subr.bf16.mxu1 %v8073_v6  ;;  %v565_v5 = vld [vmem:[%s13022_s6 + $0xfb0] sm:$0xff]  ;;  %v8112_v6 = vcombine.low %v298_v59, %v302_v34  ;;  %v9031_v59 = vld [vmem:[%s13024_s8 + $0xac] ss:$28 sps:$4 sm:$0xff]   ;;  %v354_v34 = vld [vmem:[%s13022_s6 + $0x918] sm:$0xff] }
 0x249   :  { %4462 = vmatprep.subr.bf16.mxu0 %v8327_v7  ;;  %v8366_v7 = vcombine.low %v553_v20, %v557_v62  ;;  %v8375_v9 = vcombine.high %v561_v3, %v565_v5  ;;  %v9023_v51 = vld [vmem:[%s13024_s8 + $0x38] ss:$28 sps:$4 sm:$0xff]  }
 0x24a   :  { %v358_v20 = vld [vmem:[%s13022_s6 + $0x938] sm:$0xff] }
 0x24b   :  { %4545 = vmatpush1.bf16.msra.mxu1 %v8072_v38  ;;  %v569_v38 = vld [vmem:[%s13022_s6 + $0xfd0] sm:$0xff]  ;;  %v398_v36 = vld [vmem:[%s13022_s6 + $0xa78] sm:$0xff] }
 0x24c   :  { %4463 = vmatpush1.bf16.msra.mxu0 %v8326_v11  ;;  %4546 = vmatprep.subr.bf16.mxu1 %v8081_v12  ;;  %v573_v11 = vld [vmem:[%s13022_s6 + $0xff0] sm:$0xff]  ;;  %v8120_v12 = vcombine.low %v306_v21, %v310_v29  ;;  %v366_v21 = vld [vmem:[%s13022_s6 + $0x978] sm:$0xff]  ;;  %v8168_v29 = vcombine.low %v354_v34, %v358_v20 }
 0x24d   :  { %4464 = vmatprep.subr.bf16.mxu0 %v8335_v14  ;;  %v8374_v14 = vcombine.low %v561_v3, %v565_v5  ;;  %v8383_v19 = vcombine.high %v569_v38, %v573_v11  ;;  %v9032_v3 = vld [vmem:[%s13024_s8 + $0xe0] ss:$28 sps:$4 sm:$0xff]  }
 0x24f   :  { %4547 = vmatpush1.bf16.msra.mxu1 %v8080_v25  ;;  %v8128_v25 = vcombine.low %v314_v10, %v318_v18  ;;  %v9035_v10 = vld [vmem:[%s13024_s8 + $0x118] ss:$28 sps:$4 sm:$0xff]  }
 0x250   :  { %4465 = vmatpush1.bf16.msra.mxu0 %v8334_v28  ;;  %4548 = vmatprep.subr.bf16.mxu1 %v8089_v31  ;;  %v8382_v28 = vcombine.low %v569_v38, %v573_v11  ;;  %v8137_v31 = vcombine.high %v322_v22, %v326_v24  ;;  %v9040_v38 = vld [vmem:[%s13024_s8 + $0x154] ss:$28 sps:$4 sm:$0xff]   ;;  %v378_v11 = vld [vmem:[%s13022_s6 + $0x9d8] sm:$0xff]  ;;  %v9043_v22 = vld [vmem:[%s13024_s8 + $0x18c] ss:$28 sps:$4 sm:$0xff]  }
 0x251   :  { %4466 = vmatprep.subr.bf16.mxu0 %v8343_v32  ;;  %v9022_v32 = vld [vmem:[%s13024_s8 + $0x4] ss:$28 sps:$4 sm:$0xff]   ;;  %v386_v24 = vld [vmem:[%s13022_s6 + $0xa18] sm:$0xff] }
 0x253   :  { %4549 = vmatpush1.bf16.msra.mxu1 %v8088_v39  ;;  %v9020_v39 = vld [vmem:[%s13024_s8] ss:$28 sps:$4 sm:$0xff]  }
 0x254   :  { %4467 = vmatpush1.bf16.msra.mxu0 %v8342_v41  ;;  %4550 = vmatprep.subr.bf16.mxu1 %v8097_v42  ;;  %v8145_v41 = vcombine.high %v330_v33, %v334_v35  ;;  %v338_v42 = vld [vmem:[%s13022_s6 + $0x898] sm:$0xff]  ;;  %v9046_v33 = vld [vmem:[%s13024_s8 + $0x1c4] ss:$28 sps:$4 sm:$0xff]  }
 0x255   :  { %4468 = vmatprep.subr.bf16.mxu0 %v8351_v43  ;;  %v342_v43 = vld [vmem:[%s13022_s6 + $0x8b8] sm:$0xff] }
 0x256   :  { %v8153_v46 = vcombine.high %v338_v42, %v342_v43  ;;  %v394_v35 = vld [vmem:[%s13022_s6 + $0xa58] sm:$0xff] }
 0x257   :  { %4551 = vmatpush1.bf16.msra.mxu1 %v8096_v47  ;;  %v346_v47 = vld [vmem:[%s13022_s6 + $0x8d8] sm:$0xff] }
 0x258   :  { %4469 = vmatpush1.bf16.msra.mxu0 %v8350_v49  ;;  %4552 = vmatprep.subr.bf16.mxu1 %v8105_v58  ;;  %v8152_v49 = vcombine.low %v338_v42, %v342_v43  ;;  %v9026_v58 = vld [vmem:[%s13024_s8 + $0x70] ss:$28 sps:$4 sm:$0xff]   ;;  %v9049_v42 = vld [vmem:[%s13024_s8 + $0x1fc] ss:$28 sps:$4 sm:$0xff]  }
 0x259   :  { %4470 = vmatprep.subr.bf16.mxu0 %v8359_v57  ;;  %v402_v43 = vld [vmem:[%s13022_s6 + $0xa98] sm:$0xff] }
 0x25b   :  { %4553 = vmatpush1.bf16.msra.mxu1 %v8104_v63  ;;  %v9029_v63 = vld [vmem:[%s13024_s8 + $0xa8] ss:$28 sps:$4 sm:$0xff]  }
 0x25c   :  { %4471 = vmatpush1.bf16.msra.mxu0 %v8358_v0  ;;  %4554 = vmatprep.subr.bf16.mxu1 %v8113_v1  ;;  %v8169_v0 = vcombine.high %v354_v34, %v358_v20  ;;  %v9034_v1 = vld [vmem:[%s13024_s8 + $0xe4] ss:$28 sps:$4 sm:$0xff]   ;;  %v418_v34 = vld [vmem:[%s13022_s6 + $0xb18] sm:$0xff] }
 0x25d   :  { %4472 = vmatprep.subr.bf16.mxu0 %v8367_v2  ;;  %v362_v2 = vld [vmem:[%s13022_s6 + $0x958] sm:$0xff] }
 0x25e   :  { %v8177_v5 = vcombine.high %v362_v2, %v366_v21  ;;  %v422_v20 = vld [vmem:[%s13022_s6 + $0xb38] sm:$0xff] }
 0x25f   :  { %4555 = vmatpush1.bf16.msra.mxu1 %v8112_v6  ;;  %v9037_v6 = vld [vmem:[%s13024_s8 + $0x11c] ss:$28 sps:$4 sm:$0xff]  }
 0x260   :  { %4473 = vmatpush1.bf16.msra.mxu0 %v8366_v7  ;;  %4556 = vmatprep.subr.bf16.mxu1 %v8121_v8  ;;  %v370_v7 = vld [vmem:[%s13022_s6 + $0x998] sm:$0xff] }
 0x261   :  { %4474 = vmatprep.subr.bf16.mxu0 %v8375_v9  ;;  %v374_v8 = vld [vmem:[%s13022_s6 + $0x9b8] sm:$0xff]  ;;  %v8176_v9 = vcombine.low %v362_v2, %v366_v21 }
 0x262   :  { %v8185_v18 = vcombine.high %v370_v7, %v374_v8  ;;  %v426_v2 = vld [vmem:[%s13022_s6 + $0xb58] sm:$0xff] }
 0x263   :  { %4557 = vmatpush1.bf16.msra.mxu1 %v8120_v12  ;;  %v382_v12 = vld [vmem:[%s13022_s6 + $0x9f8] sm:$0xff] }
 0x264   :  { %4475 = vmatpush1.bf16.msra.mxu0 %v8374_v14  ;;  %4558 = vmatprep.subr.bf16.mxu1 %v8129_v16  ;;  %v8184_v14 = vcombine.low %v370_v7, %v374_v8  ;;  %v9038_v16 = vld [vmem:[%s13024_s8 + $0x150] ss:$28 sps:$4 sm:$0xff]   ;;  %v430_v21 = vld [vmem:[%s13022_s6 + $0xb78] sm:$0xff] }
 0x265   :  { %4476 = vmatprep.subr.bf16.mxu0 %v8383_v19  ;;  %v8193_v19 = vcombine.high %v378_v11, %v382_v12  ;;  %v434_v7 = vld [vmem:[%s13022_s6 + $0xb98] sm:$0xff] }
 0x266   :  { %v438_v8 = vld [vmem:[%s13022_s6 + $0xbb8] sm:$0xff] }
 0x267   :  { %4559 = vmatpush1.bf16.msra.mxu1 %v8128_v25  ;;  %v390_v25 = vld [vmem:[%s13022_s6 + $0xa38] sm:$0xff] }
 0x268   :  { %4477 = vmatpush1.bf16.msra.mxu0 %v8382_v28  ;;  %4569 = vmatprep.subr.bf16.mxu1 %v8137_v31  ;;  %v8192_v28 = vcombine.low %v378_v11, %v382_v12  ;;  %v9041_v31 = vld [vmem:[%s13024_s8 + $0x188] ss:$28 sps:$4 sm:$0xff]   ;;  %v442_v11 = vld [vmem:[%s13022_s6 + $0xbd8] sm:$0xff] }
 0x269   :  { %7007 = vmatprep.subr.bf16.mxu0 %v9022_v32  ;;  %v8201_v32 = vcombine.high %v386_v24, %v390_v25  ;;  %v446_v12 = vld [vmem:[%s13022_s6 + $0xbf8] sm:$0xff] }
 0x26a   :  { %4561 = vmatmul.mubr.bf16.vlgmr.msra.gmra.mrb[16].mxu1 %v10100_v17  ;;  %v9028_v17 = vld [vmem:[%s13024_s8 + $0x74] ss:$28 sps:$4 sm:$0xff]  }
 0x26b   :  { %4479 = vmatmul.mubr.bf16.vlgmr.msra.gmra.mrb[12].mxu0 %v10527_v4  ;;  %4570 = vmatpush1.bf16.msra.mxu1 %v8136_v37  ;;  %v8200_v37 = vcombine.low %v386_v24, %v390_v25  ;;  %v450_v24 = vld [vmem:[%s13022_s6 + $0xc18] sm:$0xff] }
 0x26c   :  { %4601 = vmatprep.mubr.bf16.mxu1 %v10145_v48  ;;  %7008 = vmatpush1.bf16.msra.mxu0 %v9020_v39  ;;  %v350_v48 = vld [vmem:[%s13022_s6 + $0x8f8] sm:$0xff] }
 0x26d   :  { %7039 = vmatprep.mubr.bf16.mxu0 %v11343_v44  ;;  %4571 = vmatprep.subr.bf16.mxu1 %v8145_v41  ;;  %v8161_v57 = vcombine.high %v346_v47, %v350_v48  ;;  %v8160_v62 = vcombine.low %v346_v47, %v350_v48  ;;  %v9044_v39 = vld [vmem:[%s13024_s8 + $0x1c0] ss:$28 sps:$4 sm:$0xff]   ;;  %v8209_v41 = vcombine.high %v394_v35, %v398_v36 }
 0x26e   :  { %7009 = vmatprep.subr.bf16.mxu0 %v9025_v60  ;;  %v406_v60 = vld [vmem:[%s13022_s6 + $0xab8] sm:$0xff] }
 0x26f   :  { %4572 = vmatpush1.bf16.msra.mxu1 %v8144_v45  ;;  %v8208_v45 = vcombine.low %v394_v35, %v398_v36  ;;  %v410_v47 = vld [vmem:[%s13022_s6 + $0xad8] sm:$0xff]  ;;  %v9070_v35 = vld [vmem:[%s13024_s8 + $0x384] ss:$28 sps:$4 sm:$0xff]  }
 0x270   :  { %7010 = vmatpush1.bf16.msra.mxu0 %v9023_v51  ;;  %4573 = vmatprep.subr.bf16.mxu1 %v8153_v46  ;;  %v9047_v51 = vld [vmem:[%s13024_s8 + $0x1f8] ss:$28 sps:$4 sm:$0xff]   ;;  %v8217_v46 = vcombine.high %v402_v43, %v406_v60 }
 0x271   :  { %7011 = vmatprep.subr.bf16.mxu0 %v9028_v17  ;;  %v9052_v17 = vld [vmem:[%s13024_s8 + $0x234] ss:$28 sps:$4 sm:$0xff]   ;;  %v414_v48 = vld [vmem:[%s13022_s6 + $0xaf8] sm:$0xff] }
 0x272   :  { %v454_v25 = vld [vmem:[%s13022_s6 + $0xc38] sm:$0xff] }
 0x273   :  { %4574 = vmatpush1.bf16.msra.mxu1 %v8152_v49  ;;  %v8216_v49 = vcombine.low %v402_v43, %v406_v60  ;;  %v458_v36 = vld [vmem:[%s13022_s6 + $0xc58] sm:$0xff] }
 0x274   :  { %7012 = vmatpush1.bf16.msra.mxu0 %v9026_v58  ;;  %4575 = vmatprep.subr.bf16.mxu1 %v8161_v57  ;;  %v9050_v58 = vld [vmem:[%s13024_s8 + $0x230] ss:$28 sps:$4 sm:$0xff]   ;;  %v8225_v57 = vcombine.high %v410_v47, %v414_v48  ;;  %v9073_v43 = vld [vmem:[%s13024_s8 + $0x3bc] ss:$28 sps:$4 sm:$0xff]  }
 0x275   :  { %7013 = vmatprep.subr.bf16.mxu0 %v9031_v59  ;;  %v9055_v59 = vld [vmem:[%s13024_s8 + $0x26c] ss:$28 sps:$4 sm:$0xff]   ;;  %v466_v60 = vld [vmem:[%s13022_s6 + $0xc98] sm:$0xff] }
 0x277   :  { %4576 = vmatpush1.bf16.msra.mxu1 %v8160_v62  ;;  %v8224_v62 = vcombine.low %v410_v47, %v414_v48  ;;  %v9076_v47 = vld [vmem:[%s13024_s8 + $0x3f4] ss:$28 sps:$4 sm:$0xff]  }
 0x278   :  { %7014 = vmatpush1.bf16.msra.mxu0 %v9029_v63  ;;  %4577 = vmatprep.subr.bf16.mxu1 %v8169_v0  ;;  %v9053_v63 = vld [vmem:[%s13024_s8 + $0x268] ss:$28 sps:$4 sm:$0xff]   ;;  %v8233_v0 = vcombine.high %v418_v34, %v422_v20 }
 0x279   :  { %7015 = vmatprep.subr.bf16.mxu0 %v9034_v1  ;;  %v9058_v1 = vld [vmem:[%s13024_s8 + $0x2a4] ss:$28 sps:$4 sm:$0xff]  }
 0x27b   :  { %4578 = vmatpush1.bf16.msra.mxu1 %v8168_v29  ;;  %v8232_v29 = vcombine.low %v418_v34, %v422_v20  ;;  %v486_v34 = vld [vmem:[%s13022_s6 + $0xd38] sm:$0xff] }
 0x27c   :  { %7016 = vmatpush1.bf16.msra.mxu0 %v9032_v3  ;;  %4579 = vmatprep.subr.bf16.mxu1 %v8177_v5  ;;  %v9056_v3 = vld [vmem:[%s13024_s8 + $0x2a0] ss:$28 sps:$4 sm:$0xff]   ;;  %v8241_v5 = vcombine.high %v426_v2, %v430_v21 }
 0x27d   :  { %7017 = vmatprep.subr.bf16.mxu0 %v9037_v6  ;;  %v9061_v6 = vld [vmem:[%s13024_s8 + $0x2dc] ss:$28 sps:$4 sm:$0xff]  }
 0x27f   :  { %4580 = vmatpush1.bf16.msra.mxu1 %v8176_v9  ;;  %v8240_v9 = vcombine.low %v426_v2, %v430_v21  ;;  %v494_v2 = vld [vmem:[%s13022_s6 + $0xd78] sm:$0xff] }
 0x280   :  { %7018 = vmatpush1.bf16.msra.mxu0 %v9035_v10  ;;  %4581 = vmatprep.subr.bf16.mxu1 %v8185_v18  ;;  %v9059_v10 = vld [vmem:[%s13024_s8 + $0x2d8] ss:$28 sps:$4 sm:$0xff]   ;;  %v8249_v18 = vcombine.high %v434_v7, %v438_v8 }
 0x281   :  { %7019 = vmatprep.subr.bf16.mxu0 %v9040_v38  ;;  %v9064_v38 = vld [vmem:[%s13024_s8 + $0x314] ss:$28 sps:$4 sm:$0xff]  }
 0x283   :  { %4582 = vmatpush1.bf16.msra.mxu1 %v8184_v14  ;;  %v8248_v14 = vcombine.low %v434_v7, %v438_v8  ;;  %v502_v7 = vld [vmem:[%s13022_s6 + $0xdb8] sm:$0xff]  ;;  %v1410_v8 = vrot.slane %v11176_v15, %v10075_v55 }
 0x284   :  { %7020 = vmatpush1.bf16.msra.mxu0 %v9038_v16  ;;  %4583 = vmatprep.subr.bf16.mxu1 %v8193_v19  ;;  %v9062_v16 = vld [vmem:[%s13024_s8 + $0x310] ss:$28 sps:$4 sm:$0xff]   ;;  %v8257_v19 = vcombine.high %v442_v11, %v446_v12 }
 0x285   :  { %7021 = vmatprep.subr.bf16.mxu0 %v9043_v22  ;;  %v9067_v22 = vld [vmem:[%s13024_s8 + $0x34c] ss:$28 sps:$4 sm:$0xff]  }
 0x287   :  { %4584 = vmatpush1.bf16.msra.mxu1 %v8192_v28  ;;  %v8256_v28 = vcombine.low %v442_v11, %v446_v12  ;;  %v9088_v11 = vld [vmem:[%s13024_s8 + $0x4d4] ss:$28 sps:$4 sm:$0xff]   ;;  %v506_v12 = vld [vmem:[%s13022_s6 + $0xdd8] sm:$0xff] }
 0x288   :  { %7022 = vmatpush1.bf16.msra.mxu0 %v9041_v31  ;;  %4585 = vmatprep.subr.bf16.mxu1 %v8201_v32  ;;  %v9065_v31 = vld [vmem:[%s13024_s8 + $0x348] ss:$28 sps:$4 sm:$0xff]   ;;  %v8265_v32 = vcombine.high %v450_v24, %v454_v25 }
 0x289   :  { %7023 = vmatprep.subr.bf16.mxu0 %v9046_v33  ;;  %v4651_v33 = vmax.f32 %v11214_v56, 0.0  ;;  %v9068_v56 = vld [vmem:[%s13024_s8 + $0x380] ss:$28 sps:$4 sm:$0xff]  }
 0x28b   :  { %4586 = vmatpush1.bf16.msra.mxu1 %v8200_v37  ;;  %v462_v37 = vld [vmem:[%s13022_s6 + $0xc78] sm:$0xff] }
 0x28c   :  { %7024 = vmatpush1.bf16.msra.mxu0 %v9044_v39  ;;  %4587 = vmatprep.subr.bf16.mxu1 %v8209_v41  ;;  %v8264_v39 = vcombine.low %v450_v24, %v454_v25  ;;  %v11532_v41 = vpack.c.bf16 %v4651_v33, %v4651_v33  ;;  %v9091_v33 = vld [vmem:[%s13024_s8 + $0x50c] ss:$28 sps:$4 sm:$0xff]  }
 0x28d   :  { %7025 = vmatprep.subr.bf16.mxu0 %v9049_v42  ;;  %v8273_v42 = vcombine.high %v458_v36, %v462_v37 }
 0x28f   :  { %4588 = vmatpush1.bf16.msra.mxu1 %v8208_v45  ;;  %v470_v45 = vld [vmem:[%s13022_s6 + $0xcb8] sm:$0xff] }
 0x290   :  { %7026 = vmatpush1.bf16.msra.mxu0 %v9047_v51  ;;  %4589 = vmatprep.subr.bf16.mxu1 %v8217_v46  ;;  %v8272_v51 = vcombine.low %v458_v36, %v462_v37  ;;  %v9071_v46 = vld [vmem:[%s13024_s8 + $0x3b8] ss:$28 sps:$4 sm:$0xff]   ;;  %v8280_v48 = vcombine.low %v466_v60, %v470_v45 }
 0x291   :  { %7027 = vmatprep.subr.bf16.mxu0 %v9052_v17  ;;  %v8281_v17 = vcombine.high %v466_v60, %v470_v45  ;;  %v518_v36 = vld [vmem:[%s13022_s6 + $0xe38] sm:$0xff] }
 0x292   :  { %v522_v60 = vld [vmem:[%s13022_s6 + $0xe58] sm:$0xff] }
 0x293   :  { %4590 = vmatpush1.bf16.msra.mxu1 %v8216_v49  ;;  %v9074_v49 = vld [vmem:[%s13024_s8 + $0x3f0] ss:$28 sps:$4 sm:$0xff]   ;;  %v526_v45 = vld [vmem:[%s13022_s6 + $0xe78] sm:$0xff] }
 0x294   :  { %7028 = vmatpush1.bf16.msra.mxu0 %v9050_v58  ;;  %4591 = vmatprep.subr.bf16.mxu1 %v8225_v57  ;;  %v9079_v57 = vld [vmem:[%s13024_s8 + $0x42c] ss:$28 sps:$4 sm:$0xff]  }
 0x295   :  { %7029 = vmatprep.subr.bf16.mxu0 %v9055_v59  ;;  %v482_v59 = vld [vmem:[%s13022_s6 + $0xd18] sm:$0xff] }
 0x296   :  { %v8296_v21 = vcombine.low %v482_v59, %v486_v34 }
 0x297   :  { %4592 = vmatpush1.bf16.msra.mxu1 %v8224_v62  ;;  %v9077_v62 = vld [vmem:[%s13024_s8 + $0x428] ss:$28 sps:$4 sm:$0xff]  }
 0x298   :  { %7030 = vmatpush1.bf16.msra.mxu0 %v9053_v63  ;;  %4593 = vmatprep.subr.bf16.mxu1 %v8233_v0  ;;  %v8297_v63 = vcombine.high %v482_v59, %v486_v34  ;;  %v9082_v0 = vld [vmem:[%s13024_s8 + $0x464] ss:$28 sps:$4 sm:$0xff]   ;;  %v538_v59 = vld [vmem:[%s13022_s6 + $0xed8] sm:$0xff] }
 0x299   :  { %7031 = vmatprep.subr.bf16.mxu0 %v9058_v1  ;;  %v490_v1 = vld [vmem:[%s13022_s6 + $0xd58] sm:$0xff] }
 0x29a   :  { %v542_v34 = vld [vmem:[%s13022_s6 + $0xef8] sm:$0xff] }
 0x29b   :  { %4594 = vmatpush1.bf16.msra.mxu1 %v8232_v29  ;;  %v9080_v29 = vld [vmem:[%s13024_s8 + $0x460] ss:$28 sps:$4 sm:$0xff]  }
 0x29c   :  { %7032 = vmatpush1.bf16.msra.mxu0 %v9056_v3  ;;  %4595 = vmatprep.subr.bf16.mxu1 %v8241_v5  ;;  %v8305_v3 = vcombine.high %v490_v1, %v494_v2  ;;  %v9085_v5 = vld [vmem:[%s13024_s8 + $0x49c] ss:$28 sps:$4 sm:$0xff]  }
 0x29d   :  { %7033 = vmatprep.subr.bf16.mxu0 %v9061_v6  ;;  %v498_v6 = vld [vmem:[%s13022_s6 + $0xd98] sm:$0xff] }
 0x29e   :  { %v8312_v24 = vcombine.low %v498_v6, %v502_v7 }
 0x29f   :  { %4596 = vmatpush1.bf16.msra.mxu1 %v8240_v9  ;;  %v8304_v9 = vcombine.low %v490_v1, %v494_v2  ;;  %v546_v1 = vld [vmem:[%s13022_s6 + $0xf18] sm:$0xff] }
 0x2a0   :  { %7034 = vmatpush1.bf16.msra.mxu0 %v9059_v10  ;;  %4597 = vmatprep.subr.bf16.mxu1 %v8249_v18  ;;  %v9083_v10 = vld [vmem:[%s13024_s8 + $0x498] ss:$28 sps:$4 sm:$0xff]   ;;  %v8313_v18 = vcombine.high %v498_v6, %v502_v7 }
 0x2a1   :  { %7035 = vmatprep.subr.bf16.mxu0 %v9064_v38  ;;  %v550_v2 = vld [vmem:[%s13022_s6 + $0xf38] sm:$0xff] }
 0x2a2   :  { %v554_v6 = vld [vmem:[%s13022_s6 + $0xf58] sm:$0xff] }
 0x2a3   :  { %4598 = vmatpush1.bf16.msra.mxu1 %v8248_v14  ;;  %v510_v14 = vld [vmem:[%s13022_s6 + $0xdf8] sm:$0xff] }
 0x2a4   :  { %7036 = vmatpush1.bf16.msra.mxu0 %v9062_v16  ;;  %4599 = vmatprep.subr.bf16.mxu1 %v8257_v19  ;;  %v558_v7 = vld [vmem:[%s13022_s6 + $0xf78] sm:$0xff] }
 0x2a5   :  { %7037 = vmatprep.subr.bf16.mxu0 %v9067_v22 }
 0x2a7   :  { %4600 = vmatpush1.bf16.msra.mxu1 %v8256_v28  ;;  %v9086_v28 = vld [vmem:[%s13024_s8 + $0x4d0] ss:$28 sps:$4 sm:$0xff]  }
 0x2a8   :  { %7038 = vmatpush1.bf16.msra.mxu0 %v9065_v31  ;;  %4610 = vmatprep.subr.bf16.mxu1 %v8265_v32  ;;  %v8321_v31 = vcombine.high %v506_v12, %v510_v14 }
 0x2a9   :  { %7048 = vmatprep.subr.bf16.mxu0 %v9070_v35  ;;  %v514_v35 = vld [vmem:[%s13022_s6 + $0xe18] sm:$0xff] }
 0x2aa   :  { %4602 = vmatmul.mubr.bf16.vlgmr.msra.gmra.mrb[16].mxu1 %v10327_v13  ;;  %v474_v13 = vld [vmem:[%s13022_s6 + $0xcd8] sm:$0xff] }
 0x2ab   :  { %7040 = vmatmul.mubr.bf16.vlgmr.msra.gmra.mrb[16].mxu0 %v11532_v41  ;;  %4611 = vmatpush1.bf16.msra.mxu1 %v8264_v39  ;;  %v8320_v39 = vcombine.low %v506_v12, %v510_v14  ;;  %v566_v12 = vld [vmem:[%s13022_s6 + $0xfb8] sm:$0xff]  ;;  %v8368_v14 = vcombine.low %v554_v6, %v558_v7 }
 0x2ac   :  { %4642 = vmatprep.mubr.bf16.mxu1 %v10342_v27  ;;  %7049 = vmatpush1.bf16.msra.mxu0 %v9068_v56  ;;  %v478_v27 = vld [vmem:[%s13022_s6 + $0xcf8] sm:$0xff]  ;;  %v9089_v56 = vld [vmem:[%s13024_s8 + $0x508] ss:$28 sps:$4 sm:$0xff]  }
 0x2ad   :  { %4612 = vmatprep.subr.bf16.mxu1 %v8273_v42  ;;  %7050 = vmatprep.subr.bf16.mxu0 %v9073_v43  ;;  %v8289_v58 = vcombine.high %v474_v13, %v478_v27  ;;  %v8288_v20 = vcombine.low %v474_v13, %v478_v27  ;;  %v8329_v42 = vcombine.high %v514_v35, %v518_v36  ;;  %v9094_v43 = vld [vmem:[%s13024_s8 + $0x544] ss:$28 sps:$4 sm:$0xff]   ;;  %v530_v13 = vld [vmem:[%s13022_s6 + $0xe98] sm:$0xff] }
 0x2ae   :  { %v534_v27 = vld [vmem:[%s13022_s6 + $0xeb8] sm:$0xff] }
 0x2af   :  { %4613 = vmatpush1.bf16.msra.mxu1 %v8272_v51  ;;  %v8328_v51 = vcombine.low %v514_v35, %v518_v36  ;;  %v9115_v35 = vld [vmem:[%s13024_s8 + $0x6cc] ss:$28 sps:$4 sm:$0xff]  }
 0x2b0   :  { %7051 = vmatpush1.bf16.msra.mxu0 %v9071_v46  ;;  %4614 = vmatprep.subr.bf16.mxu1 %v8281_v17  ;;  %v9092_v46 = vld [vmem:[%s13024_s8 + $0x540] ss:$28 sps:$4 sm:$0xff]   ;;  %v8337_v17 = vcombine.high %v522_v60, %v526_v45 }
 0x2b1   :  { %7052 = vmatprep.subr.bf16.mxu0 %v9076_v47  ;;  %v9097_v47 = vld [vmem:[%s13024_s8 + $0x57c] ss:$28 sps:$4 sm:$0xff]  }
 0x2b3   :  { %4615 = vmatpush1.bf16.msra.mxu1 %v8280_v48  ;;  %v8336_v48 = vcombine.low %v522_v60, %v526_v45  ;;  %v9121_v60 = vld [vmem:[%s13024_s8 + $0x44] ss:$28 sps:$4 sm:$0xff]  }
 0x2b4   :  { %7053 = vmatpush1.bf16.msra.mxu0 %v9074_v49  ;;  %4616 = vmatprep.subr.bf16.mxu1 %v8289_v58  ;;  %v9095_v49 = vld [vmem:[%s13024_s8 + $0x578] ss:$28 sps:$4 sm:$0xff]   ;;  %v8345_v58 = vcombine.high %v530_v13, %v534_v27 }
 0x2b5   :  { %7054 = vmatprep.subr.bf16.mxu0 %v9079_v57  ;;  %v9100_v57 = vld [vmem:[%s13024_s8 + $0x5b4] ss:$28 sps:$4 sm:$0xff]  }
 0x2b7   :  { %4617 = vmatpush1.bf16.msra.mxu1 %v8288_v20  ;;  %v8344_v20 = vcombine.low %v530_v13, %v534_v27  ;;  %v9151_v13 = vld [vmem:[%s13024_s8 + $0x774] ss:$28 sps:$4 sm:$0xff]  }
 0x2b8   :  { %7055 = vmatpush1.bf16.msra.mxu0 %v9077_v62  ;;  %4618 = vmatprep.subr.bf16.mxu1 %v8297_v63  ;;  %v9098_v62 = vld [vmem:[%s13024_s8 + $0x5b0] ss:$28 sps:$4 sm:$0xff]   ;;  %v8353_v63 = vcombine.high %v538_v59, %v542_v34  ;;  %v9122_v27 = vld [vmem:[%s13024_s8 + $0x78] ss:$28 sps:$4 sm:$0xff]  }
 0x2b9   :  { %7056 = vmatprep.subr.bf16.mxu0 %v9082_v0  ;;  %v9103_v0 = vld [vmem:[%s13024_s8 + $0x5ec] ss:$28 sps:$4 sm:$0xff]  }
 0x2bb   :  { %4619 = vmatpush1.bf16.msra.mxu1 %v8296_v21  ;;  %v8352_v21 = vcombine.low %v538_v59, %v542_v34  ;;  %v9130_v59 = vld [vmem:[%s13024_s8 + $0xec] ss:$28 sps:$4 sm:$0xff]  }
 0x2bc   :  { %7057 = vmatpush1.bf16.msra.mxu0 %v9080_v29  ;;  %4620 = vmatprep.subr.bf16.mxu1 %v8305_v3  ;;  %v9101_v29 = vld [vmem:[%s13024_s8 + $0x5e8] ss:$28 sps:$4 sm:$0xff]   ;;  %v8361_v3 = vcombine.high %v546_v1, %v550_v2 }
 0x2bd   :  { %v11599_v38 = vpop.f32.mrb[12].mxu1  ;;  %7058 = vmatprep.subr.bf16.mxu0 %v9085_v5  ;;  %v9106_v5 = vld [vmem:[%s13024_s8 + $0x624] ss:$28 sps:$4 sm:$0xff]  }
 0x2be   :  { %v4318_v16 = vpop.f32.mrb[13].mxu1  ;;  %v9155_v34 = vld [vmem:[%s13024_s8 + $0x7a8] ss:$28 sps:$4 sm:$0xff]  }
 0x2bf   :  { %v8927_v19 = vadd.f32 %v4318_v16, %v1410_v8  ;;  %v4320_v22 = vpop.f32.mrb[14].mxu1  ;;  %4621 = vmatpush1.bf16.msra.mxu1 %v8304_v9  ;;  %v8360_v8 = vcombine.low %v546_v1, %v550_v2  ;;  %v9104_v9 = vld [vmem:[%s13024_s8 + $0x620] ss:$28 sps:$4 sm:$0xff]   ;;  %v9107_v16 = vld [vmem:[%s13024_s8 + $0x658] ss:$28 sps:$4 sm:$0xff]  }
 0x2c0   :  { %7059 = vmatpush1.bf16.msra.mxu0 %v9083_v10  ;;  %v4321_v25 = vpop.f32.mrb[15].mxu1  ;;  %4622 = vmatprep.subr.bf16.mxu1 %v8313_v18  ;;  %v8369_v10 = vcombine.high %v554_v6, %v558_v7  ;;  %v9109_v18 = vld [vmem:[%s13024_s8 + $0x65c] ss:$28 sps:$4 sm:$0xff]   ;;  %v1406_v22 = vrot.slane %v11176_v15, %v10069_v53  ;;  %v9110_v15 = vld [vmem:[%s13024_s8 + $0x690] ss:$28 sps:$4 sm:$0xff]  }
 0x2c1   :  { %v4654_v32 = vmax.f32 %v8927_v19, 0.0  ;;  %7060 = vmatprep.subr.bf16.mxu0 %v9088_v11  ;;  %v562_v11 = vld [vmem:[%s13022_s6 + $0xf98] sm:$0xff]  ;;  %v9142_v6 = vld [vmem:[%s13024_s8 + $0x194] ss:$28 sps:$4 sm:$0xff]  }
 0x2c2   :  { %v8377_v19 = vcombine.high %v562_v11, %v566_v12  ;;  %v570_v25 = vld [vmem:[%s13022_s6 + $0xfd8] sm:$0xff]  ;;  %v9173_v7 = vld [vmem:[%s13024_s8 + $0x850] ss:$28 sps:$4 sm:$0xff]  }
 0x2c3   :  { %v11622_v37 = vpack.c.bf16 %v4654_v32, %v4654_v32  ;;  %4623 = vmatpush1.bf16.msra.mxu1 %v8312_v24  ;;  %v9112_v24 = vld [vmem:[%s13024_s8 + $0x694] ss:$28 sps:$4 sm:$0xff]   ;;  %v9169_v1 = vld [vmem:[%s13024_s8 + $0x81c] ss:$28 sps:$4 sm:$0xff]  }
 0x2c4   :  { %7061 = vmatpush1.bf16.msra.mxu0 %v9086_v28  ;;  %4624 = vmatprep.subr.bf16.mxu1 %v8321_v31  ;;  %v574_v28 = vld [vmem:[%s13022_s6 + $0xff8] sm:$0xff]  ;;  %v8376_v31 = vcombine.low %v562_v11, %v566_v12  ;;  %v9187_v11 = vld [vmem:[%s13024_s8 + $0x8c4] ss:$28 sps:$4 sm:$0xff]  }
 0x2c5   :  { %7080 = vmatprep.mubr.bf16.mxu0 %v11622_v37  ;;  %7062 = vmatprep.subr.bf16.mxu0 %v9091_v33  ;;  %v8385_v32 = vcombine.high %v570_v25, %v574_v28  ;;  %v8926_v33 = vadd.f32 %v11599_v38, %v1406_v22  ;;  %v8384_v36 = vcombine.low %v570_v25, %v574_v28  ;;  %v9139_v38 = vld [vmem:[%s13024_s8 + $0x704] ss:$28 sps:$4 sm:$0xff]   ;;  %v9191_v25 = vld [vmem:[%s13024_s8 + $0x8f8] ss:$28 sps:$4 sm:$0xff]  }
 0x2c6   :  { %v9131_v2 = vld [vmem:[%s13024_s8 + $0x120] ss:$28 sps:$4 sm:$0xff]   ;;  %v9146_v12 = vld [vmem:[%s13024_s8 + $0x1c8] ss:$28 sps:$4 sm:$0xff]   ;;  %v9199_v28 = vld [vmem:[%s13024_s8 + $0x934] ss:$28 sps:$4 sm:$0xff]  }
 0x2c7   :  { %4625 = vmatpush1.bf16.msra.mxu1 %v8320_v39  ;;  %v9113_v39 = vld [vmem:[%s13024_s8 + $0x6c8] ss:$28 sps:$4 sm:$0xff]   ;;  %v9152_v22 = vld [vmem:[%s13024_s8 + $0x200] ss:$28 sps:$4 sm:$0xff]  }
 0x2c8   :  { %7063 = vmatpush1.bf16.msra.mxu0 %v9089_v56  ;;  %4626 = vmatprep.subr.bf16.mxu1 %v8329_v42  ;;  %v9118_v56 = vld [vmem:[%s13024_s8 + $0xc] ss:$28 sps:$4 sm:$0xff]   ;;  %v4653_v42 = vmax.f32 %v8926_v33, 0.0 }
 0x2c9   :  { %7064 = vmatprep.subr.bf16.mxu0 %v9094_v43  ;;  %v9116_v43 = vld [vmem:[%s13024_s8 + $0x8] ss:$28 sps:$4 sm:$0xff]  }
 0x2ca   :  { %v11733_v45 = vpack.c.bf16 %v4653_v42, %v4653_v42  ;;  %v9205_v33 = vld [vmem:[%s13024_s8 + $0x96c] ss:$28 sps:$4 sm:$0xff]  }
 0x2cb   :  { %4627 = vmatpush1.bf16.msra.mxu1 %v8328_v51  ;;  %v9137_v51 = vld [vmem:[%s13024_s8 + $0x700] ss:$28 sps:$4 sm:$0xff]   ;;  %v9170_v42 = vld [vmem:[%s13024_s8 + $0x2a8] ss:$28 sps:$4 sm:$0xff]  }
 0x2cc   :  { %7065 = vmatpush1.bf16.msra.mxu0 %v9092_v46  ;;  %4628 = vmatprep.subr.bf16.mxu1 %v8337_v17  ;;  %v9145_v46 = vld [vmem:[%s13024_s8 + $0x73c] ss:$28 sps:$4 sm:$0xff]  }
 0x2cd   :  { %7066 = vmatprep.subr.bf16.mxu0 %v9097_v47  ;;  %v9119_v17 = vld [vmem:[%s13024_s8 + $0x40] ss:$28 sps:$4 sm:$0xff]  }
 0x2ce   :  { %v9124_v47 = vld [vmem:[%s13024_s8 + $0x7c] ss:$28 sps:$4 sm:$0xff]  }
 0x2cf   :  { %4629 = vmatpush1.bf16.msra.mxu1 %v8336_v48  ;;  %v9127_v48 = vld [vmem:[%s13024_s8 + $0xb4] ss:$28 sps:$4 sm:$0xff]  }
 0x2d0   :  { %7067 = vmatpush1.bf16.msra.mxu0 %v9095_v49  ;;  %4630 = vmatprep.subr.bf16.mxu1 %v8345_v58  ;;  %v9149_v49 = vld [vmem:[%s13024_s8 + $0x770] ss:$28 sps:$4 sm:$0xff]  }
 0x2d1   :  { %7068 = vmatprep.subr.bf16.mxu0 %v9100_v57  ;;  %v9157_v58 = vld [vmem:[%s13024_s8 + $0x7ac] ss:$28 sps:$4 sm:$0xff]  }
 0x2d2   :  { %v9125_v57 = vld [vmem:[%s13024_s8 + $0xb0] ss:$28 sps:$4 sm:$0xff]  }
 0x2d3   :  { %4631 = vmatpush1.bf16.msra.mxu1 %v8344_v20  ;;  %v9163_v20 = vld [vmem:[%s13024_s8 + $0x7e4] ss:$28 sps:$4 sm:$0xff]  }
 0x2d4   :  { %7069 = vmatpush1.bf16.msra.mxu0 %v9098_v62  ;;  %4632 = vmatprep.subr.bf16.mxu1 %v8353_v63  ;;  %v9128_v62 = vld [vmem:[%s13024_s8 + $0xe8] ss:$28 sps:$4 sm:$0xff]  }
 0x2d5   :  { %7070 = vmatprep.subr.bf16.mxu0 %v9103_v0  ;;  %v9133_v63 = vld [vmem:[%s13024_s8 + $0x124] ss:$28 sps:$4 sm:$0xff]  }
 0x2d6   :  { %v9161_v0 = vld [vmem:[%s13024_s8 + $0x7e0] ss:$28 sps:$4 sm:$0xff]  }
 0x2d7   :  { %4633 = vmatpush1.bf16.msra.mxu1 %v8352_v21  ;;  %v9136_v21 = vld [vmem:[%s13024_s8 + $0x15c] ss:$28 sps:$4 sm:$0xff]  }
 0x2d8   :  { %7071 = vmatpush1.bf16.msra.mxu0 %v9101_v29  ;;  %4634 = vmatprep.subr.bf16.mxu1 %v8361_v3  ;;  %v9167_v29 = vld [vmem:[%s13024_s8 + $0x818] ss:$28 sps:$4 sm:$0xff]  }
 0x2d9   :  { %7072 = vmatprep.subr.bf16.mxu0 %v9106_v5  ;;  %v9175_v3 = vld [vmem:[%s13024_s8 + $0x854] ss:$28 sps:$4 sm:$0xff]  }
 0x2da   :  { %v9134_v5 = vld [vmem:[%s13024_s8 + $0x158] ss:$28 sps:$4 sm:$0xff]  }
 0x2db   :  { %4635 = vmatpush1.bf16.msra.mxu1 %v8360_v8  ;;  %v9181_v8 = vld [vmem:[%s13024_s8 + $0x88c] ss:$28 sps:$4 sm:$0xff]  }
 0x2dc   :  { %7073 = vmatpush1.bf16.msra.mxu0 %v9104_v9  ;;  %4636 = vmatprep.subr.bf16.mxu1 %v8369_v10  ;;  %v9140_v9 = vld [vmem:[%s13024_s8 + $0x190] ss:$28 sps:$4 sm:$0xff]  }
 0x2dd   :  { %7074 = vmatprep.subr.bf16.mxu0 %v9109_v18  ;;  %v9148_v10 = vld [vmem:[%s13024_s8 + $0x1cc] ss:$28 sps:$4 sm:$0xff]  }
 0x2de   :  { %v9179_v18 = vld [vmem:[%s13024_s8 + $0x888] ss:$28 sps:$4 sm:$0xff]  }
 0x2df   :  { %4637 = vmatpush1.bf16.msra.mxu1 %v8368_v14  ;;  %v9154_v14 = vld [vmem:[%s13024_s8 + $0x204] ss:$28 sps:$4 sm:$0xff]  }
 0x2e0   :  { %7075 = vmatpush1.bf16.msra.mxu0 %v9107_v16  ;;  %4638 = vmatprep.subr.bf16.mxu1 %v8377_v19  ;;  %v9185_v16 = vld [vmem:[%s13024_s8 + $0x8c0] ss:$28 sps:$4 sm:$0xff]  }
 0x2e1   :  { %7076 = vmatprep.subr.bf16.mxu0 %v9112_v24  ;;  %v9193_v19 = vld [vmem:[%s13024_s8 + $0x8fc] ss:$28 sps:$4 sm:$0xff]  }
 0x2e2   :  { %v9160_v24 = vld [vmem:[%s13024_s8 + $0x23c] ss:$28 sps:$4 sm:$0xff]  }
 0x2e3   :  { %4639 = vmatpush1.bf16.msra.mxu1 %v8376_v31  ;;  %v9158_v31 = vld [vmem:[%s13024_s8 + $0x238] ss:$28 sps:$4 sm:$0xff]  }
 0x2e4   :  { %7077 = vmatpush1.bf16.msra.mxu0 %v9110_v15  ;;  %4640 = vmatprep.subr.bf16.mxu1 %v8385_v32  ;;  %v9166_v15 = vld [vmem:[%s13024_s8 + $0x274] ss:$28 sps:$4 sm:$0xff]  }
 0x2e5   :  { %7078 = vmatprep.subr.bf16.mxu0 %v9115_v35  ;;  %v9197_v32 = vld [vmem:[%s13024_s8 + $0x930] ss:$28 sps:$4 sm:$0xff]  }
 0x2e6   :  { %v9164_v35 = vld [vmem:[%s13024_s8 + $0x270] ss:$28 sps:$4 sm:$0xff]  }
 0x2e7   :  { %4641 = vmatpush1.bf16.msra.mxu1 %v8384_v36  ;;  %v9172_v36 = vld [vmem:[%s13024_s8 + $0x2ac] ss:$28 sps:$4 sm:$0xff]  }
 0x2e8   :  { %7079 = vmatpush1.bf16.msra.mxu0 %v9113_v39  ;;  %7171 = vmatprep.subr.bf16.mxu1 %v9118_v56  ;;  %v9203_v39 = vld [vmem:[%s13024_s8 + $0x968] ss:$28 sps:$4 sm:$0xff]  }
 0x2e9   :  { %7089 = vmatprep.subr.bf16.mxu0 %v9139_v38  ;;  %v9211_v56 = vld [vmem:[%s13024_s8 + $0x9a4] ss:$28 sps:$4 sm:$0xff]  }
 0x2ea   :  { %4643 = vmatmul.mubr.bf16.vlgmr.msra.gmra.mrb[16].mxu1 %v10527_v4  ;;  %v9143_v4 = vld [vmem:[%s13024_s8 + $0x738] ss:$28 sps:$4 sm:$0xff]   ;;  %v9178_v38 = vld [vmem:[%s13024_s8 + $0x2e4] ss:$28 sps:$4 sm:$0xff]  }
 0x2eb   :  { %7081 = vmatmul.mubr.bf16.vlgmr.msra.gmra.mrb[16].mxu0 %v11733_v45  ;;  %7172 = vmatpush1.bf16.msra.mxu1 %v9116_v43  ;;  %v9209_v43 = vld [vmem:[%s13024_s8 + $0x9a0] ss:$28 sps:$4 sm:$0xff]  }
 0x2ec   :  { %7203 = vmatprep.mubr.bf16.mxu1 %v11343_v44  ;;  %7173 = vmatprep.subr.bf16.mxu1 %v9121_v60  ;;  %v9217_v60 = vld [vmem:[%s13024_s8 + $0x9dc] ss:$28 sps:$4 sm:$0xff]  }
 0x2ed   :  { %7090 = vmatpush1.bf16.msra.mxu0 %v9137_v51  ;;  %v9176_v51 = vld [vmem:[%s13024_s8 + $0x2e0] ss:$28 sps:$4 sm:$0xff]  }
 0x2ee   :  { %7091 = vmatprep.subr.bf16.mxu0 %v9145_v46  ;;  %v9184_v46 = vld [vmem:[%s13024_s8 + $0x31c] ss:$28 sps:$4 sm:$0xff]  }
 0x2ef   :  { %7174 = vmatpush1.bf16.msra.mxu1 %v9119_v17  ;;  %v9215_v17 = vld [vmem:[%s13024_s8 + $0x9d8] ss:$28 sps:$4 sm:$0xff]  }
 0x2f0   :  { %7175 = vmatprep.subr.bf16.mxu1 %v9124_v47  ;;  %v9223_v47 = vld [vmem:[%s13024_s8 + $0xa14] ss:$28 sps:$4 sm:$0xff]  }
 0x2f1   :  { %7092 = vmatpush1.bf16.msra.mxu0 %v9143_v4  ;;  %v9182_v4 = vld [vmem:[%s13024_s8 + $0x318] ss:$28 sps:$4 sm:$0xff]  }
 0x2f2   :  { %7093 = vmatprep.subr.bf16.mxu0 %v9151_v13  ;;  %v9190_v13 = vld [vmem:[%s13024_s8 + $0x354] ss:$28 sps:$4 sm:$0xff]  }
 0x2f3   :  { %7176 = vmatpush1.bf16.msra.mxu1 %v9122_v27  ;;  %v9221_v27 = vld [vmem:[%s13024_s8 + $0xa10] ss:$28 sps:$4 sm:$0xff]  }
 0x2f4   :  { %7177 = vmatprep.subr.bf16.mxu1 %v9127_v48  ;;  %v9229_v48 = vld [vmem:[%s13024_s8 + $0xa4c] ss:$28 sps:$4 sm:$0xff]  }
 0x2f5   :  { %7094 = vmatpush1.bf16.msra.mxu0 %v9149_v49  ;;  %v9188_v49 = vld [vmem:[%s13024_s8 + $0x350] ss:$28 sps:$4 sm:$0xff]  }
 0x2f6   :  { %7095 = vmatprep.subr.bf16.mxu0 %v9157_v58  ;;  %v9196_v58 = vld [vmem:[%s13024_s8 + $0x38c] ss:$28 sps:$4 sm:$0xff]  }
 0x2f7   :  { %7178 = vmatpush1.bf16.msra.mxu1 %v9125_v57  ;;  %v9227_v57 = vld [vmem:[%s13024_s8 + $0xa48] ss:$28 sps:$4 sm:$0xff]  }
 0x2f8   :  { %7179 = vmatprep.subr.bf16.mxu1 %v9130_v59  ;;  %v9283_v59 = vld [vmem:[%s13024_s8 + $0xa84] ss:$28 sps:$4 sm:$0xff]  }
 0x2f9   :  { %7096 = vmatpush1.bf16.msra.mxu0 %v9155_v34  ;;  %v9194_v34 = vld [vmem:[%s13024_s8 + $0x388] ss:$28 sps:$4 sm:$0xff]  }
 0x2fa   :  { %7097 = vmatprep.subr.bf16.mxu0 %v9163_v20  ;;  %v9202_v20 = vld [vmem:[%s13024_s8 + $0x3c4] ss:$28 sps:$4 sm:$0xff]  }
 0x2fb   :  { %7180 = vmatpush1.bf16.msra.mxu1 %v9128_v62  ;;  %v9200_v62 = vld [vmem:[%s13024_s8 + $0x3c0] ss:$28 sps:$4 sm:$0xff]  }
 0x2fc   :  { %7181 = vmatprep.subr.bf16.mxu1 %v9133_v63  ;;  %v9208_v63 = vld [vmem:[%s13024_s8 + $0x3fc] ss:$28 sps:$4 sm:$0xff]  }
 0x2fd   :  { %7098 = vmatpush1.bf16.msra.mxu0 %v9161_v0  ;;  %v9206_v0 = vld [vmem:[%s13024_s8 + $0x3f8] ss:$28 sps:$4 sm:$0xff]  }
 0x2fe   :  { %7099 = vmatprep.subr.bf16.mxu0 %v9169_v1  ;;  %v9214_v1 = vld [vmem:[%s13024_s8 + $0x434] ss:$28 sps:$4 sm:$0xff]  }
 0x2ff   :  { %7182 = vmatpush1.bf16.msra.mxu1 %v9131_v2  ;;  %v9212_v2 = vld [vmem:[%s13024_s8 + $0x430] ss:$28 sps:$4 sm:$0xff]  }
 0x300   :  { %7183 = vmatprep.subr.bf16.mxu1 %v9136_v21  ;;  %v9220_v21 = vld [vmem:[%s13024_s8 + $0x46c] ss:$28 sps:$4 sm:$0xff]  }
 0x301   :  { %7100 = vmatpush1.bf16.msra.mxu0 %v9167_v29  ;;  %v9218_v29 = vld [vmem:[%s13024_s8 + $0x468] ss:$28 sps:$4 sm:$0xff]  }
 0x302   :  { %7101 = vmatprep.subr.bf16.mxu0 %v9175_v3  ;;  %v9226_v3 = vld [vmem:[%s13024_s8 + $0x4a4] ss:$28 sps:$4 sm:$0xff]  }
 0x303   :  { %7184 = vmatpush1.bf16.msra.mxu1 %v9134_v5  ;;  %v11959_v5 = vld [vmem:[%s13023_s7] sm:$0xff] }
 0x304   :  { %7185 = vmatprep.subr.bf16.mxu1 %v9142_v6  ;;  %v1414_v6 = vrot.slane %v11959_v5, %v10269_v30 }
 0x305   :  { %7102 = vmatpush1.bf16.msra.mxu0 %v9173_v7  ;;  %v9224_v7 = vld [vmem:[%s13024_s8 + $0x4a0] ss:$28 sps:$4 sm:$0xff]  }
 0x306   :  { %7103 = vmatprep.subr.bf16.mxu0 %v9181_v8  ;;  %v1418_v8 = vrot.slane %v11959_v5, %v10086_v61 }
 0x307   :  { %7186 = vmatpush1.bf16.msra.mxu1 %v9140_v9  ;;  %v9232_v9 = vld [vmem:[%s13024_s8 + $0x4dc] ss:$28 sps:$4 sm:$0xff]  }
 0x308   :  { %7187 = vmatprep.subr.bf16.mxu1 %v9148_v10 }
 0x309   :  { %7104 = vmatpush1.bf16.msra.mxu0 %v9179_v18 }
 0x30a   :  { %7105 = vmatprep.subr.bf16.mxu0 %v9187_v11 }
 0x30b   :  { %7188 = vmatpush1.bf16.msra.mxu1 %v9146_v12  ;;  %v9230_v12 = vld [vmem:[%s13024_s8 + $0x4d8] ss:$28 sps:$4 sm:$0xff]  }
 0x30c   :  { %7189 = vmatprep.subr.bf16.mxu1 %v9154_v14 }
 0x30d   :  { %7106 = vmatpush1.bf16.msra.mxu0 %v9185_v16 }
 0x30e   :  { %7107 = vmatprep.subr.bf16.mxu0 %v9193_v19  ;;  %v9235_v19 = vld [vmem:[%s13024_s8 + $0x514] ss:$28 sps:$4 sm:$0xff]  }
 0x30f   :  { %7190 = vmatpush1.bf16.msra.mxu1 %v9152_v22 }
 0x310   :  { %7191 = vmatprep.subr.bf16.mxu1 %v9160_v24 }
 0x311   :  { %7108 = vmatpush1.bf16.msra.mxu0 %v9191_v25 }
 0x312   :  { %7109 = vmatprep.subr.bf16.mxu0 %v9199_v28  ;;  %v9233_v28 = vld [vmem:[%s13024_s8 + $0x510] ss:$28 sps:$4 sm:$0xff]  }
 0x313   :  { %7192 = vmatpush1.bf16.msra.mxu1 %v9158_v31 }
 0x314   :  { %7193 = vmatprep.subr.bf16.mxu1 %v9166_v15  ;;  %v9238_v15 = vld [vmem:[%s13024_s8 + $0x54c] ss:$28 sps:$4 sm:$0xff]  }
 0x315   :  { %7110 = vmatpush1.bf16.msra.mxu0 %v9197_v32  ;;  %v9281_v32 = vld [vmem:[%s13024_s8 + $0xa80] ss:$28 sps:$4 sm:$0xff]  }
 0x316   :  { %7111 = vmatprep.subr.bf16.mxu0 %v9205_v33 }
 0x317   :  { %7194 = vmatpush1.bf16.msra.mxu1 %v9164_v35  ;;  %v9289_v35 = vld [vmem:[%s13024_s8 + $0xabc] ss:$28 sps:$4 sm:$0xff]  }
 0x318   :  { %7195 = vmatprep.subr.bf16.mxu1 %v9172_v36  ;;  %v9236_v36 = vld [vmem:[%s13024_s8 + $0x548] ss:$28 sps:$4 sm:$0xff]  }
 0x319   :  { %7112 = vmatpush1.bf16.msra.mxu0 %v9203_v39  ;;  %v9241_v39 = vld [vmem:[%s13024_s8 + $0x584] ss:$28 sps:$4 sm:$0xff]  }
 0x31a   :  { %7113 = vmatprep.subr.bf16.mxu0 %v9211_v56  ;;  %v9287_v56 = vld [vmem:[%s13024_s8 + $0xab8] ss:$28 sps:$4 sm:$0xff]  }
 0x31b   :  { %7196 = vmatpush1.bf16.msra.mxu1 %v9170_v42  ;;  %v9295_v42 = vld [vmem:[%s13024_s8 + $0xaf4] ss:$28 sps:$4 sm:$0xff]  }
 0x31c   :  { %7197 = vmatprep.subr.bf16.mxu1 %v9178_v38  ;;  %v9239_v38 = vld [vmem:[%s13024_s8 + $0x580] ss:$28 sps:$4 sm:$0xff]  }
 0x31d   :  { %7114 = vmatpush1.bf16.msra.mxu0 %v9209_v43  ;;  %v9244_v43 = vld [vmem:[%s13024_s8 + $0x5bc] ss:$28 sps:$4 sm:$0xff]  }
 0x31e   :  { %7115 = vmatprep.subr.bf16.mxu0 %v9217_v60  ;;  %v9293_v60 = vld [vmem:[%s13024_s8 + $0xaf0] ss:$28 sps:$4 sm:$0xff]  }
 0x31f   :  { %7198 = vmatpush1.bf16.msra.mxu1 %v9176_v51  ;;  %v9301_v51 = vld [vmem:[%s13024_s8 + $0xb2c] ss:$28 sps:$4 sm:$0xff]  }
 0x320   :  { %7199 = vmatprep.subr.bf16.mxu1 %v9184_v46  ;;  %v9242_v46 = vld [vmem:[%s13024_s8 + $0x5b8] ss:$28 sps:$4 sm:$0xff]  }
 0x321   :  { %7116 = vmatpush1.bf16.msra.mxu0 %v9215_v17  ;;  %v9247_v17 = vld [vmem:[%s13024_s8 + $0x5f4] ss:$28 sps:$4 sm:$0xff]  }
 0x322   :  { %7117 = vmatprep.subr.bf16.mxu0 %v9223_v47  ;;  %v9299_v47 = vld [vmem:[%s13024_s8 + $0xb28] ss:$28 sps:$4 sm:$0xff]  }
 0x323   :  { %7200 = vmatpush1.bf16.msra.mxu1 %v9182_v4  ;;  %v9307_v4 = vld [vmem:[%s13024_s8 + $0xb64] ss:$28 sps:$4 sm:$0xff]  }
 0x324   :  { %7201 = vmatprep.subr.bf16.mxu1 %v9190_v13  ;;  %v9245_v13 = vld [vmem:[%s13024_s8 + $0x5f0] ss:$28 sps:$4 sm:$0xff]  }
 0x325   :  { %7118 = vmatpush1.bf16.msra.mxu0 %v9221_v27  ;;  %v9250_v27 = vld [vmem:[%s13024_s8 + $0x62c] ss:$28 sps:$4 sm:$0xff]  }
 0x326   :  { %7119 = vmatprep.subr.bf16.mxu0 %v9229_v48  ;;  %v9305_v48 = vld [vmem:[%s13024_s8 + $0xb60] ss:$28 sps:$4 sm:$0xff]  }
 0x327   :  { %7202 = vmatpush1.bf16.msra.mxu1 %v9188_v49  ;;  %v9313_v49 = vld [vmem:[%s13024_s8 + $0xb9c] ss:$28 sps:$4 sm:$0xff]  }
 0x328   :  { %7212 = vmatprep.subr.bf16.mxu1 %v9196_v58  ;;  %v9248_v58 = vld [vmem:[%s13024_s8 + $0x628] ss:$28 sps:$4 sm:$0xff]  }
 0x329   :  { %7120 = vmatpush1.bf16.msra.mxu0 %v9227_v57  ;;  %v9253_v57 = vld [vmem:[%s13024_s8 + $0x664] ss:$28 sps:$4 sm:$0xff]  }
 0x32a   :  { %7204 = vmatmul.mubr.bf16.vlgmr.msra.gmra.mrb[20].mxu1 %v11532_v41  ;;  %7130 = vmatprep.subr.bf16.mxu0 %v9283_v59  ;;  %v9311_v59 = vld [vmem:[%s13024_s8 + $0xb98] ss:$28 sps:$4 sm:$0xff]  }
 0x32b   :  { %7213 = vmatpush1.bf16.msra.mxu1 %v9194_v34  ;;  %7244 = vmatprep.mubr.bf16.mxu1 %v11622_v37  ;;  %v9319_v34 = vld [vmem:[%s13024_s8 + $0xbd4] ss:$28 sps:$4 sm:$0xff]  }
 0x32c   :  { %7214 = vmatprep.subr.bf16.mxu1 %v9202_v20  ;;  %v9251_v20 = vld [vmem:[%s13024_s8 + $0x660] ss:$28 sps:$4 sm:$0xff]  }
 0x32f   :  { %7215 = vmatpush1.bf16.msra.mxu1 %v9200_v62  ;;  %v9256_v62 = vld [vmem:[%s13024_s8 + $0x69c] ss:$28 sps:$4 sm:$0xff]  }
 0x330   :  { %7216 = vmatprep.subr.bf16.mxu1 %v9208_v63  ;;  %v9317_v63 = vld [vmem:[%s13024_s8 + $0xbd0] ss:$28 sps:$4 sm:$0xff]  }
 0x333   :  { %7217 = vmatpush1.bf16.msra.mxu1 %v9206_v0  ;;  %v9325_v0 = vld [vmem:[%s13024_s8 + $0xc0c] ss:$28 sps:$4 sm:$0xff]  }
 0x334   :  { %7218 = vmatprep.subr.bf16.mxu1 %v9214_v1  ;;  %v9254_v1 = vld [vmem:[%s13024_s8 + $0x698] ss:$28 sps:$4 sm:$0xff]  }
 0x337   :  { %7219 = vmatpush1.bf16.msra.mxu1 %v9212_v2  ;;  %v9259_v2 = vld [vmem:[%s13024_s8 + $0x6d4] ss:$28 sps:$4 sm:$0xff]  }
 0x338   :  { %7220 = vmatprep.subr.bf16.mxu1 %v9220_v21  ;;  %v9323_v21 = vld [vmem:[%s13024_s8 + $0xc08] ss:$28 sps:$4 sm:$0xff]  }
 0x33b   :  { %7221 = vmatpush1.bf16.msra.mxu1 %v9218_v29  ;;  %v9331_v29 = vld [vmem:[%s13024_s8 + $0xc44] ss:$28 sps:$4 sm:$0xff]  }
 0x33c   :  { %7222 = vmatprep.subr.bf16.mxu1 %v9226_v3  ;;  %v9257_v3 = vld [vmem:[%s13024_s8 + $0x6d0] ss:$28 sps:$4 sm:$0xff]  }
 0x33e   :  { %v4480_v10 = vpop.f32.mrb[12].mxu0 }
 0x33f   :  { %v8928_v18 = vadd.f32 %v4480_v10, %v1414_v6  ;;  %v4482_v11 = vpop.f32.mrb[13].mxu0  ;;  %7223 = vmatpush1.bf16.msra.mxu1 %v9224_v7  ;;  %v9262_v6 = vld [vmem:[%s13024_s8 + $0x70c] ss:$28 sps:$4 sm:$0xff]   ;;  %v9329_v7 = vld [vmem:[%s13024_s8 + $0xc40] ss:$28 sps:$4 sm:$0xff]  }
 0x340   :  { %v8929_v14 = vadd.f32 %v4482_v11, %v1418_v8  ;;  %v4484_v16 = vpop.f32.mrb[14].mxu0  ;;  %7224 = vmatprep.subr.bf16.mxu1 %v9232_v9  ;;  %v9337_v8 = vld [vmem:[%s13024_s8 + $0xc7c] ss:$28 sps:$4 sm:$0xff]   ;;  %v9260_v9 = vld [vmem:[%s13024_s8 + $0x708] ss:$28 sps:$4 sm:$0xff]  }
 0x341   :  { %v4655_v22 = vmax.f32 %v8928_v18, 0.0  ;;  %v4485_v24 = vpop.f32.mrb[15].mxu0  ;;  %v9265_v10 = vld [vmem:[%s13024_s8 + $0x744] ss:$28 sps:$4 sm:$0xff]   ;;  %v9335_v18 = vld [vmem:[%s13024_s8 + $0xc78] ss:$28 sps:$4 sm:$0xff]  }
 0x342   :  { %v4656_v25 = vmax.f32 %v8929_v14, 0.0  ;;  %v9343_v11 = vld [vmem:[%s13024_s8 + $0xcb4] ss:$28 sps:$4 sm:$0xff]   ;;  %v9268_v14 = vld [vmem:[%s13024_s8 + $0x77c] ss:$28 sps:$4 sm:$0xff]  }
 0x343   :  { %7225 = vmatpush1.bf16.msra.mxu1 %v9230_v12  ;;  %v11988_v33 = vpack.c.bf16 %v4655_v22, %v4655_v22  ;;  %v9263_v12 = vld [vmem:[%s13024_s8 + $0x740] ss:$28 sps:$4 sm:$0xff]   ;;  %v9341_v16 = vld [vmem:[%s13024_s8 + $0xcb0] ss:$28 sps:$4 sm:$0xff]   ;;  %v9266_v22 = vld [vmem:[%s13024_s8 + $0x778] ss:$28 sps:$4 sm:$0xff]  }
 0x344   :  { %v11980_v31 = vpack.c.bf16 %v4656_v25, %v4656_v25  ;;  %7226 = vmatprep.subr.bf16.mxu1 %v9235_v19  ;;  %v9349_v19 = vld [vmem:[%s13024_s8 + $0xcec] ss:$28 sps:$4 sm:$0xff]   ;;  %v9271_v24 = vld [vmem:[%s13024_s8 + $0x7b4] ss:$28 sps:$4 sm:$0xff]  }
 0x345   :  { %v9347_v25 = vld [vmem:[%s13024_s8 + $0xce8] ss:$28 sps:$4 sm:$0xff]  }
 0x346   :  { %7121 = vmatprep.mubr.bf16.mxu0 %v11980_v31 }
 0x347   :  { %7122 = vmatmul.mubr.bf16.vlgmr.msra.gmra.mrb[16].mxu0 %v11988_v33  ;;  %7227 = vmatpush1.bf16.msra.mxu1 %v9233_v28  ;;  %v9355_v28 = vld [vmem:[%s13024_s8 + $0xd24] ss:$28 sps:$4 sm:$0xff]  }
 0x348   :  { %7228 = vmatprep.subr.bf16.mxu1 %v9238_v15  ;;  %7131 = vmatpush1.bf16.msra.mxu0 %v9281_v32  ;;  %v9269_v15 = vld [vmem:[%s13024_s8 + $0x7b0] ss:$28 sps:$4 sm:$0xff]  }
 0x349   :  { %7132 = vmatprep.subr.bf16.mxu0 %v9289_v35  ;;  %v9274_v32 = vld [vmem:[%s13024_s8 + $0x7ec] ss:$28 sps:$4 sm:$0xff]   ;;  %v9353_v35 = vld [vmem:[%s13024_s8 + $0xd20] ss:$28 sps:$4 sm:$0xff]  }
 0x34b   :  { %7229 = vmatpush1.bf16.msra.mxu1 %v9236_v36  ;;  %v9361_v36 = vld [vmem:[%s13024_s8 + $0xd5c] ss:$28 sps:$4 sm:$0xff]  }
 0x34c   :  { %7230 = vmatprep.subr.bf16.mxu1 %v9241_v39  ;;  %7133 = vmatpush1.bf16.msra.mxu0 %v9287_v56  ;;  %v9272_v39 = vld [vmem:[%s13024_s8 + $0x7e8] ss:$28 sps:$4 sm:$0xff]  }
 0x34d   :  { %7134 = vmatprep.subr.bf16.mxu0 %v9295_v42  ;;  %v9277_v56 = vld [vmem:[%s13024_s8 + $0x824] ss:$28 sps:$4 sm:$0xff]   ;;  %v9359_v42 = vld [vmem:[%s13024_s8 + $0xd58] ss:$28 sps:$4 sm:$0xff]  }
 0x34f   :  { %7231 = vmatpush1.bf16.msra.mxu1 %v9239_v38  ;;  %v9367_v38 = vld [vmem:[%s13024_s8 + $0xd94] ss:$28 sps:$4 sm:$0xff]  }
 0x350   :  { %7232 = vmatprep.subr.bf16.mxu1 %v9244_v43  ;;  %7135 = vmatpush1.bf16.msra.mxu0 %v9293_v60  ;;  %v9275_v43 = vld [vmem:[%s13024_s8 + $0x820] ss:$28 sps:$4 sm:$0xff]  }
 0x351   :  { %7136 = vmatprep.subr.bf16.mxu0 %v9301_v51  ;;  %v9280_v60 = vld [vmem:[%s13024_s8 + $0x85c] ss:$28 sps:$4 sm:$0xff]   ;;  %v9365_v51 = vld [vmem:[%s13024_s8 + $0xd90] ss:$28 sps:$4 sm:$0xff]  }
 0x353   :  { %7233 = vmatpush1.bf16.msra.mxu1 %v9242_v46  ;;  %v9373_v46 = vld [vmem:[%s13024_s8 + $0xdcc] ss:$28 sps:$4 sm:$0xff]  }
 0x354   :  { %7234 = vmatprep.subr.bf16.mxu1 %v9247_v17  ;;  %7137 = vmatpush1.bf16.msra.mxu0 %v9299_v47  ;;  %v9278_v17 = vld [vmem:[%s13024_s8 + $0x858] ss:$28 sps:$4 sm:$0xff]  }
 0x355   :  { %7138 = vmatprep.subr.bf16.mxu0 %v9307_v4  ;;  %v9286_v47 = vld [vmem:[%s13024_s8 + $0x894] ss:$28 sps:$4 sm:$0xff]   ;;  %v9371_v4 = vld [vmem:[%s13024_s8 + $0xdc8] ss:$28 sps:$4 sm:$0xff]  }
 0x357   :  { %7235 = vmatpush1.bf16.msra.mxu1 %v9245_v13  ;;  %v9379_v13 = vld [vmem:[%s13024_s8 + $0x14] ss:$28 sps:$4 sm:$0xff]  }
 0x358   :  { %7236 = vmatprep.subr.bf16.mxu1 %v9250_v27  ;;  %7139 = vmatpush1.bf16.msra.mxu0 %v9305_v48  ;;  %v9284_v27 = vld [vmem:[%s13024_s8 + $0x890] ss:$28 sps:$4 sm:$0xff]  }
 0x359   :  { %7140 = vmatprep.subr.bf16.mxu0 %v9313_v49  ;;  %v9292_v48 = vld [vmem:[%s13024_s8 + $0x8cc] ss:$28 sps:$4 sm:$0xff]  }
 0x35a   :  { %v9290_v49 = vld [vmem:[%s13024_s8 + $0x8c8] ss:$28 sps:$4 sm:$0xff]  }
 0x35b   :  { %7237 = vmatpush1.bf16.msra.mxu1 %v9248_v58  ;;  %v9298_v58 = vld [vmem:[%s13024_s8 + $0x904] ss:$28 sps:$4 sm:$0xff]  }
 0x35c   :  { %7238 = vmatprep.subr.bf16.mxu1 %v9253_v57  ;;  %7141 = vmatpush1.bf16.msra.mxu0 %v9311_v59  ;;  %v9296_v57 = vld [vmem:[%s13024_s8 + $0x900] ss:$28 sps:$4 sm:$0xff]  }
 0x35d   :  { %7142 = vmatprep.subr.bf16.mxu0 %v9319_v34  ;;  %v9304_v59 = vld [vmem:[%s13024_s8 + $0x93c] ss:$28 sps:$4 sm:$0xff]  }
 0x35e   :  { %v9302_v34 = vld [vmem:[%s13024_s8 + $0x938] ss:$28 sps:$4 sm:$0xff]  }
 0x35f   :  { %7239 = vmatpush1.bf16.msra.mxu1 %v9251_v20  ;;  %v9310_v20 = vld [vmem:[%s13024_s8 + $0x974] ss:$28 sps:$4 sm:$0xff]  }
 0x360   :  { %7240 = vmatprep.subr.bf16.mxu1 %v9256_v62  ;;  %7143 = vmatpush1.bf16.msra.mxu0 %v9317_v63  ;;  %v9308_v62 = vld [vmem:[%s13024_s8 + $0x970] ss:$28 sps:$4 sm:$0xff]  }
 0x361   :  { %7144 = vmatprep.subr.bf16.mxu0 %v9325_v0  ;;  %v9316_v63 = vld [vmem:[%s13024_s8 + $0x9ac] ss:$28 sps:$4 sm:$0xff]  }
 0x362   :  { %v9314_v0 = vld [vmem:[%s13024_s8 + $0x9a8] ss:$28 sps:$4 sm:$0xff]  }
 0x363   :  { %7241 = vmatpush1.bf16.msra.mxu1 %v9254_v1  ;;  %v9322_v1 = vld [vmem:[%s13024_s8 + $0x9e4] ss:$28 sps:$4 sm:$0xff]  }
 0x364   :  { %7242 = vmatprep.subr.bf16.mxu1 %v9259_v2  ;;  %7145 = vmatpush1.bf16.msra.mxu0 %v9323_v21  ;;  %v9320_v2 = vld [vmem:[%s13024_s8 + $0x9e0] ss:$28 sps:$4 sm:$0xff]  }
 0x365   :  { %7146 = vmatprep.subr.bf16.mxu0 %v9331_v29  ;;  %v9328_v21 = vld [vmem:[%s13024_s8 + $0xa1c] ss:$28 sps:$4 sm:$0xff]  }
 0x366   :  { %v9326_v29 = vld [vmem:[%s13024_s8 + $0xa18] ss:$28 sps:$4 sm:$0xff]  }
 0x367   :  { %7243 = vmatpush1.bf16.msra.mxu1 %v9257_v3  ;;  %v9334_v3 = vld [vmem:[%s13024_s8 + $0xa54] ss:$28 sps:$4 sm:$0xff]  }
 0x368   :  { %7253 = vmatprep.subr.bf16.mxu1 %v9262_v6  ;;  %7147 = vmatpush1.bf16.msra.mxu0 %v9329_v7  ;;  %v9332_v6 = vld [vmem:[%s13024_s8 + $0xa50] ss:$28 sps:$4 sm:$0xff]  }
 0x369   :  { %7148 = vmatprep.subr.bf16.mxu0 %v9337_v8  ;;  %v9340_v7 = vld [vmem:[%s13024_s8 + $0xa8c] ss:$28 sps:$4 sm:$0xff]  }
 0x36a   :  { %7245 = vmatmul.mubr.bf16.vlgmr.msra.gmra.mrb[20].mxu1 %v11733_v45  ;;  %v9338_v8 = vld [vmem:[%s13024_s8 + $0xa88] ss:$28 sps:$4 sm:$0xff]  }
 0x36b   :  { %7254 = vmatpush1.bf16.msra.mxu1 %v9260_v9  ;;  %7285 = vmatprep.mubr.bf16.mxu1 %v11980_v31  ;;  %v9346_v9 = vld [vmem:[%s13024_s8 + $0xac4] ss:$28 sps:$4 sm:$0xff]  }
 0x36c   :  { %7255 = vmatprep.subr.bf16.mxu1 %v9265_v10  ;;  %7149 = vmatpush1.bf16.msra.mxu0 %v9335_v18  ;;  %v9344_v10 = vld [vmem:[%s13024_s8 + $0xac0] ss:$28 sps:$4 sm:$0xff]  }
 0x36d   :  { %7150 = vmatprep.subr.bf16.mxu0 %v9343_v11  ;;  %v9352_v18 = vld [vmem:[%s13024_s8 + $0xafc] ss:$28 sps:$4 sm:$0xff]  }
 0x36e   :  { %v9350_v11 = vld [vmem:[%s13024_s8 + $0xaf8] ss:$28 sps:$4 sm:$0xff]  }
 0x36f   :  { %7256 = vmatpush1.bf16.msra.mxu1 %v9263_v12  ;;  %v9358_v12 = vld [vmem:[%s13024_s8 + $0xb34] ss:$28 sps:$4 sm:$0xff]  }
 0x370   :  { %7257 = vmatprep.subr.bf16.mxu1 %v9268_v14  ;;  %7151 = vmatpush1.bf16.msra.mxu0 %v9341_v16  ;;  %v9356_v14 = vld [vmem:[%s13024_s8 + $0xb30] ss:$28 sps:$4 sm:$0xff]  }
 0x371   :  { %7152 = vmatprep.subr.bf16.mxu0 %v9349_v19  ;;  %v9364_v16 = vld [vmem:[%s13024_s8 + $0xb6c] ss:$28 sps:$4 sm:$0xff]  }
 0x372   :  { %v9362_v19 = vld [vmem:[%s13024_s8 + $0xb68] ss:$28 sps:$4 sm:$0xff]  }
 0x373   :  { %7258 = vmatpush1.bf16.msra.mxu1 %v9266_v22  ;;  %v9370_v22 = vld [vmem:[%s13024_s8 + $0xba4] ss:$28 sps:$4 sm:$0xff]  }
 0x374   :  { %7259 = vmatprep.subr.bf16.mxu1 %v9271_v24  ;;  %7153 = vmatpush1.bf16.msra.mxu0 %v9347_v25  ;;  %v1422_v24 = vrot.slane %v11959_v5, %v10480_v23  ;;  %v1426_v25 = vrot.slane %v11959_v5, %v1121_v40 }
 0x375   :  { %7154 = vmatprep.subr.bf16.mxu0 %v9355_v28  ;;  %v9368_v28 = vld [vmem:[%s13024_s8 + $0xba0] ss:$28 sps:$4 sm:$0xff]  }
 0x377   :  { %7260 = vmatpush1.bf16.msra.mxu1 %v9269_v15  ;;  %v9376_v15 = vld [vmem:[%s13024_s8 + $0xbdc] ss:$28 sps:$4 sm:$0xff]  }
 0x378   :  { %7261 = vmatprep.subr.bf16.mxu1 %v9274_v32  ;;  %7155 = vmatpush1.bf16.msra.mxu0 %v9353_v35 }
 0x379   :  { %7156 = vmatprep.subr.bf16.mxu0 %v9361_v36 }
 0x37b   :  { %7262 = vmatpush1.bf16.msra.mxu1 %v9272_v39 }
 0x37c   :  { %7263 = vmatprep.subr.bf16.mxu1 %v9277_v56  ;;  %7157 = vmatpush1.bf16.msra.mxu0 %v9359_v42  ;;  %v9382_v42 = vld [vmem:[%s13024_s8 + $0xc14] ss:$28 sps:$4 sm:$0xff]  }
 0x37d   :  { %7158 = vmatprep.subr.bf16.mxu0 %v9367_v38 }
 0x37f   :  { %7264 = vmatpush1.bf16.msra.mxu1 %v9275_v43 }
 0x380   :  { %7265 = vmatprep.subr.bf16.mxu1 %v9280_v60  ;;  %7159 = vmatpush1.bf16.msra.mxu0 %v9365_v51  ;;  %v9377_v60 = vld [vmem:[%s13024_s8 + $0x10] ss:$28 sps:$4 sm:$0xff]  }
 0x381   :  { %7160 = vmatprep.subr.bf16.mxu0 %v9373_v46  ;;  %v9380_v51 = vld [vmem:[%s13024_s8 + $0xc10] ss:$28 sps:$4 sm:$0xff]  }
 0x383   :  { %7266 = vmatpush1.bf16.msra.mxu1 %v9278_v17  ;;  %v9385_v17 = vld [vmem:[%s13024_s8 + $0x4c] ss:$28 sps:$4 sm:$0xff]  }
 0x384   :  { %7267 = vmatprep.subr.bf16.mxu1 %v9286_v47  ;;  %7161 = vmatpush1.bf16.msra.mxu0 %v9371_v4  ;;  %v9388_v47 = vld [vmem:[%s13024_s8 + $0xc4c] ss:$28 sps:$4 sm:$0xff]  }
 0x385   :  { %7335 = vmatprep.subr.bf16.mxu0 %v9379_v13  ;;  %v9383_v4 = vld [vmem:[%s13024_s8 + $0x48] ss:$28 sps:$4 sm:$0xff]  }
 0x386   :  { %v9386_v13 = vld [vmem:[%s13024_s8 + $0xc48] ss:$28 sps:$4 sm:$0xff]  }
 0x387   :  { %7268 = vmatpush1.bf16.msra.mxu1 %v9284_v27  ;;  %v9391_v27 = vld [vmem:[%s13024_s8 + $0x84] ss:$28 sps:$4 sm:$0xff]  }
 0x388   :  { %7269 = vmatprep.subr.bf16.mxu1 %v9292_v48  ;;  %v9394_v48 = vld [vmem:[%s13024_s8 + $0xc84] ss:$28 sps:$4 sm:$0xff]  }
 0x38b   :  { %7270 = vmatpush1.bf16.msra.mxu1 %v9290_v49  ;;  %v9389_v49 = vld [vmem:[%s13024_s8 + $0x80] ss:$28 sps:$4 sm:$0xff]  }
 0x38c   :  { %7271 = vmatprep.subr.bf16.mxu1 %v9298_v58  ;;  %v9392_v58 = vld [vmem:[%s13024_s8 + $0xc80] ss:$28 sps:$4 sm:$0xff]  }
 0x38f   :  { %7272 = vmatpush1.bf16.msra.mxu1 %v9296_v57  ;;  %v9397_v57 = vld [vmem:[%s13024_s8 + $0xbc] ss:$28 sps:$4 sm:$0xff]  }
 0x390   :  { %7273 = vmatprep.subr.bf16.mxu1 %v9304_v59  ;;  %v9400_v59 = vld [vmem:[%s13024_s8 + $0xcbc] ss:$28 sps:$4 sm:$0xff]  }
 0x393   :  { %7274 = vmatpush1.bf16.msra.mxu1 %v9302_v34  ;;  %v9395_v34 = vld [vmem:[%s13024_s8 + $0xb8] ss:$28 sps:$4 sm:$0xff]  }
 0x394   :  { %7275 = vmatprep.subr.bf16.mxu1 %v9310_v20  ;;  %v9398_v20 = vld [vmem:[%s13024_s8 + $0xcb8] ss:$28 sps:$4 sm:$0xff]  }
 0x397   :  { %7276 = vmatpush1.bf16.msra.mxu1 %v9308_v62  ;;  %v9403_v62 = vld [vmem:[%s13024_s8 + $0xf4] ss:$28 sps:$4 sm:$0xff]  }
 0x398   :  { %7277 = vmatprep.subr.bf16.mxu1 %v9316_v63  ;;  %v9406_v63 = vld [vmem:[%s13024_s8 + $0xcf4] ss:$28 sps:$4 sm:$0xff]  }
 0x39b   :  { %7278 = vmatpush1.bf16.msra.mxu1 %v9314_v0  ;;  %v9401_v0 = vld [vmem:[%s13024_s8 + $0xf0] ss:$28 sps:$4 sm:$0xff]  }
 0x39c   :  { %7279 = vmatprep.subr.bf16.mxu1 %v9322_v1  ;;  %v9404_v1 = vld [vmem:[%s13024_s8 + $0xcf0] ss:$28 sps:$4 sm:$0xff]  }
 0x39f   :  { %7280 = vmatpush1.bf16.msra.mxu1 %v9320_v2  ;;  %v9409_v2 = vld [vmem:[%s13024_s8 + $0x12c] ss:$28 sps:$4 sm:$0xff]  }
 0x3a0   :  { %7281 = vmatprep.subr.bf16.mxu1 %v9328_v21  ;;  %v9412_v21 = vld [vmem:[%s13024_s8 + $0xd2c] ss:$28 sps:$4 sm:$0xff]  }
 0x3a3   :  { %7282 = vmatpush1.bf16.msra.mxu1 %v9326_v29  ;;  %v9407_v29 = vld [vmem:[%s13024_s8 + $0x128] ss:$28 sps:$4 sm:$0xff]  }
 0x3a4   :  { %7283 = vmatprep.subr.bf16.mxu1 %v9334_v3  ;;  %v9410_v3 = vld [vmem:[%s13024_s8 + $0xd28] ss:$28 sps:$4 sm:$0xff]  }
 0x3a7   :  { %7284 = vmatpush1.bf16.msra.mxu1 %v9332_v6  ;;  %v9415_v6 = vld [vmem:[%s13024_s8 + $0x164] ss:$28 sps:$4 sm:$0xff]  }
 0x3a8   :  { %7294 = vmatprep.subr.bf16.mxu1 %v9340_v7  ;;  %v9418_v7 = vld [vmem:[%s13024_s8 + $0xd64] ss:$28 sps:$4 sm:$0xff]  }
 0x3aa   :  { %7286 = vmatmul.mubr.bf16.vlgmr.msra.gmra.mrb[20].mxu1 %v11988_v33 }
 0x3ab   :  { %7295 = vmatpush1.bf16.msra.mxu1 %v9338_v8  ;;  %v9413_v8 = vld [vmem:[%s13024_s8 + $0x160] ss:$28 sps:$4 sm:$0xff]  }
 0x3ac   :  { %7296 = vmatprep.subr.bf16.mxu1 %v9346_v9  ;;  %v9416_v9 = vld [vmem:[%s13024_s8 + $0xd60] ss:$28 sps:$4 sm:$0xff]  }
 0x3af   :  { %7297 = vmatpush1.bf16.msra.mxu1 %v9344_v10  ;;  %v9421_v10 = vld [vmem:[%s13024_s8 + $0x19c] ss:$28 sps:$4 sm:$0xff]  }
 0x3b0   :  { %7298 = vmatprep.subr.bf16.mxu1 %v9352_v18  ;;  %v9424_v18 = vld [vmem:[%s13024_s8 + $0xd9c] ss:$28 sps:$4 sm:$0xff]  }
 0x3b3   :  { %7299 = vmatpush1.bf16.msra.mxu1 %v9350_v11  ;;  %v9419_v11 = vld [vmem:[%s13024_s8 + $0x198] ss:$28 sps:$4 sm:$0xff]  }
 0x3b4   :  { %7300 = vmatprep.subr.bf16.mxu1 %v9358_v12  ;;  %v9422_v12 = vld [vmem:[%s13024_s8 + $0xd98] ss:$28 sps:$4 sm:$0xff]  }
 0x3b7   :  { %7301 = vmatpush1.bf16.msra.mxu1 %v9356_v14  ;;  %v9427_v14 = vld [vmem:[%s13024_s8 + $0x1d4] ss:$28 sps:$4 sm:$0xff]  }
 0x3b8   :  { %7302 = vmatprep.subr.bf16.mxu1 %v9364_v16  ;;  %v9430_v16 = vld [vmem:[%s13024_s8 + $0xdd4] ss:$28 sps:$4 sm:$0xff]  }
 0x3bb   :  { %7303 = vmatpush1.bf16.msra.mxu1 %v9362_v19  ;;  %v9425_v19 = vld [vmem:[%s13024_s8 + $0x1d0] ss:$28 sps:$4 sm:$0xff]  }
 0x3bc   :  { %7304 = vmatprep.subr.bf16.mxu1 %v9370_v22  ;;  %v9428_v22 = vld [vmem:[%s13024_s8 + $0xdd0] ss:$28 sps:$4 sm:$0xff]  }
 0x3bd   :  { %v4644_v32 = vpop.f32.mrb[16].mxu1 }
 0x3be   :  { %v8930_v35 = vadd.f32 %v4644_v32, %v1422_v24  ;;  %v4646_v36 = vpop.f32.mrb[17].mxu1  ;;  %v9433_v24 = vld [vmem:[%s13024_s8 + $0x20c] ss:$28 sps:$4 sm:$0xff]   ;;  %v9438_v32 = vld [vmem:[%s13024_s8 + $0x244] ss:$28 sps:$4 sm:$0xff]  }
 0x3bf   :  { %v8931_v39 = vadd.f32 %v4646_v36, %v1426_v25  ;;  %v4648_v56 = vpop.f32.mrb[18].mxu1  ;;  %7305 = vmatpush1.bf16.msra.mxu1 %v9368_v28  ;;  %v9434_v25 = vld [vmem:[%s13024_s8 + $0x1d8] ss:$28 sps:$4 sm:$0xff]   ;;  %v9431_v28 = vld [vmem:[%s13024_s8 + $0x208] ss:$28 sps:$4 sm:$0xff]  }
 0x3c0   :  { %v4657_v40 = vmax.f32 %v8930_v35, 0.0  ;;  %v4649_v5 = vpop.f32.mrb[19].mxu1  ;;  %7306 = vmatprep.subr.bf16.mxu1 %v9376_v15  ;;  %v9435_v15 = vld [vmem:[%s13024_s8 + $0x18] ss:$28 sps:$4 sm:$0xff]   ;;  %v9439_v35 = vld [vmem:[%s13024_s8 + $0x210] ss:$28 sps:$4 sm:$0xff]  }
 0x3c1   :  { %v4658_v38 = vmax.f32 %v8931_v39, 0.0  ;;  %v9436_v36 = vld [vmem:[%s13024_s8 + $0x240] ss:$28 sps:$4 sm:$0xff]   ;;  %v9440_v39 = vld [vmem:[%s13024_s8 + $0x50] ss:$28 sps:$4 sm:$0xff]  }
 0x3c2   :  { %v12287_v46 = vpack.c.bf16 %v4657_v40, %v4657_v40  ;;  %v9443_v56 = vld [vmem:[%s13024_s8 + $0x27c] ss:$28 sps:$4 sm:$0xff]   ;;  %v9448_v5 = vld [vmem:[%s13024_s8 + $0x2b4] ss:$28 sps:$4 sm:$0xff]  }
 0x3c3   :  { %v12279_v43 = vpack.c.bf16 %v4658_v38, %v4658_v38  ;;  %7307 = vmatpush1.bf16.msra.mxu1 %v9374_v50  ;;  %v9444_v50 = vld [vmem:[%s13024_s8 + $0x248] ss:$28 sps:$4 sm:$0xff]   ;;  %v9441_v40 = vld [vmem:[%s13024_s8 + $0x278] ss:$28 sps:$4 sm:$0xff]   ;;  %v9446_v38 = vld [vmem:[%s13024_s8 + $0x2b0] ss:$28 sps:$4 sm:$0xff]  }
 0x3c4   :  { %7308 = vmatprep.subr.bf16.mxu1 %v9382_v42  ;;  %v9449_v42 = vld [vmem:[%s13024_s8 + $0x280] ss:$28 sps:$4 sm:$0xff]  }
 0x3c5   :  { %7162 = vmatprep.mubr.bf16.mxu0 %v12279_v43  ;;  %7326 = vmatprep.mubr.bf16.mxu1 %v12279_v43 }
 0x3c6   :  { %7163 = vmatmul.mubr.bf16.vlgmr.msra.gmra.mrb[16].mxu0 %v12287_v46 }
 0x3c7   :  { %7336 = vmatpush1.bf16.msra.mxu0 %v9377_v60  ;;  %7309 = vmatpush1.bf16.msra.mxu1 %v9380_v51  ;;  %v9450_v60 = vld [vmem:[%s13024_s8 + $0xc0] ss:$28 sps:$4 sm:$0xff]   ;;  %v9453_v51 = vld [vmem:[%s13024_s8 + $0x2ec] ss:$28 sps:$4 sm:$0xff]  }
 0x3c8   :  { %7367 = vmatprep.mubr.bf16.mxu0 %v11343_v44  ;;  %7337 = vmatprep.subr.bf16.mxu0 %v9385_v17  ;;  %v9454_v17 = vld [vmem:[%s13024_s8 + $0x2b8] ss:$28 sps:$4 sm:$0xff]  }
 0x3c9   :  { %7310 = vmatprep.subr.bf16.mxu1 %v9388_v47  ;;  %v9451_v47 = vld [vmem:[%s13024_s8 + $0x2e8] ss:$28 sps:$4 sm:$0xff]  }
 0x3cb   :  { %7338 = vmatpush1.bf16.msra.mxu0 %v9383_v4  ;;  %7311 = vmatpush1.bf16.msra.mxu1 %v9386_v13  ;;  %v9455_v4 = vld [vmem:[%s13024_s8 + $0xf8] ss:$28 sps:$4 sm:$0xff]   ;;  %v9458_v13 = vld [vmem:[%s13024_s8 + $0x324] ss:$28 sps:$4 sm:$0xff]  }
 0x3cc   :  { %7339 = vmatprep.subr.bf16.mxu0 %v9391_v27  ;;  %7312 = vmatprep.subr.bf16.mxu1 %v9394_v48  ;;  %v9459_v27 = vld [vmem:[%s13024_s8 + $0x2f0] ss:$28 sps:$4 sm:$0xff]   ;;  %v9456_v48 = vld [vmem:[%s13024_s8 + $0x320] ss:$28 sps:$4 sm:$0xff]  }
 0x3cf   :  { %7340 = vmatpush1.bf16.msra.mxu0 %v9389_v49  ;;  %7313 = vmatpush1.bf16.msra.mxu1 %v9392_v58  ;;  %v9460_v49 = vld [vmem:[%s13024_s8 + $0x130] ss:$28 sps:$4 sm:$0xff]   ;;  %v9463_v58 = vld [vmem:[%s13024_s8 + $0x35c] ss:$28 sps:$4 sm:$0xff]  }
 0x3d0   :  { %7341 = vmatprep.subr.bf16.mxu0 %v9397_v57  ;;  %7314 = vmatprep.subr.bf16.mxu1 %v9400_v59  ;;  %v9464_v57 = vld [vmem:[%s13024_s8 + $0x328] ss:$28 sps:$4 sm:$0xff]   ;;  %v9461_v59 = vld [vmem:[%s13024_s8 + $0x358] ss:$28 sps:$4 sm:$0xff]  }
 0x3d3   :  { %7342 = vmatpush1.bf16.msra.mxu0 %v9395_v34  ;;  %7315 = vmatpush1.bf16.msra.mxu1 %v9398_v20  ;;  %v9465_v34 = vld [vmem:[%s13024_s8 + $0x168] ss:$28 sps:$4 sm:$0xff]   ;;  %v9468_v20 = vld [vmem:[%s13024_s8 + $0x394] ss:$28 sps:$4 sm:$0xff]  }
 0x3d4   :  { %7343 = vmatprep.subr.bf16.mxu0 %v9403_v62  ;;  %7316 = vmatprep.subr.bf16.mxu1 %v9406_v63  ;;  %v9469_v62 = vld [vmem:[%s13024_s8 + $0x360] ss:$28 sps:$4 sm:$0xff]   ;;  %v9466_v63 = vld [vmem:[%s13024_s8 + $0x390] ss:$28 sps:$4 sm:$0xff]  }
 0x3d7   :  { %7344 = vmatpush1.bf16.msra.mxu0 %v9401_v0  ;;  %7317 = vmatpush1.bf16.msra.mxu1 %v9404_v1  ;;  %v9470_v0 = vld [vmem:[%s13024_s8 + $0x1a0] ss:$28 sps:$4 sm:$0xff]   ;;  %v9473_v1 = vld [vmem:[%s13024_s8 + $0x3cc] ss:$28 sps:$4 sm:$0xff]  }
 0x3d8   :  { %7345 = vmatprep.subr.bf16.mxu0 %v9409_v2  ;;  %7318 = vmatprep.subr.bf16.mxu1 %v9412_v21  ;;  %v9474_v2 = vld [vmem:[%s13024_s8 + $0x558] ss:$28 sps:$4 sm:$0xff]   ;;  %v9471_v21 = vld [vmem:[%s13024_s8 + $0x3c8] ss:$28 sps:$4 sm:$0xff]  }
 0x3db   :  { %7346 = vmatpush1.bf16.msra.mxu0 %v9407_v29  ;;  %7319 = vmatpush1.bf16.msra.mxu1 %v9410_v3  ;;  %v9475_v29 = vld [vmem:[%s13024_s8 + $0x398] ss:$28 sps:$4 sm:$0xff]   ;;  %v9478_v3 = vld [vmem:[%s13024_s8 + $0x404] ss:$28 sps:$4 sm:$0xff]  }
 0x3dc   :  { %7347 = vmatprep.subr.bf16.mxu0 %v9415_v6  ;;  %7320 = vmatprep.subr.bf16.mxu1 %v9418_v7  ;;  %v9479_v6 = vld [vmem:[%s13024_s8 + $0x590] ss:$28 sps:$4 sm:$0xff]   ;;  %v9476_v7 = vld [vmem:[%s13024_s8 + $0x400] ss:$28 sps:$4 sm:$0xff]  }
 0x3df   :  { %7348 = vmatpush1.bf16.msra.mxu0 %v9413_v8  ;;  %7321 = vmatpush1.bf16.msra.mxu1 %v9416_v9  ;;  %v9480_v8 = vld [vmem:[%s13024_s8 + $0x3d0] ss:$28 sps:$4 sm:$0xff]   ;;  %v9483_v9 = vld [vmem:[%s13024_s8 + $0x43c] ss:$28 sps:$4 sm:$0xff]  }
 0x3e0   :  { %7349 = vmatprep.subr.bf16.mxu0 %v9421_v10  ;;  %7322 = vmatprep.subr.bf16.mxu1 %v9424_v18  ;;  %v9481_v10 = vld [vmem:[%s13024_s8 + $0x438] ss:$28 sps:$4 sm:$0xff]  }
 0x3e1   :  { %v9488_v18 = vld [vmem:[%s13024_s8 + $0x474] ss:$28 sps:$4 sm:$0xff]  }
 0x3e3   :  { %7350 = vmatpush1.bf16.msra.mxu0 %v9419_v11  ;;  %7323 = vmatpush1.bf16.msra.mxu1 %v9422_v12  ;;  %v9489_v11 = vld [vmem:[%s13024_s8 + $0x600] ss:$28 sps:$4 sm:$0xff]   ;;  %v9486_v12 = vld [vmem:[%s13024_s8 + $0x470] ss:$28 sps:$4 sm:$0xff]  }
 0x3e4   :  { %7351 = vmatprep.subr.bf16.mxu0 %v9427_v14  ;;  %7324 = vmatprep.subr.bf16.mxu1 %v9430_v16  ;;  %v9490_v14 = vld [vmem:[%s13024_s8 + $0x440] ss:$28 sps:$4 sm:$0xff]   ;;  %v9493_v16 = vld [vmem:[%s13024_s8 + $0x4ac] ss:$28 sps:$4 sm:$0xff]  }
 0x3e7   :  { %7352 = vmatpush1.bf16.msra.mxu0 %v9425_v19  ;;  %7325 = vmatpush1.bf16.msra.mxu1 %v9428_v22  ;;  %v9494_v19 = vld [vmem:[%s13024_s8 + $0x638] ss:$28 sps:$4 sm:$0xff]   ;;  %v9491_v22 = vld [vmem:[%s13024_s8 + $0x4a8] ss:$28 sps:$4 sm:$0xff]  }
 0x3e8   :  { %7353 = vmatprep.subr.bf16.mxu0 %v9433_v24  ;;  %8834 = vmatprep.subr.bf16.mxu1 %v9434_v25  ;;  %v9495_v24 = vld [vmem:[%s13024_s8 + $0x478] ss:$28 sps:$4 sm:$0xff]   ;;  %v9498_v25 = vld [vmem:[%s13024_s8 + $0x4e4] ss:$28 sps:$4 sm:$0xff]  }
 0x3ea   :  { %7327 = vmatmul.mubr.bf16.vlgmr.msra.gmra.mrb[20].mxu1 %v12287_v46 }
 0x3eb   :  { %7354 = vmatpush1.bf16.msra.mxu0 %v9431_v28  ;;  %8835 = vmatpush3.bf16.msra.mxu1 %v9435_v15  ;;  %v9499_v28 = vld [vmem:[%s13024_s8 + $0x670] ss:$28 sps:$4 sm:$0xff]   ;;  %v9496_v15 = vld [vmem:[%s13024_s8 + $0x4e0] ss:$28 sps:$4 sm:$0xff]  }
 0x3ec   :  { %7531 = vmatprep.mubr.bf16.mxu1 %v11343_v44  ;;  %7355 = vmatprep.subr.bf16.mxu0 %v9438_v32  ;;  %v9445_v44 = vld [vmem:[%s13024_s8 + $0x88] ss:$28 sps:$4 sm:$0xff]   ;;  %v9500_v32 = vld [vmem:[%s13024_s8 + $0x4b0] ss:$28 sps:$4 sm:$0xff]  }
 0x3ed   :  { %8836 = vmatprep.subr.bf16.mxu1 %v9439_v35  ;;  %v9503_v35 = vld [vmem:[%s13024_s8 + $0x51c] ss:$28 sps:$4 sm:$0xff]  }
 0x3ef   :  { %7356 = vmatpush1.bf16.msra.mxu0 %v9436_v36  ;;  %8837 = vmatpush3.bf16.msra.mxu1 %v9440_v39  ;;  %v9504_v36 = vld [vmem:[%s13024_s8 + $0x6a8] ss:$28 sps:$4 sm:$0xff]   ;;  %v9501_v39 = vld [vmem:[%s13024_s8 + $0x518] ss:$28 sps:$4 sm:$0xff]  }
 0x3f0   :  { %7357 = vmatprep.subr.bf16.mxu0 %v9443_v56  ;;  %8838 = vmatprep.subr.bf16.mxu1 %v9444_v50  ;;  %v9505_v56 = vld [vmem:[%s13024_s8 + $0x4e8] ss:$28 sps:$4 sm:$0xff]   ;;  %v9508_v50 = vld [vmem:[%s13024_s8 + $0x554] ss:$28 sps:$4 sm:$0xff]  }
 0x3f3   :  { %7358 = vmatpush1.bf16.msra.mxu0 %v9441_v40  ;;  %8839 = vmatpush3.bf16.msra.mxu1 %v9445_v44  ;;  %v9509_v40 = vld [vmem:[%s13024_s8 + $0x6e0] ss:$28 sps:$4 sm:$0xff]   ;;  %v9506_v44 = vld [vmem:[%s13024_s8 + $0x550] ss:$28 sps:$4 sm:$0xff]  }
 0x3f4   :  { %7359 = vmatprep.subr.bf16.mxu0 %v9448_v5  ;;  %8840 = vmatprep.subr.bf16.mxu1 %v9449_v42  ;;  %v9510_v5 = vld [vmem:[%s13024_s8 + $0x520] ss:$28 sps:$4 sm:$0xff]   ;;  %v9513_v42 = vld [vmem:[%s13024_s8 + $0x58c] ss:$28 sps:$4 sm:$0xff]  }
 0x3f7   :  { %7360 = vmatpush1.bf16.msra.mxu0 %v9446_v38  ;;  %8841 = vmatpush3.bf16.msra.mxu1 %v9450_v60  ;;  %v9514_v38 = vld [vmem:[%s13024_s8 + $0x8d8] ss:$28 sps:$4 sm:$0xff]   ;;  %v9511_v60 = vld [vmem:[%s13024_s8 + $0x588] ss:$28 sps:$4 sm:$0xff]  }
 0x3f8   :  { %7361 = vmatprep.subr.bf16.mxu0 %v9453_v51  ;;  %8842 = vmatprep.subr.bf16.mxu1 %v9454_v17  ;;  %v9515_v51 = vld [vmem:[%s13024_s8 + $0x718] ss:$28 sps:$4 sm:$0xff]   ;;  %v9518_v17 = vld [vmem:[%s13024_s8 + $0x5c4] ss:$28 sps:$4 sm:$0xff]  }
 0x3fb   :  { %7362 = vmatpush1.bf16.msra.mxu0 %v9451_v47  ;;  %8843 = vmatpush3.bf16.msra.mxu1 %v9455_v4  ;;  %v9519_v47 = vld [vmem:[%s13024_s8 + $0x910] ss:$28 sps:$4 sm:$0xff]   ;;  %v9516_v4 = vld [vmem:[%s13024_s8 + $0x5c0] ss:$28 sps:$4 sm:$0xff]  }
 0x3fc   :  { %7363 = vmatprep.subr.bf16.mxu0 %v9458_v13  ;;  %8844 = vmatprep.subr.bf16.mxu1 %v9459_v27  ;;  %v9520_v13 = vld [vmem:[%s13024_s8 + $0x750] ss:$28 sps:$4 sm:$0xff]   ;;  %v9523_v27 = vld [vmem:[%s13024_s8 + $0x5fc] ss:$28 sps:$4 sm:$0xff]  }
 0x3ff   :  { %7364 = vmatpush1.bf16.msra.mxu0 %v9456_v48  ;;  %8845 = vmatpush3.bf16.msra.mxu1 %v9460_v49  ;;  %v9524_v48 = vld [vmem:[%s13024_s8 + $0x948] ss:$28 sps:$4 sm:$0xff]   ;;  %v9521_v49 = vld [vmem:[%s13024_s8 + $0x5f8] ss:$28 sps:$4 sm:$0xff]  }
 0x400   :  { %7365 = vmatprep.subr.bf16.mxu0 %v9463_v58  ;;  %8846 = vmatprep.subr.bf16.mxu1 %v9464_v57  ;;  %v9525_v58 = vld [vmem:[%s13024_s8 + $0x788] ss:$28 sps:$4 sm:$0xff]   ;;  %v9528_v57 = vld [vmem:[%s13024_s8 + $0x634] ss:$28 sps:$4 sm:$0xff]  }
 0x403   :  { %7366 = vmatpush1.bf16.msra.mxu0 %v9461_v59  ;;  %8847 = vmatpush3.bf16.msra.mxu1 %v9465_v34  ;;  %v9529_v59 = vld [vmem:[%s13024_s8 + $0x980] ss:$28 sps:$4 sm:$0xff]   ;;  %v9526_v34 = vld [vmem:[%s13024_s8 + $0x630] ss:$28 sps:$4 sm:$0xff]  }
 0x404   :  { %7376 = vmatprep.subr.bf16.mxu0 %v9468_v20  ;;  %8848 = vmatprep.subr.bf16.mxu1 %v9469_v62  ;;  %v9530_v20 = vld [vmem:[%s13024_s8 + $0x7c0] ss:$28 sps:$4 sm:$0xff]   ;;  %v9533_v62 = vld [vmem:[%s13024_s8 + $0x66c] ss:$28 sps:$4 sm:$0xff]  }
 0x406   :  { %7368 = vmatmul.mubr.bf16.vlgmr.msra.gmra.mrb[20].mxu0 %v11532_v41 }
 0x407   :  { %7377 = vmatpush1.bf16.msra.mxu0 %v9466_v63  ;;  %7408 = vmatprep.mubr.bf16.mxu0 %v11622_v37  ;;  %v9534_v63 = vld [vmem:[%s13024_s8 + $0x9b8] ss:$28 sps:$4 sm:$0xff]  }
 0x408   :  { %8849 = vmatpush3.bf16.msra.mxu1 %v9470_v0  ;;  %7378 = vmatprep.subr.bf16.mxu0 %v9473_v1  ;;  %v9531_v0 = vld [vmem:[%s13024_s8 + $0x668] ss:$28 sps:$4 sm:$0xff]   ;;  %v9535_v1 = vld [vmem:[%s13024_s8 + $0x7f8] ss:$28 sps:$4 sm:$0xff]  }
 0x409   :  { %8856 = vmatprep.subr.bf16.mxu1 %v9474_v2  ;;  %v9538_v2 = vld [vmem:[%s13024_s8 + $0x6a4] ss:$28 sps:$4 sm:$0xff]  }
 0x40b   :  { %7379 = vmatpush1.bf16.msra.mxu0 %v9471_v21  ;;  %7532 = vmatmul.mubr.bf16.vlgmr.msra.gmra.mrb[24].mxu1 %v11532_v41  ;;  %v9484_v41 = vld [vmem:[%s13024_s8 + $0x5c8] ss:$28 sps:$4 sm:$0xff]   ;;  %v9539_v21 = vld [vmem:[%s13024_s8 + $0x9f0] ss:$28 sps:$4 sm:$0xff]  }
 0x40c   :  { %8857 = vmatpush3.bf16.msra.mxu1 %v9475_v29  ;;  %7571 = vmatprep.mubr.bf16.mxu1 %v11622_v37  ;;  %v9485_v37 = vld [vmem:[%s13024_s8 + $0x408] ss:$28 sps:$4 sm:$0xff]   ;;  %v9536_v29 = vld [vmem:[%s13024_s8 + $0x6a0] ss:$28 sps:$4 sm:$0xff]  }
 0x40d   :  { %7380 = vmatprep.subr.bf16.mxu0 %v9478_v3  ;;  %8858 = vmatprep.subr.bf16.mxu1 %v9479_v6  ;;  %v9540_v3 = vld [vmem:[%s13024_s8 + $0x830] ss:$28 sps:$4 sm:$0xff]   ;;  %v9543_v6 = vld [vmem:[%s13024_s8 + $0x6dc] ss:$28 sps:$4 sm:$0xff]  }
 0x40f   :  { %7381 = vmatpush1.bf16.msra.mxu0 %v9476_v7  ;;  %v9544_v7 = vld [vmem:[%s13024_s8 + $0xa28] ss:$28 sps:$4 sm:$0xff]  }
 0x410   :  { %8859 = vmatpush3.bf16.msra.mxu1 %v9480_v8  ;;  %7382 = vmatprep.subr.bf16.mxu0 %v9483_v9  ;;  %v9541_v8 = vld [vmem:[%s13024_s8 + $0x6d8] ss:$28 sps:$4 sm:$0xff]   ;;  %v9545_v9 = vld [vmem:[%s13024_s8 + $0x868] ss:$28 sps:$4 sm:$0xff]  }
 0x411   :  { %8860 = vmatprep.subr.bf16.mxu1 %v9484_v41  ;;  %v9548_v41 = vld [vmem:[%s13024_s8 + $0x714] ss:$28 sps:$4 sm:$0xff]  }
 0x413   :  { %7383 = vmatpush1.bf16.msra.mxu0 %v9481_v10  ;;  %v9549_v10 = vld [vmem:[%s13024_s8 + $0xa60] ss:$28 sps:$4 sm:$0xff]  }
 0x414   :  { %8861 = vmatpush3.bf16.msra.mxu1 %v9485_v37  ;;  %7384 = vmatprep.subr.bf16.mxu0 %v9488_v18  ;;  %v9546_v37 = vld [vmem:[%s13024_s8 + $0x710] ss:$28 sps:$4 sm:$0xff]   ;;  %v9550_v18 = vld [vmem:[%s13024_s8 + $0x8a0] ss:$28 sps:$4 sm:$0xff]  }
 0x415   :  { %8862 = vmatprep.subr.bf16.mxu1 %v9489_v11  ;;  %v9553_v11 = vld [vmem:[%s13024_s8 + $0x74c] ss:$28 sps:$4 sm:$0xff]  }
 0x417   :  { %7385 = vmatpush1.bf16.msra.mxu0 %v9486_v12  ;;  %v9554_v12 = vld [vmem:[%s13024_s8 + $0xc58] ss:$28 sps:$4 sm:$0xff]  }
 0x418   :  { %8863 = vmatpush3.bf16.msra.mxu1 %v9490_v14  ;;  %7386 = vmatprep.subr.bf16.mxu0 %v9493_v16  ;;  %v9551_v14 = vld [vmem:[%s13024_s8 + $0x748] ss:$28 sps:$4 sm:$0xff]   ;;  %v9555_v16 = vld [vmem:[%s13024_s8 + $0xa98] ss:$28 sps:$4 sm:$0xff]  }
 0x419   :  { %8864 = vmatprep.subr.bf16.mxu1 %v9494_v19  ;;  %v9558_v19 = vld [vmem:[%s13024_s8 + $0x784] ss:$28 sps:$4 sm:$0xff]  }
 0x41b   :  { %7387 = vmatpush1.bf16.msra.mxu0 %v9491_v22  ;;  %v9560_v22 = vld [vmem:[%s13024_s8 + $0xad0] ss:$28 sps:$4 sm:$0xff]  }
 0x41c   :  { %8865 = vmatpush3.bf16.msra.mxu1 %v9495_v24  ;;  %7388 = vmatprep.subr.bf16.mxu0 %v9498_v25  ;;  %v9563_v24 = vld [vmem:[%s13024_s8 + $0x7bc] ss:$28 sps:$4 sm:$0xff]   ;;  %v9564_v25 = vld [vmem:[%s13024_s8 + $0xcc8] ss:$28 sps:$4 sm:$0xff]  }
 0x41d   :  { %8866 = vmatprep.subr.bf16.mxu1 %v9499_v28  ;;  %v9561_v28 = vld [vmem:[%s13024_s8 + $0x7b8] ss:$28 sps:$4 sm:$0xff]  }
 0x41f   :  { %7389 = vmatpush1.bf16.msra.mxu0 %v9496_v15  ;;  %v9565_v15 = vld [vmem:[%s13024_s8 + $0xb08] ss:$28 sps:$4 sm:$0xff]  }
 0x420   :  { %8867 = vmatpush3.bf16.msra.mxu1 %v9500_v32  ;;  %7390 = vmatprep.subr.bf16.mxu0 %v9503_v35  ;;  %v9568_v32 = vld [vmem:[%s13024_s8 + $0x7f4] ss:$28 sps:$4 sm:$0xff]   ;;  %v9569_v35 = vld [vmem:[%s13024_s8 + $0xd00] ss:$28 sps:$4 sm:$0xff]  }
 0x421   :  { %8868 = vmatprep.subr.bf16.mxu1 %v9504_v36  ;;  %v9566_v36 = vld [vmem:[%s13024_s8 + $0x7f0] ss:$28 sps:$4 sm:$0xff]  }
 0x423   :  { %7391 = vmatpush1.bf16.msra.mxu0 %v9501_v39  ;;  %v9570_v39 = vld [vmem:[%s13024_s8 + $0xb40] ss:$28 sps:$4 sm:$0xff]  }
 0x424   :  { %8869 = vmatpush3.bf16.msra.mxu1 %v9505_v56  ;;  %7392 = vmatprep.subr.bf16.mxu0 %v9508_v50  ;;  %v9573_v56 = vld [vmem:[%s13024_s8 + $0x82c] ss:$28 sps:$4 sm:$0xff]   ;;  %v9574_v50 = vld [vmem:[%s13024_s8 + $0xd38] ss:$28 sps:$4 sm:$0xff]  }
 0x425   :  { %8870 = vmatprep.subr.bf16.mxu1 %v9509_v40  ;;  %v9571_v40 = vld [vmem:[%s13024_s8 + $0x828] ss:$28 sps:$4 sm:$0xff]  }
 0x427   :  { %7393 = vmatpush1.bf16.msra.mxu0 %v9506_v44  ;;  %v9575_v44 = vld [vmem:[%s13024_s8 + $0xb78] ss:$28 sps:$4 sm:$0xff]  }
 0x428   :  { %8871 = vmatpush3.bf16.msra.mxu1 %v9510_v5  ;;  %7394 = vmatprep.subr.bf16.mxu0 %v9513_v42  ;;  %v9578_v5 = vld [vmem:[%s13024_s8 + $0x864] ss:$28 sps:$4 sm:$0xff]   ;;  %v9579_v42 = vld [vmem:[%s13024_s8 + $0xd70] ss:$28 sps:$4 sm:$0xff]  }
 0x429   :  { %8878 = vmatprep.subr.bf16.mxu1 %v9514_v38  ;;  %v9576_v38 = vld [vmem:[%s13024_s8 + $0x860] ss:$28 sps:$4 sm:$0xff]  }
 0x42b   :  { %7395 = vmatpush1.bf16.msra.mxu0 %v9511_v60  ;;  %7572 = vmatmul.mubr.bf16.vlgmr.msra.gmra.mrb[28].mxu1 %v11733_v45  ;;  %v9580_v60 = vld [vmem:[%s13024_s8 + $0xbb0] ss:$28 sps:$4 sm:$0xff]  }
 0x42c   :  { %8879 = vmatpush3.bf16.msra.mxu1 %v9515_v51  ;;  %7611 = vmatprep.mubr.bf16.mxu1 %v11980_v31  ;;  %v9583_v51 = vld [vmem:[%s13024_s8 + $0x89c] ss:$28 sps:$4 sm:$0xff]  }
 0x42d   :  { %7396 = vmatprep.subr.bf16.mxu0 %v9518_v17  ;;  %8880 = vmatprep.subr.bf16.mxu1 %v9519_v47  ;;  %v9584_v17 = vld [vmem:[%s13024_s8 + $0xda8] ss:$28 sps:$4 sm:$0xff]   ;;  %v9581_v47 = vld [vmem:[%s13024_s8 + $0x898] ss:$28 sps:$4 sm:$0xff]  }
 0x42f   :  { %7397 = vmatpush1.bf16.msra.mxu0 %v9516_v4  ;;  %v9585_v4 = vld [vmem:[%s13024_s8 + $0xbe8] ss:$28 sps:$4 sm:$0xff]  }
 0x430   :  { %8881 = vmatpush3.bf16.msra.mxu1 %v9520_v13  ;;  %7398 = vmatprep.subr.bf16.mxu0 %v9523_v27  ;;  %v9588_v13 = vld [vmem:[%s13024_s8 + $0x8d4] ss:$28 sps:$4 sm:$0xff]   ;;  %v9589_v27 = vld [vmem:[%s13024_s8 + $0xde0] ss:$28 sps:$4 sm:$0xff]  }
 0x431   :  { %8882 = vmatprep.subr.bf16.mxu1 %v9524_v48  ;;  %v9586_v48 = vld [vmem:[%s13024_s8 + $0x8d0] ss:$28 sps:$4 sm:$0xff]  }
 0x433   :  { %7399 = vmatpush1.bf16.msra.mxu0 %v9521_v49  ;;  %v9590_v49 = vld [vmem:[%s13024_s8 + $0xc20] ss:$28 sps:$4 sm:$0xff]  }
 0x434   :  { %8883 = vmatpush3.bf16.msra.mxu1 %v9525_v58  ;;  %7400 = vmatprep.subr.bf16.mxu0 %v9528_v57  ;;  %v9593_v58 = vld [vmem:[%s13024_s8 + $0x90c] ss:$28 sps:$4 sm:$0xff]  }
 0x435   :  { %8884 = vmatprep.subr.bf16.mxu1 %v9529_v59  ;;  %v9591_v57 = vld [vmem:[%s13024_s8 + $0x908] ss:$28 sps:$4 sm:$0xff]  }
 0x436   :  { %v9596_v59 = vld [vmem:[%s13024_s8 + $0x944] ss:$28 sps:$4 sm:$0xff]  }
 0x437   :  { %7401 = vmatpush1.bf16.msra.mxu0 %v9526_v34  ;;  %v9594_v34 = vld [vmem:[%s13024_s8 + $0x940] ss:$28 sps:$4 sm:$0xff]  }
 0x438   :  { %8885 = vmatpush3.bf16.msra.mxu1 %v9530_v20  ;;  %7402 = vmatprep.subr.bf16.mxu0 %v9533_v62  ;;  %v9599_v20 = vld [vmem:[%s13024_s8 + $0x97c] ss:$28 sps:$4 sm:$0xff]  }
 0x439   :  { %8886 = vmatprep.subr.bf16.mxu1 %v9534_v63  ;;  %v9597_v62 = vld [vmem:[%s13024_s8 + $0x978] ss:$28 sps:$4 sm:$0xff]  }
 0x43a   :  { %v9602_v63 = vld [vmem:[%s13024_s8 + $0x9b4] ss:$28 sps:$4 sm:$0xff]  }
 0x43b   :  { %7403 = vmatpush1.bf16.msra.mxu0 %v9531_v0  ;;  %v9600_v0 = vld [vmem:[%s13024_s8 + $0x9b0] ss:$28 sps:$4 sm:$0xff]  }
 0x43c   :  { %8887 = vmatpush3.bf16.msra.mxu1 %v9535_v1  ;;  %7404 = vmatprep.subr.bf16.mxu0 %v9538_v2  ;;  %v9605_v1 = vld [vmem:[%s13024_s8 + $0x9ec] ss:$28 sps:$4 sm:$0xff]  }
 0x43d   :  { %8888 = vmatprep.subr.bf16.mxu1 %v9539_v21  ;;  %v9603_v2 = vld [vmem:[%s13024_s8 + $0x9e8] ss:$28 sps:$4 sm:$0xff]  }
 0x43e   :  { %v9608_v21 = vld [vmem:[%s13024_s8 + $0xa24] ss:$28 sps:$4 sm:$0xff]  }
 0x43f   :  { %7405 = vmatpush1.bf16.msra.mxu0 %v9536_v29  ;;  %v9606_v29 = vld [vmem:[%s13024_s8 + $0xa20] ss:$28 sps:$4 sm:$0xff]  }
 0x440   :  { %8889 = vmatpush3.bf16.msra.mxu1 %v9540_v3  ;;  %7406 = vmatprep.subr.bf16.mxu0 %v9543_v6  ;;  %v9611_v3 = vld [vmem:[%s13024_s8 + $0xa5c] ss:$28 sps:$4 sm:$0xff]  }
 0x441   :  { %8890 = vmatprep.subr.bf16.mxu1 %v9544_v7  ;;  %v9609_v6 = vld [vmem:[%s13024_s8 + $0xa58] ss:$28 sps:$4 sm:$0xff]  }
 0x442   :  { %v9614_v7 = vld [vmem:[%s13024_s8 + $0xa94] ss:$28 sps:$4 sm:$0xff]  }
 0x443   :  { %7407 = vmatpush1.bf16.msra.mxu0 %v9541_v8  ;;  %v9612_v8 = vld [vmem:[%s13024_s8 + $0xa90] ss:$28 sps:$4 sm:$0xff]  }
 0x444   :  { %8891 = vmatpush3.bf16.msra.mxu1 %v9545_v9  ;;  %7417 = vmatprep.subr.bf16.mxu0 %v9548_v41  ;;  %v9617_v9 = vld [vmem:[%s13024_s8 + $0xacc] ss:$28 sps:$4 sm:$0xff]  }
 0x445   :  { %8892 = vmatprep.subr.bf16.mxu1 %v9549_v10  ;;  %v9615_v41 = vld [vmem:[%s13024_s8 + $0xac8] ss:$28 sps:$4 sm:$0xff]  }
 0x446   :  { %7409 = vmatmul.mubr.bf16.vlgmr.msra.gmra.mrb[20].mxu0 %v11733_v45  ;;  %v9559_v45 = vld [vmem:[%s13024_s8 + $0xc90] ss:$28 sps:$4 sm:$0xff]   ;;  %v9620_v10 = vld [vmem:[%s13024_s8 + $0xb04] ss:$28 sps:$4 sm:$0xff]  }
 0x447   :  { %7418 = vmatpush1.bf16.msra.mxu0 %v9546_v37  ;;  %7449 = vmatprep.mubr.bf16.mxu0 %v11980_v31  ;;  %v9556_v31 = vld [vmem:[%s13024_s8 + $0x780] ss:$28 sps:$4 sm:$0xff]  }
 0x448   :  { %8893 = vmatpush3.bf16.msra.mxu1 %v9550_v18  ;;  %7419 = vmatprep.subr.bf16.mxu0 %v9553_v11  ;;  %v9618_v37 = vld [vmem:[%s13024_s8 + $0xb00] ss:$28 sps:$4 sm:$0xff]   ;;  %v9626_v18 = vld [vmem:[%s13024_s8 + $0xb74] ss:$28 sps:$4 sm:$0xff]  }
 0x449   :  { %8900 = vmatprep.subr.bf16.mxu1 %v9554_v12  ;;  %v9624_v11 = vld [vmem:[%s13024_s8 + $0xb70] ss:$28 sps:$4 sm:$0xff]   ;;  %v12863_v12 = vld [vmem:[%s13025_s9] sm:$0x7f] }
 0x44b   :  { %7420 = vmatpush1.bf16.msra.mxu0 %v9551_v14  ;;  %7612 = vmatmul.mubr.bf16.vlgmr.msra.gmra.mrb[32].mxu1 %v11988_v33  ;;  %v9629_v14 = vld [vmem:[%s13024_s8 + $0xbac] ss:$28 sps:$4 sm:$0xff]  }
 0x44c   :  { %8901 = vmatpush3.bf16.msra.mxu1 %v9555_v16  ;;  %7651 = vmatprep.mubr.bf16.mxu1 %v12279_v43  ;;  %v4671_v16 = vrot.slane %v12863_v12, %v10066_v52 }
 0x44d   :  { %7421 = vmatprep.subr.bf16.mxu0 %v9558_v19  ;;  %8902 = vmatprep.subr.bf16.mxu1 %v9559_v45  ;;  %v9627_v19 = vld [vmem:[%s13024_s8 + $0xba8] ss:$28 sps:$4 sm:$0xff]   ;;  %v4675_v45 = vrot.slane %v12863_v12, %v10072_v54 }
 0x44f   :  { %7422 = vmatpush1.bf16.msra.mxu0 %v9556_v31  ;;  %v9632_v31 = vld [vmem:[%s13024_s8 + $0xbe4] ss:$28 sps:$4 sm:$0xff]  }
 0x450   :  { %8903 = vmatpush3.bf16.msra.mxu1 %v9560_v22  ;;  %7423 = vmatprep.subr.bf16.mxu0 %v9563_v24 }
 0x451   :  { %8904 = vmatprep.subr.bf16.mxu1 %v9564_v25 }
 0x453   :  { %7424 = vmatpush1.bf16.msra.mxu0 %v9561_v28 }
 0x454   :  { %8905 = vmatpush3.bf16.msra.mxu1 %v9565_v15  ;;  %7425 = vmatprep.subr.bf16.mxu0 %v9568_v32  ;;  %v9630_v15 = vld [vmem:[%s13024_s8 + $0xbe0] ss:$28 sps:$4 sm:$0xff]  }
 0x455   :  { %8906 = vmatprep.subr.bf16.mxu1 %v9569_v35  ;;  %v9635_v35 = vld [vmem:[%s13024_s8 + $0xc1c] ss:$28 sps:$4 sm:$0xff]  }
 0x457   :  { %7426 = vmatpush1.bf16.msra.mxu0 %v9566_v36 }
 0x458   :  { %8907 = vmatpush3.bf16.msra.mxu1 %v9570_v39  ;;  %7427 = vmatprep.subr.bf16.mxu0 %v9573_v56 }
 0x459   :  { %8908 = vmatprep.subr.bf16.mxu1 %v9574_v50  ;;  %v9633_v50 = vld [vmem:[%s13024_s8 + $0xc18] ss:$28 sps:$4 sm:$0xff]  }
 0x45b   :  { %7428 = vmatpush1.bf16.msra.mxu0 %v9571_v40 }
 0x45c   :  { %8909 = vmatpush3.bf16.msra.mxu1 %v9575_v44  ;;  %7429 = vmatprep.subr.bf16.mxu0 %v9578_v5  ;;  %v9638_v44 = vld [vmem:[%s13024_s8 + $0xc54] ss:$28 sps:$4 sm:$0xff]  }
 0x45d   :  { %8910 = vmatprep.subr.bf16.mxu1 %v9579_v42  ;;  %v9636_v42 = vld [vmem:[%s13024_s8 + $0xc50] ss:$28 sps:$4 sm:$0xff]  }
 0x45f   :  { %7430 = vmatpush1.bf16.msra.mxu0 %v9576_v38  ;;  %v9641_v38 = vld [vmem:[%s13024_s8 + $0xc8c] ss:$28 sps:$4 sm:$0xff]  }
 0x460   :  { %8911 = vmatpush3.bf16.msra.mxu1 %v9580_v60  ;;  %7431 = vmatprep.subr.bf16.mxu0 %v9583_v51  ;;  %v9639_v60 = vld [vmem:[%s13024_s8 + $0xc88] ss:$28 sps:$4 sm:$0xff]  }
 0x461   :  { %8912 = vmatprep.subr.bf16.mxu1 %v9584_v17  ;;  %v9644_v51 = vld [vmem:[%s13024_s8 + $0xcc4] ss:$28 sps:$4 sm:$0xff]  }
 0x462   :  { %v9642_v17 = vld [vmem:[%s13024_s8 + $0xcc0] ss:$28 sps:$4 sm:$0xff]  }
 0x463   :  { %7432 = vmatpush1.bf16.msra.mxu0 %v9581_v47 }
 0x464   :  { %8913 = vmatpush3.bf16.msra.mxu1 %v9585_v4  ;;  %7433 = vmatprep.subr.bf16.mxu0 %v9588_v13  ;;  %v9647_v4 = vld [vmem:[%s13024_s8 + $0xcfc] ss:$28 sps:$4 sm:$0xff]  }
 0x465   :  { %8914 = vmatprep.subr.bf16.mxu1 %v9589_v27 }
 0x467   :  { %7434 = vmatpush1.bf16.msra.mxu0 %v9586_v48 }
 0x468   :  { %8915 = vmatpush3.bf16.msra.mxu1 %v9590_v49  ;;  %7435 = vmatprep.subr.bf16.mxu0 %v9593_v58  ;;  %v9645_v49 = vld [vmem:[%s13024_s8 + $0xcf8] ss:$28 sps:$4 sm:$0xff]  }
 0x469   :  { %v9650_v58 = vld [vmem:[%s13024_s8 + $0xd34] ss:$28 sps:$4 sm:$0xff]  }
 0x46b   :  { %7436 = vmatpush1.bf16.msra.mxu0 %v9591_v57  ;;  %7652 = vmatmul.mubr.bf16.vlgmr.msra.gmra.mrb[36].mxu1 %v12287_v46  ;;  %v9648_v57 = vld [vmem:[%s13024_s8 + $0xd30] ss:$28 sps:$4 sm:$0xff]  }
 0x46c   :  { %7437 = vmatprep.subr.bf16.mxu0 %v9596_v59  ;;  %v9653_v59 = vld [vmem:[%s13024_s8 + $0xd6c] ss:$28 sps:$4 sm:$0xff]  }
 0x46f   :  { %7438 = vmatpush1.bf16.msra.mxu0 %v9594_v34 }
 0x470   :  { %7439 = vmatprep.subr.bf16.mxu0 %v9599_v20 }
 0x473   :  { %7440 = vmatpush1.bf16.msra.mxu0 %v9597_v62  ;;  %v9651_v62 = vld [vmem:[%s13024_s8 + $0xd68] ss:$28 sps:$4 sm:$0xff]  }
 0x474   :  { %7441 = vmatprep.subr.bf16.mxu0 %v9602_v63  ;;  %v9656_v63 = vld [vmem:[%s13024_s8 + $0xda4] ss:$28 sps:$4 sm:$0xff]  }
 0x477   :  { %7442 = vmatpush1.bf16.msra.mxu0 %v9600_v0 }
 0x478   :  { %7443 = vmatprep.subr.bf16.mxu0 %v9605_v1 }
 0x47b   :  { %7444 = vmatpush1.bf16.msra.mxu0 %v9603_v2 }
 0x47c   :  { %7445 = vmatprep.subr.bf16.mxu0 %v9608_v21 }
 0x47f   :  { %7446 = vmatpush1.bf16.msra.mxu0 %v9606_v29  ;;  %v4679_v29 = vrot.slane %v12863_v12, %v10069_v53 }
 0x480   :  { %7447 = vmatprep.subr.bf16.mxu0 %v9611_v3 }
 0x483   :  { %7448 = vmatpush1.bf16.msra.mxu0 %v9609_v6 }
 0x484   :  { %7458 = vmatprep.subr.bf16.mxu0 %v9614_v7  ;;  %v9654_v7 = vld [vmem:[%s13024_s8 + $0xda0] ss:$28 sps:$4 sm:$0xff]  }
 0x486   :  { %7450 = vmatmul.mubr.bf16.vlgmr.msra.gmra.mrb[20].mxu0 %v11988_v33  ;;  %v9623_v33 = vld [vmem:[%s13024_s8 + $0xb3c] ss:$28 sps:$4 sm:$0xff]  }
 0x487   :  { %7459 = vmatpush1.bf16.msra.mxu0 %v9612_v8  ;;  %7490 = vmatprep.mubr.bf16.mxu0 %v12279_v43  ;;  %v9621_v43 = vld [vmem:[%s13024_s8 + $0xb38] ss:$28 sps:$4 sm:$0xff]   ;;  %v4683_v8 = vrot.slane %v12863_v12, %v10075_v55 }
 0x488   :  { %7460 = vmatprep.subr.bf16.mxu0 %v9617_v9 }
 0x48b   :  { %7461 = vmatpush1.bf16.msra.mxu0 %v9615_v41  ;;  %v9659_v41 = vld [vmem:[%s13024_s8 + $0xddc] ss:$28 sps:$4 sm:$0xff]  }
 0x48c   :  { %7462 = vmatprep.subr.bf16.mxu0 %v9620_v10 }
 0x48f   :  { %7463 = vmatpush1.bf16.msra.mxu0 %v9618_v37 }
 0x490   :  { %7464 = vmatprep.subr.bf16.mxu0 %v9623_v33 }
 0x493   :  { %7465 = vmatpush1.bf16.msra.mxu0 %v9621_v43 }
 0x494   :  { %7466 = vmatprep.subr.bf16.mxu0 %v9626_v18  ;;  %v7659_v18 = vld [vmem:[%s13019_s3] sm:$0xff] }
 0x497   :  { %7467 = vmatpush1.bf16.msra.mxu0 %v9624_v11 }
 0x498   :  { %7468 = vmatprep.subr.bf16.mxu0 %v9629_v14 }
 0x499   :  { %v7164_v22 = vpop.f32.mrb[16].mxu0 }
 0x49a   :  { %v12878_v24 = vadd.f32 %v7164_v22, %v4671_v16  ;;  %v7166_v25 = vpop.f32.mrb[17].mxu0  ;;  %v9657_v16 = vld [vmem:[%s13024_s8 + $0xdd8] ss:$28 sps:$4 sm:$0xff]  }
 0x49b   :  { %v12880_v28 = vadd.f32 %v7166_v25, %v4675_v45  ;;  %7469 = vmatpush1.bf16.msra.mxu0 %v9627_v19  ;;  %v7168_v52 = vpop.f32.mrb[18].mxu0 }
 0x49c   :  { %v7680_v32 = vand.u32 2147483647, %v12878_v24  ;;  %v7169_v54 = vpop.f32.mrb[19].mxu0  ;;  %7470 = vmatprep.subr.bf16.mxu0 %v9632_v31  ;;  %v7666_v34 = vsub.f32 0.0, %v12878_v24  ;;  %v7660_v31 = vld [vmem:[%s13019_s3 + $0x8] sm:$0xff] }
 0x49d   :  { %v7681_v36 = vand.u32 2147483647, %v12880_v28  ;;  %v7667_v20 = vsub.f32 0.0, %v12880_v28 }
 0x49e   :  { %v7687_v39 = vsub.f32 0.0, %v7680_v32  ;;  %v7673_v2 = vmax.f32 %v7666_v34, 0.0 }
 0x49f   :  { %v7688_v56 = vsub.f32 0.0, %v7681_v36  ;;  %7471 = vmatpush1.bf16.msra.mxu0 %v9630_v15  ;;  %v7674_v3 = vmax.f32 %v7667_v20, 0.0  ;;  %v7785_v36 = vsub.f32 1.0, %v7659_v18 }
 0x4a0   :  { %v7694_v40 = vmul.f32 1.442695, %v7687_v39  ;;  %7472 = vmatprep.subr.bf16.mxu0 %v9635_v35 }
 0x4a1   :  { %v7696_v5 = vmul.f32 1.442695, %v7688_v56 }
 0x4a2   :  { %9660 = vpow2.f32 %v7694_v40 }
 0x4a3   :  { %9662 = vpow2.f32 %v7696_v5  ;;  %7473 = vmatpush1.bf16.msra.mxu0 %v9633_v50 }
 0x4a4   :  { %7474 = vmatprep.subr.bf16.mxu0 %v9638_v44 }
 0x4a7   :  { %7475 = vmatpush1.bf16.msra.mxu0 %v9636_v42 }
 0x4a8   :  { %7476 = vmatprep.subr.bf16.mxu0 %v9641_v38 }
 0x4ab   :  { %7477 = vmatpush1.bf16.msra.mxu0 %v9639_v60 }
 0x4ac   :  { %v9661_v47 = vpop.eup %9660  ;;  %7478 = vmatprep.subr.bf16.mxu0 %v9644_v51 }
 0x4ad   :  { %v9663_v13 = vpop.eup %9662  ;;  %v7708_v27 = vadd.f32 1.0, %v9661_v47 }
 0x4ae   :  { %v7709_v48 = vadd.f32 1.0, %v9663_v13 }
 0x4af   :  { %9664 = vlog2.f32 %v7708_v27  ;;  %7479 = vmatpush1.bf16.msra.mxu0 %v9642_v17 }
 0x4b0   :  { %9666 = vlog2.f32 %v7709_v48  ;;  %7480 = vmatprep.subr.bf16.mxu0 %v9647_v4 }
 0x4b3   :  { %7481 = vmatpush1.bf16.msra.mxu0 %v9645_v49 }
 0x4b4   :  { %7482 = vmatprep.subr.bf16.mxu0 %v9650_v58 }
 0x4b7   :  { %7483 = vmatpush1.bf16.msra.mxu0 %v9648_v57 }
 0x4b8   :  { %7484 = vmatprep.subr.bf16.mxu0 %v9653_v59 }
 0x4b9   :  { %v9665_v0 = vpop.eup %9664 }
 0x4ba   :  { %v9667_v1 = vpop.eup %9666  ;;  %v7716_v21 = vmul.f32 0.6931472, %v9665_v0 }
 0x4bb   :  { %v7718_v6 = vmul.f32 0.6931472, %v9667_v1  ;;  %7485 = vmatpush1.bf16.msra.mxu0 %v9651_v62 }
 0x4bc   :  { %v7729_v9 = vadd.f32 %v7716_v21, %v7673_v2  ;;  %7486 = vmatprep.subr.bf16.mxu0 %v9656_v63 }
 0x4bd   :  { %v7730_v10 = vadd.f32 %v7718_v6, %v7674_v3  ;;  %v7328_v37 = vpop.f32.mrb[20].mxu1 }
 0x4be   :  { %v7736_v33 = vsub.f32 0.0, %v7729_v9  ;;  %v12944_v53 = vadd.f32 %v7328_v37, %v4679_v29  ;;  %v7330_v43 = vpop.f32.mrb[21].mxu1  ;;  %v7661_v9 = vld [vmem:[%s13019_s3 + $0x10] sm:$0xff] }
 0x4bf   :  { %v7737_v11 = vsub.f32 0.0, %v7730_v10  ;;  %v12949_v14 = vadd.f32 %v7330_v43, %v4683_v8  ;;  %7487 = vmatpush1.bf16.msra.mxu0 %v9654_v7  ;;  %v7332_v55 = vpop.f32.mrb[22].mxu1 }
 0x4c0   :  { %v7743_v19 = vmax.f32 %v7736_v33, -13.815511  ;;  %v7757_v45 = vsub.f32 %v7736_v33, %v12878_v24  ;;  %v7682_v22 = vand.u32 2147483647, %v12944_v53  ;;  %v7333_v25 = vpop.f32.mrb[23].mxu1  ;;  %7488 = vmatprep.subr.bf16.mxu0 %v9659_v41  ;;  %v7786_v24 = vsub.f32 1.0, %v7660_v31 }
 0x4c1   :  { %v7744_v52 = vmax.f32 %v7737_v11, -13.815511  ;;  %v7758_v15 = vsub.f32 %v7737_v11, %v12880_v28  ;;  %v7683_v32 = vand.u32 2147483647, %v12949_v14  ;;  %v7668_v57 = vsub.f32 0.0, %v12944_v53  ;;  %v7662_v33 = vld [vmem:[%s13019_s3 + $0x18] sm:$0xff] }
 0x4c2   :  { %v7750_v54 = vmin.f32 %v7743_v19, -1.0000005e-06  ;;  %v7764_v35 = vmax.f32 %v7757_v45, -13.815511  ;;  %v7689_v39 = vsub.f32 0.0, %v7682_v22  ;;  %v7669_v59 = vsub.f32 0.0, %v12949_v14 }
 0x4c3   :  { %v7751_v56 = vmin.f32 %v7744_v52, -1.0000005e-06  ;;  %v7765_v50 = vmax.f32 %v7758_v15, -13.815511  ;;  %v7690_v40 = vsub.f32 0.0, %v7683_v32  ;;  %7489 = vmatpush1.bf16.msra.mxu0 %v9657_v16  ;;  %v7675_v62 = vmax.f32 %v7668_v57, 0.0 }
 0x4c4   :  { %v7771_v44 = vmin.f32 %v7764_v35, -1.0000005e-06  ;;  %v7698_v5 = vmul.f32 1.442695, %v7689_v39  ;;  %v7778_v60 = vmul.f32 %v7750_v54, %v7659_v18  ;;  %v7676_v0 = vmax.f32 %v7669_v59, 0.0 }
 0x4c5   :  { %v7772_v42 = vmin.f32 %v7765_v50, -1.0000005e-06  ;;  %v7700_v38 = vmul.f32 1.442695, %v7690_v40  ;;  %v7779_v28 = vmul.f32 %v7751_v56, %v7660_v31  ;;  %v7787_v16 = vsub.f32 1.0, %v7661_v9 }
 0x4c6   :  { %v7792_v51 = vmul.f32 %v7785_v36, %v7771_v44  ;;  %9668 = vpow2.f32 %v7698_v5  ;;  %7491 = vmatmul.mubr.bf16.vlgmr.msra.gmra.mrb[20].mxu0 %v12287_v46  ;;  %v7788_v31 = vsub.f32 1.0, %v7662_v33  ;;  %v7811_v59 = vmul.f32 %v9824_v26, %v9824_v26 }
 0x4c7   :  { %v7793_v17 = vmul.f32 %v7786_v24, %v7772_v42  ;;  %9670 = vpow2.f32 %v7700_v38 }
 0x4c8   :  { %v7799_v47 = vadd.f32 %v7792_v51, %v7778_v60 }
 0x4c9   :  { %v7800_v4 = vadd.f32 %v7793_v17, %v7779_v28 }
 0x4cb   :  { %v7817_v13 = vadd.f32 %v7800_v4, %v7799_v47 }
 0x4d0   :  { %v9669_v27 = vpop.eup %9668 }
 0x4d1   :  { %v9671_v48 = vpop.eup %9670  ;;  %v7710_v49 = vadd.f32 1.0, %v9669_v27 }
 0x4d2   :  { %v7711_v58 = vadd.f32 1.0, %v9671_v48 }
 0x4d3   :  { %9672 = vlog2.f32 %v7710_v49 }
 0x4d4   :  { %9674 = vlog2.f32 %v7711_v58 }
 0x4dd   :  { %v9673_v34 = vpop.eup %9672 }
 0x4de   :  { %v9675_v20 = vpop.eup %9674  ;;  %v7720_v46 = vmul.f32 0.6931472, %v9673_v34  ;;  %v8850_v63 = vpop.f32.mrb[24].mxu1 }
 0x4df   :  { %v7722_v1 = vmul.f32 0.6931472, %v9675_v20  ;;  %v8851_v2 = vpop.f32.mrb[25].mxu1  ;;  %v7812_v20 = vsel %vm44_vm0, %v7811_v59, 0.0 }
 0x4e0   :  { %v7731_v21 = vadd.f32 %v7720_v46, %v7675_v62  ;;  %v8852_v29 = vadd.f32 %v8851_v2, %v8850_v63  ;;  %v8853_v3 = vpop.f32.mrb[26].mxu1 }
 0x4e1   :  { %v7732_v6 = vadd.f32 %v7722_v1, %v7676_v0  ;;  %v8854_v7 = vpop.f32.mrb[27].mxu1  ;;  %v4687_v0 = vrot.slane %v12863_v12, %v10269_v30  ;;  %v4691_v1 = vrot.slane %v12863_v12, %v10086_v61 }
 0x4e2   :  { %v7738_v8 = vsub.f32 0.0, %v7731_v21 }
 0x4e3   :  { %v7739_v41 = vsub.f32 0.0, %v7732_v6 }
 0x4e4   :  { %v7745_v10 = vmax.f32 %v7738_v8, -13.815511  ;;  %v7759_v37 = vsub.f32 %v7738_v8, %v12944_v53 }
 0x4e5   :  { %v7746_v43 = vmax.f32 %v7739_v41, -13.815511  ;;  %v7760_v18 = vsub.f32 %v7739_v41, %v12949_v14  ;;  %v4695_v14 = vrot.slane %v12863_v12, %v10480_v23  ;;  %v9691_v23 = vld [vmem:[%s13016_s0] sm:$0xff] }
 0x4e6   :  { %v7752_v11 = vmin.f32 %v7745_v10, -1.0000005e-06  ;;  %v7766_v55 = vmax.f32 %v7759_v37, -13.815511  ;;  %v7806_v57 = vmul.f32 %v9691_v23, %v9691_v23 }
 0x4e7   :  { %v7753_v19 = vmin.f32 %v7746_v43, -1.0000005e-06  ;;  %v7767_v45 = vmax.f32 %v7760_v18, -13.815511  ;;  %v7534_v24 = vadd.f32 %v8852_v29, %v4695_v14 }
 0x4e8   :  { %v7773_v22 = vmin.f32 %v7766_v55, -1.0000005e-06  ;;  %v7780_v52 = vmul.f32 %v7752_v11, %v7661_v9  ;;  %v7807_v34 = vsel %vm44_vm0, %v7806_v57, 0.0 }
 0x4e9   :  { %v7774_v25 = vmin.f32 %v7767_v45, -1.0000005e-06  ;;  %v7781_v54 = vmul.f32 %v7753_v19, %v7662_v33  ;;  %7808 = vadd.xlane.f32.xlu0 %v7807_v34 }
 0x4ea   :  { %v7794_v15 = vmul.f32 %v7787_v16, %v7773_v22 }
 0x4eb   :  { %v7795_v32 = vmul.f32 %v7788_v31, %v7774_v25 }
 0x4ec   :  { %v7801_v53 = vadd.f32 %v7794_v15, %v7780_v52 }
 0x4ed   :  { %v7802_v35 = vadd.f32 %v7795_v32, %v7781_v54  ;;  %7813 = vadd.xlane.f32.xlu0 %v7812_v20 }
 0x4ee   :  { %v7818_v36 = vadd.f32 %v7817_v13, %v7801_v53 }
 0x4f0   :  { %v12972_v39 = vadd.f32 %v7818_v36, %v7802_v35 }
 0x4fe   :  { %v8872_v56 = vpop.f32.mrb[28].mxu1 }
 0x4ff   :  { %v8873_v50 = vpop.f32.mrb[29].mxu1 }
 0x500   :  { %v8874_v40 = vadd.f32 %v8873_v50, %v8872_v56  ;;  %v8875_v44 = vpop.f32.mrb[30].mxu1 }
 0x501   :  { %v8876_v5 = vpop.f32.mrb[31].mxu1 }
 0x502   :  { %v7574_v42 = vadd.f32 %v8874_v40, %v7534_v24  ;;  %v7665_v40 = vld [vmem:[%s13019_s3 + $0x30] sm:$0xff]  ;;  %v7663_v5 = vld [vmem:[%s13019_s3 + $0x20] sm:$0xff] }
 0x51e   :  { %v8894_v38 = vpop.f32.mrb[32].mxu1 }
 0x51f   :  { %v8895_v60 = vpop.f32.mrb[33].mxu1 }
 0x520   :  { %v8896_v51 = vadd.f32 %v8895_v60, %v8894_v38  ;;  %v8897_v28 = vpop.f32.mrb[34].mxu1 }
 0x521   :  { %v8898_v17 = vpop.f32.mrb[35].mxu1  ;;  %v9692_v28 = vld [vmem:[%s13018_s2] sm:$0xff]  ;;  %s9718_s2 = smov [#allocation2]  }
 0x522   :  { %v7614_v47 = vadd.f32 %v8896_v51, %v7574_v42  ;;  %v7664_v42 = vld [vmem:[%s13019_s3 + $0x28] sm:$0xff]  ;;  %s7842_s3 = sshll.u32 %s9718_s2, 4  ;;  %s7843_s3 = int_to_ptr.vmem [resolvable:$true] %s7842_s3 }
 0x523   :  { %s9693_s29 = scalar_lea.vmem %s7843_s3, 128  ;;  %p9698_p1 = scmp.lt.s32.totalorder %s7843_s3, %s7843_s3 }
 0x524   :  { %p9694_p0 = scmp.ne.s32.totalorder %s7843_s3, %s9693_s29  ;;  %p9699_p2 = scmp.lt.s32.totalorder %s9693_s29, %s9693_s29 }
 0x526   :  { %p9700_p3 = por %p9699_p2, %p9698_p1 }
 0x528   :  { %p9701_p4 = pnand %p9700_p3, %p9694_p0 }
 0x53e   :  { %v8916_v4 = vpop.f32.mrb[36].mxu1 }
 0x53f   :  { %v8917_v13 = vpop.f32.mrb[37].mxu1 }
 0x540   :  { %v8918_v27 = vadd.f32 %v8917_v13, %v8916_v4  ;;  %v8919_v48 = vpop.f32.mrb[38].mxu1  ;;  %v7791_v13 = vsub.f32 1.0, %v7665_v40 }
 0x541   :  { %v8920_v49 = vpop.f32.mrb[39].mxu1 }
 0x542   :  { %v7654_v58 = vadd.f32 %v8918_v27, %v7614_v47  ;;  %v7789_v49 = vsub.f32 1.0, %v7663_v5 }
 0x544   :  { %v7686_v62 = vand.u32 2147483647, %v7654_v58  ;;  %v7672_v18 = vsub.f32 0.0, %v7654_v58 }
 0x546   :  { %v7693_v46 = vsub.f32 0.0, %v7686_v62  ;;  %v7679_v19 = vmax.f32 %v7672_v18, 0.0 }
 0x548   :  { %v7706_v63 = vmul.f32 1.442695, %v7693_v46 }
 0x54a   :  { %9676 = vpow2.f32 %v7706_v63 }
 0x554   :  { %v9677_v2 = vpop.eup %9676 }
 0x555   :  { %v7714_v7 = vadd.f32 1.0, %v9677_v2 }
 0x557   :  { %9678 = vlog2.f32 %v7714_v7 }
 0x561   :  { %v9679_v30 = vpop.eup %9678 }
 0x562   :  { %v7728_v11 = vmul.f32 0.6931472, %v9679_v30 }
 0x564   :  { %v7735_v45 = vadd.f32 %v7728_v11, %v7679_v19 }
 0x566   :  { %v7742_v31 = vsub.f32 0.0, %v7735_v45 }
 0x568   :  { %v7763_v15 = vsub.f32 %v7742_v31, %v7654_v58  ;;  %v7749_v38 = vmax.f32 %v7742_v31, -13.815511  ;;  %v7790_v58 = vsub.f32 1.0, %v7664_v42 }
 0x56a   :  { %v7770_v50 = vmax.f32 %v7763_v15, -13.815511  ;;  %v7756_v59 = vmin.f32 %v7749_v38, -1.0000005e-06 }
 0x56c   :  { %v7777_v4 = vmin.f32 %v7770_v50, -1.0000005e-06 }
 0x56e   :  { %v7798_v62 = vmul.f32 %v7791_v13, %v7777_v4 }
 0x599   :  { %v7492_v21 = vpop.f32.mrb[20].mxu0 }
 0x59a   :  { %v8936_v29 = vadd.f32 %v7492_v21, %v4687_v0  ;;  %v7494_v26 = vpop.f32.mrb[21].mxu0 }
 0x59b   :  { %v8937_v3 = vadd.f32 %v7494_v26, %v4691_v1  ;;  %v7496_v6 = vpop.f32.mrb[22].mxu0  ;;  %v7784_v1 = vmul.f32 %v7756_v59, %v7665_v40 }
 0x59c   :  { %v7684_v8 = vand.u32 2147483647, %v8936_v29  ;;  %v7497_v9 = vpop.f32.mrb[23].mxu0  ;;  %v7670_v22 = vsub.f32 0.0, %v8936_v29 }
 0x59d   :  { %v7685_v41 = vand.u32 2147483647, %v8937_v3  ;;  %v7671_v25 = vsub.f32 0.0, %v8937_v3  ;;  %v7805_v26 = vadd.f32 %v7798_v62, %v7784_v1 }
 0x59e   :  { %v7691_v10 = vsub.f32 0.0, %v7684_v8  ;;  %v7677_v54 = vmax.f32 %v7670_v22, 0.0 }
 0x59f   :  { %v7692_v37 = vsub.f32 0.0, %v7685_v41  ;;  %v7678_v35 = vmax.f32 %v7671_v25, 0.0  ;;  %v7823_v8 = vsel %vm7822_vm1, %v7805_v26, 0.0 }
 0x5a0   :  { %v7702_v33 = vmul.f32 1.442695, %v7691_v10 }
 0x5a1   :  { %v7704_v43 = vmul.f32 1.442695, %v7692_v37 }
 0x5a2   :  { %9680 = vpow2.f32 %v7702_v33 }
 0x5a3   :  { %9682 = vpow2.f32 %v7704_v43 }
 0x5ac   :  { %v9681_v61 = vpop.eup %9680 }
 0x5ad   :  { %v9683_v12 = vpop.eup %9682  ;;  %v7712_v55 = vadd.f32 1.0, %v9681_v61 }
 0x5ae   :  { %v7713_v16 = vadd.f32 1.0, %v9683_v12 }
 0x5af   :  { %9684 = vlog2.f32 %v7712_v55 }
 0x5b0   :  { %9686 = vlog2.f32 %v7713_v16 }
 0x5b1   :  { %9688 = vlog2.f32 %v9692_v28 }
 0x5b9   :  { %v9685_v52 = vpop.eup %9684 }
 0x5ba   :  { %v9687_v32 = vpop.eup %9686  ;;  %v7724_v53 = vmul.f32 0.6931472, %v9685_v52 }
 0x5bb   :  { %v7726_v36 = vmul.f32 0.6931472, %v9687_v32 }
 0x5bc   :  { %v7733_v14 = vadd.f32 %v7724_v53, %v7677_v54 }
 0x5bd   :  { %v7734_v56 = vadd.f32 %v7726_v36, %v7678_v35 }
 0x5be   :  { %v7740_v24 = vsub.f32 0.0, %v7733_v14 }
 0x5bf   :  { %v7741_v44 = vsub.f32 0.0, %v7734_v56 }
 0x5c0   :  { %v7747_v60 = vmax.f32 %v7740_v24, -13.815511  ;;  %v7761_v51 = vsub.f32 %v7740_v24, %v8936_v29 }
 0x5c1   :  { %v7762_v17 = vsub.f32 %v7741_v44, %v8937_v3  ;;  %v7748_v47 = vmax.f32 %v7741_v44, -13.815511  ;;  %v9689_v3 = vpop.eup %9688 }
 0x5c2   :  { %v7754_v27 = vmin.f32 %v7747_v60, -1.0000005e-06  ;;  %v7768_v48 = vmax.f32 %v7761_v51, -13.815511  ;;  %v7829_v9 = vmul.f32 0.6931472, %v9689_v3 }
 0x5c3   :  { %v7769_v23 = vmax.f32 %v7762_v17, -13.815511  ;;  %v7755_v57 = vmin.f32 %v7748_v47, -1.0000005e-06 }
 0x5c4   :  { %v7775_v34 = vmin.f32 %v7768_v48, -1.0000005e-06  ;;  %v7782_v46 = vmul.f32 %v7754_v27, %v7663_v5  ;;  %v7830_v10 = vsel %vm44_vm0, %v7829_v9, 0.0 }
 0x5c5   :  { %v7776_v20 = vmin.f32 %v7769_v23, -1.0000005e-06  ;;  %v7783_v0 = vmul.f32 %v7755_v57, %v7664_v42 }
 0x5c6   :  { %v7796_v63 = vmul.f32 %v7789_v49, %v7775_v34 }
 0x5c7   :  { %v7797_v2 = vmul.f32 %v7790_v58, %v7776_v20 }
 0x5c8   :  { %v7803_v21 = vadd.f32 %v7796_v63, %v7782_v46 }
 0x5c9   :  { %v7804_v29 = vadd.f32 %v7797_v2, %v7783_v0 }
 0x5ca   :  { %v7820_v6 = vadd.f32 %v12972_v39, %v7803_v21 }
 0x5cc   :  { %v7821_v7 = vadd.f32 %v7820_v6, %v7804_v29 }
 0x5ce   :  { %v7824_v41 = vadd.f32 %v7823_v8, %v7821_v7 }
 0x5d0   :  { %7825 = vadd.xlane.f32.xlu1 %v7824_v41 }
 0x5d4   :  { %7831 = vadd.xlane.f32.xlu1 %v7830_v10 }
 0x5d5   :  { %9704 = shalt.err (!%p9701_p4)
}
 0x5d6   :  { %s9705_s13 = scalar_lea.hbm %s13026_s10, 128 }
 0x5d7   :  { %p9706_p5 = scmp.ne.s32.totalorder %s13026_s10, %s9705_s13  ;;  %p9709_p6 = scmp.lt.u32.totalorder %s9705_s13, %s13026_s10 }
 0x5d9   :  { %p9711_p7 = pnand %p9709_p6, %p9706_p5 }
 0x5db   :  { %9714 = shalt.err (!%p9711_p7)
}
 0x5dc   :  { %7845 = dma.vmem_to_hbm [thread:$0]  %s7843_s3, 128, %s13026_s10, [#allocation3]   ;;  %v7809_v39 = vpop.xlane.xlu0 %7808  ;;  %vm7834_vm2 = vcmask 7168  }
 0x5dd   :  { %v7810_v33 = vmul.f32 0.5, %v7809_v39 }
 0x5e0   :  { %v7814_v37 = vpop.xlane.xlu0 %7813 }
 0x5e1   :  { %v7815_v43 = vmul.f32 0.5, %v7814_v37 }
 0x5e3   :  { %v7816_v18 = vsub.f32 %v7810_v33, %v7815_v43 }
 0x65d   :  { %v7826_v30 = vpop.xlane.xlu1 %7825 }
 0x65e   :  { %v7827_v61 = vadd.f32 %v7826_v30, %v7816_v18 }
 0x661   :  { %v7832_v12 = vpop.xlane.xlu1 %7831 }
 0x662   :  { %v7833_v11 = vadd.f32 %v7832_v12, %v7827_v61 }
 0x664   :  { %7835 = vst.msk [vmem:[%s13027_s11] sm:$0xff] %vm7834_vm2, %v7833_v11 }
 0x665   :  { %9715 = dma.done.wait [#allocation3], 128  }
 0x666   :  { %9716 = vsyncadd [#allocation3], 4294967168 }
 0x667   :  { %7853 = vsyncpa [#allocation3], 1 }

</bundles_post_ra>
